<compile_context>
chip_gen: v7x
topology: tpu7x:2x2x1
jax: 0.10.0
libtpu: 0.0.40
codegen_flags: <defaults>
</compile_context>

<pallas_src>
import functools
import math

import jax
import jax.numpy as jnp
from jax.experimental import pallas as pl
from jax.experimental.pallas import tpu as pltpu

_LANE_TILE = 512                 # lane-dim tile used only when M is large
_VMEM_LIMIT = 64 * 1024 * 1024   # headroom for large-K single-block GEMMs


def _round_up(x, m):
    return (x + m - 1) // m * m


def _apply_act(y, act):
    if act == "relu":
        return jnp.maximum(y, 0.0)
    if act == "leaky_relu":
        return jnp.where(y >= 0.0, y, 0.01 * y)   # PyTorch LeakyReLU default
    return y


# --------------------------------------------------------------------------
# GEMM kernels (1x1 convs, FTB conv1d via small im2col, fused conv2+residual)
# --------------------------------------------------------------------------
def _gemm_kernel(w_ref, x_ref, b_ref, o_ref, *, act):
    y = jnp.dot(w_ref[...], x_ref[...], preferred_element_type=jnp.float32)
    o_ref[...] = _apply_act(y + b_ref[...], act).astype(o_ref.dtype)


def gemm_cm(w, x, b, act="none"):
    """y = act(w @ x + b).  w:(N,K), x:(K,M), b:(N,1) -> (N,M).  Lane dim = M."""
    N, K = w.shape
    _, M = x.shape
    if M <= 2 * _LANE_TILE:
        tm, Mp = M, M
    else:
        tm = _LANE_TILE
        Mp = _round_up(M, tm)
        x = jnp.pad(x, ((0, 0), (0, Mp - M)))
    out = pl.pallas_call(
        functools.partial(_gemm_kernel, act=act),
        out_shape=jax.ShapeDtypeStruct((N, Mp), jnp.float32),
        grid=(Mp // tm,),
        in_specs=[
            pl.BlockSpec((N, K), lambda i: (0, 0)),
            pl.BlockSpec((K, tm), lambda i: (0, i)),
            pl.BlockSpec((N, 1), lambda i: (0, 0)),
        ],
        out_specs=pl.BlockSpec((N, tm), lambda i: (0, i)),
        compiler_params=pltpu.CompilerParams(
            dimension_semantics=("parallel",),
            vmem_limit_bytes=_VMEM_LIMIT),
    )(w, x, b)
    return out if Mp == M else out[:, :M]


def _gemm2_kernel(wa_ref, xa_ref, wb_ref, xb_ref, b_ref, *rest, act, has_res):
    if has_res:
        res_ref, o_ref = rest
    else:
        (o_ref,) = rest
    y = jnp.dot(wa_ref[...], xa_ref[...], preferred_element_type=jnp.float32)
    y = y + jnp.dot(wb_ref[...], xb_ref[...], preferred_element_type=jnp.float32)
    y = _apply_act(y + b_ref[...], act)
    if has_res:
        y = y + res_ref[...]
    o_ref[...] = y.astype(o_ref.dtype)


def gemm2_cm(wa, xa, wb, xb, b, act="none", residual=None):
    """y = act(wa@xa + wb@xb + b) [+ residual].  Fuses the FTB channel-concat
    1x1 conv and (optionally) the TFS residual add into one kernel."""
    N, Ka = wa.shape
    _, M = xa.shape
    Kb = wb.shape[1]
    has_res = residual is not None
    if M <= 2 * _LANE_TILE:
        tm, Mp = M, M
    else:
        tm = _LANE_TILE
        Mp = _round_up(M, tm)
        xa = jnp.pad(xa, ((0, 0), (0, Mp - M)))
        xb = jnp.pad(xb, ((0, 0), (0, Mp - M)))
        if has_res:
            residual = jnp.pad(residual, ((0, 0), (0, Mp - M)))
    in_specs = [
        pl.BlockSpec((N, Ka), lambda i: (0, 0)),
        pl.BlockSpec((Ka, tm), lambda i: (0, i)),
        pl.BlockSpec((N, Kb), lambda i: (0, 0)),
        pl.BlockSpec((Kb, tm), lambda i: (0, i)),
        pl.BlockSpec((N, 1), lambda i: (0, 0)),
    ]
    args = [wa, xa, wb, xb, b]
    if has_res:
        in_specs.append(pl.BlockSpec((N, tm), lambda i: (0, i)))
        args.append(residual)
    out = pl.pallas_call(
        functools.partial(_gemm2_kernel, act=act, has_res=has_res),
        out_shape=jax.ShapeDtypeStruct((N, Mp), jnp.float32),
        grid=(Mp // tm,),
        in_specs=in_specs,
        out_specs=pl.BlockSpec((N, tm), lambda i: (0, i)),
        compiler_params=pltpu.CompilerParams(
            dimension_semantics=("parallel",),
            vmem_limit_bytes=_VMEM_LIMIT),
    )(*args)
    return out if Mp == M else out[:, :M]


def _attmul_freqfc_kernel(x_ref, h_ref, w_ref, o_ref):
    # per-channel c:  freq[d, m] = sum_e Wfc[d, e] * (h[m] * x[e, m])
    att = x_ref[0] * h_ref[0]                                   # (D, M)
    o_ref[0] = jnp.dot(w_ref[...], att, preferred_element_type=jnp.float32)


def attmul_freqfc(x3, h2, wfc):
    """Fused FTB attention-multiply + freq_fc.
    x3:(C,D,M), h2:(C,M), wfc:(D,D) -> (C,D,M)."""
    C, D, M = x3.shape
    h3 = h2.reshape(C, 1, M)
    return pl.pallas_call(
        _attmul_freqfc_kernel,
        out_shape=jax.ShapeDtypeStruct((C, D, M), jnp.float32),
        grid=(C,),
        in_specs=[
            pl.BlockSpec((1, D, M), lambda c: (c, 0, 0)),
            pl.BlockSpec((1, 1, M), lambda c: (c, 0, 0)),
            pl.BlockSpec((D, D), lambda c: (0, 0)),
        ],
        out_specs=pl.BlockSpec((1, D, M), lambda c: (c, 0, 0)),
        compiler_params=pltpu.CompilerParams(
            dimension_semantics=("parallel",),
            vmem_limit_bytes=_VMEM_LIMIT),
    )(x3, h3, wfc)


# --------------------------------------------------------------------------
# KxK convolution: in-kernel tap accumulation (no HBM im2col blow-up)
# --------------------------------------------------------------------------
def _conv_taps_kernel(*refs, kh, kw, T, act):
    # refs = (w_taps, bias, x_shift_0, ..., x_shift_{kh-1}, out)
    w_ref, b_ref = refs[0], refs[1]
    x_refs = refs[2:2 + kh]
    o_ref = refs[2 + kh]
    cout = o_ref.shape[2]
    acc = jnp.zeros((cout, T), jnp.float32)
    for i in range(kh):
        xi = x_refs[i][0, 0]                         # (Cin, T + kw - 1)
        for j in range(kw):
            patch = xi[:, j:j + T] if kw > 1 else xi  # static lane window
            acc = acc + jnp.dot(w_ref[i * kw + j], patch,
                                preferred_element_type=jnp.float32)
    o_ref[0, 0] = _apply_act(acc + b_ref[...], act).astype(o_ref.dtype)


def conv2d_taps_bd(x, p, act):
    """'same' Conv2d (odd kernel, stride 1) + folded BN + act on a D-major
    layout.  x:(B, D, Cin, T) -> (B, D, Cout, T).
    The kh row-shifts are kh BlockSpec views of the same padded buffer; the
    kw time-shifts are in-kernel lane slices -> no patch matrix in HBM."""
    wtaps, b, kh, kw = p["wtaps"], p["b"], p["kh"], p["kw"]
    B, D, Cin, T = x.shape
    Cout = wtaps.shape[1]
    ph, pw = kh // 2, kw // 2
    xp = jnp.pad(x, ((0, 0), (ph, ph), (0, 0), (pw, pw)))    # (B, Dp, Cin, Tp)
    Tp = T + kw - 1
    in_specs = [pl.BlockSpec((kh * kw, Cout, Cin), lambda bi, d: (0, 0, 0)),
                pl.BlockSpec((Cout, 1), lambda bi, d: (0, 0))]
    in_specs += [pl.BlockSpec((1, 1, Cin, Tp),
                              lambda bi, d, i=i: (bi, d + i, 0, 0))
                 for i in range(kh)]
    return pl.pallas_call(
        functools.partial(_conv_taps_kernel, kh=kh, kw=kw, T=T, act=act),
        out_shape=jax.ShapeDtypeStruct((B, D, Cout, T), jnp.float32),
        grid=(B, D),
        in_specs=in_specs,
        out_specs=pl.BlockSpec((1, 1, Cout, T), lambda bi, d: (bi, d, 0, 0)),
        compiler_params=pltpu.CompilerParams(
            dimension_semantics=("parallel", "parallel"),
            vmem_limit_bytes=_VMEM_LIMIT),
    )(wtaps, b, *([xp] * kh))


# --------------------------------------------------------------------------
# GEMM-based conv (1x1 convs and tiny-Cin entry conv) in (C, D, B, T) layout
# --------------------------------------------------------------------------
def conv2d_gemm_cm(x, p, act):
    """x:(Cin, D, B, T) channels-major; 'same' padding, stride 1; BN folded."""
    wmat, b, kh, kw = p["wflat"], p["b"], p["kh"], p["kw"]
    C, D, B, T = x.shape
    M = D * B * T
    if kh == 1 and kw == 1:
        pat = x.reshape(C, M)
    else:
        # Only used where Cin is tiny (entry 1x7 conv with Cin=1), so the
        # im2col copy is negligible; big convs use conv2d_taps_bd instead.
        ph, pw = kh // 2, kw // 2
        xp = jnp.pad(x, ((0, 0), (ph, ph), (0, 0), (pw, pw)))
        taps = [xp[:, i:i + D, :, j:j + T]
                for i in range(kh) for j in range(kw)]
        pat = jnp.stack(taps, axis=1).reshape(C * kh * kw, M)
    y = gemm_cm(wmat, pat, b, act)
    return y.reshape(-1, D, B, T)


# --------------------------------------------------------------------------
# Model forward (FTB / TFS_AttConv / TF_Domain_Noise), layout (C, D, B, T)
# --------------------------------------------------------------------------
def ftb_forward(x, p, residual=None):
    C, D, B, T = x.shape
    M = D * B * T
    xf = x.reshape(C, M)
    # conv1: 1x1 (C -> r) + BN + ReLU
    h1 = gemm_cm(p["conv1"]["wflat"], xf, p["conv1"]["b"], act="relu")  # (r,M)
    r = h1.shape[0]
    # Conv1d(r*D -> C, k=9, pad=4) + BN + ReLU (small im2col along T only)
    # TODO(synk): this 9-tap im2col is still built by XLA; it is ~kh*kw x a
    # (r*D, B*T) matrix, which is small relative to the big convs.
    z = h1.reshape(r * D, B, T)
    zp = jnp.pad(z, ((0, 0), (0, 0), (4, 4)))
    pat = jnp.stack([zp[:, :, j:j + T] for j in range(9)], axis=1)
    pat = pat.reshape(r * D * 9, B * T)
    h2 = gemm_cm(p["conv1d"]["wflat"], pat, p["conv1d"]["b"], act="relu")
    # attention multiply (broadcast over D) + freq_fc, fused in one kernel
    freq = attmul_freqfc(x.reshape(C, D, B * T), h2, p["freq_fc_w"])
    # conv2 over concat([att, x], channel) as two fused GEMMs (+ residual)
    out = gemm2_cm(p["conv2_wa"], freq.reshape(C, M),
                   p["conv2_wb"], xf,
                   p["conv2_b"], act="relu", residual=residual)
    return out.reshape(C, D, B, T)


def tfs_forward(x, p, residual=None):
    h = ftb_forward(x, p["ftb1"])                        # (C, D, B, T)
    hd = jnp.transpose(h, (2, 1, 0, 3))                  # (B, D, C, T)
    hd = conv2d_taps_bd(hd, p["c1"], "leaky_relu")       # 5x5
    hd = conv2d_taps_bd(hd, p["c2"], "leaky_relu")       # 1x25
    hd = conv2d_taps_bd(hd, p["c3"], "leaky_relu")       # 5x5
    h = jnp.transpose(hd, (2, 1, 0, 3))                  # (C, D, B, T)
    h = ftb_forward(h, p["ftb2"], residual=residual)     # fused s[0] + s[-1]
    return h


def tf_domain_noise_forward(amp, params):
    # amp: (B, 1, D, T) NCHW  ->  internal channels-major (C, D, B, T)
    x = jnp.transpose(amp, (1, 2, 0, 3))
    h = conv2d_gemm_cm(x, params["ac1a"], "leaky_relu")           # 1x7, Cin=1
    hd = jnp.transpose(h, (2, 1, 0, 3))                           # (B, D, C, T)
    sd = conv2d_taps_bd(hd, params["ac1b"], "leaky_relu")         # 7x1
    spec = jnp.transpose(sd, (2, 1, 0, 3))                        # (C, D, B, T)
    C, D, B, T = spec.shape
    res = spec.reshape(C, D * B * T)
    s1 = tfs_forward(spec, params["tfss"][0], residual=res)  # tfs0(spec)+spec
    s2 = tfs_forward(s1, params["tfss"][1], residual=res)    # tfs1(.)  +spec
    s3 = tfs_forward(s2, params["tfss"][2], residual=None)
    y = conv2d_gemm_cm(s3, params["ac2"], "leaky_relu")           # (1,D,B,T)
    return jnp.transpose(y, (2, 0, 1, 3))                         # (B,1,D,T)


# --------------------------------------------------------------------------
# Deterministic parameter init (BatchNorm eval-mode, folded into conv weights)
# --------------------------------------------------------------------------
def _fold_bn(w, b, gamma, beta, mean, var, eps=1e-5):
    scale = gamma / jnp.sqrt(var + eps)
    w_f = w * scale[:, None, None, None]
    b_f = (b - mean) * scale + beta
    return w_f, b_f


def _init_conv_bn(key, cout, cin, kh, kw):
    k = jax.random.split(key, 6)
    fan_in = cin * kh * kw
    w = jax.random.normal(k[0], (cout, cin, kh, kw), jnp.float32) * \
        math.sqrt(2.0 / fan_in)
    b = 0.01 * jax.random.normal(k[1], (cout,), jnp.float32)
    gamma = 1.0 + 0.1 * jax.random.normal(k[2], (cout,), jnp.float32)
    beta = 0.1 * jax.random.normal(k[3], (cout,), jnp.float32)
    mean = 0.05 * jax.random.normal(k[4], (cout,), jnp.float32)
    var = 0.9 + 0.2 * jax.random.uniform(k[5], (cout,), jnp.float32)
    w_f, b_f = _fold_bn(w, b, gamma, beta, mean, var)
    # Pre-reshape once at init for both conv paths (no per-call relayouts).
    return {
        "wflat": w_f.reshape(cout, cin * kh * kw),                 # GEMM path
        "wtaps": jnp.transpose(w_f, (2, 3, 0, 1)).reshape(kh * kw, cout, cin),
        "b": b_f.reshape(cout, 1),
        "kh": kh, "kw": kw,
    }


def init_params(key, channel_amp, input_dim, r_channel):
    keys = iter(jax.random.split(key, 64))
    C, D, r = channel_amp, input_dim, r_channel

    def conv_bn(cout, cin, kh, kw):
        return _init_conv_bn(next(keys), cout, cin, kh, kw)

    def ftb():
        c1 = conv_bn(r, C, 1, 1)
        c1d = conv_bn(C, r * D, 1, 9)        # Conv1d treated as a (1,9) conv
        fc = jax.random.normal(next(keys), (D, D), jnp.float32) / math.sqrt(D)
        c2 = conv_bn(C, 2 * C, 1, 1)
        return {
            "conv1": c1, "conv1d": c1d, "freq_fc_w": fc,
            # concat order in FTB is [att, inputs] -> split the 1x1 conv2
            "conv2_wa": c2["wflat"][:, :C], "conv2_wb": c2["wflat"][:, C:],
            "conv2_b": c2["b"],
        }

    def tfs():
        return {"ftb1": ftb(),
                "c1": conv_bn(C, C, 5, 5),
                "c2": conv_bn(C, C, 1, 25),
                "c3": conv_bn(C, C, 5, 5),
                "ftb2": ftb()}

    return {"ac1a": conv_bn(C, 1, 1, 7),
            "ac1b": conv_bn(C, C, 7, 1),
            "tfss": [tfs() for _ in range(3)],
            "ac2": conv_bn(1, C, 1, 1)}


# --------------------------------------------------------------------------
if __name__ == "__main__":
    # Small, forward-consistent shapes: amp is [B, 1, Dim, Time].
    B, D, T = 1, 16, 8
    CHANNEL_AMP = 8     # module default 96, scaled down
    R_CHANNEL = 5       # FTB default

    key = jax.random.PRNGKey(0)
    pkey, xkey = jax.random.split(key)
    params = init_params(pkey, channel_amp=CHANNEL_AMP, input_dim=D,
                         r_channel=R_CHANNEL)
    amp = jax.random.normal(xkey, (B, 1, D, T), jnp.float32)

    fwd = jax.jit(lambda a: tf_domain_noise_forward(a, params))
    out = fwd(amp)
    jax.block_until_ready(out)
    assert out.shape == (B, 1, D, T), out.shape
    assert out.dtype == jnp.float32
    # TODO(synk): BatchNorm uses eval-mode running statistics (folded into the
    # conv GEMMs); training-mode batch statistics are not reproduced.
    print("KERNEL_OK")
</pallas_src>

<mosaic_0001>
module attributes {stable_mosaic.version = 11 : i64} {
  func.func @_gemm_kernel(%arg0: i32, %arg1: memref<8x7xf32, #tpu.memory_space<vmem>>, %arg2: memref<7x128xf32, #tpu.memory_space<vmem>>, %arg3: memref<8x1xf32, #tpu.memory_space<vmem>>, %arg4: memref<8x128xf32, #tpu.memory_space<vmem>>) attributes {dimension_semantics = [#tpu.dimension_semantics<parallel>], iteration_bounds = array<i64: 1>, scalar_prefetch = 0 : i64, scratch_operands = 0 : i64, tpu.core_type = #tpu.core_type<tc>, window_params = [{pipeline_mode = #tpu.pipeline_mode<synchronous>, transform_indices = @transform_0, window_bounds = array<i64: 8, 7>}, {transform_indices = @transform_1, window_bounds = array<i64: 7, 128>}, {pipeline_mode = #tpu.pipeline_mode<synchronous>, transform_indices = @transform_2, window_bounds = array<i64: 8, 1>}, {transform_indices = @transform_3, window_bounds = array<i64: 8, 128>}]} {
    %c0 = arith.constant 0 : index
    %c0_0 = arith.constant 0 : index
    %0 = vector.load %arg1[%c0, %c0_0] : memref<8x7xf32, #tpu.memory_space<vmem>>, vector<8x7xf32>
    %c0_1 = arith.constant 0 : index
    %c0_2 = arith.constant 0 : index
    %1 = vector.load %arg2[%c0_1, %c0_2] : memref<7x128xf32, #tpu.memory_space<vmem>>, vector<7x128xf32>
    %cst = arith.constant dense<0.000000e+00> : vector<8x128xf32>
    %2 = tpu.matmul %0, %1, %cst {dimension_numbers = #tpu.dot_dimension_numbers<[1], [0], [0], [1], [0, 0, 1, 1], [], []>} : vector<8x7xf32>, vector<7x128xf32>, vector<8x128xf32> -> vector<8x128xf32>
    %c0_3 = arith.constant 0 : index
    %c0_4 = arith.constant 0 : index
    %3 = vector.load %arg3[%c0_3, %c0_4] : memref<8x1xf32, #tpu.memory_space<vmem>>, vector<8x1xf32>
    %4 = vector.broadcast %3 : vector<8x1xf32> to vector<8x128xf32>
    %5 = arith.addf %2, %4 : vector<8x128xf32>
    %cst_5 = arith.constant 0.000000e+00 : f32
    %6 = vector.broadcast %cst_5 : f32 to vector<8x128xf32>
    %7 = arith.cmpf oge, %5, %6 : vector<8x128xf32>
    %cst_6 = arith.constant 0.00999999977 : f32
    %8 = vector.broadcast %cst_6 : f32 to vector<8x128xf32>
    %9 = arith.mulf %8, %5 : vector<8x128xf32>
    %10 = arith.select %7, %5, %9 : vector<8x128xi1>, vector<8x128xf32>
    %c0_7 = arith.constant 0 : index
    %c0_8 = arith.constant 0 : index
    %11 = vector.load %arg4[%c0_7, %c0_8] : memref<8x128xf32, #tpu.memory_space<vmem>>, vector<8x128xf32>
    tpu.vector_store %arg4[%c0_7, %c0_8], %10 {strides = array<i32>} : memref<8x128xf32, #tpu.memory_space<vmem>>, vector<8x128xf32>,
    return
  }
  func.func @transform_0(%arg0: i32) -> (i32, i32) {
    %c0_i32 = arith.constant 0 : i32
    %c0_i32_0 = arith.constant 0 : i32
    %c0_i32_1 = arith.constant 0 : i32
    return %c0_i32, %c0_i32_0 : i32, i32
  }
  func.func @transform_1(%arg0: i32) -> (i32, i32) {
    %c0_i32 = arith.constant 0 : i32
    %c0_i32_0 = arith.constant 0 : i32
    return %c0_i32, %arg0 : i32, i32
  }
  func.func @transform_2(%arg0: i32) -> (i32, i32) {
    %c0_i32 = arith.constant 0 : i32
    %c0_i32_0 = arith.constant 0 : i32
    %c0_i32_1 = arith.constant 0 : i32
    return %c0_i32, %c0_i32_0 : i32, i32
  }
  func.func @transform_3(%arg0: i32) -> (i32, i32) {
    %c0_i32 = arith.constant 0 : i32
    %c0_i32_0 = arith.constant 0 : i32
    return %c0_i32, %arg0 : i32, i32
  }
}

module attributes {stable_mosaic.version = 11 : i64} {
  func.func @_conv_taps_kernel(%arg0: i32, %arg1: i32, %arg2: memref<7x8x8xf32, #tpu.memory_space<vmem>>, %arg3: memref<8x1xf32, #tpu.memory_space<vmem>>, %arg4: memref<1x1x8x8xf32, #tpu.memory_space<vmem>>, %arg5: memref<1x1x8x8xf32, #tpu.memory_space<vmem>>, %arg6: memref<1x1x8x8xf32, #tpu.memory_space<vmem>>, %arg7: memref<1x1x8x8xf32, #tpu.memory_space<vmem>>, %arg8: memref<1x1x8x8xf32, #tpu.memory_space<vmem>>, %arg9: memref<1x1x8x8xf32, #tpu.memory_space<vmem>>, %arg10: memref<1x1x8x8xf32, #tpu.memory_space<vmem>>, %arg11: memref<1x1x8x8xf32, #tpu.memory_space<vmem>>) attributes {dimension_semantics = [#tpu.dimension_semantics<parallel>, #tpu.dimension_semantics<parallel>], iteration_bounds = array<i64: 1, 16>, scalar_prefetch = 0 : i64, scratch_operands = 0 : i64, tpu.core_type = #tpu.core_type<tc>, window_params = [{pipeline_mode = #tpu.pipeline_mode<synchronous>, transform_indices = @transform_0, window_bounds = array<i64: 7, 8, 8>}, {pipeline_mode = #tpu.pipeline_mode<synchronous>, transform_indices = @transform_1, window_bounds = array<i64: 8, 1>}, {transform_indices = @transform_2, window_bounds = array<i64: 1, 1, 8, 8>}, {transform_indices = @transform_3, window_bounds = array<i64: 1, 1, 8, 8>}, {transform_indices = @transform_4, window_bounds = array<i64: 1, 1, 8, 8>}, {transform_indices = @transform_5, window_bounds = array<i64: 1, 1, 8, 8>}, {transform_indices = @transform_6, window_bounds = array<i64: 1, 1, 8, 8>}, {transform_indices = @transform_7, window_bounds = array<i64: 1, 1, 8, 8>}, {transform_indices = @transform_8, window_bounds = array<i64: 1, 1, 8, 8>}, {transform_indices = @transform_9, window_bounds = array<i64: 1, 1, 8, 8>}]} {
    %cst = arith.constant 0.000000e+00 : f32
    %0 = vector.broadcast %cst : f32 to vector<8x8xf32>
    %c0 = arith.constant 0 : index
    %c0_0 = arith.constant 0 : index
    %c0_1 = arith.constant 0 : index
    %c0_2 = arith.constant 0 : index
    %1 = vector.load %arg4[%c0, %c0_0, %c0_1, %c0_2] : memref<1x1x8x8xf32, #tpu.memory_space<vmem>>, vector<1x1x8x8xf32>
    %2 = vector.shape_cast %1 : vector<1x1x8x8xf32> to vector<8x8xf32>
    %c0_3 = arith.constant 0 : index
    %c0_4 = arith.constant 0 : index
    %c0_5 = arith.constant 0 : index
    %3 = vector.load %arg2[%c0_3, %c0_4, %c0_5] : memref<7x8x8xf32, #tpu.memory_space<vmem>>, vector<1x8x8xf32>
    %4 = vector.shape_cast %3 : vector<1x8x8xf32> to vector<8x8xf32>
    %cst_6 = arith.constant dense<0.000000e+00> : vector<8x8xf32>
    %5 = tpu.matmul %4, %2, %cst_6 {dimension_numbers = #tpu.dot_dimension_numbers<[1], [0], [0], [1], [0, 0, 1, 1], [], []>} : vector<8x8xf32>, vector<8x8xf32>, vector<8x8xf32> -> vector<8x8xf32>
    %6 = arith.addf %0, %5 : vector<8x8xf32>
    %c0_7 = arith.constant 0 : index
    %c0_8 = arith.constant 0 : index
    %c0_9 = arith.constant 0 : index
    %c0_10 = arith.constant 0 : index
    %7 = vector.load %arg5[%c0_7, %c0_8, %c0_9, %c0_10] : memref<1x1x8x8xf32, #tpu.memory_space<vmem>>, vector<1x1x8x8xf32>
    %8 = vector.shape_cast %7 : vector<1x1x8x8xf32> to vector<8x8xf32>
    %c1 = arith.constant 1 : index
    %c0_11 = arith.constant 0 : index
    %c0_12 = arith.constant 0 : index
    %9 = vector.load %arg2[%c1, %c0_11, %c0_12] : memref<7x8x8xf32, #tpu.memory_space<vmem>>, vector<1x8x8xf32>
    %10 = vector.shape_cast %9 : vector<1x8x8xf32> to vector<8x8xf32>
    %cst_13 = arith.constant dense<0.000000e+00> : vector<8x8xf32>
    %11 = tpu.matmul %10, %8, %cst_13 {dimension_numbers = #tpu.dot_dimension_numbers<[1], [0], [0], [1], [0, 0, 1, 1], [], []>} : vector<8x8xf32>, vector<8x8xf32>, vector<8x8xf32> -> vector<8x8xf32>
    %12 = arith.addf %6, %11 : vector<8x8xf32>
    %c0_14 = arith.constant 0 : index
    %c0_15 = arith.constant 0 : index
    %c0_16 = arith.constant 0 : index
    %c0_17 = arith.constant 0 : index
    %13 = vector.load %arg6[%c0_14, %c0_15, %c0_16, %c0_17] : memref<1x1x8x8xf32, #tpu.memory_space<vmem>>, vector<1x1x8x8xf32>
    %14 = vector.shape_cast %13 : vector<1x1x8x8xf32> to vector<8x8xf32>
    %c2 = arith.constant 2 : index
    %c0_18 = arith.constant 0 : index
    %c0_19 = arith.constant 0 : index
    %15 = vector.load %arg2[%c2, %c0_18, %c0_19] : memref<7x8x8xf32, #tpu.memory_space<vmem>>, vector<1x8x8xf32>
    %16 = vector.shape_cast %15 : vector<1x8x8xf32> to vector<8x8xf32>
    %cst_20 = arith.constant dense<0.000000e+00> : vector<8x8xf32>
    %17 = tpu.matmul %16, %14, %cst_20 {dimension_numbers = #tpu.dot_dimension_numbers<[1], [0], [0], [1], [0, 0, 1, 1], [], []>} : vector<8x8xf32>, vector<8x8xf32>, vector<8x8xf32> -> vector<8x8xf32>
    %18 = arith.addf %12, %17 : vector<8x8xf32>
    %c0_21 = arith.constant 0 : index
    %c0_22 = arith.constant 0 : index
    %c0_23 = arith.constant 0 : index
    %c0_24 = arith.constant 0 : index
    %19 = vector.load %arg7[%c0_21, %c0_22, %c0_23, %c0_24] : memref<1x1x8x8xf32, #tpu.memory_space<vmem>>, vector<1x1x8x8xf32>
    %20 = vector.shape_cast %19 : vector<1x1x8x8xf32> to vector<8x8xf32>
    %c3 = arith.constant 3 : index
    %c0_25 = arith.constant 0 : index
    %c0_26 = arith.constant 0 : index
    %21 = vector.load %arg2[%c3, %c0_25, %c0_26] : memref<7x8x8xf32, #tpu.memory_space<vmem>>, vector<1x8x8xf32>
    %22 = vector.shape_cast %21 : vector<1x8x8xf32> to vector<8x8xf32>
    %cst_27 = arith.constant dense<0.000000e+00> : vector<8x8xf32>
    %23 = tpu.matmul %22, %20, %cst_27 {dimension_numbers = #tpu.dot_dimension_numbers<[1], [0], [0], [1], [0, 0, 1, 1], [], []>} : vector<8x8xf32>, vector<8x8xf32>, vector<8x8xf32> -> vector<8x8xf32>
    %24 = arith.addf %18, %23 : vector<8x8xf32>
    %c0_28 = arith.constant 0 : index
    %c0_29 = arith.constant 0 : index
    %c0_30 = arith.constant 0 : index
    %c0_31 = arith.constant 0 : index
    %25 = vector.load %arg8[%c0_28, %c0_29, %c0_30, %c0_31] : memref<1x1x8x8xf32, #tpu.memory_space<vmem>>, vector<1x1x8x8xf32>
    %26 = vector.shape_cast %25 : vector<1x1x8x8xf32> to vector<8x8xf32>
    %c4 = arith.constant 4 : index
    %c0_32 = arith.constant 0 : index
    %c0_33 = arith.constant 0 : index
    %27 = vector.load %arg2[%c4, %c0_32, %c0_33] : memref<7x8x8xf32, #tpu.memory_space<vmem>>, vector<1x8x8xf32>
    %28 = vector.shape_cast %27 : vector<1x8x8xf32> to vector<8x8xf32>
    %cst_34 = arith.constant dense<0.000000e+00> : vector<8x8xf32>
    %29 = tpu.matmul %28, %26, %cst_34 {dimension_numbers = #tpu.dot_dimension_numbers<[1], [0], [0], [1], [0, 0, 1, 1], [], []>} : vector<8x8xf32>, vector<8x8xf32>, vector<8x8xf32> -> vector<8x8xf32>
    %30 = arith.addf %24, %29 : vector<8x8xf32>
    %c0_35 = arith.constant 0 : index
    %c0_36 = arith.constant 0 : index
    %c0_37 = arith.constant 0 : index
    %c0_38 = arith.constant 0 : index
    %31 = vector.load %arg9[%c0_35, %c0_36, %c0_37, %c0_38] : memref<1x1x8x8xf32, #tpu.memory_space<vmem>>, vector<1x1x8x8xf32>
    %32 = vector.shape_cast %31 : vector<1x1x8x8xf32> to vector<8x8xf32>
    %c5 = arith.constant 5 : index
    %c0_39 = arith.constant 0 : index
    %c0_40 = arith.constant 0 : index
    %33 = vector.load %arg2[%c5, %c0_39, %c0_40] : memref<7x8x8xf32, #tpu.memory_space<vmem>>, vector<1x8x8xf32>
    %34 = vector.shape_cast %33 : vector<1x8x8xf32> to vector<8x8xf32>
    %cst_41 = arith.constant dense<0.000000e+00> : vector<8x8xf32>
    %35 = tpu.matmul %34, %32, %cst_41 {dimension_numbers = #tpu.dot_dimension_numbers<[1], [0], [0], [1], [0, 0, 1, 1], [], []>} : vector<8x8xf32>, vector<8x8xf32>, vector<8x8xf32> -> vector<8x8xf32>
    %36 = arith.addf %30, %35 : vector<8x8xf32>
    %c0_42 = arith.constant 0 : index
    %c0_43 = arith.constant 0 : index
    %c0_44 = arith.constant 0 : index
    %c0_45 = arith.constant 0 : index
    %37 = vector.load %arg10[%c0_42, %c0_43, %c0_44, %c0_45] : memref<1x1x8x8xf32, #tpu.memory_space<vmem>>, vector<1x1x8x8xf32>
    %38 = vector.shape_cast %37 : vector<1x1x8x8xf32> to vector<8x8xf32>
    %c6 = arith.constant 6 : index
    %c0_46 = arith.constant 0 : index
    %c0_47 = arith.constant 0 : index
    %39 = vector.load %arg2[%c6, %c0_46, %c0_47] : memref<7x8x8xf32, #tpu.memory_space<vmem>>, vector<1x8x8xf32>
    %40 = vector.shape_cast %39 : vector<1x8x8xf32> to vector<8x8xf32>
    %cst_48 = arith.constant dense<0.000000e+00> : vector<8x8xf32>
    %41 = tpu.matmul %40, %38, %cst_48 {dimension_numbers = #tpu.dot_dimension_numbers<[1], [0], [0], [1], [0, 0, 1, 1], [], []>} : vector<8x8xf32>, vector<8x8xf32>, vector<8x8xf32> -> vector<8x8xf32>
    %42 = arith.addf %36, %41 : vector<8x8xf32>
    %c0_49 = arith.constant 0 : index
    %c0_50 = arith.constant 0 : index
    %43 = vector.load %arg3[%c0_49, %c0_50] : memref<8x1xf32, #tpu.memory_space<vmem>>, vector<8x1xf32>
    %44 = vector.broadcast %43 : vector<8x1xf32> to vector<8x8xf32>
    %45 = arith.addf %42, %44 : vector<8x8xf32>
    %cst_51 = arith.constant 0.000000e+00 : f32
    %46 = vector.broadcast %cst_51 : f32 to vector<8x8xf32>
    %47 = arith.cmpf oge, %45, %46 : vector<8x8xf32>
    %cst_52 = arith.constant 0.00999999977 : f32
    %48 = vector.broadcast %cst_52 : f32 to vector<8x8xf32>
    %49 = arith.mulf %48, %45 : vector<8x8xf32>
    %50 = arith.select %47, %45, %49 : vector<8x8xi1>, vector<8x8xf32>
    %c0_53 = arith.constant 0 : index
    %c0_54 = arith.constant 0 : index
    %c0_55 = arith.constant 0 : index
    %c0_56 = arith.constant 0 : index
    %51 = vector.load %arg11[%c0_53, %c0_54, %c0_55, %c0_56] : memref<1x1x8x8xf32, #tpu.memory_space<vmem>>, vector<1x1x8x8xf32>
    %52 = vector.shape_cast %51 : vector<1x1x8x8xf32> to vector<8x8xf32>
    %53 = vector.shape_cast %50 : vector<8x8xf32> to vector<1x1x8x8xf32>
    tpu.vector_store %arg11[%c0_53, %c0_54, %c0_55, %c0_56], %53 {strides = array<i32>} : memref<1x1x8x8xf32, #tpu.memory_space<vmem>>, vector<1x1x8x8xf32>,
    return
  }
  func.func @transform_0(%arg0: i32, %arg1: i32) -> (i32, i32, i32) {
    %c0_i32 = arith.constant 0 : i32
    %c0_i32_0 = arith.constant 0 : i32
    %c0_i32_1 = arith.constant 0 : i32
    %c0_i32_2 = arith.constant 0 : i32
    return %c0_i32, %c0_i32_0, %c0_i32_1 : i32, i32, i32
  }
  func.func @transform_1(%arg0: i32, %arg1: i32) -> (i32, i32) {
    %c0_i32 = arith.constant 0 : i32
    %c0_i32_0 = arith.constant 0 : i32
    %c0_i32_1 = arith.constant 0 : i32
    return %c0_i32, %c0_i32_0 : i32, i32
  }
  func.func @transform_2(%arg0: i32, %arg1: i32) -> (i32, i32, i32, i32) {
    %c0_i32 = arith.constant 0 : i32
    %0 = arith.addi %arg1, %c0_i32 : i32
    %c0_i32_0 = arith.constant 0 : i32
    %c0_i32_1 = arith.constant 0 : i32
    %c0_i32_2 = arith.constant 0 : i32
    return %arg0, %0, %c0_i32_0, %c0_i32_1 : i32, i32, i32, i32
  }
  func.func @transform_3(%arg0: i32, %arg1: i32) -> (i32, i32, i32, i32) {
    %c1_i32 = arith.constant 1 : i32
    %0 = arith.addi %arg1, %c1_i32 : i32
    %c0_i32 = arith.constant 0 : i32
    %c0_i32_0 = arith.constant 0 : i32
    %c0_i32_1 = arith.constant 0 : i32
    return %arg0, %0, %c0_i32, %c0_i32_0 : i32, i32, i32, i32
  }
  func.func @transform_4(%arg0: i32, %arg1: i32) -> (i32, i32, i32, i32) {
    %c2_i32 = arith.constant 2 : i32
    %0 = arith.addi %arg1, %c2_i32 : i32
    %c0_i32 = arith.constant 0 : i32
    %c0_i32_0 = arith.constant 0 : i32
    %c0_i32_1 = arith.constant 0 : i32
    return %arg0, %0, %c0_i32, %c0_i32_0 : i32, i32, i32, i32
  }
  func.func @transform_5(%arg0: i32, %arg1: i32) -> (i32, i32, i32, i32) {
    %c3_i32 = arith.constant 3 : i32
    %0 = arith.addi %arg1, %c3_i32 : i32
    %c0_i32 = arith.constant 0 : i32
    %c0_i32_0 = arith.constant 0 : i32
    %c0_i32_1 = arith.constant 0 : i32
    return %arg0, %0, %c0_i32, %c0_i32_0 : i32, i32, i32, i32
  }
  func.func @transform_6(%arg0: i32, %arg1: i32) -> (i32, i32, i32, i32) {
    %c4_i32 = arith.constant 4 : i32
    %0 = arith.addi %arg1, %c4_i32 : i32
    %c0_i32 = arith.constant 0 : i32
    %c0_i32_0 = arith.constant 0 : i32
    %c0_i32_1 = arith.constant 0 : i32
    return %arg0, %0, %c0_i32, %c0_i32_0 : i32, i32, i32, i32
  }
  func.func @transform_7(%arg0: i32, %arg1: i32) -> (i32, i32, i32, i32) {
    %c5_i32 = arith.constant 5 : i32
    %0 = arith.addi %arg1, %c5_i32 : i32
    %c0_i32 = arith.constant 0 : i32
    %c0_i32_0 = arith.constant 0 : i32
    %c0_i32_1 = arith.constant 0 : i32
    return %arg0, %0, %c0_i32, %c0_i32_0 : i32, i32, i32, i32
  }
  func.func @transform_8(%arg0: i32, %arg1: i32) -> (i32, i32, i32, i32) {
    %c6_i32 = arith.constant 6 : i32
    %0 = arith.addi %arg1, %c6_i32 : i32
    %c0_i32 = arith.constant 0 : i32
    %c0_i32_0 = arith.constant 0 : i32
    %c0_i32_1 = arith.constant 0 : i32
    return %arg0, %0, %c0_i32, %c0_i32_0 : i32, i32, i32, i32
  }
  func.func @transform_9(%arg0: i32, %arg1: i32) -> (i32, i32, i32, i32) {
    %c0_i32 = arith.constant 0 : i32
    %c0_i32_0 = arith.constant 0 : i32
    %c0_i32_1 = arith.constant 0 : i32
    return %arg0, %arg1, %c0_i32, %c0_i32_0 : i32, i32, i32, i32
  }
}

module attributes {stable_mosaic.version = 11 : i64} {
  func.func @_gemm_kernel(%arg0: i32, %arg1: memref<5x8xf32, #tpu.memory_space<vmem>>, %arg2: memref<8x128xf32, #tpu.memory_space<vmem>>, %arg3: memref<5x1xf32, #tpu.memory_space<vmem>>, %arg4: memref<5x128xf32, #tpu.memory_space<vmem>>) attributes {dimension_semantics = [#tpu.dimension_semantics<parallel>], iteration_bounds = array<i64: 1>, scalar_prefetch = 0 : i64, scratch_operands = 0 : i64, tpu.core_type = #tpu.core_type<tc>, window_params = [{pipeline_mode = #tpu.pipeline_mode<synchronous>, transform_indices = @transform_0, window_bounds = array<i64: 5, 8>}, {transform_indices = @transform_1, window_bounds = array<i64: 8, 128>}, {pipeline_mode = #tpu.pipeline_mode<synchronous>, transform_indices = @transform_2, window_bounds = array<i64: 5, 1>}, {transform_indices = @transform_3, window_bounds = array<i64: 5, 128>}]} {
    %c0 = arith.constant 0 : index
    %c0_0 = arith.constant 0 : index
    %0 = vector.load %arg1[%c0, %c0_0] : memref<5x8xf32, #tpu.memory_space<vmem>>, vector<5x8xf32>
    %c0_1 = arith.constant 0 : index
    %c0_2 = arith.constant 0 : index
    %1 = vector.load %arg2[%c0_1, %c0_2] : memref<8x128xf32, #tpu.memory_space<vmem>>, vector<8x128xf32>
    %cst = arith.constant dense<0.000000e+00> : vector<5x128xf32>
    %2 = tpu.matmul %0, %1, %cst {dimension_numbers = #tpu.dot_dimension_numbers<[1], [0], [0], [1], [0, 0, 1, 1], [], []>} : vector<5x8xf32>, vector<8x128xf32>, vector<5x128xf32> -> vector<5x128xf32>
    %c0_3 = arith.constant 0 : index
    %c0_4 = arith.constant 0 : index
    %3 = vector.load %arg3[%c0_3, %c0_4] : memref<5x1xf32, #tpu.memory_space<vmem>>, vector<5x1xf32>
    %4 = vector.broadcast %3 : vector<5x1xf32> to vector<5x128xf32>
    %5 = arith.addf %2, %4 : vector<5x128xf32>
    %cst_5 = arith.constant 0.000000e+00 : f32
    %6 = vector.broadcast %cst_5 : f32 to vector<5x128xf32>
    %7 = arith.maximumf %5, %6 : vector<5x128xf32>
    %c0_6 = arith.constant 0 : index
    %c0_7 = arith.constant 0 : index
    %8 = vector.load %arg4[%c0_6, %c0_7] : memref<5x128xf32, #tpu.memory_space<vmem>>, vector<5x128xf32>
    tpu.vector_store %arg4[%c0_6, %c0_7], %7 {strides = array<i32>} : memref<5x128xf32, #tpu.memory_space<vmem>>, vector<5x128xf32>,
    return
  }
  func.func @transform_0(%arg0: i32) -> (i32, i32) {
    %c0_i32 = arith.constant 0 : i32
    %c0_i32_0 = arith.constant 0 : i32
    %c0_i32_1 = arith.constant 0 : i32
    return %c0_i32, %c0_i32_0 : i32, i32
  }
  func.func @transform_1(%arg0: i32) -> (i32, i32) {
    %c0_i32 = arith.constant 0 : i32
    %c0_i32_0 = arith.constant 0 : i32
    return %c0_i32, %arg0 : i32, i32
  }
  func.func @transform_2(%arg0: i32) -> (i32, i32) {
    %c0_i32 = arith.constant 0 : i32
    %c0_i32_0 = arith.constant 0 : i32
    %c0_i32_1 = arith.constant 0 : i32
    return %c0_i32, %c0_i32_0 : i32, i32
  }
  func.func @transform_3(%arg0: i32) -> (i32, i32) {
    %c0_i32 = arith.constant 0 : i32
    %c0_i32_0 = arith.constant 0 : i32
    return %c0_i32, %arg0 : i32, i32
  }
}

module attributes {stable_mosaic.version = 11 : i64} {
  func.func @_attmul_freqfc_kernel(%arg0: i32, %arg1: memref<1x16x8xf32, #tpu.memory_space<vmem>>, %arg2: memref<1x1x8xf32, #tpu.memory_space<vmem>>, %arg3: memref<16x16xf32, #tpu.memory_space<vmem>>, %arg4: memref<1x16x8xf32, #tpu.memory_space<vmem>>) attributes {dimension_semantics = [#tpu.dimension_semantics<parallel>], iteration_bounds = array<i64: 8>, scalar_prefetch = 0 : i64, scratch_operands = 0 : i64, tpu.core_type = #tpu.core_type<tc>, window_params = [{transform_indices = @transform_0, window_bounds = array<i64: 1, 16, 8>}, {transform_indices = @transform_1, window_bounds = array<i64: 1, 1, 8>}, {pipeline_mode = #tpu.pipeline_mode<synchronous>, transform_indices = @transform_2, window_bounds = array<i64: 16, 16>}, {transform_indices = @transform_3, window_bounds = array<i64: 1, 16, 8>}]} {
    %c0 = arith.constant 0 : index
    %c0_0 = arith.constant 0 : index
    %c0_1 = arith.constant 0 : index
    %0 = vector.load %arg1[%c0, %c0_0, %c0_1] : memref<1x16x8xf32, #tpu.memory_space<vmem>>, vector<1x16x8xf32>
    %1 = vector.shape_cast %0 : vector<1x16x8xf32> to vector<16x8xf32>
    %c0_2 = arith.constant 0 : index
    %c0_3 = arith.constant 0 : index
    %c0_4 = arith.constant 0 : index
    %2 = vector.load %arg2[%c0_2, %c0_3, %c0_4] : memref<1x1x8xf32, #tpu.memory_space<vmem>>, vector<1x1x8xf32>
    %3 = vector.shape_cast %2 : vector<1x1x8xf32> to vector<1x8xf32>
    %4 = vector.broadcast %3 : vector<1x8xf32> to vector<16x8xf32>
    %5 = arith.mulf %1, %4 : vector<16x8xf32>
    %c0_5 = arith.constant 0 : index
    %c0_6 = arith.constant 0 : index
    %6 = vector.load %arg3[%c0_5, %c0_6] : memref<16x16xf32, #tpu.memory_space<vmem>>, vector<16x16xf32>
    %cst = arith.constant dense<0.000000e+00> : vector<16x8xf32>
    %7 = tpu.matmul %6, %5, %cst {dimension_numbers = #tpu.dot_dimension_numbers<[1], [0], [0], [1], [0, 0, 1, 1], [], []>} : vector<16x16xf32>, vector<16x8xf32>, vector<16x8xf32> -> vector<16x8xf32>
    %c0_7 = arith.constant 0 : index
    %c0_8 = arith.constant 0 : index
    %c0_9 = arith.constant 0 : index
    %8 = vector.load %arg4[%c0_7, %c0_8, %c0_9] : memref<1x16x8xf32, #tpu.memory_space<vmem>>, vector<1x16x8xf32>
    %9 = vector.shape_cast %8 : vector<1x16x8xf32> to vector<16x8xf32>
    %10 = vector.shape_cast %7 : vector<16x8xf32> to vector<1x16x8xf32>
    tpu.vector_store %arg4[%c0_7, %c0_8, %c0_9], %10 {strides = array<i32>} : memref<1x16x8xf32, #tpu.memory_space<vmem>>, vector<1x16x8xf32>,
    return
  }
  func.func @transform_0(%arg0: i32) -> (i32, i32, i32) {
    %c0_i32 = arith.constant 0 : i32
    %c0_i32_0 = arith.constant 0 : i32
    %c0_i32_1 = arith.constant 0 : i32
    return %arg0, %c0_i32, %c0_i32_0 : i32, i32, i32
  }
  func.func @transform_1(%arg0: i32) -> (i32, i32, i32) {
    %c0_i32 = arith.constant 0 : i32
    %c0_i32_0 = arith.constant 0 : i32
    %c0_i32_1 = arith.constant 0 : i32
    return %arg0, %c0_i32, %c0_i32_0 : i32, i32, i32
  }
  func.func @transform_2(%arg0: i32) -> (i32, i32) {
    %c0_i32 = arith.constant 0 : i32
    %c0_i32_0 = arith.constant 0 : i32
    %c0_i32_1 = arith.constant 0 : i32
    return %c0_i32, %c0_i32_0 : i32, i32
  }
  func.func @transform_3(%arg0: i32) -> (i32, i32, i32) {
    %c0_i32 = arith.constant 0 : i32
    %c0_i32_0 = arith.constant 0 : i32
    %c0_i32_1 = arith.constant 0 : i32
    return %arg0, %c0_i32, %c0_i32_0 : i32, i32, i32
  }
}

module attributes {stable_mosaic.version = 11 : i64} {
  func.func @_gemm_kernel(%arg0: i32, %arg1: memref<8x720xf32, #tpu.memory_space<vmem>>, %arg2: memref<720x8xf32, #tpu.memory_space<vmem>>, %arg3: memref<8x1xf32, #tpu.memory_space<vmem>>, %arg4: memref<8x8xf32, #tpu.memory_space<vmem>>) attributes {dimension_semantics = [#tpu.dimension_semantics<parallel>], iteration_bounds = array<i64: 1>, scalar_prefetch = 0 : i64, scratch_operands = 0 : i64, tpu.core_type = #tpu.core_type<tc>, window_params = [{pipeline_mode = #tpu.pipeline_mode<synchronous>, transform_indices = @transform_0, window_bounds = array<i64: 8, 720>}, {transform_indices = @transform_1, window_bounds = array<i64: 720, 8>}, {pipeline_mode = #tpu.pipeline_mode<synchronous>, transform_indices = @transform_2, window_bounds = array<i64: 8, 1>}, {transform_indices = @transform_3, window_bounds = array<i64: 8, 8>}]} {
    %c0 = arith.constant 0 : index
    %c0_0 = arith.constant 0 : index
    %0 = vector.load %arg1[%c0, %c0_0] : memref<8x720xf32, #tpu.memory_space<vmem>>, vector<8x720xf32>
    %c0_1 = arith.constant 0 : index
    %c0_2 = arith.constant 0 : index
    %1 = vector.load %arg2[%c0_1, %c0_2] : memref<720x8xf32, #tpu.memory_space<vmem>>, vector<720x8xf32>
    %cst = arith.constant dense<0.000000e+00> : vector<8x8xf32>
    %2 = tpu.matmul %0, %1, %cst {dimension_numbers = #tpu.dot_dimension_numbers<[1], [0], [0], [1], [0, 0, 1, 1], [], []>} : vector<8x720xf32>, vector<720x8xf32>, vector<8x8xf32> -> vector<8x8xf32>
    %c0_3 = arith.constant 0 : index
    %c0_4 = arith.constant 0 : index
    %3 = vector.load %arg3[%c0_3, %c0_4] : memref<8x1xf32, #tpu.memory_space<vmem>>, vector<8x1xf32>
    %4 = vector.broadcast %3 : vector<8x1xf32> to vector<8x8xf32>
    %5 = arith.addf %2, %4 : vector<8x8xf32>
    %cst_5 = arith.constant 0.000000e+00 : f32
    %6 = vector.broadcast %cst_5 : f32 to vector<8x8xf32>
    %7 = arith.maximumf %5, %6 : vector<8x8xf32>
    %c0_6 = arith.constant 0 : index
    %c0_7 = arith.constant 0 : index
    %8 = vector.load %arg4[%c0_6, %c0_7] : memref<8x8xf32, #tpu.memory_space<vmem>>, vector<8x8xf32>
    tpu.vector_store %arg4[%c0_6, %c0_7], %7 {strides = array<i32>} : memref<8x8xf32, #tpu.memory_space<vmem>>, vector<8x8xf32>,
    return
  }
  func.func @transform_0(%arg0: i32) -> (i32, i32) {
    %c0_i32 = arith.constant 0 : i32
    %c0_i32_0 = arith.constant 0 : i32
    %c0_i32_1 = arith.constant 0 : i32
    return %c0_i32, %c0_i32_0 : i32, i32
  }
  func.func @transform_1(%arg0: i32) -> (i32, i32) {
    %c0_i32 = arith.constant 0 : i32
    %c0_i32_0 = arith.constant 0 : i32
    return %c0_i32, %arg0 : i32, i32
  }
  func.func @transform_2(%arg0: i32) -> (i32, i32) {
    %c0_i32 = arith.constant 0 : i32
    %c0_i32_0 = arith.constant 0 : i32
    %c0_i32_1 = arith.constant 0 : i32
    return %c0_i32, %c0_i32_0 : i32, i32
  }
  func.func @transform_3(%arg0: i32) -> (i32, i32) {
    %c0_i32 = arith.constant 0 : i32
    %c0_i32_0 = arith.constant 0 : i32
    return %c0_i32, %arg0 : i32, i32
  }
}

module attributes {stable_mosaic.version = 11 : i64} {
  func.func @_gemm2_kernel(%arg0: i32, %arg1: memref<8x8xf32, #tpu.memory_space<vmem>>, %arg2: memref<8x128xf32, #tpu.memory_space<vmem>>, %arg3: memref<8x8xf32, #tpu.memory_space<vmem>>, %arg4: memref<8x128xf32, #tpu.memory_space<vmem>>, %arg5: memref<8x1xf32, #tpu.memory_space<vmem>>, %arg6: memref<8x128xf32, #tpu.memory_space<vmem>>) attributes {dimension_semantics = [#tpu.dimension_semantics<parallel>], iteration_bounds = array<i64: 1>, scalar_prefetch = 0 : i64, scratch_operands = 0 : i64, tpu.core_type = #tpu.core_type<tc>, window_params = [{pipeline_mode = #tpu.pipeline_mode<synchronous>, transform_indices = @transform_0, window_bounds = array<i64: 8, 8>}, {transform_indices = @transform_1, window_bounds = array<i64: 8, 128>}, {pipeline_mode = #tpu.pipeline_mode<synchronous>, transform_indices = @transform_2, window_bounds = array<i64: 8, 8>}, {transform_indices = @transform_3, window_bounds = array<i64: 8, 128>}, {pipeline_mode = #tpu.pipeline_mode<synchronous>, transform_indices = @transform_4, window_bounds = array<i64: 8, 1>}, {transform_indices = @transform_5, window_bounds = array<i64: 8, 128>}]} {
    %c0 = arith.constant 0 : index
    %c0_0 = arith.constant 0 : index
    %0 = vector.load %arg1[%c0, %c0_0] : memref<8x8xf32, #tpu.memory_space<vmem>>, vector<8x8xf32>
    %c0_1 = arith.constant 0 : index
    %c0_2 = arith.constant 0 : index
    %1 = vector.load %arg2[%c0_1, %c0_2] : memref<8x128xf32, #tpu.memory_space<vmem>>, vector<8x128xf32>
    %cst = arith.constant dense<0.000000e+00> : vector<8x128xf32>
    %2 = tpu.matmul %0, %1, %cst {dimension_numbers = #tpu.dot_dimension_numbers<[1], [0], [0], [1], [0, 0, 1, 1], [], []>} : vector<8x8xf32>, vector<8x128xf32>, vector<8x128xf32> -> vector<8x128xf32>
    %c0_3 = arith.constant 0 : index
    %c0_4 = arith.constant 0 : index
    %3 = vector.load %arg3[%c0_3, %c0_4] : memref<8x8xf32, #tpu.memory_space<vmem>>, vector<8x8xf32>
    %c0_5 = arith.constant 0 : index
    %c0_6 = arith.constant 0 : index
    %4 = vector.load %arg4[%c0_5, %c0_6] : memref<8x128xf32, #tpu.memory_space<vmem>>, vector<8x128xf32>
    %cst_7 = arith.constant dense<0.000000e+00> : vector<8x128xf32>
    %5 = tpu.matmul %3, %4, %cst_7 {dimension_numbers = #tpu.dot_dimension_numbers<[1], [0], [0], [1], [0, 0, 1, 1], [], []>} : vector<8x8xf32>, vector<8x128xf32>, vector<8x128xf32> -> vector<8x128xf32>
    %6 = arith.addf %2, %5 : vector<8x128xf32>
    %c0_8 = arith.constant 0 : index
    %c0_9 = arith.constant 0 : index
    %7 = vector.load %arg5[%c0_8, %c0_9] : memref<8x1xf32, #tpu.memory_space<vmem>>, vector<8x1xf32>
    %8 = vector.broadcast %7 : vector<8x1xf32> to vector<8x128xf32>
    %9 = arith.addf %6, %8 : vector<8x128xf32>
    %cst_10 = arith.constant 0.000000e+00 : f32
    %10 = vector.broadcast %cst_10 : f32 to vector<8x128xf32>
    %11 = arith.maximumf %9, %10 : vector<8x128xf32>
    %c0_11 = arith.constant 0 : index
    %c0_12 = arith.constant 0 : index
    %12 = vector.load %arg6[%c0_11, %c0_12] : memref<8x128xf32, #tpu.memory_space<vmem>>, vector<8x128xf32>
    tpu.vector_store %arg6[%c0_11, %c0_12], %11 {strides = array<i32>} : memref<8x128xf32, #tpu.memory_space<vmem>>, vector<8x128xf32>,
    return
  }
  func.func @transform_0(%arg0: i32) -> (i32, i32) {
    %c0_i32 = arith.constant 0 : i32
    %c0_i32_0 = arith.constant 0 : i32
    %c0_i32_1 = arith.constant 0 : i32
    return %c0_i32, %c0_i32_0 : i32, i32
  }
  func.func @transform_1(%arg0: i32) -> (i32, i32) {
    %c0_i32 = arith.constant 0 : i32
    %c0_i32_0 = arith.constant 0 : i32
    return %c0_i32, %arg0 : i32, i32
  }
  func.func @transform_2(%arg0: i32) -> (i32, i32) {
    %c0_i32 = arith.constant 0 : i32
    %c0_i32_0 = arith.constant 0 : i32
    %c0_i32_1 = arith.constant 0 : i32
    return %c0_i32, %c0_i32_0 : i32, i32
  }
  func.func @transform_3(%arg0: i32) -> (i32, i32) {
    %c0_i32 = arith.constant 0 : i32
    %c0_i32_0 = arith.constant 0 : i32
    return %c0_i32, %arg0 : i32, i32
  }
  func.func @transform_4(%arg0: i32) -> (i32, i32) {
    %c0_i32 = arith.constant 0 : i32
    %c0_i32_0 = arith.constant 0 : i32
    %c0_i32_1 = arith.constant 0 : i32
    return %c0_i32, %c0_i32_0 : i32, i32
  }
  func.func @transform_5(%arg0: i32) -> (i32, i32) {
    %c0_i32 = arith.constant 0 : i32
    %c0_i32_0 = arith.constant 0 : i32
    return %c0_i32, %arg0 : i32, i32
  }
}

module attributes {stable_mosaic.version = 11 : i64} {
  func.func @_conv_taps_kernel(%arg0: i32, %arg1: i32, %arg2: memref<25x8x8xf32, #tpu.memory_space<vmem>>, %arg3: memref<8x1xf32, #tpu.memory_space<vmem>>, %arg4: memref<1x1x8x12xf32, #tpu.memory_space<vmem>>, %arg5: memref<1x1x8x12xf32, #tpu.memory_space<vmem>>, %arg6: memref<1x1x8x12xf32, #tpu.memory_space<vmem>>, %arg7: memref<1x1x8x12xf32, #tpu.memory_space<vmem>>, %arg8: memref<1x1x8x12xf32, #tpu.memory_space<vmem>>, %arg9: memref<1x1x8x8xf32, #tpu.memory_space<vmem>>) attributes {dimension_semantics = [#tpu.dimension_semantics<parallel>, #tpu.dimension_semantics<parallel>], iteration_bounds = array<i64: 1, 16>, scalar_prefetch = 0 : i64, scratch_operands = 0 : i64, tpu.core_type = #tpu.core_type<tc>, window_params = [{pipeline_mode = #tpu.pipeline_mode<synchronous>, transform_indices = @transform_0, window_bounds = array<i64: 25, 8, 8>}, {pipeline_mode = #tpu.pipeline_mode<synchronous>, transform_indices = @transform_1, window_bounds = array<i64: 8, 1>}, {transform_indices = @transform_2, window_bounds = array<i64: 1, 1, 8, 12>}, {transform_indices = @transform_3, window_bounds = array<i64: 1, 1, 8, 12>}, {transform_indices = @transform_4, window_bounds = array<i64: 1, 1, 8, 12>}, {transform_indices = @transform_5, window_bounds = array<i64: 1, 1, 8, 12>}, {transform_indices = @transform_6, window_bounds = array<i64: 1, 1, 8, 12>}, {transform_indices = @transform_7, window_bounds = array<i64: 1, 1, 8, 8>}]} {
    %cst = arith.constant 0.000000e+00 : f32
    %0 = vector.broadcast %cst : f32 to vector<8x8xf32>
    %c0 = arith.constant 0 : index
    %c0_0 = arith.constant 0 : index
    %c0_1 = arith.constant 0 : index
    %c0_2 = arith.constant 0 : index
    %1 = vector.load %arg4[%c0, %c0_0, %c0_1, %c0_2] : memref<1x1x8x12xf32, #tpu.memory_space<vmem>>, vector<1x1x8x12xf32>
    %2 = vector.shape_cast %1 : vector<1x1x8x12xf32> to vector<8x12xf32>
    %3 = vector.extract_strided_slice %2 {offsets = [0, 0], sizes = [8, 8], strides = [1, 1]} : vector<8x12xf32> to vector<8x8xf32>
    %c0_3 = arith.constant 0 : index
    %c0_4 = arith.constant 0 : index
    %c0_5 = arith.constant 0 : index
    %4 = vector.load %arg2[%c0_3, %c0_4, %c0_5] : memref<25x8x8xf32, #tpu.memory_space<vmem>>, vector<1x8x8xf32>
    %5 = vector.shape_cast %4 : vector<1x8x8xf32> to vector<8x8xf32>
    %cst_6 = arith.constant dense<0.000000e+00> : vector<8x8xf32>
    %6 = tpu.matmul %5, %3, %cst_6 {dimension_numbers = #tpu.dot_dimension_numbers<[1], [0], [0], [1], [0, 0, 1, 1], [], []>} : vector<8x8xf32>, vector<8x8xf32>, vector<8x8xf32> -> vector<8x8xf32>
    %7 = arith.addf %0, %6 : vector<8x8xf32>
    %8 = vector.extract_strided_slice %2 {offsets = [0, 1], sizes = [8, 8], strides = [1, 1]} : vector<8x12xf32> to vector<8x8xf32>
    %c1 = arith.constant 1 : index
    %c0_7 = arith.constant 0 : index
    %c0_8 = arith.constant 0 : index
    %9 = vector.load %arg2[%c1, %c0_7, %c0_8] : memref<25x8x8xf32, #tpu.memory_space<vmem>>, vector<1x8x8xf32>
    %10 = vector.shape_cast %9 : vector<1x8x8xf32> to vector<8x8xf32>
    %cst_9 = arith.constant dense<0.000000e+00> : vector<8x8xf32>
    %11 = tpu.matmul %10, %8, %cst_9 {dimension_numbers = #tpu.dot_dimension_numbers<[1], [0], [0], [1], [0, 0, 1, 1], [], []>} : vector<8x8xf32>, vector<8x8xf32>, vector<8x8xf32> -> vector<8x8xf32>
    %12 = arith.addf %7, %11 : vector<8x8xf32>
    %13 = vector.extract_strided_slice %2 {offsets = [0, 2], sizes = [8, 8], strides = [1, 1]} : vector<8x12xf32> to vector<8x8xf32>
    %c2 = arith.constant 2 : index
    %c0_10 = arith.constant 0 : index
    %c0_11 = arith.constant 0 : index
    %14 = vector.load %arg2[%c2, %c0_10, %c0_11] : memref<25x8x8xf32, #tpu.memory_space<vmem>>, vector<1x8x8xf32>
    %15 = vector.shape_cast %14 : vector<1x8x8xf32> to vector<8x8xf32>
    %cst_12 = arith.constant dense<0.000000e+00> : vector<8x8xf32>
    %16 = tpu.matmul %15, %13, %cst_12 {dimension_numbers = #tpu.dot_dimension_numbers<[1], [0], [0], [1], [0, 0, 1, 1], [], []>} : vector<8x8xf32>, vector<8x8xf32>, vector<8x8xf32> -> vector<8x8xf32>
    %17 = arith.addf %12, %16 : vector<8x8xf32>
    %18 = vector.extract_strided_slice %2 {offsets = [0, 3], sizes = [8, 8], strides = [1, 1]} : vector<8x12xf32> to vector<8x8xf32>
    %c3 = arith.constant 3 : index
    %c0_13 = arith.constant 0 : index
    %c0_14 = arith.constant 0 : index
    %19 = vector.load %arg2[%c3, %c0_13, %c0_14] : memref<25x8x8xf32, #tpu.memory_space<vmem>>, vector<1x8x8xf32>
    %20 = vector.shape_cast %19 : vector<1x8x8xf32> to vector<8x8xf32>
    %cst_15 = arith.constant dense<0.000000e+00> : vector<8x8xf32>
    %21 = tpu.matmul %20, %18, %cst_15 {dimension_numbers = #tpu.dot_dimension_numbers<[1], [0], [0], [1], [0, 0, 1, 1], [], []>} : vector<8x8xf32>, vector<8x8xf32>, vector<8x8xf32> -> vector<8x8xf32>
    %22 = arith.addf %17, %21 : vector<8x8xf32>
    %23 = vector.extract_strided_slice %2 {offsets = [0, 4], sizes = [8, 8], strides = [1, 1]} : vector<8x12xf32> to vector<8x8xf32>
    %c4 = arith.constant 4 : index
    %c0_16 = arith.constant 0 : index
    %c0_17 = arith.constant 0 : index
    %24 = vector.load %arg2[%c4, %c0_16, %c0_17] : memref<25x8x8xf32, #tpu.memory_space<vmem>>, vector<1x8x8xf32>
    %25 = vector.shape_cast %24 : vector<1x8x8xf32> to vector<8x8xf32>
    %cst_18 = arith.constant dense<0.000000e+00> : vector<8x8xf32>
    %26 = tpu.matmul %25, %23, %cst_18 {dimension_numbers = #tpu.dot_dimension_numbers<[1], [0], [0], [1], [0, 0, 1, 1], [], []>} : vector<8x8xf32>, vector<8x8xf32>, vector<8x8xf32> -> vector<8x8xf32>
    %27 = arith.addf %22, %26 : vector<8x8xf32>
    %c0_19 = arith.constant 0 : index
    %c0_20 = arith.constant 0 : index
    %c0_21 = arith.constant 0 : index
    %c0_22 = arith.constant 0 : index
    %28 = vector.load %arg5[%c0_19, %c0_20, %c0_21, %c0_22] : memref<1x1x8x12xf32, #tpu.memory_space<vmem>>, vector<1x1x8x12xf32>
    %29 = vector.shape_cast %28 : vector<1x1x8x12xf32> to vector<8x12xf32>
    %30 = vector.extract_strided_slice %29 {offsets = [0, 0], sizes = [8, 8], strides = [1, 1]} : vector<8x12xf32> to vector<8x8xf32>
    %c5 = arith.constant 5 : index
    %c0_23 = arith.constant 0 : index
    %c0_24 = arith.constant 0 : index
    %31 = vector.load %arg2[%c5, %c0_23, %c0_24] : memref<25x8x8xf32, #tpu.memory_space<vmem>>, vector<1x8x8xf32>
    %32 = vector.shape_cast %31 : vector<1x8x8xf32> to vector<8x8xf32>
    %cst_25 = arith.constant dense<0.000000e+00> : vector<8x8xf32>
    %33 = tpu.matmul %32, %30, %cst_25 {dimension_numbers = #tpu.dot_dimension_numbers<[1], [0], [0], [1], [0, 0, 1, 1], [], []>} : vector<8x8xf32>, vector<8x8xf32>, vector<8x8xf32> -> vector<8x8xf32>
    %34 = arith.addf %27, %33 : vector<8x8xf32>
    %35 = vector.extract_strided_slice %29 {offsets = [0, 1], sizes = [8, 8], strides = [1, 1]} : vector<8x12xf32> to vector<8x8xf32>
    %c6 = arith.constant 6 : index
    %c0_26 = arith.constant 0 : index
    %c0_27 = arith.constant 0 : index
    %36 = vector.load %arg2[%c6, %c0_26, %c0_27] : memref<25x8x8xf32, #tpu.memory_space<vmem>>, vector<1x8x8xf32>
    %37 = vector.shape_cast %36 : vector<1x8x8xf32> to vector<8x8xf32>
    %cst_28 = arith.constant dense<0.000000e+00> : vector<8x8xf32>
    %38 = tpu.matmul %37, %35, %cst_28 {dimension_numbers = #tpu.dot_dimension_numbers<[1], [0], [0], [1], [0, 0, 1, 1], [], []>} : vector<8x8xf32>, vector<8x8xf32>, vector<8x8xf32> -> vector<8x8xf32>
    %39 = arith.addf %34, %38 : vector<8x8xf32>
    %40 = vector.extract_strided_slice %29 {offsets = [0, 2], sizes = [8, 8], strides = [1, 1]} : vector<8x12xf32> to vector<8x8xf32>
    %c7 = arith.constant 7 : index
    %c0_29 = arith.constant 0 : index
    %c0_30 = arith.constant 0 : index
    %41 = vector.load %arg2[%c7, %c0_29, %c0_30] : memref<25x8x8xf32, #tpu.memory_space<vmem>>, vector<1x8x8xf32>
    %42 = vector.shape_cast %41 : vector<1x8x8xf32> to vector<8x8xf32>
    %cst_31 = arith.constant dense<0.000000e+00> : vector<8x8xf32>
    %43 = tpu.matmul %42, %40, %cst_31 {dimension_numbers = #tpu.dot_dimension_numbers<[1], [0], [0], [1], [0, 0, 1, 1], [], []>} : vector<8x8xf32>, vector<8x8xf32>, vector<8x8xf32> -> vector<8x8xf32>
    %44 = arith.addf %39, %43 : vector<8x8xf32>
    %45 = vector.extract_strided_slice %29 {offsets = [0, 3], sizes = [8, 8], strides = [1, 1]} : vector<8x12xf32> to vector<8x8xf32>
    %c8 = arith.constant 8 : index
    %c0_32 = arith.constant 0 : index
    %c0_33 = arith.constant 0 : index
    %46 = vector.load %arg2[%c8, %c0_32, %c0_33] : memref<25x8x8xf32, #tpu.memory_space<vmem>>, vector<1x8x8xf32>
    %47 = vector.shape_cast %46 : vector<1x8x8xf32> to vector<8x8xf32>
    %cst_34 = arith.constant dense<0.000000e+00> : vector<8x8xf32>
    %48 = tpu.matmul %47, %45, %cst_34 {dimension_numbers = #tpu.dot_dimension_numbers<[1], [0], [0], [1], [0, 0, 1, 1], [], []>} : vector<8x8xf32>, vector<8x8xf32>, vector<8x8xf32> -> vector<8x8xf32>
    %49 = arith.addf %44, %48 : vector<8x8xf32>
    %50 = vector.extract_strided_slice %29 {offsets = [0, 4], sizes = [8, 8], strides = [1, 1]} : vector<8x12xf32> to vector<8x8xf32>
    %c9 = arith.constant 9 : index
    %c0_35 = arith.constant 0 : index
    %c0_36 = arith.constant 0 : index
    %51 = vector.load %arg2[%c9, %c0_35, %c0_36] : memref<25x8x8xf32, #tpu.memory_space<vmem>>, vector<1x8x8xf32>
    %52 = vector.shape_cast %51 : vector<1x8x8xf32> to vector<8x8xf32>
    %cst_37 = arith.constant dense<0.000000e+00> : vector<8x8xf32>
    %53 = tpu.matmul %52, %50, %cst_37 {dimension_numbers = #tpu.dot_dimension_numbers<[1], [0], [0], [1], [0, 0, 1, 1], [], []>} : vector<8x8xf32>, vector<8x8xf32>, vector<8x8xf32> -> vector<8x8xf32>
    %54 = arith.addf %49, %53 : vector<8x8xf32>
    %c0_38 = arith.constant 0 : index
    %c0_39 = arith.constant 0 : index
    %c0_40 = arith.constant 0 : index
    %c0_41 = arith.constant 0 : index
    %55 = vector.load %arg6[%c0_38, %c0_39, %c0_40, %c0_41] : memref<1x1x8x12xf32, #tpu.memory_space<vmem>>, vector<1x1x8x12xf32>
    %56 = vector.shape_cast %55 : vector<1x1x8x12xf32> to vector<8x12xf32>
    %57 = vector.extract_strided_slice %56 {offsets = [0, 0], sizes = [8, 8], strides = [1, 1]} : vector<8x12xf32> to vector<8x8xf32>
    %c10 = arith.constant 10 : index
    %c0_42 = arith.constant 0 : index
    %c0_43 = arith.constant 0 : index
    %58 = vector.load %arg2[%c10, %c0_42, %c0_43] : memref<25x8x8xf32, #tpu.memory_space<vmem>>, vector<1x8x8xf32>
    %59 = vector.shape_cast %58 : vector<1x8x8xf32> to vector<8x8xf32>
    %cst_44 = arith.constant dense<0.000000e+00> : vector<8x8xf32>
    %60 = tpu.matmul %59, %57, %cst_44 {dimension_numbers = #tpu.dot_dimension_numbers<[1], [0], [0], [1], [0, 0, 1, 1], [], []>} : vector<8x8xf32>, vector<8x8xf32>, vector<8x8xf32> -> vector<8x8xf32>
    %61 = arith.addf %54, %60 : vector<8x8xf32>
    %62 = vector.extract_strided_slice %56 {offsets = [0, 1], sizes = [8, 8], strides = [1, 1]} : vector<8x12xf32> to vector<8x8xf32>
    %c11 = arith.constant 11 : index
    %c0_45 = arith.constant 0 : index
    %c0_46 = arith.constant 0 : index
    %63 = vector.load %arg2[%c11, %c0_45, %c0_46] : memref<25x8x8xf32, #tpu.memory_space<vmem>>, vector<1x8x8xf32>
    %64 = vector.shape_cast %63 : vector<1x8x8xf32> to vector<8x8xf32>
    %cst_47 = arith.constant dense<0.000000e+00> : vector<8x8xf32>
    %65 = tpu.matmul %64, %62, %cst_47 {dimension_numbers = #tpu.dot_dimension_numbers<[1], [0], [0], [1], [0, 0, 1, 1], [], []>} : vector<8x8xf32>, vector<8x8xf32>, vector<8x8xf32> -> vector<8x8xf32>
    %66 = arith.addf %61, %65 : vector<8x8xf32>
    %67 = vector.extract_strided_slice %56 {offsets = [0, 2], sizes = [8, 8], strides = [1, 1]} : vector<8x12xf32> to vector<8x8xf32>
    %c12 = arith.constant 12 : index
    %c0_48 = arith.constant 0 : index
    %c0_49 = arith.constant 0 : index
    %68 = vector.load %arg2[%c12, %c0_48, %c0_49] : memref<25x8x8xf32, #tpu.memory_space<vmem>>, vector<1x8x8xf32>
    %69 = vector.shape_cast %68 : vector<1x8x8xf32> to vector<8x8xf32>
    %cst_50 = arith.constant dense<0.000000e+00> : vector<8x8xf32>
    %70 = tpu.matmul %69, %67, %cst_50 {dimension_numbers = #tpu.dot_dimension_numbers<[1], [0], [0], [1], [0, 0, 1, 1], [], []>} : vector<8x8xf32>, vector<8x8xf32>, vector<8x8xf32> -> vector<8x8xf32>
    %71 = arith.addf %66, %70 : vector<8x8xf32>
    %72 = vector.extract_strided_slice %56 {offsets = [0, 3], sizes = [8, 8], strides = [1, 1]} : vector<8x12xf32> to vector<8x8xf32>
    %c13 = arith.constant 13 : index
    %c0_51 = arith.constant 0 : index
    %c0_52 = arith.constant 0 : index
    %73 = vector.load %arg2[%c13, %c0_51, %c0_52] : memref<25x8x8xf32, #tpu.memory_space<vmem>>, vector<1x8x8xf32>
    %74 = vector.shape_cast %73 : vector<1x8x8xf32> to vector<8x8xf32>
    %cst_53 = arith.constant dense<0.000000e+00> : vector<8x8xf32>
    %75 = tpu.matmul %74, %72, %cst_53 {dimension_numbers = #tpu.dot_dimension_numbers<[1], [0], [0], [1], [0, 0, 1, 1], [], []>} : vector<8x8xf32>, vector<8x8xf32>, vector<8x8xf32> -> vector<8x8xf32>
    %76 = arith.addf %71, %75 : vector<8x8xf32>
    %77 = vector.extract_strided_slice %56 {offsets = [0, 4], sizes = [8, 8], strides = [1, 1]} : vector<8x12xf32> to vector<8x8xf32>
    %c14 = arith.constant 14 : index
    %c0_54 = arith.constant 0 : index
    %c0_55 = arith.constant 0 : index
    %78 = vector.load %arg2[%c14, %c0_54, %c0_55] : memref<25x8x8xf32, #tpu.memory_space<vmem>>, vector<1x8x8xf32>
    %79 = vector.shape_cast %78 : vector<1x8x8xf32> to vector<8x8xf32>
    %cst_56 = arith.constant dense<0.000000e+00> : vector<8x8xf32>
    %80 = tpu.matmul %79, %77, %cst_56 {dimension_numbers = #tpu.dot_dimension_numbers<[1], [0], [0], [1], [0, 0, 1, 1], [], []>} : vector<8x8xf32>, vector<8x8xf32>, vector<8x8xf32> -> vector<8x8xf32>
    %81 = arith.addf %76, %80 : vector<8x8xf32>
    %c0_57 = arith.constant 0 : index
    %c0_58 = arith.constant 0 : index
    %c0_59 = arith.constant 0 : index
    %c0_60 = arith.constant 0 : index
    %82 = vector.load %arg7[%c0_57, %c0_58, %c0_59, %c0_60] : memref<1x1x8x12xf32, #tpu.memory_space<vmem>>, vector<1x1x8x12xf32>
    %83 = vector.shape_cast %82 : vector<1x1x8x12xf32> to vector<8x12xf32>
    %84 = vector.extract_strided_slice %83 {offsets = [0, 0], sizes = [8, 8], strides = [1, 1]} : vector<8x12xf32> to vector<8x8xf32>
    %c15 = arith.constant 15 : index
    %c0_61 = arith.constant 0 : index
    %c0_62 = arith.constant 0 : index
    %85 = vector.load %arg2[%c15, %c0_61, %c0_62] : memref<25x8x8xf32, #tpu.memory_space<vmem>>, vector<1x8x8xf32>
    %86 = vector.shape_cast %85 : vector<1x8x8xf32> to vector<8x8xf32>
    %cst_63 = arith.constant dense<0.000000e+00> : vector<8x8xf32>
    %87 = tpu.matmul %86, %84, %cst_63 {dimension_numbers = #tpu.dot_dimension_numbers<[1], [0], [0], [1], [0, 0, 1, 1], [], []>} : vector<8x8xf32>, vector<8x8xf32>, vector<8x8xf32> -> vector<8x8xf32>
    %88 = arith.addf %81, %87 : vector<8x8xf32>
    %89 = vector.extract_strided_slice %83 {offsets = [0, 1], sizes = [8, 8], strides = [1, 1]} : vector<8x12xf32> to vector<8x8xf32>
    %c16 = arith.constant 16 : index
    %c0_64 = arith.constant 0 : index
    %c0_65 = arith.constant 0 : index
    %90 = vector.load %arg2[%c16, %c0_64, %c0_65] : memref<25x8x8xf32, #tpu.memory_space<vmem>>, vector<1x8x8xf32>
    %91 = vector.shape_cast %90 : vector<1x8x8xf32> to vector<8x8xf32>
    %cst_66 = arith.constant dense<0.000000e+00> : vector<8x8xf32>
    %92 = tpu.matmul %91, %89, %cst_66 {dimension_numbers = #tpu.dot_dimension_numbers<[1], [0], [0], [1], [0, 0, 1, 1], [], []>} : vector<8x8xf32>, vector<8x8xf32>, vector<8x8xf32> -> vector<8x8xf32>
    %93 = arith.addf %88, %92 : vector<8x8xf32>
    %94 = vector.extract_strided_slice %83 {offsets = [0, 2], sizes = [8, 8], strides = [1, 1]} : vector<8x12xf32> to vector<8x8xf32>
    %c17 = arith.constant 17 : index
    %c0_67 = arith.constant 0 : index
    %c0_68 = arith.constant 0 : index
    %95 = vector.load %arg2[%c17, %c0_67, %c0_68] : memref<25x8x8xf32, #tpu.memory_space<vmem>>, vector<1x8x8xf32>
    %96 = vector.shape_cast %95 : vector<1x8x8xf32> to vector<8x8xf32>
    %cst_69 = arith.constant dense<0.000000e+00> : vector<8x8xf32>
    %97 = tpu.matmul %96, %94, %cst_69 {dimension_numbers = #tpu.dot_dimension_numbers<[1], [0], [0], [1], [0, 0, 1, 1], [], []>} : vector<8x8xf32>, vector<8x8xf32>, vector<8x8xf32> -> vector<8x8xf32>
    %98 = arith.addf %93, %97 : vector<8x8xf32>
    %99 = vector.extract_strided_slice %83 {offsets = [0, 3], sizes = [8, 8], strides = [1, 1]} : vector<8x12xf32> to vector<8x8xf32>
    %c18 = arith.constant 18 : index
    %c0_70 = arith.constant 0 : index
    %c0_71 = arith.constant 0 : index
    %100 = vector.load %arg2[%c18, %c0_70, %c0_71] : memref<25x8x8xf32, #tpu.memory_space<vmem>>, vector<1x8x8xf32>
    %101 = vector.shape_cast %100 : vector<1x8x8xf32> to vector<8x8xf32>
    %cst_72 = arith.constant dense<0.000000e+00> : vector<8x8xf32>
    %102 = tpu.matmul %101, %99, %cst_72 {dimension_numbers = #tpu.dot_dimension_numbers<[1], [0], [0], [1], [0, 0, 1, 1], [], []>} : vector<8x8xf32>, vector<8x8xf32>, vector<8x8xf32> -> vector<8x8xf32>
    %103 = arith.addf %98, %102 : vector<8x8xf32>
    %104 = vector.extract_strided_slice %83 {offsets = [0, 4], sizes = [8, 8], strides = [1, 1]} : vector<8x12xf32> to vector<8x8xf32>
    %c19 = arith.constant 19 : index
    %c0_73 = arith.constant 0 : index
    %c0_74 = arith.constant 0 : index
    %105 = vector.load %arg2[%c19, %c0_73, %c0_74] : memref<25x8x8xf32, #tpu.memory_space<vmem>>, vector<1x8x8xf32>
    %106 = vector.shape_cast %105 : vector<1x8x8xf32> to vector<8x8xf32>
    %cst_75 = arith.constant dense<0.000000e+00> : vector<8x8xf32>
    %107 = tpu.matmul %106, %104, %cst_75 {dimension_numbers = #tpu.dot_dimension_numbers<[1], [0], [0], [1], [0, 0, 1, 1], [], []>} : vector<8x8xf32>, vector<8x8xf32>, vector<8x8xf32> -> vector<8x8xf32>
    %108 = arith.addf %103, %107 : vector<8x8xf32>
    %c0_76 = arith.constant 0 : index
    %c0_77 = arith.constant 0 : index
    %c0_78 = arith.constant 0 : index
    %c0_79 = arith.constant 0 : index
    %109 = vector.load %arg8[%c0_76, %c0_77, %c0_78, %c0_79] : memref<1x1x8x12xf32, #tpu.memory_space<vmem>>, vector<1x1x8x12xf32>
    %110 = vector.shape_cast %109 : vector<1x1x8x12xf32> to vector<8x12xf32>
    %111 = vector.extract_strided_slice %110 {offsets = [0, 0], sizes = [8, 8], strides = [1, 1]} : vector<8x12xf32> to vector<8x8xf32>
    %c20 = arith.constant 20 : index
    %c0_80 = arith.constant 0 : index
    %c0_81 = arith.constant 0 : index
    %112 = vector.load %arg2[%c20, %c0_80, %c0_81] : memref<25x8x8xf32, #tpu.memory_space<vmem>>, vector<1x8x8xf32>
    %113 = vector.shape_cast %112 : vector<1x8x8xf32> to vector<8x8xf32>
    %cst_82 = arith.constant dense<0.000000e+00> : vector<8x8xf32>
    %114 = tpu.matmul %113, %111, %cst_82 {dimension_numbers = #tpu.dot_dimension_numbers<[1], [0], [0], [1], [0, 0, 1, 1], [], []>} : vector<8x8xf32>, vector<8x8xf32>, vector<8x8xf32> -> vector<8x8xf32>
    %115 = arith.addf %108, %114 : vector<8x8xf32>
    %116 = vector.extract_strided_slice %110 {offsets = [0, 1], sizes = [8, 8], strides = [1, 1]} : vector<8x12xf32> to vector<8x8xf32>
    %c21 = arith.constant 21 : index
    %c0_83 = arith.constant 0 : index
    %c0_84 = arith.constant 0 : index
    %117 = vector.load %arg2[%c21, %c0_83, %c0_84] : memref<25x8x8xf32, #tpu.memory_space<vmem>>, vector<1x8x8xf32>
    %118 = vector.shape_cast %117 : vector<1x8x8xf32> to vector<8x8xf32>
    %cst_85 = arith.constant dense<0.000000e+00> : vector<8x8xf32>
    %119 = tpu.matmul %118, %116, %cst_85 {dimension_numbers = #tpu.dot_dimension_numbers<[1], [0], [0], [1], [0, 0, 1, 1], [], []>} : vector<8x8xf32>, vector<8x8xf32>, vector<8x8xf32> -> vector<8x8xf32>
    %120 = arith.addf %115, %119 : vector<8x8xf32>
    %121 = vector.extract_strided_slice %110 {offsets = [0, 2], sizes = [8, 8], strides = [1, 1]} : vector<8x12xf32> to vector<8x8xf32>
    %c22 = arith.constant 22 : index
    %c0_86 = arith.constant 0 : index
    %c0_87 = arith.constant 0 : index
    %122 = vector.load %arg2[%c22, %c0_86, %c0_87] : memref<25x8x8xf32, #tpu.memory_space<vmem>>, vector<1x8x8xf32>
    %123 = vector.shape_cast %122 : vector<1x8x8xf32> to vector<8x8xf32>
    %cst_88 = arith.constant dense<0.000000e+00> : vector<8x8xf32>
    %124 = tpu.matmul %123, %121, %cst_88 {dimension_numbers = #tpu.dot_dimension_numbers<[1], [0], [0], [1], [0, 0, 1, 1], [], []>} : vector<8x8xf32>, vector<8x8xf32>, vector<8x8xf32> -> vector<8x8xf32>
    %125 = arith.addf %120, %124 : vector<8x8xf32>
    %126 = vector.extract_strided_slice %110 {offsets = [0, 3], sizes = [8, 8], strides = [1, 1]} : vector<8x12xf32> to vector<8x8xf32>
    %c23 = arith.constant 23 : index
    %c0_89 = arith.constant 0 : index
    %c0_90 = arith.constant 0 : index
    %127 = vector.load %arg2[%c23, %c0_89, %c0_90] : memref<25x8x8xf32, #tpu.memory_space<vmem>>, vector<1x8x8xf32>
    %128 = vector.shape_cast %127 : vector<1x8x8xf32> to vector<8x8xf32>
    %cst_91 = arith.constant dense<0.000000e+00> : vector<8x8xf32>
    %129 = tpu.matmul %128, %126, %cst_91 {dimension_numbers = #tpu.dot_dimension_numbers<[1], [0], [0], [1], [0, 0, 1, 1], [], []>} : vector<8x8xf32>, vector<8x8xf32>, vector<8x8xf32> -> vector<8x8xf32>
    %130 = arith.addf %125, %129 : vector<8x8xf32>
    %131 = vector.extract_strided_slice %110 {offsets = [0, 4], sizes = [8, 8], strides = [1, 1]} : vector<8x12xf32> to vector<8x8xf32>
    %c24 = arith.constant 24 : index
    %c0_92 = arith.constant 0 : index
    %c0_93 = arith.constant 0 : index
    %132 = vector.load %arg2[%c24, %c0_92, %c0_93] : memref<25x8x8xf32, #tpu.memory_space<vmem>>, vector<1x8x8xf32>
    %133 = vector.shape_cast %132 : vector<1x8x8xf32> to vector<8x8xf32>
    %cst_94 = arith.constant dense<0.000000e+00> : vector<8x8xf32>
    %134 = tpu.matmul %133, %131, %cst_94 {dimension_numbers = #tpu.dot_dimension_numbers<[1], [0], [0], [1], [0, 0, 1, 1], [], []>} : vector<8x8xf32>, vector<8x8xf32>, vector<8x8xf32> -> vector<8x8xf32>
    %135 = arith.addf %130, %134 : vector<8x8xf32>
    %c0_95 = arith.constant 0 : index
    %c0_96 = arith.constant 0 : index
    %136 = vector.load %arg3[%c0_95, %c0_96] : memref<8x1xf32, #tpu.memory_space<vmem>>, vector<8x1xf32>
    %137 = vector.broadcast %136 : vector<8x1xf32> to vector<8x8xf32>
    %138 = arith.addf %135, %137 : vector<8x8xf32>
    %cst_97 = arith.constant 0.000000e+00 : f32
    %139 = vector.broadcast %cst_97 : f32 to vector<8x8xf32>
    %140 = arith.cmpf oge, %138, %139 : vector<8x8xf32>
    %cst_98 = arith.constant 0.00999999977 : f32
    %141 = vector.broadcast %cst_98 : f32 to vector<8x8xf32>
    %142 = arith.mulf %141, %138 : vector<8x8xf32>
    %143 = arith.select %140, %138, %142 : vector<8x8xi1>, vector<8x8xf32>
    %c0_99 = arith.constant 0 : index
    %c0_100 = arith.constant 0 : index
    %c0_101 = arith.constant 0 : index
    %c0_102 = arith.constant 0 : index
    %144 = vector.load %arg9[%c0_99, %c0_100, %c0_101, %c0_102] : memref<1x1x8x8xf32, #tpu.memory_space<vmem>>, vector<1x1x8x8xf32>
    %145 = vector.shape_cast %144 : vector<1x1x8x8xf32> to vector<8x8xf32>
    %146 = vector.shape_cast %143 : vector<8x8xf32> to vector<1x1x8x8xf32>
    tpu.vector_store %arg9[%c0_99, %c0_100, %c0_101, %c0_102], %146 {strides = array<i32>} : memref<1x1x8x8xf32, #tpu.memory_space<vmem>>, vector<1x1x8x8xf32>,
    return
  }
  func.func @transform_0(%arg0: i32, %arg1: i32) -> (i32, i32, i32) {
    %c0_i32 = arith.constant 0 : i32
    %c0_i32_0 = arith.constant 0 : i32
    %c0_i32_1 = arith.constant 0 : i32
    %c0_i32_2 = arith.constant 0 : i32
    return %c0_i32, %c0_i32_0, %c0_i32_1 : i32, i32, i32
  }
  func.func @transform_1(%arg0: i32, %arg1: i32) -> (i32, i32) {
    %c0_i32 = arith.constant 0 : i32
    %c0_i32_0 = arith.constant 0 : i32
    %c0_i32_1 = arith.constant 0 : i32
    return %c0_i32, %c0_i32_0 : i32, i32
  }
  func.func @transform_2(%arg0: i32, %arg1: i32) -> (i32, i32, i32, i32) {
    %c0_i32 = arith.constant 0 : i32
    %0 = arith.addi %arg1, %c0_i32 : i32
    %c0_i32_0 = arith.constant 0 : i32
    %c0_i32_1 = arith.constant 0 : i32
    %c0_i32_2 = arith.constant 0 : i32
    return %arg0, %0, %c0_i32_0, %c0_i32_1 : i32, i32, i32, i32
  }
  func.func @transform_3(%arg0: i32, %arg1: i32) -> (i32, i32, i32, i32) {
    %c1_i32 = arith.constant 1 : i32
    %0 = arith.addi %arg1, %c1_i32 : i32
    %c0_i32 = arith.constant 0 : i32
    %c0_i32_0 = arith.constant 0 : i32
    %c0_i32_1 = arith.constant 0 : i32
    return %arg0, %0, %c0_i32, %c0_i32_0 : i32, i32, i32, i32
  }
  func.func @transform_4(%arg0: i32, %arg1: i32) -> (i32, i32, i32, i32) {
    %c2_i32 = arith.constant 2 : i32
    %0 = arith.addi %arg1, %c2_i32 : i32
    %c0_i32 = arith.constant 0 : i32
    %c0_i32_0 = arith.constant 0 : i32
    %c0_i32_1 = arith.constant 0 : i32
    return %arg0, %0, %c0_i32, %c0_i32_0 : i32, i32, i32, i32
  }
  func.func @transform_5(%arg0: i32, %arg1: i32) -> (i32, i32, i32, i32) {
    %c3_i32 = arith.constant 3 : i32
    %0 = arith.addi %arg1, %c3_i32 : i32
    %c0_i32 = arith.constant 0 : i32
    %c0_i32_0 = arith.constant 0 : i32
    %c0_i32_1 = arith.constant 0 : i32
    return %arg0, %0, %c0_i32, %c0_i32_0 : i32, i32, i32, i32
  }
  func.func @transform_6(%arg0: i32, %arg1: i32) -> (i32, i32, i32, i32) {
    %c4_i32 = arith.constant 4 : i32
    %0 = arith.addi %arg1, %c4_i32 : i32
    %c0_i32 = arith.constant 0 : i32
    %c0_i32_0 = arith.constant 0 : i32
    %c0_i32_1 = arith.constant 0 : i32
    return %arg0, %0, %c0_i32, %c0_i32_0 : i32, i32, i32, i32
  }
  func.func @transform_7(%arg0: i32, %arg1: i32) -> (i32, i32, i32, i32) {
    %c0_i32 = arith.constant 0 : i32
    %c0_i32_0 = arith.constant 0 : i32
    %c0_i32_1 = arith.constant 0 : i32
    return %arg0, %arg1, %c0_i32, %c0_i32_0 : i32, i32, i32, i32
  }
}

module attributes {stable_mosaic.version = 11 : i64} {
  func.func @_conv_taps_kernel(%arg0: i32, %arg1: i32, %arg2: memref<25x8x8xf32, #tpu.memory_space<vmem>>, %arg3: memref<8x1xf32, #tpu.memory_space<vmem>>, %arg4: memref<1x1x8x32xf32, #tpu.memory_space<vmem>>, %arg5: memref<1x1x8x8xf32, #tpu.memory_space<vmem>>) attributes {dimension_semantics = [#tpu.dimension_semantics<parallel>, #tpu.dimension_semantics<parallel>], iteration_bounds = array<i64: 1, 16>, scalar_prefetch = 0 : i64, scratch_operands = 0 : i64, tpu.core_type = #tpu.core_type<tc>, window_params = [{pipeline_mode = #tpu.pipeline_mode<synchronous>, transform_indices = @transform_0, window_bounds = array<i64: 25, 8, 8>}, {pipeline_mode = #tpu.pipeline_mode<synchronous>, transform_indices = @transform_1, window_bounds = array<i64: 8, 1>}, {transform_indices = @transform_2, window_bounds = array<i64: 1, 1, 8, 32>}, {transform_indices = @transform_3, window_bounds = array<i64: 1, 1, 8, 8>}]} {
    %cst = arith.constant 0.000000e+00 : f32
    %0 = vector.broadcast %cst : f32 to vector<8x8xf32>
    %c0 = arith.constant 0 : index
    %c0_0 = arith.constant 0 : index
    %c0_1 = arith.constant 0 : index
    %c0_2 = arith.constant 0 : index
    %1 = vector.load %arg4[%c0, %c0_0, %c0_1, %c0_2] : memref<1x1x8x32xf32, #tpu.memory_space<vmem>>, vector<1x1x8x32xf32>
    %2 = vector.shape_cast %1 : vector<1x1x8x32xf32> to vector<8x32xf32>
    %3 = vector.extract_strided_slice %2 {offsets = [0, 0], sizes = [8, 8], strides = [1, 1]} : vector<8x32xf32> to vector<8x8xf32>
    %c0_3 = arith.constant 0 : index
    %c0_4 = arith.constant 0 : index
    %c0_5 = arith.constant 0 : index
    %4 = vector.load %arg2[%c0_3, %c0_4, %c0_5] : memref<25x8x8xf32, #tpu.memory_space<vmem>>, vector<1x8x8xf32>
    %5 = vector.shape_cast %4 : vector<1x8x8xf32> to vector<8x8xf32>
    %cst_6 = arith.constant dense<0.000000e+00> : vector<8x8xf32>
    %6 = tpu.matmul %5, %3, %cst_6 {dimension_numbers = #tpu.dot_dimension_numbers<[1], [0], [0], [1], [0, 0, 1, 1], [], []>} : vector<8x8xf32>, vector<8x8xf32>, vector<8x8xf32> -> vector<8x8xf32>
    %7 = arith.addf %0, %6 : vector<8x8xf32>
    %8 = vector.extract_strided_slice %2 {offsets = [0, 1], sizes = [8, 8], strides = [1, 1]} : vector<8x32xf32> to vector<8x8xf32>
    %c1 = arith.constant 1 : index
    %c0_7 = arith.constant 0 : index
    %c0_8 = arith.constant 0 : index
    %9 = vector.load %arg2[%c1, %c0_7, %c0_8] : memref<25x8x8xf32, #tpu.memory_space<vmem>>, vector<1x8x8xf32>
    %10 = vector.shape_cast %9 : vector<1x8x8xf32> to vector<8x8xf32>
    %cst_9 = arith.constant dense<0.000000e+00> : vector<8x8xf32>
    %11 = tpu.matmul %10, %8, %cst_9 {dimension_numbers = #tpu.dot_dimension_numbers<[1], [0], [0], [1], [0, 0, 1, 1], [], []>} : vector<8x8xf32>, vector<8x8xf32>, vector<8x8xf32> -> vector<8x8xf32>
    %12 = arith.addf %7, %11 : vector<8x8xf32>
    %13 = vector.extract_strided_slice %2 {offsets = [0, 2], sizes = [8, 8], strides = [1, 1]} : vector<8x32xf32> to vector<8x8xf32>
    %c2 = arith.constant 2 : index
    %c0_10 = arith.constant 0 : index
    %c0_11 = arith.constant 0 : index
    %14 = vector.load %arg2[%c2, %c0_10, %c0_11] : memref<25x8x8xf32, #tpu.memory_space<vmem>>, vector<1x8x8xf32>
    %15 = vector.shape_cast %14 : vector<1x8x8xf32> to vector<8x8xf32>
    %cst_12 = arith.constant dense<0.000000e+00> : vector<8x8xf32>
    %16 = tpu.matmul %15, %13, %cst_12 {dimension_numbers = #tpu.dot_dimension_numbers<[1], [0], [0], [1], [0, 0, 1, 1], [], []>} : vector<8x8xf32>, vector<8x8xf32>, vector<8x8xf32> -> vector<8x8xf32>
    %17 = arith.addf %12, %16 : vector<8x8xf32>
    %18 = vector.extract_strided_slice %2 {offsets = [0, 3], sizes = [8, 8], strides = [1, 1]} : vector<8x32xf32> to vector<8x8xf32>
    %c3 = arith.constant 3 : index
    %c0_13 = arith.constant 0 : index
    %c0_14 = arith.constant 0 : index
    %19 = vector.load %arg2[%c3, %c0_13, %c0_14] : memref<25x8x8xf32, #tpu.memory_space<vmem>>, vector<1x8x8xf32>
    %20 = vector.shape_cast %19 : vector<1x8x8xf32> to vector<8x8xf32>
    %cst_15 = arith.constant dense<0.000000e+00> : vector<8x8xf32>
    %21 = tpu.matmul %20, %18, %cst_15 {dimension_numbers = #tpu.dot_dimension_numbers<[1], [0], [0], [1], [0, 0, 1, 1], [], []>} : vector<8x8xf32>, vector<8x8xf32>, vector<8x8xf32> -> vector<8x8xf32>
    %22 = arith.addf %17, %21 : vector<8x8xf32>
    %23 = vector.extract_strided_slice %2 {offsets = [0, 4], sizes = [8, 8], strides = [1, 1]} : vector<8x32xf32> to vector<8x8xf32>
    %c4 = arith.constant 4 : index
    %c0_16 = arith.constant 0 : index
    %c0_17 = arith.constant 0 : index
    %24 = vector.load %arg2[%c4, %c0_16, %c0_17] : memref<25x8x8xf32, #tpu.memory_space<vmem>>, vector<1x8x8xf32>
    %25 = vector.shape_cast %24 : vector<1x8x8xf32> to vector<8x8xf32>
    %cst_18 = arith.constant dense<0.000000e+00> : vector<8x8xf32>
    %26 = tpu.matmul %25, %23, %cst_18 {dimension_numbers = #tpu.dot_dimension_numbers<[1], [0], [0], [1], [0, 0, 1, 1], [], []>} : vector<8x8xf32>, vector<8x8xf32>, vector<8x8xf32> -> vector<8x8xf32>
    %27 = arith.addf %22, %26 : vector<8x8xf32>
    %28 = vector.extract_strided_slice %2 {offsets = [0, 5], sizes = [8, 8], strides = [1, 1]} : vector<8x32xf32> to vector<8x8xf32>
    %c5 = arith.constant 5 : index
    %c0_19 = arith.constant 0 : index
    %c0_20 = arith.constant 0 : index
    %29 = vector.load %arg2[%c5, %c0_19, %c0_20] : memref<25x8x8xf32, #tpu.memory_space<vmem>>, vector<1x8x8xf32>
    %30 = vector.shape_cast %29 : vector<1x8x8xf32> to vector<8x8xf32>
    %cst_21 = arith.constant dense<0.000000e+00> : vector<8x8xf32>
    %31 = tpu.matmul %30, %28, %cst_21 {dimension_numbers = #tpu.dot_dimension_numbers<[1], [0], [0], [1], [0, 0, 1, 1], [], []>} : vector<8x8xf32>, vector<8x8xf32>, vector<8x8xf32> -> vector<8x8xf32>
    %32 = arith.addf %27, %31 : vector<8x8xf32>
    %33 = vector.extract_strided_slice %2 {offsets = [0, 6], sizes = [8, 8], strides = [1, 1]} : vector<8x32xf32> to vector<8x8xf32>
    %c6 = arith.constant 6 : index
    %c0_22 = arith.constant 0 : index
    %c0_23 = arith.constant 0 : index
    %34 = vector.load %arg2[%c6, %c0_22, %c0_23] : memref<25x8x8xf32, #tpu.memory_space<vmem>>, vector<1x8x8xf32>
    %35 = vector.shape_cast %34 : vector<1x8x8xf32> to vector<8x8xf32>
    %cst_24 = arith.constant dense<0.000000e+00> : vector<8x8xf32>
    %36 = tpu.matmul %35, %33, %cst_24 {dimension_numbers = #tpu.dot_dimension_numbers<[1], [0], [0], [1], [0, 0, 1, 1], [], []>} : vector<8x8xf32>, vector<8x8xf32>, vector<8x8xf32> -> vector<8x8xf32>
    %37 = arith.addf %32, %36 : vector<8x8xf32>
    %38 = vector.extract_strided_slice %2 {offsets = [0, 7], sizes = [8, 8], strides = [1, 1]} : vector<8x32xf32> to vector<8x8xf32>
    %c7 = arith.constant 7 : index
    %c0_25 = arith.constant 0 : index
    %c0_26 = arith.constant 0 : index
    %39 = vector.load %arg2[%c7, %c0_25, %c0_26] : memref<25x8x8xf32, #tpu.memory_space<vmem>>, vector<1x8x8xf32>
    %40 = vector.shape_cast %39 : vector<1x8x8xf32> to vector<8x8xf32>
    %cst_27 = arith.constant dense<0.000000e+00> : vector<8x8xf32>
    %41 = tpu.matmul %40, %38, %cst_27 {dimension_numbers = #tpu.dot_dimension_numbers<[1], [0], [0], [1], [0, 0, 1, 1], [], []>} : vector<8x8xf32>, vector<8x8xf32>, vector<8x8xf32> -> vector<8x8xf32>
    %42 = arith.addf %37, %41 : vector<8x8xf32>
    %43 = vector.extract_strided_slice %2 {offsets = [0, 8], sizes = [8, 8], strides = [1, 1]} : vector<8x32xf32> to vector<8x8xf32>
    %c8 = arith.constant 8 : index
    %c0_28 = arith.constant 0 : index
    %c0_29 = arith.constant 0 : index
    %44 = vector.load %arg2[%c8, %c0_28, %c0_29] : memref<25x8x8xf32, #tpu.memory_space<vmem>>, vector<1x8x8xf32>
    %45 = vector.shape_cast %44 : vector<1x8x8xf32> to vector<8x8xf32>
    %cst_30 = arith.constant dense<0.000000e+00> : vector<8x8xf32>
    %46 = tpu.matmul %45, %43, %cst_30 {dimension_numbers = #tpu.dot_dimension_numbers<[1], [0], [0], [1], [0, 0, 1, 1], [], []>} : vector<8x8xf32>, vector<8x8xf32>, vector<8x8xf32> -> vector<8x8xf32>
    %47 = arith.addf %42, %46 : vector<8x8xf32>
    %48 = vector.extract_strided_slice %2 {offsets = [0, 9], sizes = [8, 8], strides = [1, 1]} : vector<8x32xf32> to vector<8x8xf32>
    %c9 = arith.constant 9 : index
    %c0_31 = arith.constant 0 : index
    %c0_32 = arith.constant 0 : index
    %49 = vector.load %arg2[%c9, %c0_31, %c0_32] : memref<25x8x8xf32, #tpu.memory_space<vmem>>, vector<1x8x8xf32>
    %50 = vector.shape_cast %49 : vector<1x8x8xf32> to vector<8x8xf32>
    %cst_33 = arith.constant dense<0.000000e+00> : vector<8x8xf32>
    %51 = tpu.matmul %50, %48, %cst_33 {dimension_numbers = #tpu.dot_dimension_numbers<[1], [0], [0], [1], [0, 0, 1, 1], [], []>} : vector<8x8xf32>, vector<8x8xf32>, vector<8x8xf32> -> vector<8x8xf32>
    %52 = arith.addf %47, %51 : vector<8x8xf32>
    %53 = vector.extract_strided_slice %2 {offsets = [0, 10], sizes = [8, 8], strides = [1, 1]} : vector<8x32xf32> to vector<8x8xf32>
    %c10 = arith.constant 10 : index
    %c0_34 = arith.constant 0 : index
    %c0_35 = arith.constant 0 : index
    %54 = vector.load %arg2[%c10, %c0_34, %c0_35] : memref<25x8x8xf32, #tpu.memory_space<vmem>>, vector<1x8x8xf32>
    %55 = vector.shape_cast %54 : vector<1x8x8xf32> to vector<8x8xf32>
    %cst_36 = arith.constant dense<0.000000e+00> : vector<8x8xf32>
    %56 = tpu.matmul %55, %53, %cst_36 {dimension_numbers = #tpu.dot_dimension_numbers<[1], [0], [0], [1], [0, 0, 1, 1], [], []>} : vector<8x8xf32>, vector<8x8xf32>, vector<8x8xf32> -> vector<8x8xf32>
    %57 = arith.addf %52, %56 : vector<8x8xf32>
    %58 = vector.extract_strided_slice %2 {offsets = [0, 11], sizes = [8, 8], strides = [1, 1]} : vector<8x32xf32> to vector<8x8xf32>
    %c11 = arith.constant 11 : index
    %c0_37 = arith.constant 0 : index
    %c0_38 = arith.constant 0 : index
    %59 = vector.load %arg2[%c11, %c0_37, %c0_38] : memref<25x8x8xf32, #tpu.memory_space<vmem>>, vector<1x8x8xf32>
    %60 = vector.shape_cast %59 : vector<1x8x8xf32> to vector<8x8xf32>
    %cst_39 = arith.constant dense<0.000000e+00> : vector<8x8xf32>
    %61 = tpu.matmul %60, %58, %cst_39 {dimension_numbers = #tpu.dot_dimension_numbers<[1], [0], [0], [1], [0, 0, 1, 1], [], []>} : vector<8x8xf32>, vector<8x8xf32>, vector<8x8xf32> -> vector<8x8xf32>
    %62 = arith.addf %57, %61 : vector<8x8xf32>
    %63 = vector.extract_strided_slice %2 {offsets = [0, 12], sizes = [8, 8], strides = [1, 1]} : vector<8x32xf32> to vector<8x8xf32>
    %c12 = arith.constant 12 : index
    %c0_40 = arith.constant 0 : index
    %c0_41 = arith.constant 0 : index
    %64 = vector.load %arg2[%c12, %c0_40, %c0_41] : memref<25x8x8xf32, #tpu.memory_space<vmem>>, vector<1x8x8xf32>
    %65 = vector.shape_cast %64 : vector<1x8x8xf32> to vector<8x8xf32>
    %cst_42 = arith.constant dense<0.000000e+00> : vector<8x8xf32>
    %66 = tpu.matmul %65, %63, %cst_42 {dimension_numbers = #tpu.dot_dimension_numbers<[1], [0], [0], [1], [0, 0, 1, 1], [], []>} : vector<8x8xf32>, vector<8x8xf32>, vector<8x8xf32> -> vector<8x8xf32>
    %67 = arith.addf %62, %66 : vector<8x8xf32>
    %68 = vector.extract_strided_slice %2 {offsets = [0, 13], sizes = [8, 8], strides = [1, 1]} : vector<8x32xf32> to vector<8x8xf32>
    %c13 = arith.constant 13 : index
    %c0_43 = arith.constant 0 : index
    %c0_44 = arith.constant 0 : index
    %69 = vector.load %arg2[%c13, %c0_43, %c0_44] : memref<25x8x8xf32, #tpu.memory_space<vmem>>, vector<1x8x8xf32>
    %70 = vector.shape_cast %69 : vector<1x8x8xf32> to vector<8x8xf32>
    %cst_45 = arith.constant dense<0.000000e+00> : vector<8x8xf32>
    %71 = tpu.matmul %70, %68, %cst_45 {dimension_numbers = #tpu.dot_dimension_numbers<[1], [0], [0], [1], [0, 0, 1, 1], [], []>} : vector<8x8xf32>, vector<8x8xf32>, vector<8x8xf32> -> vector<8x8xf32>
    %72 = arith.addf %67, %71 : vector<8x8xf32>
    %73 = vector.extract_strided_slice %2 {offsets = [0, 14], sizes = [8, 8], strides = [1, 1]} : vector<8x32xf32> to vector<8x8xf32>
    %c14 = arith.constant 14 : index
    %c0_46 = arith.constant 0 : index
    %c0_47 = arith.constant 0 : index
    %74 = vector.load %arg2[%c14, %c0_46, %c0_47] : memref<25x8x8xf32, #tpu.memory_space<vmem>>, vector<1x8x8xf32>
    %75 = vector.shape_cast %74 : vector<1x8x8xf32> to vector<8x8xf32>
    %cst_48 = arith.constant dense<0.000000e+00> : vector<8x8xf32>
    %76 = tpu.matmul %75, %73, %cst_48 {dimension_numbers = #tpu.dot_dimension_numbers<[1], [0], [0], [1], [0, 0, 1, 1], [], []>} : vector<8x8xf32>, vector<8x8xf32>, vector<8x8xf32> -> vector<8x8xf32>
    %77 = arith.addf %72, %76 : vector<8x8xf32>
    %78 = vector.extract_strided_slice %2 {offsets = [0, 15], sizes = [8, 8], strides = [1, 1]} : vector<8x32xf32> to vector<8x8xf32>
    %c15 = arith.constant 15 : index
    %c0_49 = arith.constant 0 : index
    %c0_50 = arith.constant 0 : index
    %79 = vector.load %arg2[%c15, %c0_49, %c0_50] : memref<25x8x8xf32, #tpu.memory_space<vmem>>, vector<1x8x8xf32>
    %80 = vector.shape_cast %79 : vector<1x8x8xf32> to vector<8x8xf32>
    %cst_51 = arith.constant dense<0.000000e+00> : vector<8x8xf32>
    %81 = tpu.matmul %80, %78, %cst_51 {dimension_numbers = #tpu.dot_dimension_numbers<[1], [0], [0], [1], [0, 0, 1, 1], [], []>} : vector<8x8xf32>, vector<8x8xf32>, vector<8x8xf32> -> vector<8x8xf32>
    %82 = arith.addf %77, %81 : vector<8x8xf32>
    %83 = vector.extract_strided_slice %2 {offsets = [0, 16], sizes = [8, 8], strides = [1, 1]} : vector<8x32xf32> to vector<8x8xf32>
    %c16 = arith.constant 16 : index
    %c0_52 = arith.constant 0 : index
    %c0_53 = arith.constant 0 : index
    %84 = vector.load %arg2[%c16, %c0_52, %c0_53] : memref<25x8x8xf32, #tpu.memory_space<vmem>>, vector<1x8x8xf32>
    %85 = vector.shape_cast %84 : vector<1x8x8xf32> to vector<8x8xf32>
    %cst_54 = arith.constant dense<0.000000e+00> : vector<8x8xf32>
    %86 = tpu.matmul %85, %83, %cst_54 {dimension_numbers = #tpu.dot_dimension_numbers<[1], [0], [0], [1], [0, 0, 1, 1], [], []>} : vector<8x8xf32>, vector<8x8xf32>, vector<8x8xf32> -> vector<8x8xf32>
    %87 = arith.addf %82, %86 : vector<8x8xf32>
    %88 = vector.extract_strided_slice %2 {offsets = [0, 17], sizes = [8, 8], strides = [1, 1]} : vector<8x32xf32> to vector<8x8xf32>
    %c17 = arith.constant 17 : index
    %c0_55 = arith.constant 0 : index
    %c0_56 = arith.constant 0 : index
    %89 = vector.load %arg2[%c17, %c0_55, %c0_56] : memref<25x8x8xf32, #tpu.memory_space<vmem>>, vector<1x8x8xf32>
    %90 = vector.shape_cast %89 : vector<1x8x8xf32> to vector<8x8xf32>
    %cst_57 = arith.constant dense<0.000000e+00> : vector<8x8xf32>
    %91 = tpu.matmul %90, %88, %cst_57 {dimension_numbers = #tpu.dot_dimension_numbers<[1], [0], [0], [1], [0, 0, 1, 1], [], []>} : vector<8x8xf32>, vector<8x8xf32>, vector<8x8xf32> -> vector<8x8xf32>
    %92 = arith.addf %87, %91 : vector<8x8xf32>
    %93 = vector.extract_strided_slice %2 {offsets = [0, 18], sizes = [8, 8], strides = [1, 1]} : vector<8x32xf32> to vector<8x8xf32>
    %c18 = arith.constant 18 : index
    %c0_58 = arith.constant 0 : index
    %c0_59 = arith.constant 0 : index
    %94 = vector.load %arg2[%c18, %c0_58, %c0_59] : memref<25x8x8xf32, #tpu.memory_space<vmem>>, vector<1x8x8xf32>
    %95 = vector.shape_cast %94 : vector<1x8x8xf32> to vector<8x8xf32>
    %cst_60 = arith.constant dense<0.000000e+00> : vector<8x8xf32>
    %96 = tpu.matmul %95, %93, %cst_60 {dimension_numbers = #tpu.dot_dimension_numbers<[1], [0], [0], [1], [0, 0, 1, 1], [], []>} : vector<8x8xf32>, vector<8x8xf32>, vector<8x8xf32> -> vector<8x8xf32>
    %97 = arith.addf %92, %96 : vector<8x8xf32>
    %98 = vector.extract_strided_slice %2 {offsets = [0, 19], sizes = [8, 8], strides = [1, 1]} : vector<8x32xf32> to vector<8x8xf32>
    %c19 = arith.constant 19 : index
    %c0_61 = arith.constant 0 : index
    %c0_62 = arith.constant 0 : index
    %99 = vector.load %arg2[%c19, %c0_61, %c0_62] : memref<25x8x8xf32, #tpu.memory_space<vmem>>, vector<1x8x8xf32>
    %100 = vector.shape_cast %99 : vector<1x8x8xf32> to vector<8x8xf32>
    %cst_63 = arith.constant dense<0.000000e+00> : vector<8x8xf32>
    %101 = tpu.matmul %100, %98, %cst_63 {dimension_numbers = #tpu.dot_dimension_numbers<[1], [0], [0], [1], [0, 0, 1, 1], [], []>} : vector<8x8xf32>, vector<8x8xf32>, vector<8x8xf32> -> vector<8x8xf32>
    %102 = arith.addf %97, %101 : vector<8x8xf32>
    %103 = vector.extract_strided_slice %2 {offsets = [0, 20], sizes = [8, 8], strides = [1, 1]} : vector<8x32xf32> to vector<8x8xf32>
    %c20 = arith.constant 20 : index
    %c0_64 = arith.constant 0 : index
    %c0_65 = arith.constant 0 : index
    %104 = vector.load %arg2[%c20, %c0_64, %c0_65] : memref<25x8x8xf32, #tpu.memory_space<vmem>>, vector<1x8x8xf32>
    %105 = vector.shape_cast %104 : vector<1x8x8xf32> to vector<8x8xf32>
    %cst_66 = arith.constant dense<0.000000e+00> : vector<8x8xf32>
    %106 = tpu.matmul %105, %103, %cst_66 {dimension_numbers = #tpu.dot_dimension_numbers<[1], [0], [0], [1], [0, 0, 1, 1], [], []>} : vector<8x8xf32>, vector<8x8xf32>, vector<8x8xf32> -> vector<8x8xf32>
    %107 = arith.addf %102, %106 : vector<8x8xf32>
    %108 = vector.extract_strided_slice %2 {offsets = [0, 21], sizes = [8, 8], strides = [1, 1]} : vector<8x32xf32> to vector<8x8xf32>
    %c21 = arith.constant 21 : index
    %c0_67 = arith.constant 0 : index
    %c0_68 = arith.constant 0 : index
    %109 = vector.load %arg2[%c21, %c0_67, %c0_68] : memref<25x8x8xf32, #tpu.memory_space<vmem>>, vector<1x8x8xf32>
    %110 = vector.shape_cast %109 : vector<1x8x8xf32> to vector<8x8xf32>
    %cst_69 = arith.constant dense<0.000000e+00> : vector<8x8xf32>
    %111 = tpu.matmul %110, %108, %cst_69 {dimension_numbers = #tpu.dot_dimension_numbers<[1], [0], [0], [1], [0, 0, 1, 1], [], []>} : vector<8x8xf32>, vector<8x8xf32>, vector<8x8xf32> -> vector<8x8xf32>
    %112 = arith.addf %107, %111 : vector<8x8xf32>
    %113 = vector.extract_strided_slice %2 {offsets = [0, 22], sizes = [8, 8], strides = [1, 1]} : vector<8x32xf32> to vector<8x8xf32>
    %c22 = arith.constant 22 : index
    %c0_70 = arith.constant 0 : index
    %c0_71 = arith.constant 0 : index
    %114 = vector.load %arg2[%c22, %c0_70, %c0_71] : memref<25x8x8xf32, #tpu.memory_space<vmem>>, vector<1x8x8xf32>
    %115 = vector.shape_cast %114 : vector<1x8x8xf32> to vector<8x8xf32>
    %cst_72 = arith.constant dense<0.000000e+00> : vector<8x8xf32>
    %116 = tpu.matmul %115, %113, %cst_72 {dimension_numbers = #tpu.dot_dimension_numbers<[1], [0], [0], [1], [0, 0, 1, 1], [], []>} : vector<8x8xf32>, vector<8x8xf32>, vector<8x8xf32> -> vector<8x8xf32>
    %117 = arith.addf %112, %116 : vector<8x8xf32>
    %118 = vector.extract_strided_slice %2 {offsets = [0, 23], sizes = [8, 8], strides = [1, 1]} : vector<8x32xf32> to vector<8x8xf32>
    %c23 = arith.constant 23 : index
    %c0_73 = arith.constant 0 : index
    %c0_74 = arith.constant 0 : index
    %119 = vector.load %arg2[%c23, %c0_73, %c0_74] : memref<25x8x8xf32, #tpu.memory_space<vmem>>, vector<1x8x8xf32>
    %120 = vector.shape_cast %119 : vector<1x8x8xf32> to vector<8x8xf32>
    %cst_75 = arith.constant dense<0.000000e+00> : vector<8x8xf32>
    %121 = tpu.matmul %120, %118, %cst_75 {dimension_numbers = #tpu.dot_dimension_numbers<[1], [0], [0], [1], [0, 0, 1, 1], [], []>} : vector<8x8xf32>, vector<8x8xf32>, vector<8x8xf32> -> vector<8x8xf32>
    %122 = arith.addf %117, %121 : vector<8x8xf32>
    %123 = vector.extract_strided_slice %2 {offsets = [0, 24], sizes = [8, 8], strides = [1, 1]} : vector<8x32xf32> to vector<8x8xf32>
    %c24 = arith.constant 24 : index
    %c0_76 = arith.constant 0 : index
    %c0_77 = arith.constant 0 : index
    %124 = vector.load %arg2[%c24, %c0_76, %c0_77] : memref<25x8x8xf32, #tpu.memory_space<vmem>>, vector<1x8x8xf32>
    %125 = vector.shape_cast %124 : vector<1x8x8xf32> to vector<8x8xf32>
    %cst_78 = arith.constant dense<0.000000e+00> : vector<8x8xf32>
    %126 = tpu.matmul %125, %123, %cst_78 {dimension_numbers = #tpu.dot_dimension_numbers<[1], [0], [0], [1], [0, 0, 1, 1], [], []>} : vector<8x8xf32>, vector<8x8xf32>, vector<8x8xf32> -> vector<8x8xf32>
    %127 = arith.addf %122, %126 : vector<8x8xf32>
    %c0_79 = arith.constant 0 : index
    %c0_80 = arith.constant 0 : index
    %128 = vector.load %arg3[%c0_79, %c0_80] : memref<8x1xf32, #tpu.memory_space<vmem>>, vector<8x1xf32>
    %129 = vector.broadcast %128 : vector<8x1xf32> to vector<8x8xf32>
    %130 = arith.addf %127, %129 : vector<8x8xf32>
    %cst_81 = arith.constant 0.000000e+00 : f32
    %131 = vector.broadcast %cst_81 : f32 to vector<8x8xf32>
    %132 = arith.cmpf oge, %130, %131 : vector<8x8xf32>
    %cst_82 = arith.constant 0.00999999977 : f32
    %133 = vector.broadcast %cst_82 : f32 to vector<8x8xf32>
    %134 = arith.mulf %133, %130 : vector<8x8xf32>
    %135 = arith.select %132, %130, %134 : vector<8x8xi1>, vector<8x8xf32>
    %c0_83 = arith.constant 0 : index
    %c0_84 = arith.constant 0 : index
    %c0_85 = arith.constant 0 : index
    %c0_86 = arith.constant 0 : index
    %136 = vector.load %arg5[%c0_83, %c0_84, %c0_85, %c0_86] : memref<1x1x8x8xf32, #tpu.memory_space<vmem>>, vector<1x1x8x8xf32>
    %137 = vector.shape_cast %136 : vector<1x1x8x8xf32> to vector<8x8xf32>
    %138 = vector.shape_cast %135 : vector<8x8xf32> to vector<1x1x8x8xf32>
    tpu.vector_store %arg5[%c0_83, %c0_84, %c0_85, %c0_86], %138 {strides = array<i32>} : memref<1x1x8x8xf32, #tpu.memory_space<vmem>>, vector<1x1x8x8xf32>,
    return
  }
  func.func @transform_0(%arg0: i32, %arg1: i32) -> (i32, i32, i32) {
    %c0_i32 = arith.constant 0 : i32
    %c0_i32_0 = arith.constant 0 : i32
    %c0_i32_1 = arith.constant 0 : i32
    %c0_i32_2 = arith.constant 0 : i32
    return %c0_i32, %c0_i32_0, %c0_i32_1 : i32, i32, i32
  }
  func.func @transform_1(%arg0: i32, %arg1: i32) -> (i32, i32) {
    %c0_i32 = arith.constant 0 : i32
    %c0_i32_0 = arith.constant 0 : i32
    %c0_i32_1 = arith.constant 0 : i32
    return %c0_i32, %c0_i32_0 : i32, i32
  }
  func.func @transform_2(%arg0: i32, %arg1: i32) -> (i32, i32, i32, i32) {
    %c0_i32 = arith.constant 0 : i32
    %0 = arith.addi %arg1, %c0_i32 : i32
    %c0_i32_0 = arith.constant 0 : i32
    %c0_i32_1 = arith.constant 0 : i32
    %c0_i32_2 = arith.constant 0 : i32
    return %arg0, %0, %c0_i32_0, %c0_i32_1 : i32, i32, i32, i32
  }
  func.func @transform_3(%arg0: i32, %arg1: i32) -> (i32, i32, i32, i32) {
    %c0_i32 = arith.constant 0 : i32
    %c0_i32_0 = arith.constant 0 : i32
    %c0_i32_1 = arith.constant 0 : i32
    return %arg0, %arg1, %c0_i32, %c0_i32_0 : i32, i32, i32, i32
  }
}

module attributes {stable_mosaic.version = 11 : i64} {
  func.func @_gemm2_kernel(%arg0: i32, %arg1: memref<8x8xf32, #tpu.memory_space<vmem>>, %arg2: memref<8x128xf32, #tpu.memory_space<vmem>>, %arg3: memref<8x8xf32, #tpu.memory_space<vmem>>, %arg4: memref<8x128xf32, #tpu.memory_space<vmem>>, %arg5: memref<8x1xf32, #tpu.memory_space<vmem>>, %arg6: memref<8x128xf32, #tpu.memory_space<vmem>>, %arg7: memref<8x128xf32, #tpu.memory_space<vmem>>) attributes {dimension_semantics = [#tpu.dimension_semantics<parallel>], iteration_bounds = array<i64: 1>, scalar_prefetch = 0 : i64, scratch_operands = 0 : i64, tpu.core_type = #tpu.core_type<tc>, window_params = [{pipeline_mode = #tpu.pipeline_mode<synchronous>, transform_indices = @transform_0, window_bounds = array<i64: 8, 8>}, {transform_indices = @transform_1, window_bounds = array<i64: 8, 128>}, {pipeline_mode = #tpu.pipeline_mode<synchronous>, transform_indices = @transform_2, window_bounds = array<i64: 8, 8>}, {transform_indices = @transform_3, window_bounds = array<i64: 8, 128>}, {pipeline_mode = #tpu.pipeline_mode<synchronous>, transform_indices = @transform_4, window_bounds = array<i64: 8, 1>}, {transform_indices = @transform_5, window_bounds = array<i64: 8, 128>}, {transform_indices = @transform_6, window_bounds = array<i64: 8, 128>}]} {
    %c0 = arith.constant 0 : index
    %c0_0 = arith.constant 0 : index
    %0 = vector.load %arg1[%c0, %c0_0] : memref<8x8xf32, #tpu.memory_space<vmem>>, vector<8x8xf32>
    %c0_1 = arith.constant 0 : index
    %c0_2 = arith.constant 0 : index
    %1 = vector.load %arg2[%c0_1, %c0_2] : memref<8x128xf32, #tpu.memory_space<vmem>>, vector<8x128xf32>
    %cst = arith.constant dense<0.000000e+00> : vector<8x128xf32>
    %2 = tpu.matmul %0, %1, %cst {dimension_numbers = #tpu.dot_dimension_numbers<[1], [0], [0], [1], [0, 0, 1, 1], [], []>} : vector<8x8xf32>, vector<8x128xf32>, vector<8x128xf32> -> vector<8x128xf32>
    %c0_3 = arith.constant 0 : index
    %c0_4 = arith.constant 0 : index
    %3 = vector.load %arg3[%c0_3, %c0_4] : memref<8x8xf32, #tpu.memory_space<vmem>>, vector<8x8xf32>
    %c0_5 = arith.constant 0 : index
    %c0_6 = arith.constant 0 : index
    %4 = vector.load %arg4[%c0_5, %c0_6] : memref<8x128xf32, #tpu.memory_space<vmem>>, vector<8x128xf32>
    %cst_7 = arith.constant dense<0.000000e+00> : vector<8x128xf32>
    %5 = tpu.matmul %3, %4, %cst_7 {dimension_numbers = #tpu.dot_dimension_numbers<[1], [0], [0], [1], [0, 0, 1, 1], [], []>} : vector<8x8xf32>, vector<8x128xf32>, vector<8x128xf32> -> vector<8x128xf32>
    %6 = arith.addf %2, %5 : vector<8x128xf32>
    %c0_8 = arith.constant 0 : index
    %c0_9 = arith.constant 0 : index
    %7 = vector.load %arg5[%c0_8, %c0_9] : memref<8x1xf32, #tpu.memory_space<vmem>>, vector<8x1xf32>
    %8 = vector.broadcast %7 : vector<8x1xf32> to vector<8x128xf32>
    %9 = arith.addf %6, %8 : vector<8x128xf32>
    %cst_10 = arith.constant 0.000000e+00 : f32
    %10 = vector.broadcast %cst_10 : f32 to vector<8x128xf32>
    %11 = arith.maximumf %9, %10 : vector<8x128xf32>
    %c0_11 = arith.constant 0 : index
    %c0_12 = arith.constant 0 : index
    %12 = vector.load %arg6[%c0_11, %c0_12] : memref<8x128xf32, #tpu.memory_space<vmem>>, vector<8x128xf32>
    %13 = arith.addf %11, %12 : vector<8x128xf32>
    %c0_13 = arith.constant 0 : index
    %c0_14 = arith.constant 0 : index
    %14 = vector.load %arg7[%c0_13, %c0_14] : memref<8x128xf32, #tpu.memory_space<vmem>>, vector<8x128xf32>
    tpu.vector_store %arg7[%c0_13, %c0_14], %13 {strides = array<i32>} : memref<8x128xf32, #tpu.memory_space<vmem>>, vector<8x128xf32>,
    return
  }
  func.func @transform_0(%arg0: i32) -> (i32, i32) {
    %c0_i32 = arith.constant 0 : i32
    %c0_i32_0 = arith.constant 0 : i32
    %c0_i32_1 = arith.constant 0 : i32
    return %c0_i32, %c0_i32_0 : i32, i32
  }
  func.func @transform_1(%arg0: i32) -> (i32, i32) {
    %c0_i32 = arith.constant 0 : i32
    %c0_i32_0 = arith.constant 0 : i32
    return %c0_i32, %arg0 : i32, i32
  }
  func.func @transform_2(%arg0: i32) -> (i32, i32) {
    %c0_i32 = arith.constant 0 : i32
    %c0_i32_0 = arith.constant 0 : i32
    %c0_i32_1 = arith.constant 0 : i32
    return %c0_i32, %c0_i32_0 : i32, i32
  }
  func.func @transform_3(%arg0: i32) -> (i32, i32) {
    %c0_i32 = arith.constant 0 : i32
    %c0_i32_0 = arith.constant 0 : i32
    return %c0_i32, %arg0 : i32, i32
  }
  func.func @transform_4(%arg0: i32) -> (i32, i32) {
    %c0_i32 = arith.constant 0 : i32
    %c0_i32_0 = arith.constant 0 : i32
    %c0_i32_1 = arith.constant 0 : i32
    return %c0_i32, %c0_i32_0 : i32, i32
  }
  func.func @transform_5(%arg0: i32) -> (i32, i32) {
    %c0_i32 = arith.constant 0 : i32
    %c0_i32_0 = arith.constant 0 : i32
    return %c0_i32, %arg0 : i32, i32
  }
  func.func @transform_6(%arg0: i32) -> (i32, i32) {
    %c0_i32 = arith.constant 0 : i32
    %c0_i32_0 = arith.constant 0 : i32
    return %c0_i32, %arg0 : i32, i32
  }
}

module attributes {stable_mosaic.version = 11 : i64} {
  func.func @_gemm_kernel(%arg0: i32, %arg1: memref<1x8xf32, #tpu.memory_space<vmem>>, %arg2: memref<8x128xf32, #tpu.memory_space<vmem>>, %arg3: memref<1x1xf32, #tpu.memory_space<vmem>>, %arg4: memref<1x128xf32, #tpu.memory_space<vmem>>) attributes {dimension_semantics = [#tpu.dimension_semantics<parallel>], iteration_bounds = array<i64: 1>, scalar_prefetch = 0 : i64, scratch_operands = 0 : i64, tpu.core_type = #tpu.core_type<tc>, window_params = [{pipeline_mode = #tpu.pipeline_mode<synchronous>, transform_indices = @transform_0, window_bounds = array<i64: 1, 8>}, {transform_indices = @transform_1, window_bounds = array<i64: 8, 128>}, {pipeline_mode = #tpu.pipeline_mode<synchronous>, transform_indices = @transform_2, window_bounds = array<i64: 1, 1>}, {transform_indices = @transform_3, window_bounds = array<i64: 1, 128>}]} {
    %c0 = arith.constant 0 : index
    %c0_0 = arith.constant 0 : index
    %0 = vector.load %arg1[%c0, %c0_0] : memref<1x8xf32, #tpu.memory_space<vmem>>, vector<1x8xf32>
    %c0_1 = arith.constant 0 : index
    %c0_2 = arith.constant 0 : index
    %1 = vector.load %arg2[%c0_1, %c0_2] : memref<8x128xf32, #tpu.memory_space<vmem>>, vector<8x128xf32>
    %cst = arith.constant dense<0.000000e+00> : vector<1x128xf32>
    %2 = tpu.matmul %0, %1, %cst {dimension_numbers = #tpu.dot_dimension_numbers<[1], [0], [0], [1], [0, 0, 1, 1], [], []>} : vector<1x8xf32>, vector<8x128xf32>, vector<1x128xf32> -> vector<1x128xf32>
    %c0_3 = arith.constant 0 : index
    %c0_4 = arith.constant 0 : index
    %3 = vector.load %arg3[%c0_3, %c0_4] : memref<1x1xf32, #tpu.memory_space<vmem>>, vector<1x1xf32>
    %4 = vector.broadcast %3 : vector<1x1xf32> to vector<1x128xf32>
    %5 = arith.addf %2, %4 : vector<1x128xf32>
    %cst_5 = arith.constant 0.000000e+00 : f32
    %6 = vector.broadcast %cst_5 : f32 to vector<1x128xf32>
    %7 = arith.cmpf oge, %5, %6 : vector<1x128xf32>
    %cst_6 = arith.constant 0.00999999977 : f32
    %8 = vector.broadcast %cst_6 : f32 to vector<1x128xf32>
    %9 = arith.mulf %8, %5 : vector<1x128xf32>
    %10 = arith.select %7, %5, %9 : vector<1x128xi1>, vector<1x128xf32>
    %c0_7 = arith.constant 0 : index
    %c0_8 = arith.constant 0 : index
    %11 = vector.load %arg4[%c0_7, %c0_8] : memref<1x128xf32, #tpu.memory_space<vmem>>, vector<1x128xf32>
    tpu.vector_store %arg4[%c0_7, %c0_8], %10 {strides = array<i32>} : memref<1x128xf32, #tpu.memory_space<vmem>>, vector<1x128xf32>,
    return
  }
  func.func @transform_0(%arg0: i32) -> (i32, i32) {
    %c0_i32 = arith.constant 0 : i32
    %c0_i32_0 = arith.constant 0 : i32
    %c0_i32_1 = arith.constant 0 : i32
    return %c0_i32, %c0_i32_0 : i32, i32
  }
  func.func @transform_1(%arg0: i32) -> (i32, i32) {
    %c0_i32 = arith.constant 0 : i32
    %c0_i32_0 = arith.constant 0 : i32
    return %c0_i32, %arg0 : i32, i32
  }
  func.func @transform_2(%arg0: i32) -> (i32, i32) {
    %c0_i32 = arith.constant 0 : i32
    %c0_i32_0 = arith.constant 0 : i32
    %c0_i32_1 = arith.constant 0 : i32
    return %c0_i32, %c0_i32_0 : i32, i32
  }
  func.func @transform_3(%arg0: i32) -> (i32, i32) {
    %c0_i32 = arith.constant 0 : i32
    %c0_i32_0 = arith.constant 0 : i32
    return %c0_i32, %arg0 : i32, i32
  }
}

</mosaic_0001>

<bundles_post_ra>
// kernel: _lambda_.38
= control target key start
LH: loop header
LB: loop body
LE: loop exit
PB: predicated region body
PF: predicated region fallthrough
CT: control target
= control target key end

     0   :  { %8 = vsyncpa [#allocation3], 0  ;;  %s335_s0 = inlined_call_operand.hbm [shape: f32[5,8], index: 0, kind: input, shape index: {}]   ;;  %s336_s1 = inlined_call_operand.hbm [shape: f32[8,128], index: 1, kind: input, shape index: {}]   ;;  %s337_s2 = inlined_call_operand.hbm [shape: f32[5,1], index: 2, kind: input, shape index: {}]   ;;  %s338_s3 = inlined_call_operand.hbm [shape: f32[5,128], index: 3, kind: output, shape index: {}]  }
   0x1   :  { %9 = vsyncpa [#allocation6], 0 }
   0x2   :  { %10 = vsyncpa [#allocation4], 0  ;;  %s260_s12 = smov [#allocation5]   ;;  %s261_s14 = smov [#allocation2]  }
   0x3   :  { %s27_s13 = sshll.u32 %s260_s12, 4  ;;  %s17_s15 = sshll.u32 %s261_s14, 4  ;;  %s28_s13 = int_to_ptr.vmem [resolvable:$true] %s27_s13  ;;  %s18_s15 = int_to_ptr.vmem [resolvable:$true] %s17_s15 }
   0x4   :  { %s166_s18 = scalar_lea.hbm %s336_s1, 128 }
   0x5   :  { %p167_p0 = scmp.ne.s32.totalorder %s336_s1, %s166_s18  ;;  %p170_p1 = scmp.lt.u32.totalorder %s166_s18, %s336_s1 }
   0x7   :  { %p172_p2 = pnand %p170_p1, %p167_p0 }
   0x9   :  { %175 = shalt.err (!%p172_p2)
}
   0xa   :  { %s176_s23 = scalar_lea.vmem %s28_s13, 128  ;;  %p181_p4 = scmp.lt.s32.totalorder %s28_s13, %s28_s13 }
   0xb   :  { %p177_p3 = scmp.ne.s32.totalorder %s28_s13, %s176_s23  ;;  %p182_p5 = scmp.lt.s32.totalorder %s176_s23, %s176_s23 }
   0xd   :  { %p183_p6 = por %p182_p5, %p181_p4 }
   0xf   :  { %p184_p7 = pnand %p183_p6, %p177_p3 }
  0x11   :  { %187 = shalt.err (!%p184_p7)
}
  0x12   :  { %30 = dma.hbm_to_vmem [thread:$0]  %s336_s1, 128, %s28_s13, [#allocation6]  }
  0x13   :  { %s188_s28 = scalar_lea.hbm %s335_s0, 128 }
  0x14   :  { %p189_p8 = scmp.ne.s32.totalorder %s335_s0, %s188_s28  ;;  %p192_p9 = scmp.lt.u32.totalorder %s188_s28, %s335_s0 }
  0x16   :  { %p194_p10 = pnand %p192_p9, %p189_p8 }
  0x18   :  { %197 = shalt.err (!%p194_p10)
}
  0x19   :  { %s198_s6 = scalar_lea.vmem %s18_s15, 128  ;;  %p203_p12 = scmp.lt.s32.totalorder %s18_s15, %s18_s15 }
  0x1a   :  { %p199_p11 = scmp.ne.s32.totalorder %s18_s15, %s198_s6  ;;  %p204_p13 = scmp.lt.s32.totalorder %s198_s6, %s198_s6 }
  0x1c   :  { %p205_p0 = por %p204_p13, %p203_p12 }
  0x1e   :  { %p206_p1 = pnand %p205_p0, %p199_p11 }
  0x20   :  { %209 = shalt.err (!%p206_p1)
}
  0x21   :  { %20 = dma.hbm_to_vmem [thread:$0]  %s335_s0, 128, %s18_s15, [#allocation3]  }
  0x22   :  { %s262_s8 = smov [#allocation7]   ;;  %s210_s12 = scalar_lea.hbm %s337_s2, 128 }
  0x23   :  { %s37_s9 = sshll.u32 %s262_s8, 4  ;;  %p211_p2 = scmp.ne.s32.totalorder %s337_s2, %s210_s12  ;;  %s38_s9 = int_to_ptr.vmem [resolvable:$true] %s37_s9 }
  0x24   :  { %p214_p3 = scmp.lt.u32.totalorder %s210_s12, %s337_s2 }
  0x26   :  { %p216_p4 = pnand %p214_p3, %p211_p2 }
  0x28   :  { %219 = shalt.err (!%p216_p4)
}
  0x29   :  { %s220_s18 = scalar_lea.vmem %s38_s9, 128  ;;  %p225_p6 = scmp.lt.s32.totalorder %s38_s9, %s38_s9 }
  0x2a   :  { %p221_p5 = scmp.ne.s32.totalorder %s38_s9, %s220_s18  ;;  %p226_p7 = scmp.lt.s32.totalorder %s220_s18, %s220_s18 }
  0x2c   :  { %p227_p8 = por %p226_p7, %p225_p6 }
  0x2e   :  { %p228_p9 = pnand %p227_p8, %p221_p5 }
  0x30   :  { %231 = shalt.err (!%p228_p9)
}
  0x31   :  { %40 = dma.hbm_to_vmem [thread:$0]  %s337_s2, 128, %s38_s9, [#allocation6]  }
  0x32   :  { %254 = dma.done.wait [#allocation3], 128  }
  0x33   :  { %255 = vsyncadd [#allocation3], 4294967168 }
  0x34   :  { %256 = dma.done.wait [#allocation6], 256  }
  0x35   :  { %257 = vsyncadd [#allocation6], 4294967040  ;;  %v263_v0 = vmov 0.0   ;;  %vm264_vm0 = vmmov 0   ;;  %v265_v1 = vmov 0   ;;  %vm58_vm1 = vcmask 64512  }
  0x36   :  { %153 = vmatprep.subr.mxu0 %v263_v0  ;;  %155 = vmatprep.mubr.msk.f32.mxu0 %vm264_vm0, %v263_v0  ;;  %v51_v2 = vld [vmem:[#allocation5] sm:$0xff]  ;;  %v50_v3 = vld [vmem:[#allocation2] sm:$0x1f]  ;;  %v52_v4 = vld [vmem:[#allocation7] sm:$0x1f]  ;;  %s266_s2 = smov [#allocation8]  }
  0x37   :  { %165 = vset.pattern.permute.xlu0 %v265_v1  ;;  %154 = vmatpush3.msra.mxu0 %v51_v2  ;;  %s140_s19 = sshll.u32 %s266_s2, 4  ;;  %s141_s19 = int_to_ptr.vmem [resolvable:$true] %s140_s19 }
  0x38   :  { %55 = vperm.xlu0 %165, %v52_v4   ;;  %156 = vmatmul.mubr.msk.f32.vlgmr.msra.gmra.mrb[0].mxu0 %vm58_vm1, %v50_v3  ;;  %s232_s20 = scalar_lea.vmem %s141_s19, 128  ;;  %p237_p11 = scmp.lt.s32.totalorder %s141_s19, %s141_s19 }
  0x39   :  { %p233_p10 = scmp.ne.s32.totalorder %s141_s19, %s232_s20  ;;  %p238_p12 = scmp.lt.s32.totalorder %s232_s20, %s232_s20 }
  0x3b   :  { %p239_p13 = por %p238_p12, %p237_p11 }
  0x3d   :  { %p240_p0 = pnand %p239_p13, %p233_p10 }
  0xb7   :  { %v56_v5 = vpop.permute.xlu0 %55 }
 0x10b   :  { %v128_v6 = vpop.f32.mrb[0].mxu0 }
 0x10c   :  { %v129_v7 = vadd.f32 %v128_v6, %v56_v5  ;;  %v157_v8 = vpop.f32.mrb[1].mxu0 }
 0x10e   :  { %v132_v9 = vmax.f32 %v129_v7, 0.0 }
 0x110   :  { %133 = vst [vmem:[#allocation8] sm:$0x1f] %v132_v9 }
 0x111   :  { %243 = shalt.err (!%p240_p0)
}
 0x112   :  { %s244_s23 = scalar_lea.hbm %s338_s3, 128 }
 0x113   :  { %p245_p1 = scmp.ne.s32.totalorder %s338_s3, %s244_s23  ;;  %p248_p2 = scmp.lt.u32.totalorder %s244_s23, %s338_s3 }
 0x115   :  { %p250_p3 = pnand %p248_p2, %p245_p1 }
 0x117   :  { %253 = shalt.err (!%p250_p3)
}
 0x118   :  { %143 = dma.vmem_to_hbm [thread:$0]  %s141_s19, 128, %s338_s3, [#allocation4]  }
 0x119   :  { %258 = dma.done.wait [#allocation4], 128  }
 0x11a   :  { %259 = vsyncadd [#allocation4], 4294967168 }
 0x11b   :  { %147 = vsyncpa [#allocation3], 1 }
 0x11c   :  { %148 = vsyncpa [#allocation6], 1 }
 0x11d   :  { %149 = vsyncpa [#allocation4], 1 }

// kernel: _lambda_.36
= control target key start
LH: loop header
LB: loop body
LE: loop exit
PB: predicated region body
PF: predicated region fallthrough
CT: control target
= control target key end

     0   :  { %8 = vsyncpa [#allocation3], 0  ;;  %s342_s0 = inlined_call_operand.hbm [shape: f32[8,7], index: 0, kind: input, shape index: {}]   ;;  %s343_s1 = inlined_call_operand.hbm [shape: f32[7,128], index: 1, kind: input, shape index: {}]   ;;  %s344_s2 = inlined_call_operand.hbm [shape: f32[8,1], index: 2, kind: input, shape index: {}]   ;;  %s345_s3 = inlined_call_operand.hbm [shape: f32[8,128], index: 3, kind: output, shape index: {}]  }
   0x1   :  { %9 = vsyncpa [#allocation6], 0 }
   0x2   :  { %10 = vsyncpa [#allocation4], 0  ;;  %s267_s12 = smov [#allocation5]   ;;  %s268_s14 = smov [#allocation2]  }
   0x3   :  { %s27_s13 = sshll.u32 %s267_s12, 4  ;;  %s17_s15 = sshll.u32 %s268_s14, 4  ;;  %s28_s13 = int_to_ptr.vmem [resolvable:$true] %s27_s13  ;;  %s18_s15 = int_to_ptr.vmem [resolvable:$true] %s17_s15 }
   0x4   :  { %s173_s18 = scalar_lea.hbm %s343_s1, 128 }
   0x5   :  { %p174_p0 = scmp.ne.s32.totalorder %s343_s1, %s173_s18  ;;  %p177_p1 = scmp.lt.u32.totalorder %s173_s18, %s343_s1 }
   0x7   :  { %p179_p2 = pnand %p177_p1, %p174_p0 }
   0x9   :  { %182 = shalt.err (!%p179_p2)
}
   0xa   :  { %s183_s23 = scalar_lea.vmem %s28_s13, 128  ;;  %p188_p4 = scmp.lt.s32.totalorder %s28_s13, %s28_s13 }
   0xb   :  { %p184_p3 = scmp.ne.s32.totalorder %s28_s13, %s183_s23  ;;  %p189_p5 = scmp.lt.s32.totalorder %s183_s23, %s183_s23 }
   0xd   :  { %p190_p6 = por %p189_p5, %p188_p4 }
   0xf   :  { %p191_p7 = pnand %p190_p6, %p184_p3 }
  0x11   :  { %194 = shalt.err (!%p191_p7)
}
  0x12   :  { %30 = dma.hbm_to_vmem [thread:$0]  %s343_s1, 128, %s28_s13, [#allocation6]  }
  0x13   :  { %s195_s28 = scalar_lea.hbm %s342_s0, 128 }
  0x14   :  { %p196_p8 = scmp.ne.s32.totalorder %s342_s0, %s195_s28  ;;  %p199_p9 = scmp.lt.u32.totalorder %s195_s28, %s342_s0 }
  0x16   :  { %p201_p10 = pnand %p199_p9, %p196_p8 }
  0x18   :  { %204 = shalt.err (!%p201_p10)
}
  0x19   :  { %s205_s6 = scalar_lea.vmem %s18_s15, 128  ;;  %p210_p12 = scmp.lt.s32.totalorder %s18_s15, %s18_s15 }
  0x1a   :  { %p206_p11 = scmp.ne.s32.totalorder %s18_s15, %s205_s6  ;;  %p211_p13 = scmp.lt.s32.totalorder %s205_s6, %s205_s6 }
  0x1c   :  { %p212_p0 = por %p211_p13, %p210_p12 }
  0x1e   :  { %p213_p1 = pnand %p212_p0, %p206_p11 }
  0x20   :  { %216 = shalt.err (!%p213_p1)
}
  0x21   :  { %20 = dma.hbm_to_vmem [thread:$0]  %s342_s0, 128, %s18_s15, [#allocation3]  }
  0x22   :  { %s269_s8 = smov [#allocation7]   ;;  %s217_s12 = scalar_lea.hbm %s344_s2, 128 }
  0x23   :  { %s37_s9 = sshll.u32 %s269_s8, 4  ;;  %p218_p2 = scmp.ne.s32.totalorder %s344_s2, %s217_s12  ;;  %s38_s9 = int_to_ptr.vmem [resolvable:$true] %s37_s9 }
  0x24   :  { %p221_p3 = scmp.lt.u32.totalorder %s217_s12, %s344_s2 }
  0x26   :  { %p223_p4 = pnand %p221_p3, %p218_p2 }
  0x28   :  { %226 = shalt.err (!%p223_p4)
}
  0x29   :  { %s227_s18 = scalar_lea.vmem %s38_s9, 128  ;;  %p232_p6 = scmp.lt.s32.totalorder %s38_s9, %s38_s9 }
  0x2a   :  { %p228_p5 = scmp.ne.s32.totalorder %s38_s9, %s227_s18  ;;  %p233_p7 = scmp.lt.s32.totalorder %s227_s18, %s227_s18 }
  0x2c   :  { %p234_p8 = por %p233_p7, %p232_p6 }
  0x2e   :  { %p235_p9 = pnand %p234_p8, %p228_p5 }
  0x30   :  { %238 = shalt.err (!%p235_p9)
}
  0x31   :  { %40 = dma.hbm_to_vmem [thread:$0]  %s344_s2, 128, %s38_s9, [#allocation6]  }
  0x32   :  { %261 = dma.done.wait [#allocation3], 128  }
  0x33   :  { %262 = vsyncadd [#allocation3], 4294967168 }
  0x34   :  { %263 = dma.done.wait [#allocation6], 256  }
  0x35   :  { %264 = vsyncadd [#allocation6], 4294967040  ;;  %v270_v0 = vmov 0.0   ;;  %vm271_vm0 = vmmov 0   ;;  %v272_v1 = vmov 0   ;;  %vm62_vm1 = vcmask 1046528  }
  0x36   :  { %160 = vmatprep.subr.mxu0 %v270_v0  ;;  %162 = vmatprep.mubr.msk.f32.mxu0 %vm271_vm0, %v270_v0  ;;  %vm58_vm2 = vcmask 56320   ;;  %v51_v2 = vld [vmem:[#allocation5] sm:$0x7f]  ;;  %v50_v3 = vld [vmem:[#allocation2] sm:$0xff]  ;;  %v52_v4 = vld [vmem:[#allocation7] sm:$0xff]  ;;  %s273_s2 = smov [#allocation8]  }
  0x37   :  { %172 = vset.pattern.permute.xlu0 %v272_v1  ;;  %161 = vmatpush3.msk.msra.mxu0 %vm62_vm1, %v51_v2  ;;  %s146_s19 = sshll.u32 %s273_s2, 4  ;;  %s147_s19 = int_to_ptr.vmem [resolvable:$true] %s146_s19 }
  0x38   :  { %55 = vperm.xlu0 %172, %v52_v4   ;;  %163 = vmatmul.mubr.msk.f32.vlgmr.msra.gmra.mrb[0].mxu0 %vm58_vm2, %v50_v3  ;;  %s239_s20 = scalar_lea.vmem %s147_s19, 128  ;;  %p244_p11 = scmp.lt.s32.totalorder %s147_s19, %s147_s19 }
  0x39   :  { %p240_p10 = scmp.ne.s32.totalorder %s147_s19, %s239_s20  ;;  %p245_p12 = scmp.lt.s32.totalorder %s239_s20, %s239_s20 }
  0x3b   :  { %p246_p13 = por %p245_p12, %p244_p11 }
  0x3d   :  { %p247_p0 = pnand %p246_p13, %p240_p10 }
  0xb7   :  { %v56_v5 = vpop.permute.xlu0 %55 }
 0x10b   :  { %v132_v6 = vpop.f32.mrb[0].mxu0 }
 0x10c   :  { %v133_v7 = vadd.f32 %v132_v6, %v56_v5  ;;  %v164_v8 = vpop.f32.mrb[1].mxu0 }
 0x10e   :  { %v137_v9 = vmul.f32 0.01, %v133_v7  ;;  %vm136_vm3 = vcmp.ge.f32.partialorder %v133_v7, 0.0 }
 0x110   :  { %v138_v10 = vsel %vm136_vm3, %v133_v7, %v137_v9 }
 0x111   :  { %139 = vst [vmem:[#allocation8] sm:$0xff] %v138_v10 }
 0x112   :  { %250 = shalt.err (!%p247_p0)
}
 0x113   :  { %s251_s23 = scalar_lea.hbm %s345_s3, 128 }
 0x114   :  { %p252_p1 = scmp.ne.s32.totalorder %s345_s3, %s251_s23  ;;  %p255_p2 = scmp.lt.u32.totalorder %s251_s23, %s345_s3 }
 0x116   :  { %p257_p3 = pnand %p255_p2, %p252_p1 }
 0x118   :  { %260 = shalt.err (!%p257_p3)
}
 0x119   :  { %149 = dma.vmem_to_hbm [thread:$0]  %s147_s19, 128, %s345_s3, [#allocation4]  }
 0x11a   :  { %265 = dma.done.wait [#allocation4], 128  }
 0x11b   :  { %266 = vsyncadd [#allocation4], 4294967168 }
 0x11c   :  { %153 = vsyncpa [#allocation3], 1 }
 0x11d   :  { %154 = vsyncpa [#allocation6], 1 }
 0x11e   :  { %155 = vsyncpa [#allocation4], 1 }

// kernel: _lambda_.37
= control target key start
LH: loop header
LB: loop body
LE: loop exit
PB: predicated region body
PF: predicated region fallthrough
CT: control target
= control target key end

     0   :  { %s3240_s0 = inlined_call_operand.hbm [shape: f32[7,8,8], index: 0, kind: input, shape index: {}]   ;;  %s3241_s1 = inlined_call_operand.hbm [shape: f32[8,1], index: 1, kind: input, shape index: {}]   ;;  %s3242_s2 = inlined_call_operand.hbm [shape: f32[1,22,8,8], index: 2, kind: input, shape index: {}, may-alias: {2,3,4,5,6,7,8}]   ;;  %s3243_s3 = inlined_call_operand.hbm [shape: f32[1,22,8,8], index: 3, kind: input, shape index: {}, may-alias: {2,3,4,5,6,7,8}]   ;;  %s3244_s4 = inlined_call_operand.hbm [shape: f32[1,22,8,8], index: 4, kind: input, shape index: {}, may-alias: {2,3,4,5,6,7,8}]   ;;  %s3245_s5 = inlined_call_operand.hbm [shape: f32[1,22,8,8], index: 5, kind: input, shape index: {}, may-alias: {2,3,4,5,6,7,8}]   ;;  %s3246_s6 = inlined_call_operand.hbm [shape: f32[1,22,8,8], index: 6, kind: input, shape index: {}, may-alias: {2,3,4,5,6,7,8}]   ;;  %s3247_s7 = inlined_call_operand.hbm [shape: f32[1,22,8,8], index: 7, kind: input, shape index: {}, may-alias: {2,3,4,5,6,7,8}]   ;;  %s3248_s8 = inlined_call_operand.hbm [shape: f32[1,22,8,8], index: 8, kind: input, shape index: {}, may-alias: {2,3,4,5,6,7,8}]   ;;  %s3249_s9 = inlined_call_operand.hbm [shape: f32[1,16,8,8], index: 9, kind: output, shape index: {}]  }
   0x1   :  { %3295 = sst [smem:[#allocation50_spill]] %s3240_s0 }
   0x2   :  { %3296 = sst [smem:[#allocation51_spill]] %s3241_s1 }
   0x3   :  { %3297 = sst [smem:[#allocation52_spill]] %s3242_s2 }
   0x4   :  { %3298 = sst [smem:[#allocation53_spill]] %s3243_s3 }
   0x5   :  { %3299 = sst [smem:[#allocation54_spill]] %s3244_s4 }
   0x6   :  { %3300 = sst [smem:[#allocation55_spill]] %s3245_s5 }
   0x7   :  { %3301 = sst [smem:[#allocation56_spill]] %s3246_s6 }
   0x8   :  { %3302 = sst [smem:[#allocation57_spill]] %s3247_s7 }
   0x9   :  { %3303 = sst [smem:[#allocation58_spill]] %s3248_s8 }
   0xa   :  { %3304 = sst [smem:[#allocation59_spill]] %s3249_s9 }
   0xb   :  { %14 = vsyncpa [#allocation3], 0 }
   0xc   :  { %15 = vsyncpa [#allocation6], 0 }
   0xd   :  { %16 = vsyncpa [#allocation4], 0 }
   0xe   :  { %18 = vsyncpa [#allocation4 + $0x1], 0  ;;  %s2397_s30 = smov 0   ;;  %s2399_s10 = smov 0  }
   0xf   :  { %s2401_s11 = smov 0   ;;  %s2403_s12 = smov 0  }
  0x10   :  { %s2405_s13 = smov 0   ;;  %s2407_s14 = smov 0  }
  0x11   :  { %s2409_s15 = smov 0   ;;  %s2411_s16 = smov 0  }
  0x12   :  { %s2413_s17 = smov 0   ;;  %s2415_s18 = smov 0  }
  0x13   :  { %s2417_s19 = smov 0   ;;  %s2419_s20 = smov 0  }
  0x14   :  { %s2421_s21 = smov 0   ;;  %s2423_s22 = smov 0  }
  0x15   :  { %s2425_s23 = smov 0   ;;  %s2427_s24 = smov 0  }
  0x16   :  { %3305 = sst [smem:[#allocation25_spill]] %s2427_s24  ;;  %s2429_s25 = smov 0  }
  0x17   :  { %s2431_s26 = smov 0   ;;  %s2433_s27 = smov 0  }
  0x18   :  { %s2435_s28 = smov 0   ;;  %s2437_s29 = smov 0  }
  0x19   :  { %s2439_s9 = smov 0   ;;  %s2441_s8 = smov 0  }
  0x1a   :  { %s2443_s1 = smov 0  }
  0x1b LB: > { %s3307_s24 = sld [smem:[#allocation25_spill]]  ;;  %3309 = sst [smem:[#allocation26_spill]] %s2242_s10  ;;  %s2330_s1 = sphi %s2443_s1, %s24_s1   ;;  %s2326_s8 = sphi %s2441_s8, %s3456_s8   ;;  %s2322_s9 = sphi %s2439_s9, %s3455_s9   ;;  %s2318_s29 = sphi %s2437_s29, %s3454_s29   ;;  %s2314_s28 = sphi %s2435_s28, %s3453_s28   ;;  %s2310_s27 = sphi %s2433_s27, %s3452_s27   ;;  %s2306_s26 = sphi %s2431_s26, %s3451_s26   ;;  %s2302_s25 = sphi %s2429_s25, %s3450_s25   ;;  %s2294_s23 = sphi %s2425_s23, %s3433_s23   ;;  %s2290_s22 = sphi %s2423_s22, %s3448_s22   ;;  %s2286_s21 = sphi %s2421_s21, %s3447_s21   ;;  %s2282_s20 = sphi %s2419_s20, %s3446_s20   ;;  %s2278_s19 = sphi %s2417_s19, %s3445_s19   ;;  %s2274_s18 = sphi %s2415_s18, %s3444_s18   ;;  %s2270_s17 = sphi %s2413_s17, %s3442_s17   ;;  %s2266_s16 = sphi %s2411_s16, %s3429_s16   ;;  %s2262_s15 = sphi %s2409_s15, %s3428_s15   ;;  %s2258_s14 = sphi %s2407_s14, %s3440_s14   ;;  %s2254_s13 = sphi %s2405_s13, %s3427_s13   ;;  %s2250_s12 = sphi %s2403_s12, %s3426_s12   ;;  %s2246_s11 = sphi %s2401_s11, %s3436_s11   ;;  %s2242_s10 = sphi %s2399_s10, %s3425_s10   ;;  %s2238_s30 = sphi %s2397_s30, %s3424_s30  }
  0x1c   : > { %3308 = sst [smem:[#allocation25_spill]] %s2238_s30  ;;  %s2518_s30 = sadd.s32 4294967295, %s2330_s1  }
  0x1d   : > { %3310 = sst [smem:[#allocation27_spill]] %s2246_s11  ;;  %p1448_p0 = scmp.ge.s32.totalorder %s2330_s1, 1 }
  0x1e   : > { %3311 = sst [smem:[#allocation28_spill]] %s2250_s12  ;;  %p3260_p1 = scmp.eq.s32.totalorder %s2518_s30, 0 }
  0x1f   : > { %3312 = sst [smem:[#allocation29_spill]] %s2254_s13  ;;  %p319_p2 = scmp.lt.s32.totalorder %s2330_s1, 17 }
  0x20   : > { %3313 = sst [smem:[#allocation30_spill]] %s2258_s14  ;;  %s3328_s0 = sld [smem:[#allocation50_spill]] }
  0x21   : > { %3314 = sst [smem:[#allocation31_spill]] %s2262_s15  ;;  %p2523_p3 = pnand %p1448_p0, %p319_p2 }
  0x22   : > { %3315 = sst [smem:[#allocation32_spill]] %s2266_s16 }
  0x23   : > { %3316 = sst [smem:[#allocation33_spill]] %s2270_s17  ;;  %p1561_p4 = pneg %p2523_p3 }
  0x24   : > { %3317 = sst [smem:[#allocation34_spill]] %s2282_s20 }
  0x25   : > { %3318 = sst [smem:[#allocation35_spill]] %s2294_s23  ;;  %p2531_p5 = pnand %p1561_p4, %p3260_p1 }
  0x26   : > { %3319 = sst [smem:[#allocation36_spill]] %s2306_s26  ;;  %s1800_s14 = scalar_lea.hbm %s3328_s0, 896 }
  0x27   : > { %3320 = sst [smem:[#allocation37_spill]] %s2310_s27  ;;  %p1801_p6 = scmp.ne.s32.totalorder %s3328_s0, %s1800_s14 }
  0x28   : > { %3321 = sst [smem:[#allocation38_spill]] %s2314_s28  ;;  %p3273_p7 = pneg %p2531_p5 }
  0x29   : > { %3322 = sst [smem:[#allocation39_spill]] %s2318_s29  ;;  %p1807_p10 = scmp.lt.u32.totalorder %s1800_s14, %s3328_s0 }
  0x2a   : > { %3323 = sst [smem:[#allocation40_spill]] %s2322_s9  ;;  %s2332_s9 = smov [#allocation2]  }
  0x2b   : > { %s3324_s10 = scalar_select %p2523_p3, 1, 0 }
  0x2c   : > { %s331_s11 = sshll.u32 %s2332_s9, 4  ;;  %p1803_p8 = pnand %p3273_p7, %p1801_p6  ;;  %s332_s11 = int_to_ptr.vmem [resolvable:$true] %s331_s11 }
  0x2d   : > { %3325 = sst [smem:[#allocation41_spill]] %s3324_s10 }
  0x2e   : > { %s3326_s7 = scalar_select %p2531_p5, 1, 0 }
  0x2f   : > { %p1804_p9 = pneg %p1803_p8 }
  0x30   : > { %3327 = sst [smem:[#allocation42_spill]] %s3326_s7 }
  0x31   : > { %p1809_p11 = pnand %p1807_p10, %p1804_p9 }
  0x33   : > { %1812 = shalt.err (!%p1809_p11)
}
  0x34   : > { %s1813_s12 = scalar_lea.vmem %s332_s11, 896  ;;  %p1821_p2 = scmp.lt.s32.totalorder %s332_s11, %s332_s11 }
  0x35   : > { %p1814_p12 = scmp.ne.s32.totalorder %s332_s11, %s1813_s12  ;;  %p1822_p4 = scmp.lt.s32.totalorder %s1813_s12, %s1813_s12 }
  0x37   : > { %p1816_p13 = pnand %p1814_p12, %p3273_p7  ;;  %p1823_p1 = por %p1822_p4, %p1821_p2 }
  0x39   : > { %p1817_p0 = pneg %p1816_p13 }
  0x3b   : > { %p1824_p3 = pnand %p1823_p1, %p1817_p0 }
  0x3d   : > { %1827 = shalt.err (!%p1824_p3)
}
  0x3e   : > { %s2333_s6 = smov 128   ;;  %s2334_s10 = smov 8  }
  0x3f   : > { %1564 = dma.hbm_to_vmem [thread:$0]  (!%p2531_p5), %s3328_s0, 896, %s332_s11, [#allocation3], %s2333_s6, %s2333_s6, %s2334_s10  }
  0x40   : > { %s1447_s15 = sadd.s32 4294967294, %s2330_s1   ;;  %s2559_s9 = sadd.s32 1, %s2326_s8 }
  0x41   : > { %s87_s12 = sadd.s32 1, %s2318_s29  ;;  %p34_p1 = scmp.ge.s32.totalorder %s2559_s9, 16 }
  0x42   : > { %p94_p3 = scmp.ne.s32.totalorder %s2318_s29, %s2314_s28  ;;  %p3275_p6 = scmp.eq.s32.totalorder %s2330_s1, 0 }
  0x43   : > { %p100_p8 = scmp.ne.s32.totalorder %s2314_s28, %s2310_s27  ;;  %p3331_p10 = scmp.eq.s32.totalorder %s2518_s30, 0 }
  0x44   : > { %s2569_s7 = scalar_select %p34_p1, 0, %s2559_s9  }
  0x45   : > { %p2573_p9 = por %p3275_p6, %p94_p3  ;;  %p2579_p11 = por %p3331_p10, %p100_p8 }
  0x46   : > { %3329 = sst [smem:[#allocation43_spill]] %s2569_s7  ;;  %s83_s10 = ssub.s32 %s2326_s8, %s2569_s7 }
  0x47   : > { %s3332_s6 = scalar_select %p2579_p11, 1, 0 }
  0x48   : > { %p306_p12 = scmp.eq.s32.totalorder %s2518_s30, 15  ;;  %p85_p13 = scmp.eq.s32.totalorder %s83_s10, 0 }
  0x49   : > { %3333 = sst [smem:[#allocation44_spill]] %s3332_s6  ;;  %p312_p0 = scmp.eq.s32.totalorder %s1447_s15, 15 }
  0x4a   : > { %p2586_p2 = por %p306_p12, %p94_p3  ;;  %p3274_p4 = scmp.lt.s32.totalorder %s2330_s1, 16 }
  0x4b   : > { %s2592_s14 = scalar_select %p85_p13, %s2318_s29, %s87_s12  }
  0x4c   : > { %s3334_s13 = scalar_select %p2586_p2, 1, 0 }
  0x4d   : > { %3335 = sst [smem:[#allocation45_spill]] %s2592_s14  ;;  %p2594_p1 = por %p312_p0, %p100_p8 }
  0x4e   : > { %s356_s27 = sand.u32 1, %s2330_s1   ;;  %s358_s28 = sand.u32 1, %s2318_s29  }
  0x4f   : > { %s3336_s0 = scalar_select %p2594_p1, 1, 0 }
  0x50   : > { %s1452_s6 = sshll.u32 %s358_s28, 3  ;;  %s2601_s16 = sshll.u32 %s2326_s8, 7 }
  0x51   : > { %3337 = sst [smem:[#allocation46_spill]] %s3336_s0  ;;  %s360_s12 = scalar_lea.vmem [#allocation7], %s1452_s6 }
  0x52   : > { %s3338_s2 = sld [smem:[#allocation52_spill]]  ;;  %s369_s14 = sshll.u32 %s360_s12, 4  ;;  %s2617_s14 = int_to_ptr.vmem [resolvable:$true] %s369_s14 }
  0x53   : > { %p2613_p3 = pnand %p3274_p4, %p2573_p9  ;;  %s2619_s28 = scalar_lea.sflag [#allocation3], %s356_s27 }
  0x55   : > { %p1830_p10 = pneg %p2613_p3 }
  0x58   : > { %s2607_s15 = scalar_lea.hbm %s3338_s2, %s2601_s16  ;;  %s1833_s10 = scalar_lea.hbm %s3338_s2, 2816 }
  0x59   : > { %s1828_s17 = scalar_lea.hbm %s2607_s15, 128  ;;  %p1834_p9 = scmp.lt.u32.totalorder %s2607_s15, %s3338_s2 }
  0x5a   : > { %p1829_p8 = scmp.ne.s32.totalorder %s2607_s15, %s1828_s17  ;;  %p1835_p0 = scmp.lt.u32.totalorder %s1833_s10, %s1828_s17 }
  0x5b   : > { %p1837_p4 = scmp.lt.u32.totalorder %s1828_s17, %s2607_s15 }
  0x5c   : > { %p1831_p12 = pnand %p1830_p10, %p1829_p8  ;;  %p1836_p7 = por %p1835_p0, %p1834_p9 }
  0x5e   : > { %p1832_p13 = pneg %p1831_p12  ;;  %p1838_p6 = por %p1837_p4, %p1836_p7 }
  0x60   : > { %p1839_p1 = pnand %p1838_p6, %p1832_p13 }
  0x62   : > { %1842 = shalt.err (!%p1839_p1)
}
  0x63   : > { %s1843_s27 = scalar_lea.vmem %s2617_s14, 128  ;;  %s2335_s11 = smov [#allocation7]  }
  0x64   : > { %p1844_p8 = scmp.ne.s32.totalorder %s2617_s14, %s1843_s27  ;;  %s1848_s6 = sshll.u32 %s2335_s11, 4  ;;  %s1849_s6 = int_to_ptr.vmem [resolvable:$false] %s1848_s6 }
  0x65   : > { %s1850_s29 = scalar_lea.vmem %s1849_s6, 256  ;;  %p1851_p11 = scmp.lt.s32.totalorder %s2617_s14, %s1849_s6 }
  0x66   : > { %p1846_p12 = pnand %p1844_p8, %p1830_p10  ;;  %p1852_p9 = scmp.lt.s32.totalorder %s1850_s29, %s1843_s27 }
  0x68   : > { %p1847_p2 = pneg %p1846_p12  ;;  %p1853_p0 = por %p1852_p9, %p1851_p11 }
  0x6a   : > { %p1854_p7 = pnand %p1853_p0, %p1847_p2 }
  0x6c   : > { %1857 = shalt.err (!%p1854_p7)
}
  0x6d   : > { %1571 = dma.hbm_to_vmem [thread:$0]  (!%p2613_p3), %s2607_s15, 128, %s2617_s14, %s2619_s28  }
  0x6e   : > { %s111_s17 = sadd.s32 1, %s2569_s7  ;;  %s117_s10 = sadd.s32 1, %s2306_s26 }
  0x6f   : > { %s113_s0 = ssub.s32 %s2559_s9, %s111_s17  ;;  %p124_p6 = scmp.ne.s32.totalorder %s2306_s26, %s2302_s25 }
  0x70   : > { %p115_p11 = scmp.eq.s32.totalorder %s113_s0, 0  ;;  %p130_p2 = scmp.ne.s32.totalorder %s2302_s25, %s3307_s24 }
  0x71   : > { %p3340_p4 = scmp.eq.s32.totalorder %s2330_s1, 0  ;;  %s378_s12 = sand.u32 1, %s2306_s26  }
  0x72   : > { %s2658_s27 = scalar_select %p115_p11, %s2306_s26, %s117_s10  }
  0x73   : > { %p126_p1 = por %p124_p6, %p3340_p4  ;;  %p3342_p10 = scmp.eq.s32.totalorder %s2518_s30, 0 }
  0x74   : > { %3341 = sst [smem:[#allocation47_spill]] %s2658_s27  ;;  %s1454_s6 = sshll.u32 %s378_s12, 3 }
  0x75   : > { %p2662_p13 = por %p130_p2, %p3342_p10  ;;  %s3344_s3 = sld [smem:[#allocation53_spill]] }
  0x76   : > { %s380_s24 = scalar_lea.vmem [#allocation8], %s1454_s6  ;;  %p3345_p3 = scmp.lt.s32.totalorder %s2330_s1, 16 }
  0x77   : > { %s3343_s11 = scalar_select %p2662_p13, 1, 0 }
  0x78   : > { %s390_s9 = sshll.u32 %s380_s24, 4  ;;  %p2676_p8 = pnand %p3345_p3, %p126_p1  ;;  %s2672_s9 = int_to_ptr.vmem [resolvable:$true] %s390_s9 }
  0x7a   : > { %p1860_p9 = pneg %p2676_p8 }
  0x7b   : > { %s1245_s15 = scalar_lea.hbm %s3344_s3, %s2601_s16  ;;  %s1863_s6 = scalar_lea.hbm %s3344_s3, 2816 }
  0x7c   : > { %s2670_s2 = scalar_lea.hbm %s1245_s15, 128  ;;  %s1888_s10 = scalar_lea.hbm %s1245_s15, 256 }
  0x7d   : > { %p1859_p12 = scmp.ne.s32.totalorder %s2670_s2, %s1888_s10  ;;  %p1864_p6 = scmp.lt.u32.totalorder %s2670_s2, %s3344_s3 }
  0x7e   : > { %p1865_p11 = scmp.lt.u32.totalorder %s1863_s6, %s1888_s10  ;;  %p1867_p4 = scmp.lt.u32.totalorder %s1888_s10, %s2670_s2 }
  0x7f   : > { %p1861_p0 = pnand %p1860_p9, %p1859_p12 }
  0x80   : > { %p1866_p2 = por %p1865_p11, %p1864_p6 }
  0x81   : > { %p1862_p7 = pneg %p1861_p0 }
  0x82   : > { %p1868_p1 = por %p1867_p4, %p1866_p2 }
  0x84   : > { %p1869_p10 = pnand %p1868_p1, %p1862_p7 }
  0x86   : > { %1872 = shalt.err (!%p1869_p10)
}
  0x87   : > { %s1873_s15 = scalar_lea.vmem %s2672_s9, 128  ;;  %s2336_s24 = smov [#allocation8]  }
  0x88   : > { %p1874_p3 = scmp.ne.s32.totalorder %s2672_s9, %s1873_s15  ;;  %s1878_s0 = sshll.u32 %s2336_s24, 4  ;;  %s1879_s0 = int_to_ptr.vmem [resolvable:$false] %s1878_s0 }
  0x89   : > { %s1880_s12 = scalar_lea.vmem %s1879_s0, 256  ;;  %p1881_p13 = scmp.lt.s32.totalorder %s2672_s9, %s1879_s0 }
  0x8a   : > { %p1876_p12 = pnand %p1874_p3, %p1860_p9  ;;  %p1882_p6 = scmp.lt.s32.totalorder %s1880_s12, %s1873_s15 }
  0x8c   : > { %p1877_p0 = pneg %p1876_p12  ;;  %p1883_p11 = por %p1882_p6, %p1881_p13 }
  0x8e   : > { %p1884_p2 = pnand %p1883_p11, %p1877_p0 }
  0x90   : > { %1887 = shalt.err (!%p1884_p2)
}
  0x91   : > { %1574 = dma.hbm_to_vmem [thread:$0]  (!%p2676_p8), %s2670_s2, 128, %s2672_s9, %s2619_s28  }
  0x92   : > { %s140_s10 = sadd.s32 2, %s2326_s8  ;;  %s141_s6 = sadd.s32 2, %s2569_s7 }
  0x93   : > { %s147_s17 = sadd.s32 1, %s2294_s23  ;;  %s143_s29 = ssub.s32 %s140_s10, %s141_s6 }
  0x94   : > { %p154_p13 = scmp.ne.s32.totalorder %s2294_s23, %s2290_s22  ;;  %p145_p9 = scmp.eq.s32.totalorder %s143_s29, 0 }
  0x95   : > { %p160_p7 = scmp.ne.s32.totalorder %s2290_s22, %s2286_s21  ;;  %p3347_p4 = scmp.eq.s32.totalorder %s2330_s1, 0 }
  0x96   : > { %s399_s14 = sand.u32 1, %s2294_s23   ;;  %p3349_p10 = scmp.eq.s32.totalorder %s2518_s30, 0 }
  0x97   : > { %p156_p1 = por %p154_p13, %p3347_p4  ;;  %s1456_s0 = sshll.u32 %s399_s14, 3 }
  0x98   : > { %s2716_s15 = scalar_select %p145_p9, %s2294_s23, %s147_s17  }
  0x99   : > { %p2720_p3 = por %p160_p7, %p3349_p10  ;;  %s3351_s4 = sld [smem:[#allocation54_spill]] }
  0x9a   : > { %3348 = sst [smem:[#allocation48_spill]] %s2716_s15  ;;  %s401_s21 = scalar_lea.vmem [#allocation9], %s1456_s0 }
  0x9b   : > { %s3350_s24 = scalar_select %p2720_p3, 1, 0 }
  0x9c   : > { %s411_s10 = sshll.u32 %s401_s21, 4  ;;  %p3352_p8 = scmp.lt.s32.totalorder %s2330_s1, 16  ;;  %s2730_s10 = int_to_ptr.vmem [resolvable:$true] %s411_s10 }
  0x9e   : > { %p2734_p12 = pnand %p3352_p8, %p156_p1 }
  0x9f   : > { %s1253_s12 = scalar_lea.hbm %s3351_s4, %s2601_s16  ;;  %s1894_s0 = scalar_lea.hbm %s3351_s4, 2816 }
  0xa0   : > { %s2728_s3 = scalar_lea.hbm %s1253_s12, 256  ;;  %s1919_s17 = scalar_lea.hbm %s1253_s12, 384 }
  0xa1   : > { %p1890_p0 = scmp.ne.s32.totalorder %s2728_s3, %s1919_s17  ;;  %p1891_p6 = pneg %p2734_p12 }
  0xa2   : > { %p1895_p13 = scmp.lt.u32.totalorder %s2728_s3, %s3351_s4  ;;  %p1896_p9 = scmp.lt.u32.totalorder %s1894_s0, %s1919_s17 }
  0xa3   : > { %p1892_p11 = pnand %p1891_p6, %p1890_p0  ;;  %p1898_p4 = scmp.lt.u32.totalorder %s1919_s17, %s2728_s3 }
  0xa4   : > { %p1897_p7 = por %p1896_p9, %p1895_p13 }
  0xa5   : > { %p1893_p2 = pneg %p1892_p11 }
  0xa6   : > { %p1899_p1 = por %p1898_p4, %p1897_p7 }
  0xa8   : > { %p1900_p10 = pnand %p1899_p1, %p1893_p2 }
  0xaa   : > { %1903 = shalt.err (!%p1900_p10)
}
  0xab   : > { %s1904_s12 = scalar_lea.vmem %s2730_s10, 128  ;;  %s2337_s21 = smov [#allocation9]  }
  0xac   : > { %p1905_p8 = scmp.ne.s32.totalorder %s2730_s10, %s1904_s12  ;;  %s1909_s29 = sshll.u32 %s2337_s21, 4  ;;  %s1910_s29 = int_to_ptr.vmem [resolvable:$false] %s1909_s29 }
  0xad   : > { %s1911_s14 = scalar_lea.vmem %s1910_s29, 256  ;;  %p1912_p3 = scmp.lt.s32.totalorder %s2730_s10, %s1910_s29 }
  0xae   : > { %p1907_p0 = pnand %p1905_p8, %p1891_p6  ;;  %p1913_p13 = scmp.lt.s32.totalorder %s1911_s14, %s1904_s12 }
  0xb0   : > { %p1908_p11 = pneg %p1907_p0  ;;  %p1914_p9 = por %p1913_p13, %p1912_p3 }
  0xb2   : > { %p1915_p7 = pnand %p1914_p9, %p1908_p11 }
  0xb4   : > { %1918 = shalt.err (!%p1915_p7)
}
  0xb5   : > { %1577 = dma.hbm_to_vmem [thread:$0]  (!%p2734_p12), %s2728_s3, 128, %s2730_s10, %s2619_s28  }
  0xb6   : > { %s170_s17 = sadd.s32 3, %s2326_s8  ;;  %s171_s0 = sadd.s32 3, %s2569_s7 }
  0xb7   : > { %s177_s6 = sadd.s32 1, %s2282_s20  ;;  %s173_s2 = ssub.s32 %s170_s17, %s171_s0 }
  0xb8   : > { %p184_p3 = scmp.ne.s32.totalorder %s2282_s20, %s2278_s19  ;;  %p175_p6 = scmp.eq.s32.totalorder %s173_s2, 0 }
  0xb9   : > { %p190_p2 = scmp.ne.s32.totalorder %s2278_s19, %s2274_s18  ;;  %p3354_p4 = scmp.eq.s32.totalorder %s2330_s1, 0 }
  0xba   : > { %s420_s9 = sand.u32 1, %s2282_s20   ;;  %p3356_p10 = scmp.eq.s32.totalorder %s2518_s30, 0 }
  0xbb   : > { %p186_p1 = por %p184_p3, %p3354_p4  ;;  %s1458_s29 = sshll.u32 %s420_s9, 3 }
  0xbc   : > { %s2774_s12 = scalar_select %p175_p6, %s2282_s20, %s177_s6  }
  0xbd   : > { %p2778_p8 = por %p190_p2, %p3356_p10  ;;  %s3358_s5 = sld [smem:[#allocation55_spill]] }
  0xbe   : > { %3355 = sst [smem:[#allocation49_spill]] %s2774_s12  ;;  %s422_s18 = scalar_lea.vmem [#allocation10], %s1458_s29 }
  0xbf   : > { %s3357_s21 = scalar_select %p2778_p8, 1, 0 }
  0xc0   : > { %s432_s17 = sshll.u32 %s422_s18, 4  ;;  %p3359_p12 = scmp.lt.s32.totalorder %s2330_s1, 16  ;;  %s2788_s17 = int_to_ptr.vmem [resolvable:$true] %s432_s17 }
  0xc2   : > { %p2792_p0 = pnand %p3359_p12, %p186_p1 }
  0xc3   : > { %s1261_s14 = scalar_lea.hbm %s3358_s5, %s2601_s16  ;;  %s1925_s29 = scalar_lea.hbm %s3358_s5, 2816 }
  0xc4   : > { %s2786_s4 = scalar_lea.hbm %s1261_s14, 384  ;;  %s1950_s6 = scalar_lea.hbm %s1261_s14, 512 }
  0xc5   : > { %p1921_p11 = scmp.ne.s32.totalorder %s2786_s4, %s1950_s6  ;;  %p1922_p13 = pneg %p2792_p0 }
  0xc6   : > { %p1926_p3 = scmp.lt.u32.totalorder %s2786_s4, %s3358_s5  ;;  %p1927_p6 = scmp.lt.u32.totalorder %s1925_s29, %s1950_s6 }
  0xc7   : > { %p1923_p9 = pnand %p1922_p13, %p1921_p11  ;;  %p1929_p4 = scmp.lt.u32.totalorder %s1950_s6, %s2786_s4 }
  0xc8   : > { %p1928_p2 = por %p1927_p6, %p1926_p3 }
  0xc9   : > { %p1924_p7 = pneg %p1923_p9 }
  0xca   : > { %p1930_p1 = por %p1929_p4, %p1928_p2 }
  0xcc   : > { %p1931_p10 = pnand %p1930_p1, %p1924_p7 }
  0xce   : > { %1934 = shalt.err (!%p1931_p10)
}
  0xcf   : > { %s1935_s14 = scalar_lea.vmem %s2788_s17, 128  ;;  %s2338_s18 = smov [#allocation10]  }
  0xd0   : > { %p1936_p12 = scmp.ne.s32.totalorder %s2788_s17, %s1935_s14  ;;  %s1940_s2 = sshll.u32 %s2338_s18, 4  ;;  %s1941_s2 = int_to_ptr.vmem [resolvable:$false] %s1940_s2 }
  0xd1   : > { %s1942_s9 = scalar_lea.vmem %s1941_s2, 256  ;;  %p1943_p8 = scmp.lt.s32.totalorder %s2788_s17, %s1941_s2 }
  0xd2   : > { %p1938_p11 = pnand %p1936_p12, %p1922_p13  ;;  %p1944_p3 = scmp.lt.s32.totalorder %s1942_s9, %s1935_s14 }
  0xd4   : > { %p1939_p9 = pneg %p1938_p11  ;;  %p1945_p6 = por %p1944_p3, %p1943_p8 }
  0xd6   : > { %p1946_p2 = pnand %p1945_p6, %p1939_p9 }
  0xd8   : > { %1949 = shalt.err (!%p1946_p2)
}
  0xd9   : > { %s3361_s6 = sld [smem:[#allocation33_spill]]  ;;  %s3362_s29 = sld [smem:[#allocation32_spill]] }
  0xda   : > { %s3363_s3 = sld [smem:[#allocation31_spill]]  ;;  %s200_s10 = sadd.s32 4, %s2326_s8 }
  0xdb   : > { %1580 = dma.hbm_to_vmem [thread:$0]  (!%p2792_p0), %s2786_s4, 128, %s2788_s17, %s2619_s28  }
  0xdc   : > { %s201_s14 = sadd.s32 4, %s2569_s7  ;;  %p3364_p4 = scmp.eq.s32.totalorder %s2330_s1, 0 }
  0xdd   : > { %s203_s18 = ssub.s32 %s200_s10, %s201_s14  ;;  %p3365_p10 = scmp.eq.s32.totalorder %s2518_s30, 0 }
  0xde   : > { %p205_p13 = scmp.eq.s32.totalorder %s203_s18, 0  ;;  %s3367_s27 = sld [smem:[#allocation56_spill]] }
  0xdf   : > { %s207_s0 = sadd.s32 1, %s3361_s6  ;;  %p214_p8 = scmp.ne.s32.totalorder %s3361_s6, %s3362_s29 }
  0xe0   : > { %p220_p7 = scmp.ne.s32.totalorder %s3362_s29, %s3363_s3  ;;  %s441_s2 = sand.u32 1, %s3361_s6  }
  0xe1   : > { %p216_p1 = por %p214_p8, %p3364_p4  ;;  %s3458_s6 = smov (!%p205_p13, %s3361_s6), %s207_s0 }
  0xe2   : > { %p2836_p12 = por %p220_p7, %p3365_p10  ;;  %s1460_s5 = sshll.u32 %s441_s2, 3 }
  0xe3   : > { %s443_s29 = scalar_lea.vmem [#allocation11], %s1460_s5  ;;  %p3369_p0 = scmp.lt.s32.totalorder %s2330_s1, 16 }
  0xe4   : > { %s3366_s9 = scalar_select %p2836_p12, 1, 0 }
  0xe5   : > { %s3368_s7 = smov %s3367_s27  ;;  %s1269_s26 = scalar_lea.hbm %s3367_s27, %s2601_s16 }
  0xe6   : > { %s2844_s15 = scalar_lea.hbm %s1269_s26, 512  ;;  %s453_s3 = sshll.u32 %s443_s29, 4  ;;  %s2846_s3 = int_to_ptr.vmem [resolvable:$true] %s453_s3 }
  0xe7   : > { %p2850_p11 = pnand %p3369_p0, %p216_p1  ;;  %s1981_s14 = scalar_lea.hbm %s1269_s26, 640 }
  0xe8   : > { %p1952_p9 = scmp.ne.s32.totalorder %s2844_s15, %s1981_s14  ;;  %s1956_s0 = scalar_lea.hbm %s3368_s7, 2816 }
  0xe9   : > { %p1953_p3 = pneg %p2850_p11  ;;  %p1957_p8 = scmp.lt.u32.totalorder %s2844_s15, %s3368_s7 }
  0xea   : > { %p1958_p13 = scmp.lt.u32.totalorder %s1956_s0, %s1981_s14  ;;  %p1960_p4 = scmp.lt.u32.totalorder %s1981_s14, %s2844_s15 }
  0xeb   : > { %p1954_p6 = pnand %p1953_p3, %p1952_p9 }
  0xec   : > { %p1959_p7 = por %p1958_p13, %p1957_p8 }
  0xed   : > { %p1955_p2 = pneg %p1954_p6 }
  0xee   : > { %p1961_p1 = por %p1960_p4, %p1959_p7 }
  0xf0   : > { %p1962_p10 = pnand %p1961_p1, %p1955_p2 }
  0xf2   : > { %1965 = shalt.err (!%p1962_p10)
}
  0xf3   : > { %s1966_s26 = scalar_lea.vmem %s2846_s3, 128  ;;  %s2339_s4 = smov [#allocation11]  }
  0xf4   : > { %p1967_p0 = scmp.ne.s32.totalorder %s2846_s3, %s1966_s26  ;;  %s1971_s17 = sshll.u32 %s2339_s4, 4  ;;  %s1972_s17 = int_to_ptr.vmem [resolvable:$false] %s1971_s17 }
  0xf5   : > { %s1973_s29 = scalar_lea.vmem %s1972_s17, 256  ;;  %p1974_p12 = scmp.lt.s32.totalorder %s2846_s3, %s1972_s17 }
  0xf6   : > { %p1969_p9 = pnand %p1967_p0, %p1953_p3  ;;  %p1975_p8 = scmp.lt.s32.totalorder %s1973_s29, %s1966_s26 }
  0xf8   : > { %p1970_p6 = pneg %p1969_p9  ;;  %p1976_p13 = por %p1975_p8, %p1974_p12 }
  0xfa   : > { %p1977_p7 = pnand %p1976_p13, %p1970_p6 }
  0xfc   : > { %1980 = shalt.err (!%p1977_p7)
}
  0xfd   : > { %s3371_s14 = sld [smem:[#allocation43_spill]]  ;;  %s3373_s5 = sld [smem:[#allocation29_spill]] }
  0xfe   : > { %s3372_s27 = sld [smem:[#allocation30_spill]]  ;;  %s3374_s0 = sld [smem:[#allocation28_spill]] }
  0xff   : > { %1583 = dma.hbm_to_vmem [thread:$0]  (!%p2850_p11), %s2844_s15, 128, %s2846_s3, %s2619_s28  }
 0x100   : > { %s230_s18 = sadd.s32 5, %s2326_s8  ;;  %p3375_p4 = scmp.eq.s32.totalorder %s2330_s1, 0 }
 0x101   : > { %p3376_p10 = scmp.eq.s32.totalorder %s2518_s30, 0  ;;  %s3378_s7 = sld [smem:[#allocation57_spill]] }
 0x102   : > { %p3379_p11 = scmp.lt.s32.totalorder %s2330_s1, 16 }
 0x103   : > { %s231_s2 = sadd.s32 5, %s3371_s14 }
 0x104   : > { %s237_s10 = sadd.s32 1, %s3372_s27  ;;  %s233_s26 = ssub.s32 %s230_s18, %s231_s2 }
 0x105   : > { %p244_p12 = scmp.ne.s32.totalorder %s3372_s27, %s3373_s5  ;;  %p235_p3 = scmp.eq.s32.totalorder %s233_s26, 0 }
 0x106   : > { %p250_p2 = scmp.ne.s32.totalorder %s3373_s5, %s3374_s0  ;;  %s462_s4 = sand.u32 1, %s3372_s27  }
 0x107   : > { %p246_p1 = por %p244_p12, %p3375_p4  ;;  %s3460_s27 = smov (!%p235_p3, %s3372_s27), %s237_s10 }
 0x108   : > { %p2894_p0 = por %p250_p2, %p3376_p10  ;;  %s1462_s29 = sshll.u32 %s462_s4, 3 }
 0x109   : > { %s1277_s23 = scalar_lea.hbm %s3378_s7, %s2601_s16  ;;  %s464_s5 = scalar_lea.vmem [#allocation12], %s1462_s29 }
 0x10a   : > { %s3377_s17 = scalar_select %p2894_p0, 1, 0 }
 0x10b   : > { %s2902_s12 = scalar_lea.hbm %s1277_s23, 640  ;;  %s474_s0 = sshll.u32 %s464_s5, 4  ;;  %s2904_s0 = int_to_ptr.vmem [resolvable:$true] %s474_s0 }
 0x10c   : > { %p2908_p9 = pnand %p3379_p11, %p246_p1  ;;  %s2340_s2 = smov [#allocation5]  }
 0x10d   : > { %s2912_s10 = sshll.u32 %s2340_s2, 4  ;;  %s2012_s26 = scalar_lea.hbm %s1277_s23, 768  ;;  %s346_s10 = int_to_ptr.vmem [resolvable:$true] %s2912_s10 }
 0x10e   : > { %p1983_p6 = scmp.ne.s32.totalorder %s2902_s12, %s2012_s26  ;;  %p1984_p8 = pneg %p2908_p9 }
 0x10f   : > { %s1987_s15 = scalar_lea.hbm %s3378_s7, 2816  ;;  %p1988_p12 = scmp.lt.u32.totalorder %s2902_s12, %s3378_s7 }
 0x110   : > { %p1985_p13 = pnand %p1984_p8, %p1983_p6  ;;  %p1989_p3 = scmp.lt.u32.totalorder %s1987_s15, %s2012_s26 }
 0x111   : > { %p1991_p4 = scmp.lt.u32.totalorder %s2012_s26, %s2902_s12 }
 0x112   : > { %p1986_p7 = pneg %p1985_p13  ;;  %p1990_p2 = por %p1989_p3, %p1988_p12 }
 0x114   : > { %p1992_p1 = por %p1991_p4, %p1990_p2 }
 0x116   : > { %p1993_p10 = pnand %p1992_p1, %p1986_p7 }
 0x118   : > { %1996 = shalt.err (!%p1993_p10)
}
 0x119   : > { %s1997_s23 = scalar_lea.vmem %s2904_s0, 128  ;;  %s2341_s2 = smov [#allocation12]  }
 0x11a   : > { %p1998_p11 = scmp.ne.s32.totalorder %s2904_s0, %s1997_s23  ;;  %s2002_s4 = sshll.u32 %s2341_s2, 4  ;;  %s2003_s4 = int_to_ptr.vmem [resolvable:$false] %s2002_s4 }
 0x11b   : > { %s2004_s29 = scalar_lea.vmem %s2003_s4, 256  ;;  %p2005_p0 = scmp.lt.s32.totalorder %s2904_s0, %s2003_s4 }
 0x11c   : > { %p2000_p6 = pnand %p1998_p11, %p1984_p8  ;;  %p2006_p12 = scmp.lt.s32.totalorder %s2004_s29, %s1997_s23 }
 0x11e   : > { %p2001_p13 = pneg %p2000_p6  ;;  %p2007_p3 = por %p2006_p12, %p2005_p0 }
 0x120   : > { %p2008_p2 = pnand %p2007_p3, %p2001_p13 }
 0x122   : > { %2011 = shalt.err (!%p2008_p2)
}
 0x123   : > { %1586 = dma.hbm_to_vmem [thread:$0]  (!%p2908_p9), %s2902_s12, 128, %s2904_s0, %s2619_s28  }
 0x124   : > { %s3382_s5 = sld [smem:[#allocation51_spill]]  ;;  %p3383_p0 = pneg %p2531_p5 }
 0x12a   : > { %s2013_s2 = scalar_lea.hbm %s3382_s5, 128 }
 0x12b   : > { %p2014_p8 = scmp.ne.s32.totalorder %s3382_s5, %s2013_s2  ;;  %p2020_p1 = scmp.lt.u32.totalorder %s2013_s2, %s3382_s5 }
 0x12d   : > { %p2016_p7 = pnand %p2014_p8, %p3383_p0 }
 0x12f   : > { %p2017_p4 = pneg %p2016_p7 }
 0x131   : > { %p2022_p10 = pnand %p2020_p1, %p2017_p4 }
 0x133   : > { %2025 = shalt.err (!%p2022_p10)
}
 0x134   : > { %s2026_s12 = scalar_lea.vmem %s346_s10, 128  ;;  %p3384_p11 = pmov %p3383_p0 }
 0x135   : > { %p2027_p9 = scmp.ne.s32.totalorder %s346_s10, %s2026_s12  ;;  %p2034_p12 = scmp.lt.s32.totalorder %s346_s10, %s346_s10 }
 0x136   : > { %p2035_p3 = scmp.lt.s32.totalorder %s2026_s12, %s2026_s12 }
 0x137   : > { %p2029_p6 = pnand %p2027_p9, %p3384_p11 }
 0x138   : > { %p2036_p2 = por %p2035_p3, %p2034_p12 }
 0x139   : > { %p2030_p13 = pneg %p2029_p6 }
 0x13b   : > { %p2037_p0 = pnand %p2036_p2, %p2030_p13 }
 0x13d   : > { %2040 = shalt.err (!%p2037_p0)
}
 0x13e   : > { %s3385_s0 = sld [smem:[#allocation27_spill]]  ;;  %s3386_s4 = sld [smem:[#allocation26_spill]] }
 0x13f   : > { %s3387_s29 = sld [smem:[#allocation25_spill]]  ;;  %s260_s15 = sadd.s32 6, %s2326_s8 }
 0x140   : > { %1567 = dma.hbm_to_vmem [thread:$0]  (!%p2531_p5), %s3382_s5, 128, %s346_s10, [#allocation6]  }
 0x141   : > { %s261_s3 = sadd.s32 6, %s3371_s14  ;;  %p3388_p1 = scmp.eq.s32.totalorder %s2330_s1, 0 }
 0x142   : > { %s263_s26 = ssub.s32 %s260_s15, %s261_s3  ;;  %p3389_p9 = scmp.eq.s32.totalorder %s2518_s30, 0 }
 0x143   : > { %p265_p8 = scmp.eq.s32.totalorder %s263_s26, 0  ;;  %s3391_s20 = sld [smem:[#allocation58_spill]] }
 0x144   : > { %s267_s2 = sadd.s32 1, %s3385_s0  ;;  %p274_p7 = scmp.ne.s32.totalorder %s3385_s0, %s3386_s4 }
 0x145   : > { %p280_p4 = scmp.ne.s32.totalorder %s3386_s4, %s3387_s29  ;;  %s483_s18 = sand.u32 1, %s3385_s0  }
 0x146   : > { %s3462_s0 = smov (!%p265_p8, %s3385_s0), %s267_s2  ;;  %p276_p10 = por %p274_p7, %p3388_p1 }
 0x147   : > { %p2975_p11 = por %p280_p4, %p3389_p9  ;;  %s1464_s12 = sshll.u32 %s483_s18, 3 }
 0x148   : > { %s485_s4 = scalar_lea.vmem [#allocation13], %s1464_s12  ;;  %p3393_p5 = scmp.lt.s32.totalorder %s2330_s1, 16 }
 0x149   : > { %s3390_s23 = scalar_select %p2975_p11, 1, 0 }
 0x14a   : > { %s3392_s5 = smov %s3391_s20  ;;  %s1285_s14 = scalar_lea.hbm %s3391_s20, %s2601_s16 }
 0x14b   : > { %s2983_s15 = scalar_lea.hbm %s1285_s14, 768  ;;  %s495_s29 = sshll.u32 %s485_s4, 4  ;;  %s496_s29 = int_to_ptr.vmem [resolvable:$true] %s495_s29 }
 0x14c   : > { %p2987_p6 = pnand %p3393_p5, %p276_p10  ;;  %s2071_s26 = scalar_lea.hbm %s1285_s14, 896 }
 0x14d   : > { %p2042_p13 = scmp.ne.s32.totalorder %s2983_s15, %s2071_s26  ;;  %s2046_s18 = scalar_lea.hbm %s3392_s5, 2816 }
 0x14e   : > { %p2043_p12 = pneg %p2987_p6  ;;  %p2047_p0 = scmp.lt.u32.totalorder %s2983_s15, %s3392_s5 }
 0x14f   : > { %p2048_p8 = scmp.lt.u32.totalorder %s2046_s18, %s2071_s26  ;;  %p2050_p4 = scmp.lt.u32.totalorder %s2071_s26, %s2983_s15 }
 0x150   : > { %p2044_p3 = pnand %p2043_p12, %p2042_p13 }
 0x151   : > { %p2049_p7 = por %p2048_p8, %p2047_p0 }
 0x152   : > { %p2045_p2 = pneg %p2044_p3 }
 0x153   : > { %p2051_p1 = por %p2050_p4, %p2049_p7 }
 0x155   : > { %p2052_p10 = pnand %p2051_p1, %p2045_p2 }
 0x157   : > { %2055 = shalt.err (!%p2052_p10)
}
 0x158   : > { %s2056_s7 = scalar_lea.vmem %s496_s29, 128  ;;  %s2342_s20 = smov [#allocation13]  }
 0x159   : > { %p2057_p9 = scmp.ne.s32.totalorder %s496_s29, %s2056_s7  ;;  %s2061_s14 = sshll.u32 %s2342_s20, 4  ;;  %s2062_s14 = int_to_ptr.vmem [resolvable:$false] %s2061_s14 }
 0x15a   : > { %s2063_s4 = scalar_lea.vmem %s2062_s14, 256  ;;  %p2064_p3 = scmp.lt.s32.totalorder %s496_s29, %s2062_s14 }
 0x15b   : > { %p2059_p5 = pnand %p2057_p9, %p2043_p12  ;;  %p2065_p11 = scmp.lt.s32.totalorder %s2063_s4, %s2056_s7 }
 0x15d   : > { %p2060_p13 = pneg %p2059_p5  ;;  %p2066_p0 = por %p2065_p11, %p2064_p3 }
 0x15f   : > { %p2067_p8 = pnand %p2066_p0, %p2060_p13 }
 0x161   : > { %2070 = shalt.err (!%p2067_p8)
}
 0x162   : > { %1589 = dma.hbm_to_vmem [thread:$0]  (!%p2987_p6), %s2983_s15, 128, %s496_s29, %s2619_s28  }
 0x163   : > { %s3395_s26 = sld [smem:[#allocation41_spill]] }
 0x169   : > { %p3396_p2 = scmp.ne.s32.totalorder %s3395_s26, 0 }
 0x16a   : > { %p3397_p12 = scmp.eq.s32.totalorder (!%p3396_p2), %s2518_s30, 0 }
 0x16b   : > { %504 = sbr.rel (%p3396_p2) target bundleno = 675 (0x2a3), region = 56 }
 0x172   : > { %2197 = dma.done.wait (%p3397_p12), [#allocation3], 896   ;;  %p3398_p7 = pmov %p3397_p12 }
 0x174   : > { %2199 = vsyncadd (%p3398_p7), [#allocation3], 4294966400  ;;  %p3399_p4 = pmov %p3398_p7 }
 0x176   : > { %2201 = dma.done.wait (%p3399_p4), [#allocation6], 128   ;;  %p3400_p11 = pmov %p3399_p4 }
 0x177   : > { %s3401_s3 = sld [smem:[#allocation38_spill]]  ;;  %s3402_s16 = sld [smem:[#allocation44_spill]] }
 0x178   : > { %2203 = vsyncadd (%p3400_p11), [#allocation6], 4294967168  ;;  %s514_s28 = sand.u32 1, %s2518_s30  }
 0x179   : > { %s3028_s2 = scalar_lea.sflag [#allocation3], %s514_s28 }
 0x17d   : > { %s3292_s15 = sand.u32 1, %s3401_s3   ;;  %p3403_p6 = scmp.ne.s32.totalorder %s3402_s16, 0 }
 0x17e   : > { %s3026_s29 = sshll.u32 %s3292_s15, 3 }
 0x17f   : > { %s518_s18 = scalar_lea.vmem [#allocation7], %s3026_s29 }
 0x180   : > { %2205 = dma.done.wait (%p3403_p6), %s3028_s2, 128  }
 0x181   : > { %2207 = vsyncadd (%p3403_p6), %s3028_s2, 4294967168  ;;  %s525_s12 = sand.u32 1, %s2302_s25   ;;  %p3404_p1 = scmp.ne.s32.totalorder %s3343_s11, 0 }
 0x182   : > { %s3038_s30 = sshll.u32 %s525_s12, 3 }
 0x183   : > { %s527_s10 = scalar_lea.vmem [#allocation8], %s3038_s30 }
 0x184   : > { %2209 = dma.done.wait (%p3404_p1), %s3028_s2, 128  }
 0x185   : > { %2211 = vsyncadd (%p3404_p1), %s3028_s2, 4294967168  ;;  %s534_s7 = sand.u32 1, %s2290_s22   ;;  %p3405_p10 = scmp.ne.s32.totalorder %s3350_s24, 0 }
 0x186   : > { %s3048_s20 = sshll.u32 %s534_s7, 3 }
 0x187   : > { %s536_s14 = scalar_lea.vmem [#allocation9], %s3048_s20 }
 0x188   : > { %2213 = dma.done.wait (%p3405_p10), %s3028_s2, 128  }
 0x189   : > { %2215 = vsyncadd (%p3405_p10), %s3028_s2, 4294967168  ;;  %s543_s11 = sand.u32 1, %s2278_s19   ;;  %p3406_p9 = scmp.ne.s32.totalorder %s3357_s21, 0 }
 0x18a   : > { %s3058_s4 = sshll.u32 %s543_s11, 3 }
 0x18b   : > { %s545_s26 = scalar_lea.vmem [#allocation10], %s3058_s4 }
 0x18c   : > { %2217 = dma.done.wait (%p3406_p9), %s3028_s2, 128  }
 0x18d   : > { %2219 = vsyncadd (%p3406_p9), %s3028_s2, 4294967168  ;;  %s3407_s16 = sld [smem:[#allocation32_spill]]  ;;  %p3408_p5 = scmp.ne.s32.totalorder %s3366_s9, 0 }
 0x193   : > { %s552_s24 = sand.u32 1, %s3407_s16  }
 0x194   : > { %s3068_s28 = sshll.u32 %s552_s24, 3 }
 0x195   : > { %2221 = dma.done.wait (%p3408_p5), %s3028_s2, 128  }
 0x196   : > { %2223 = vsyncadd (%p3408_p5), %s3028_s2, 4294967168  ;;  %s3409_s7 = sld [smem:[#allocation29_spill]]  ;;  %p3410_p13 = scmp.ne.s32.totalorder %s3377_s17, 0 }
 0x19c   : > { %s561_s21 = sand.u32 1, %s3409_s7  }
 0x19d   : > { %s3078_s11 = sshll.u32 %s561_s21, 3 }
 0x19e   : > { %s563_s15 = scalar_lea.vmem [#allocation12], %s3078_s11 }
 0x19f   : > { %2225 = dma.done.wait (%p3410_p13), %s3028_s2, 128  }
 0x1a0   : > { %2227 = vsyncadd (%p3410_p13), %s3028_s2, 4294967168  ;;  %s3411_s16 = sld [smem:[#allocation26_spill]]  ;;  %p3412_p3 = scmp.ne.s32.totalorder %s3390_s23, 0 }
 0x1a6   : > { %s570_s9 = sand.u32 1, %s3411_s16  }
 0x1a7   : > { %s3088_s24 = sshll.u32 %s570_s9, 3 }
 0x1a8   : > { %s572_s12 = scalar_lea.vmem [#allocation13], %s3088_s24 }
 0x1a9   : > { %2229 = dma.done.wait (%p3412_p3), %s3028_s2, 128  }
 0x1aa   : > { %2231 = vsyncadd (%p3412_p3), %s3028_s2, 4294967168  ;;  %v2343_v0 = vmov 0.0   ;;  %vm2344_vm0 = vmmov 0   ;;  %v2345_v1 = vmov 0   ;;  %vm648_vm1 = vcmask 64512   ;;  %v645_v2 = vld [vmem:[%s527_s10] sm:$0xff] }
 0x1ab   : > { %1502 = vmatprep.subr.mxu0 %v2343_v0  ;;  %1504 = vmatprep.mubr.msk.f32.mxu0 %vm2344_vm0, %v2343_v0  ;;  %v647_v3 = vld [vmem:[#allocation2 + $0x8] sm:$0xff]  ;;  %v644_v5 = vld [vmem:[#allocation2] sm:$0xff]  ;;  %v872_v7 = vld [vmem:[%s545_s26] sm:$0xff]  ;;  %s3413_s17 = scalar_lea.vmem [#allocation11], %s3068_s28  ;;  %s3414_s23 = sld [smem:[#allocation40_spill]] }
 0x1ac   : > { %1507 = vmatprep.subr.mxu1 %v2343_v0  ;;  %1509 = vmatprep.mubr.msk.f32.mxu1 %vm2344_vm0, %v2343_v0  ;;  %v643_v4 = vld [vmem:[%s518_s18] sm:$0xff]  ;;  %v797_v8 = vld [vmem:[#allocation2 + $0x10] sm:$0xff]  ;;  %v874_v10 = vld [vmem:[#allocation2 + $0x18] sm:$0xff]  ;;  %s636_s2 = scalar_lea.vmem [#allocation14], %s3026_s29  ;;  %s3415_s20 = sld [smem:[#allocation59_spill]] }
 0x1ad   : > { %1799 = vset.pattern.permute.xlu0 %v2345_v1  ;;  %1503 = vmatpush3.msra.mxu0 %v645_v2  ;;  %v795_v6 = vld [vmem:[%s536_s14] sm:$0xff]  ;;  %v1026_v11 = vld [vmem:[%s563_s15] sm:$0xff]  ;;  %s1207_s18 = sshll.u32 %s636_s2, 4  ;;  %s3417_s26 = sand.u32 1, %s3401_s3   ;;  %s3132_s18 = int_to_ptr.vmem [resolvable:$true] %s1207_s18 }
 0x1ae   : > { %1508 = vmatpush3.msra.mxu1 %v643_v4  ;;  %1505 = vmatmul.mubr.msk.f32.vlgmr.msra.gmra.mrb[0].mxu0 %vm648_vm1, %v647_v3  ;;  %v949_v9 = vld [vmem:[%s3413_s17] sm:$0xff]  ;;  %v1180_v15 = vld [vmem:[#allocation5] sm:$0xff]  ;;  %v1105_v16 = vld [vmem:[#allocation2 + $0x30] sm:$0xff]  ;;  %s1192_s28 = scalar_lea.sflag [#allocation4], %s3417_s26  ;;  %p3418_p8 = scmp.ne.s32.totalorder %s3334_s13, 0 }
 0x1af   : > { %1512 = vmatprep.subr.mxu0 %v2343_v0  ;;  %1510 = vmatmul.mubr.msk.f32.vlgmr.msra.gmra.mrb[0].mxu1 %vm648_vm1, %v644_v5  ;;  %v951_v12 = vld [vmem:[#allocation2 + $0x20] sm:$0xff]  ;;  %v1028_v14 = vld [vmem:[#allocation2 + $0x28] sm:$0xff]  ;;  %s2346_s29 = smov [#allocation14]  }
 0x1b0   : > { %1513 = vmatpush3.msra.mxu0 %v795_v6  ;;  %1517 = vmatprep.subr.mxu1 %v2343_v0  ;;  %v1103_v13 = vld [vmem:[%s572_s12] sm:$0xff]  ;;  %s2072_s12 = scalar_lea.vmem %s3132_s18, 128  ;;  %s2076_s7 = sshll.u32 %s2346_s29, 4  ;;  %s2077_s7 = int_to_ptr.vmem [resolvable:$false] %s2076_s7 }
 0x1b1   : > { %1514 = vmatprep.mubr.msk.f32.mxu0 %vm2344_vm0, %v2343_v0  ;;  %1518 = vmatpush3.msra.mxu1 %v872_v7  ;;  %s1485_s15 = sshll.u32 %s3414_s23, 7  ;;  %p2073_p0 = scmp.ne.s32.totalorder %s3132_s18, %s2072_s12 }
 0x1b2   : > { %1522 = vmatprep.subr.mxu0 %v2343_v0  ;;  %1515 = vmatmul.mubr.msk.f32.vlgmr.msra.gmra.mrb[2].mxu0 %vm648_vm1, %v797_v8  ;;  %s3416_s4 = smov %s3415_s20  ;;  %s3130_s14 = scalar_lea.hbm %s3415_s20, %s1485_s15 }
 0x1b3   : > { %1519 = vmatprep.mubr.msk.f32.mxu1 %vm2344_vm0, %v2343_v0  ;;  %1523 = vmatpush3.msra.mxu0 %v949_v9  ;;  %p2074_p2 = pnand %p2073_p0, %p3418_p8  ;;  %s2078_s21 = scalar_lea.vmem %s2077_s7, 256 }
 0x1b4   : > { %1520 = vmatmul.mubr.msk.f32.vlgmr.msra.gmra.mrb[2].mxu1 %vm648_vm1, %v874_v10  ;;  %1527 = vmatprep.subr.mxu1 %v2343_v0  ;;  %p2079_p7 = scmp.lt.s32.totalorder %s3132_s18, %s2077_s7  ;;  %p2080_p4 = scmp.lt.s32.totalorder %s2078_s21, %s2072_s12 }
 0x1b5   : > { %1524 = vmatprep.mubr.msk.f32.mxu0 %vm2344_vm0, %v2343_v0  ;;  %1528 = vmatpush3.msra.mxu1 %v1026_v11  ;;  %p2075_p12 = pneg %p2074_p2 }
 0x1b6   : > { %1532 = vmatprep.subr.mxu0 %v2343_v0  ;;  %1525 = vmatmul.mubr.msk.f32.vlgmr.msra.gmra.mrb[4].mxu0 %vm648_vm1, %v951_v12  ;;  %p2081_p11 = por %p2080_p4, %p2079_p7 }
 0x1b7   : > { %1529 = vmatprep.mubr.msk.f32.mxu1 %vm2344_vm0, %v2343_v0  ;;  %1533 = vmatpush3.msra.mxu0 %v1103_v13 }
 0x1b8   : > { %1530 = vmatmul.mubr.msk.f32.vlgmr.msra.gmra.mrb[4].mxu1 %vm648_vm1, %v1028_v14  ;;  %1534 = vmatprep.mubr.msk.f32.mxu0 %vm2344_vm0, %v2343_v0  ;;  %p2082_p6 = pnand %p2081_p11, %p2075_p12 }
 0x1b9   : > { %1183 = vperm.xlu0 %1799, %v1180_v15  }
 0x1ba   : > { %1535 = vmatmul.mubr.msk.f32.vlgmr.msra.gmra.mrb[6].mxu0 %vm648_vm1, %v1105_v16 }
 0x238   : > { %v1184_v35 = vpop.permute.xlu0 %1183 }
 0x281   : > { %v718_v17 = vpop.f32.mrb[0].mxu0 }
 0x282   : > { %v1506_v18 = vpop.f32.mrb[1].mxu0  ;;  %v791_v19 = vpop.f32.mrb[0].mxu1 }
 0x283   : > { %v792_v20 = vadd.f32 %v791_v19, %v718_v17  ;;  %v1511_v21 = vpop.f32.mrb[1].mxu1 }
 0x285   : > { %v867_v22 = vpop.f32.mrb[2].mxu0 }
 0x286   : > { %v871_v23 = vadd.f32 %v867_v22, %v792_v20  ;;  %v1516_v24 = vpop.f32.mrb[3].mxu0 }
 0x287   : > { %v944_v25 = vpop.f32.mrb[2].mxu1 }
 0x288   : > { %v1521_v26 = vpop.f32.mrb[3].mxu1  ;;  %v948_v27 = vadd.f32 %v944_v25, %v871_v23 }
 0x289   : > { %v1021_v28 = vpop.f32.mrb[4].mxu0 }
 0x28a   : > { %v1025_v29 = vadd.f32 %v1021_v28, %v948_v27  ;;  %v1526_v30 = vpop.f32.mrb[5].mxu0 }
 0x28b   : > { %v1098_v31 = vpop.f32.mrb[4].mxu1 }
 0x28c   : > { %v1531_v32 = vpop.f32.mrb[5].mxu1  ;;  %v1102_v33 = vadd.f32 %v1098_v31, %v1025_v29 }
 0x28d   : > { %v1175_v34 = vpop.f32.mrb[6].mxu0 }
 0x28e   : > { %v1179_v36 = vadd.f32 %v1175_v34, %v1102_v33  ;;  %v1536_v37 = vpop.f32.mrb[7].mxu0 }
 0x290   : > { %v1186_v38 = vadd.f32 %v1184_v35, %v1179_v36 }
 0x292   : > { %vm1187_vm2 = vcmp.ge.f32.partialorder %v1186_v38, 0.0  ;;  %v1188_v39 = vmul.f32 0.01, %v1186_v38 }
 0x294   : > { %v1189_v40 = vsel %vm1187_vm2, %v1186_v38, %v1188_v39 }
 0x295   : > { %1190 = vst.msk [vmem:[%s636_s2] sm:$0xff] %vm648_vm1, %v1189_v40 }
 0x296   : > { %2085 = shalt.err (!%p2082_p6)
}
 0x297   : > { %s2086_s3 = scalar_lea.hbm %s3130_s14, 128  ;;  %s2090_s9 = scalar_lea.hbm %s3416_s4, 2048 }
 0x298   : > { %p2087_p1 = scmp.ne.s32.totalorder %s3130_s14, %s2086_s3  ;;  %p2091_p5 = scmp.lt.u32.totalorder %s3130_s14, %s3416_s4 }
 0x299   : > { %p2092_p13 = scmp.lt.u32.totalorder %s2090_s9, %s2086_s3  ;;  %p2094_p0 = scmp.lt.u32.totalorder %s2086_s3, %s3130_s14 }
 0x29a   : > { %p2088_p10 = pnand %p2087_p1, %p3418_p8 }
 0x29b   : > { %p2093_p3 = por %p2092_p13, %p2091_p5 }
 0x29c   : > { %p2089_p9 = pneg %p2088_p10 }
 0x29d   : > { %p2095_p2 = por %p2094_p0, %p2093_p3 }
 0x29f   : > { %p2096_p12 = pnand %p2095_p2, %p2089_p9 }
 0x2a1   : > { %2099 = shalt.err (!%p2096_p12)
}
 0x2a2   : > { %1559 = dma.vmem_to_hbm [thread:$0]  (%p3418_p8), %s3132_s18, 128, %s3130_s14, %s1192_s28  }
 0x2a3 PF: > { %s3419_s23 = sld [smem:[#allocation37_spill]]  ;;  %s3420_s15 = sld [smem:[#allocation46_spill]] }
 0x2a4   : > { %p1599_p7 = scmp.ge.s32.totalorder %s2330_s1, 2 }
 0x2a9   : > { %s1219_s2 = sand.u32 1, %s3419_s23   ;;  %p3421_p4 = scmp.ne.s32.totalorder %s3420_s15, 0 }
 0x2aa   : > { %s1220_s30 = scalar_lea.sflag [#allocation4], %s1219_s2 }
 0x2ab   : > { %p1591_p11 = pnand %p1599_p7, %p3421_p4 }
 0x2ad   : > { %2233 = dma.done.wait (!%p1591_p11), %s1220_s30, 128  }
 0x2ae   : > { %2235 = vsyncadd (!%p1591_p11), %s1220_s30, 4294967168  ;;  %s24_s1 = sadd.s32 1, %s2330_s1   ;;  %s3424_s30 = sld [smem:[#allocation26_spill]] }
 0x2af   : > { %p3163_p6 = scmp.ge.s32.totalorder %s24_s1, 18   ;;  %s3425_s10 = sld [smem:[#allocation27_spill]] }
 0x2b0   : > { %s3426_s12 = sld [smem:[#allocation29_spill]]  ;;  %s3427_s13 = sld [smem:[#allocation30_spill]] }
 0x2b1   : > { %s3428_s15 = sld [smem:[#allocation32_spill]]  ;;  %s3429_s16 = sld [smem:[#allocation33_spill]] }
 0x2b2   : > { %s3430_s26 = sld [smem:[#allocation34_spill]]  ;;  %s3431_s28 = sld [smem:[#allocation49_spill]] }
 0x2b3   : > { %s3432_s29 = sld [smem:[#allocation35_spill]]  ;;  %s3433_s23 = sld [smem:[#allocation48_spill]] }
 0x2b4   : > { %s3434_s7 = sld [smem:[#allocation36_spill]]  ;;  %s3435_s3 = sld [smem:[#allocation47_spill]] }
 0x2b5   : > { %s3436_s11 = smov %s3462_s0  ;;  %s3437_s9 = sld [smem:[#allocation38_spill]] }
 0x2b6   : > { %s3438_s2 = sld [smem:[#allocation39_spill]]  ;;  %s3439_s4 = sld [smem:[#allocation45_spill]] }
 0x2b7   : > { %s3440_s14 = smov %s3460_s27  ;;  %s3441_s5 = sld [smem:[#allocation43_spill]] }
 0x2b8   : > { %s3442_s17 = smov %s3458_s6  ;;  %s3444_s18 = smov %s2278_s19 }
 0x2b9   : > { %s3445_s19 = smov %s3430_s26  ;;  %s3446_s20 = smov %s3431_s28 }
 0x2ba   : > { %s3447_s21 = smov %s2290_s22  ;;  %s3448_s22 = smov %s3432_s29 }
 0x2bb   : > { %3449 = sst [smem:[#allocation25_spill]] %s2302_s25  ;;  %s3450_s25 = smov %s3434_s7 }
 0x2bc   : > { %s3451_s26 = smov %s3435_s3  ;;  %s3452_s27 = smov %s3437_s9 }
 0x2bd   : > { %s3453_s28 = smov %s3438_s2  ;;  %s3454_s29 = smov %s3439_s4 }
 0x2be   : > { %s3455_s9 = smov %s2326_s8  ;;  %s3456_s8 = smov %s3441_s5 }
 0x2bf   :  { %23 = sbr.rel (!%p3163_p6) target bundleno = 27 (0x1b), region = 180 }
 0x2c6   :  { %1225 = vsyncpa [#allocation3], 1 }
 0x2c7   :  { %1227 = vsyncpa [#allocation3 + $0x1], 1 }
 0x2c8   :  { %1228 = vsyncpa [#allocation6], 1 }
 0x2c9   :  { %1229 = vsyncpa [#allocation4], 1 }
 0x2ca   :  { %1231 = vsyncpa [#allocation4 + $0x1], 1 }

// kernel: _lambda_.40
= control target key start
LH: loop header
LB: loop body
LE: loop exit
PB: predicated region body
PF: predicated region fallthrough
CT: control target
= control target key end

     0   :  { %8 = vsyncpa [#allocation3], 0  ;;  %s982_s0 = inlined_call_operand.hbm [shape: f32[8,16,8], index: 0, kind: input, shape index: {}]   ;;  %s983_s1 = inlined_call_operand.hbm [shape: f32[8,1,8], index: 1, kind: input, shape index: {}]   ;;  %s984_s2 = inlined_call_operand.hbm [shape: f32[16,16], index: 2, kind: input, shape index: {}]   ;;  %s985_s3 = inlined_call_operand.hbm [shape: f32[8,16,8], index: 3, kind: output, shape index: {}]  }
   0x1   :  { %10 = vsyncpa [#allocation3 + $0x1], 0 }
   0x2   :  { %11 = vsyncpa [#allocation6], 0 }
   0x3   :  { %13 = vsyncpa [#allocation6 + $0x1], 0 }
   0x4   :  { %14 = vsyncpa [#allocation4], 0 }
   0x5   :  { %16 = vsyncpa [#allocation4 + $0x1], 0  ;;  %s746_s12 = smov 0   ;;  %s748_s13 = smov 0  }
   0x6   :  { %s750_s14 = smov 0   ;;  %s752_s15 = smov 0  }
   0x7 LB: > { %s767_s16 = sadd.s32 4294967295, %s716_s15   ;;  %s451_s17 = sadd.s32 4294967294, %s716_s15   ;;  %s716_s15 = sphi %s752_s15, %s1006_s15   ;;  %s712_s14 = sphi %s750_s14, %s1005_s14   ;;  %s708_s13 = sphi %s748_s13, %s1004_s13   ;;  %s704_s12 = sphi %s746_s12, %s1003_s12  }
   0x8   : > { %p42_p0 = scmp.ne.s32.totalorder %s708_s13, %s704_s12  ;;  %p986_p1 = scmp.eq.s32.totalorder %s767_s16, 0 }
   0x9   : > { %p119_p3 = scmp.eq.s32.totalorder %s451_s17, 7  ;;  %p452_p5 = scmp.ge.s32.totalorder %s716_s15, 1 }
   0xa   : > { %p776_p4 = por %p986_p1, %p42_p0  ;;  %p126_p7 = scmp.lt.s32.totalorder %s716_s15, 9 }
   0xb   : > { %p781_p6 = por %p119_p3, %p42_p0  ;;  %s718_s21 = smov [#allocation7]  }
   0xc   : > { %s990_s18 = scalar_select %p776_p4, 1, 0 }
   0xd   : > { %s991_s19 = scalar_select %p781_p6, 1, 0 }
   0xe   : > { %p786_p8 = pnand %p452_p5, %p126_p7  ;;  %s138_s22 = sshll.u32 %s718_s21, 4  ;;  %s139_s22 = int_to_ptr.vmem [resolvable:$true] %s138_s22 }
   0xf   : > { %s799_s24 = sadd.s32 1, %s716_s15   ;;  %s29_s25 = sadd.s32 1, %s712_s14 }
  0x10   : > { %s992_s20 = scalar_select %p786_p8, 1, 0 }
  0x11   : > { %p498_p9 = pneg %p786_p8  ;;  %s26_s26 = ssub.s32 %s716_s15, %s799_s24 }
  0x12   : > { %s554_s29 = scalar_lea.hbm %s984_s2, 256 }
  0x13   : > { %p794_p10 = pnand %p498_p9, %p986_p1  ;;  %p555_p11 = scmp.ne.s32.totalorder %s984_s2, %s554_s29 }
  0x14   : > { %p561_p3 = scmp.lt.u32.totalorder %s554_s29, %s984_s2 }
  0x15   : > { %p556_p12 = pneg %p794_p10 }
  0x17   : > { %p557_p13 = pnand %p556_p12, %p555_p11 }
  0x19   : > { %p558_p0 = pneg %p557_p13 }
  0x1b   : > { %p563_p5 = pnand %p561_p3, %p558_p0 }
  0x1d   : > { %566 = shalt.err (!%p563_p5)
}
  0x1e   : > { %s567_s7 = scalar_lea.vmem %s139_s22, 256  ;;  %p575_p2 = scmp.lt.s32.totalorder %s139_s22, %s139_s22 }
  0x1f   : > { %p568_p7 = scmp.ne.s32.totalorder %s139_s22, %s567_s7  ;;  %p576_p6 = scmp.lt.s32.totalorder %s567_s7, %s567_s7 }
  0x21   : > { %p570_p9 = pnand %p568_p7, %p556_p12  ;;  %p577_p4 = por %p576_p6, %p575_p2 }
  0x23   : > { %p571_p1 = pneg %p570_p9 }
  0x25   : > { %p578_p8 = pnand %p577_p4, %p571_p1 }
  0x27   : > { %581 = shalt.err (!%p578_p8)
}
  0x28   : > { %s719_s8 = smov 128   ;;  %s720_s9 = smov 8  }
  0x29   : > { %501 = dma.hbm_to_vmem [thread:$0]  (!%p794_p10), %s984_s2, 256, %s139_s22, [#allocation6], %s719_s8, %s719_s8, %s720_s9  }
  0x2a   : > { %p27_p1 = scmp.eq.s32.totalorder %s26_s26, 0  ;;  %p36_p2 = scmp.ne.s32.totalorder %s712_s14, %s708_s13 }
  0x2b   : > { %p37_p4 = scmp.eq.s32.totalorder %s716_s15, 0  ;;  %p514_p6 = scmp.lt.s32.totalorder %s716_s15, 8 }
  0x2c   : > { %s828_s17 = scalar_select %p27_p1, %s712_s14, %s29_s25  }
  0x2d   : > { %p38_p8 = por %p37_p4, %p36_p2  ;;  %p994_p11 = scmp.eq.s32.totalorder %s767_s16, 7 }
  0x2e   : > { %s837_s23 = sand.u32 1, %s712_s14   ;;  %s471_s27 = sshll.u32 %s716_s15, 8 }
  0x2f   : > { %p832_p12 = por %p994_p11, %p36_p2  ;;  %s455_s28 = sshll.u32 %s837_s23, 4 }
  0x30   : > { %s844_s26 = scalar_lea.hbm %s982_s0, %s471_s27  ;;  %s156_s25 = scalar_lea.vmem [#allocation2], %s455_s28 }
  0x31   : > { %s995_s21 = scalar_select %p832_p12, 1, 0 }
  0x32   : > { %s163_s30 = sshll.u32 %s156_s25, 4  ;;  %p846_p10 = pnand %p514_p6, %p38_p8  ;;  %s850_s30 = int_to_ptr.vmem [resolvable:$true] %s163_s30 }
  0x33   : > { %s173_s5 = sand.u32 1, %s716_s15   ;;  %s153_s6 = scalar_lea.sflag [#allocation3], %s837_s23 }
  0x34   : > { %s582_s7 = scalar_lea.hbm %s844_s26, 256  ;;  %p584_p0 = pneg %p846_p10 }
  0x35   : > { %p583_p13 = scmp.ne.s32.totalorder %s844_s26, %s582_s7  ;;  %s587_s27 = scalar_lea.hbm %s982_s0, 2048 }
  0x36   : > { %p588_p7 = scmp.lt.u32.totalorder %s844_s26, %s982_s0  ;;  %p589_p9 = scmp.lt.u32.totalorder %s587_s27, %s582_s7 }
  0x37   : > { %p585_p3 = pnand %p584_p0, %p583_p13  ;;  %p591_p2 = scmp.lt.u32.totalorder %s582_s7, %s844_s26 }
  0x38   : > { %p590_p1 = por %p589_p9, %p588_p7 }
  0x39   : > { %p586_p5 = pneg %p585_p3 }
  0x3a   : > { %p592_p4 = por %p591_p2, %p590_p1 }
  0x3c   : > { %p593_p6 = pnand %p592_p4, %p586_p5 }
  0x3e   : > { %596 = shalt.err (!%p593_p6)
}
  0x3f   : > { %s597_s29 = scalar_lea.vmem %s850_s30, 256  ;;  %s721_s25 = smov [#allocation2]  }
  0x40   : > { %p598_p8 = scmp.ne.s32.totalorder %s850_s30, %s597_s29  ;;  %s602_s10 = sshll.u32 %s721_s25, 4  ;;  %s603_s10 = int_to_ptr.vmem [resolvable:$false] %s602_s10 }
  0x41   : > { %s604_s11 = scalar_lea.vmem %s603_s10, 512  ;;  %p605_p3 = scmp.lt.s32.totalorder %s850_s30, %s603_s10 }
  0x42   : > { %p600_p11 = pnand %p598_p8, %p584_p0  ;;  %p606_p7 = scmp.lt.s32.totalorder %s604_s11, %s597_s29 }
  0x44   : > { %p601_p13 = pneg %p600_p11  ;;  %p607_p9 = por %p606_p7, %p605_p3 }
  0x46   : > { %p608_p1 = pnand %p607_p9, %p601_p13 }
  0x48   : > { %611 = shalt.err (!%p608_p1)
}
  0x49   : > { %505 = dma.hbm_to_vmem [thread:$0]  (!%p846_p10), %s844_s26, 256, %s850_s30, %s153_s6, %s719_s8, %s719_s8, %s720_s9  }
  0x4a   : > { %s458_s7 = sshll.u32 %s716_s15, 4  ;;  %s176_s29 = scalar_lea.vmem [#allocation5], %s837_s23 }
  0x4b   : > { %s888_s22 = scalar_lea.hbm %s983_s1, %s458_s7  ;;  %s183_s25 = sshll.u32 %s176_s29, 4  ;;  %s184_s25 = int_to_ptr.vmem [resolvable:$true] %s183_s25 }
  0x4c   : > { %s174_s10 = scalar_lea.sflag [#allocation6], %s173_s5  ;;  %s612_s11 = scalar_lea.hbm %s888_s22, 16 }
  0x4d   : > { %p613_p5 = scmp.ne.s32.totalorder %s888_s22, %s612_s11  ;;  %s617_s26 = scalar_lea.hbm %s983_s1, 128 }
  0x4e   : > { %p618_p6 = scmp.lt.u32.totalorder %s888_s22, %s983_s1  ;;  %p619_p8 = scmp.lt.u32.totalorder %s617_s26, %s612_s11 }
  0x4f   : > { %p615_p2 = pnand %p613_p5, %p584_p0  ;;  %p621_p13 = scmp.lt.u32.totalorder %s612_s11, %s888_s22 }
  0x50   : > { %p620_p11 = por %p619_p8, %p618_p6 }
  0x51   : > { %p616_p4 = pneg %p615_p2 }
  0x52   : > { %p622_p3 = por %p621_p13, %p620_p11 }
  0x54   : > { %p623_p7 = pnand %p622_p3, %p616_p4 }
  0x56   : > { %626 = shalt.err (!%p623_p7)
}
  0x57   : > { %s627_s23 = scalar_lea.vmem %s184_s25, 16  ;;  %s722_s5 = smov [#allocation5]  }
  0x58   : > { %p628_p9 = scmp.ne.s32.totalorder %s184_s25, %s627_s23  ;;  %s632_s7 = sshll.u32 %s722_s5, 4  ;;  %s633_s7 = int_to_ptr.vmem [resolvable:$false] %s632_s7 }
  0x59   : > { %s634_s27 = scalar_lea.vmem %s633_s7, 32  ;;  %p635_p2 = scmp.lt.s32.totalorder %s184_s25, %s633_s7 }
  0x5a   : > { %p630_p1 = pnand %p628_p9, %p584_p0  ;;  %p636_p12 = scmp.lt.s32.totalorder %s634_s27, %s627_s23 }
  0x5c   : > { %p631_p5 = pneg %p630_p1  ;;  %p637_p6 = por %p636_p12, %p635_p2 }
  0x5e   : > { %p638_p8 = pnand %p637_p6, %p631_p5 }
  0x60   : > { %641 = shalt.err (!%p638_p8)
}
  0x61   : > { %508 = dma.hbm_to_vmem [thread:$0]  (!%p846_p10), %s888_s22, 16, %s184_s25, %s174_s10  }
  0x62   : > { %p997_p4 = scmp.ne.s32.totalorder %s992_s20, 0 }
  0x63   : > { %s915_s28 = sand.u32 (!%p997_p4), 1, %s708_s13   ;;  %p998_p0 = scmp.ne.s32.totalorder (!%p997_p4), %s990_s18, 0 }
  0x64   : > { %192 = sbr.rel (%p997_p4) target bundleno = 352 (0x160), region = 32  ;;  %s460_s29 = sshll.u32 (!%p997_p4), %s915_s28, 4 }
  0x65   : > { %s195_s11 = scalar_lea.sflag (!%p997_p4), [#allocation3], %s915_s28  ;;  %s198_s8 = scalar_lea.vmem (!%p997_p4), [#allocation2], %s460_s29 }
  0x6b   : > { %687 = dma.done.wait (%p998_p0), %s195_s11, 256  }
  0x6c   : > { %689 = vsyncadd (%p998_p0), %s195_s11, 4294967040  ;;  %s203_s4 = sand.u32 1, %s767_s16   ;;  %s206_s22 = scalar_lea.vmem [#allocation5], %s915_s28 }
  0x6d   : > { %s204_s20 = scalar_lea.sflag [#allocation6], %s203_s4 }
  0x6e   : > { %691 = dma.done.wait (%p998_p0), %s204_s20, 16  }
  0x6f   : > { %693 = vsyncadd (%p998_p0), %s204_s20, 4294967280  ;;  %p999_p12 = scmp.eq.s32.totalorder %s767_s16, 0 }
  0x71   : > { %695 = dma.done.wait (%p999_p12), [#allocation6], 256   ;;  %p1000_p10 = pmov %p999_p12 }
  0x72   : > { %vm250_vm0 = vcmask 130048   ;;  %v237_v0 = vld [vmem:[%s198_s8] sm:$0xff]  ;;  %v238_v1 = vld [vmem:[%s198_s8 + $0x8] sm:$0xff]  ;;  %s236_s18 = scalar_lea.vmem [#allocation8], %s460_s29  ;;  %s472_s10 = sshll.u32 %s767_s16, 8  ;;  %vm332_vm1 = vcmask 64512  }
  0x73   : > { %697 = vsyncadd (%p1000_p10), [#allocation6], 4294967040  ;;  %v463_v2 = vld [vmem:[%s206_s22] ss:$0 sm:$0xff]  ;;  %v248_v5 = vld [vmem:[#allocation7] sm:$0xff]  ;;  %s349_s25 = sshll.u32 %s236_s18, 4  ;;  %s939_s30 = scalar_lea.hbm %s985_s3, %s472_s10  ;;  %s934_s25 = int_to_ptr.vmem [resolvable:$true] %s349_s25 }
  0x74   : > { %v246_v3 = vmul.f32 %v463_v2, %v237_v0  ;;  %v247_v4 = vmul.f32 %v463_v2, %v238_v1  ;;  %481 = vmatprep.mubr.msk.f32.mxu0 %vm250_vm0, %v248_v5  ;;  %v249_v7 = vld [vmem:[#allocation7 + $0x8] sm:$0xff]  ;;  %s336_s6 = scalar_lea.sflag [#allocation4], %s915_s28  ;;  %s642_s23 = scalar_lea.vmem %s934_s25, 256 }
  0x75   : > { %p643_p11 = scmp.ne.s32.totalorder %s934_s25, %s642_s23  ;;  %p1001_p13 = scmp.ne.s32.totalorder %s995_s21, 0 }
  0x76   : > { %v484_v6 = vpack.c.bf16 %v247_v4, %v246_v3  ;;  %s723_s16 = smov [#allocation8]  }
  0x77   : > { %p644_p3 = pnand %p643_p11, %p1001_p13  ;;  %s646_s5 = sshll.u32 %s723_s16, 4  ;;  %s647_s5 = int_to_ptr.vmem [resolvable:$false] %s646_s5 }
  0x78   : > { %485 = vmatprep.subr.bf16.mxu0 %v484_v6  ;;  %s648_s7 = scalar_lea.vmem %s647_s5, 512  ;;  %p649_p9 = scmp.lt.s32.totalorder %s934_s25, %s647_s5 }
  0x79   : > { %487 = vmatpush3.bf16.msra.mxu0 %v484_v6  ;;  %p645_p7 = pneg %p644_p3  ;;  %p650_p1 = scmp.lt.s32.totalorder %s648_s7, %s642_s23 }
  0x7b   : > { %p651_p5 = por %p650_p1, %p649_p9 }
  0x7c   : > { %482 = vmatmul.mubr.msk.f32.vlgmr.msra.gmra.mrb[0].mxu0 %vm250_vm0, %v249_v7 }
  0x7d   : > { %p652_p2 = pnand %p651_p5, %p645_p7 }
 0x14f   : > { %v483_v8 = vpop.f32.mrb[0].mxu0 }
 0x150   : > { %334 = vst.msk [vmem:[%s236_s18 + $0x8] sm:$0xff] %vm332_vm1, %v483_v8  ;;  %v323_v9 = vpop.f32.mrb[1].mxu0 }
 0x151   : > { %333 = vst.msk [vmem:[%s236_s18] sm:$0xff] %vm332_vm1, %v323_v9 }
 0x152   : > { %655 = shalt.err (!%p652_p2)
}
 0x153   : > { %s656_s27 = scalar_lea.hbm %s939_s30, 256  ;;  %s660_s8 = scalar_lea.hbm %s985_s3, 2048 }
 0x154   : > { %p657_p6 = scmp.ne.s32.totalorder %s939_s30, %s656_s27  ;;  %p661_p0 = scmp.lt.u32.totalorder %s939_s30, %s985_s3 }
 0x155   : > { %p662_p12 = scmp.lt.u32.totalorder %s660_s8, %s656_s27  ;;  %p664_p11 = scmp.lt.u32.totalorder %s656_s27, %s939_s30 }
 0x156   : > { %p658_p8 = pnand %p657_p6, %p1001_p13 }
 0x157   : > { %p663_p10 = por %p662_p12, %p661_p0 }
 0x158   : > { %p659_p4 = pneg %p658_p8 }
 0x159   : > { %p665_p3 = por %p664_p11, %p663_p10 }
 0x15b   : > { %p666_p7 = pnand %p665_p3, %p659_p4 }
 0x15d   : > { %669 = shalt.err (!%p666_p7)
}
 0x15e   : > { %s724_s22 = smov 128   ;;  %s725_s18 = smov 8  }
 0x15f   : > { %496 = dma.vmem_to_hbm [thread:$0]  (%p1001_p13), %s934_s25, 256, %s939_s30, %s336_s6, %s724_s22, %s724_s22, %s725_s18  }
 0x160 PF: > { %p516_p9 = scmp.ge.s32.totalorder %s716_s15, 2  ;;  %s364_s10 = sand.u32 1, %s704_s12  }
 0x161   : > { %p1002_p1 = scmp.ne.s32.totalorder %s991_s19, 0  ;;  %s365_s9 = scalar_lea.sflag [#allocation4], %s364_s10 }
 0x163   : > { %p510_p5 = pnand %p516_p9, %p1002_p1 }
 0x165   : > { %699 = dma.done.wait (!%p510_p5), %s365_s9, 256  }
 0x166   : > { %701 = vsyncadd (!%p510_p5), %s365_s9, 4294967040  ;;  %p19_p2 = scmp.ge.s32.totalorder %s799_s24, 10   ;;  %s1003_s12 = smov %s708_s13 }
 0x167   : > { %s1004_s13 = smov %s712_s14  ;;  %s1005_s14 = smov %s828_s17 }
 0x168   : > { %s1006_s15 = smov %s799_s24  ;;  %21 = sbr.rel (!%p19_p2) target bundleno = 7 (0x7), region = 94 }
 0x16f   :  { %370 = vsyncpa [#allocation3], 1 }
 0x170   :  { %372 = vsyncpa [#allocation3 + $0x1], 1 }
 0x171   :  { %373 = vsyncpa [#allocation6], 1 }
 0x172   :  { %375 = vsyncpa [#allocation6 + $0x1], 1 }
 0x173   :  { %376 = vsyncpa [#allocation4], 1 }
 0x174   :  { %378 = vsyncpa [#allocation4 + $0x1], 1 }

// kernel: _lambda_.39
= control target key start
LH: loop header
LB: loop body
LE: loop exit
PB: predicated region body
PF: predicated region fallthrough
CT: control target
= control target key end

     0   :  { %8 = vsyncpa [#allocation3], 0  ;;  %s753_s0 = inlined_call_operand.hbm [shape: f32[8,720], index: 0, kind: input, shape index: {}]   ;;  %s754_s1 = inlined_call_operand.hbm [shape: f32[720,8], index: 1, kind: input, shape index: {}]   ;;  %s755_s2 = inlined_call_operand.hbm [shape: f32[8,1], index: 2, kind: input, shape index: {}]   ;;  %s756_s3 = inlined_call_operand.hbm [shape: f32[8,8], index: 3, kind: output, shape index: {}]  }
   0x1   :  { %9 = vsyncpa [#allocation6], 0 }
   0x2   :  { %10 = vsyncpa [#allocation4], 0  ;;  %s664_s12 = smov [#allocation5]   ;;  %s570_s16 = scalar_lea.hbm %s754_s1, 11520 }
   0x3   :  { %s26_s13 = sshll.u32 %s664_s12, 4  ;;  %p571_p0 = scmp.ne.s32.totalorder %s754_s1, %s570_s16  ;;  %s27_s13 = int_to_ptr.vmem [resolvable:$true] %s26_s13 }
   0x4   :  { %p574_p1 = scmp.lt.u32.totalorder %s570_s16, %s754_s1 }
   0x6   :  { %p576_p2 = pnand %p574_p1, %p571_p0 }
   0x8   :  { %579 = shalt.err (!%p576_p2)
}
   0x9   :  { %s580_s21 = scalar_lea.vmem %s27_s13, 11520  ;;  %p585_p4 = scmp.lt.s32.totalorder %s27_s13, %s27_s13 }
   0xa   :  { %p581_p3 = scmp.ne.s32.totalorder %s27_s13, %s580_s21  ;;  %p586_p5 = scmp.lt.s32.totalorder %s580_s21, %s580_s21 }
   0xc   :  { %p587_p6 = por %p586_p5, %p585_p4 }
   0xe   :  { %p588_p7 = pnand %p587_p6, %p581_p3 }
  0x10   :  { %591 = shalt.err (!%p588_p7)
}
  0x11   :  { %s665_s22 = smov 128   ;;  %s666_s23 = smov 8  }
  0x12   :  { %32 = dma.hbm_to_vmem [thread:$0]  %s754_s1, 11520, %s27_s13, [#allocation6], %s665_s22, %s665_s22, %s666_s23  }
  0x13   :  { %s667_s26 = smov [#allocation2]   ;;  %s668_s28 = smov [#allocation7]  }
  0x14   :  { %s17_s27 = sshll.u32 %s667_s26, 4  ;;  %s39_s29 = sshll.u32 %s668_s28, 4  ;;  %s18_s27 = int_to_ptr.vmem [resolvable:$true] %s17_s27  ;;  %s40_s29 = int_to_ptr.vmem [resolvable:$true] %s39_s29 }
  0x15   :  { %s592_s5 = scalar_lea.hbm %s753_s0, 768 }
  0x16   :  { %p593_p8 = scmp.ne.s32.totalorder %s753_s0, %s592_s5  ;;  %p596_p9 = scmp.lt.u32.totalorder %s592_s5, %s753_s0 }
  0x18   :  { %p598_p10 = pnand %p596_p9, %p593_p8 }
  0x1a   :  { %601 = shalt.err (!%p598_p10)
}
  0x1b   :  { %s602_s1 = scalar_lea.vmem %s18_s27, 768  ;;  %p607_p12 = scmp.lt.s32.totalorder %s18_s27, %s18_s27 }
  0x1c   :  { %p603_p11 = scmp.ne.s32.totalorder %s18_s27, %s602_s1  ;;  %p608_p13 = scmp.lt.s32.totalorder %s602_s1, %s602_s1 }
  0x1e   :  { %p609_p0 = por %p608_p13, %p607_p12 }
  0x20   :  { %p610_p1 = pnand %p609_p0, %p603_p11 }
  0x22   :  { %613 = shalt.err (!%p610_p1)
}
  0x23   :  { %20 = dma.hbm_to_vmem [thread:$0]  %s753_s0, 768, %s18_s27, [#allocation3]  }
  0x24   :  { %s614_s14 = scalar_lea.hbm %s755_s2, 128 }
  0x25   :  { %p615_p2 = scmp.ne.s32.totalorder %s755_s2, %s614_s14  ;;  %p618_p3 = scmp.lt.u32.totalorder %s614_s14, %s755_s2 }
  0x27   :  { %p620_p4 = pnand %p618_p3, %p615_p2 }
  0x29   :  { %623 = shalt.err (!%p620_p4)
}
  0x2a   :  { %s624_s19 = scalar_lea.vmem %s40_s29, 128  ;;  %p629_p6 = scmp.lt.s32.totalorder %s40_s29, %s40_s29 }
  0x2b   :  { %p625_p5 = scmp.ne.s32.totalorder %s40_s29, %s624_s19  ;;  %p630_p7 = scmp.lt.s32.totalorder %s624_s19, %s624_s19 }
  0x2d   :  { %p631_p8 = por %p630_p7, %p629_p6 }
  0x2f   :  { %p632_p9 = pnand %p631_p8, %p625_p5 }
  0x31   :  { %635 = shalt.err (!%p632_p9)
}
  0x32   :  { %42 = dma.hbm_to_vmem [thread:$0]  %s755_s2, 128, %s40_s29, [#allocation6]  }
  0x33   :  { %658 = dma.done.wait [#allocation3], 768  }
  0x34   :  { %659 = vsyncadd [#allocation3], 4294966528 }
  0x35   :  { %660 = dma.done.wait [#allocation6], 11648  }
  0x36   :  { %661 = vsyncadd [#allocation6], 4294955648  ;;  %v669_v0 = vmov 0.0|0.0   ;;  %v670_v1 = vmov 0   ;;  %v74_v2 = vld [vmem:[#allocation5 + $0x80] sm:$0xff]  ;;  %v75_v3 = vld [vmem:[#allocation5 + $0x88] sm:$0xff] }
  0x37   :  { %522 = vmatprep.subr.bf16.mxu0 %v669_v0  ;;  %569 = vset.pattern.permute.xlu0 %v670_v1  ;;  %v58_v4 = vld [vmem:[#allocation5] sm:$0xff]  ;;  %v458_v5 = vpack.c.bf16 %v75_v3, %v74_v2  ;;  %v59_v6 = vld [vmem:[#allocation5 + $0x8] sm:$0xff]  ;;  %v76_v7 = vld [vmem:[#allocation5 + $0x90] sm:$0xff]  ;;  %vm154_vm0 = vcmask 654336   ;;  %s671_s2 = smov [#allocation8]   ;;  %vm369_vm1 = vcmask 64512  }
  0x38   :  { %v77_v8 = vld [vmem:[#allocation5 + $0x98] sm:$0xff]  ;;  %v460_v9 = vpack.c.bf16 %v59_v6, %v58_v4  ;;  %v60_v11 = vld [vmem:[#allocation5 + $0x10] sm:$0xff]  ;;  %v78_v13 = vld [vmem:[#allocation5 + $0xa0] sm:$0xff]  ;;  %s377_s21 = sshll.u32 %s671_s2, 4  ;;  %s378_s21 = int_to_ptr.vmem [resolvable:$true] %s377_s21 }
  0x39   :  { %v462_v10 = vpack.c.bf16 %v77_v8, %v76_v7  ;;  %v61_v12 = vld [vmem:[#allocation5 + $0x18] sm:$0xff]  ;;  %459 = vmatprep.subr.bf16.mxu1 %v458_v5  ;;  %v79_v14 = vld [vmem:[#allocation5 + $0xa8] sm:$0xff]  ;;  %v62_v17 = vld [vmem:[#allocation5 + $0x20] sm:$0xff]  ;;  %s636_s22 = scalar_lea.vmem %s378_s21, 128  ;;  %p641_p11 = scmp.lt.s32.totalorder %s378_s21, %s378_s21 }
  0x3a   :  { %461 = vmatpush3.bf16.msra.mxu1 %v460_v9  ;;  %v464_v15 = vpack.c.bf16 %v61_v12, %v60_v11  ;;  %v466_v16 = vpack.c.bf16 %v79_v14, %v78_v13  ;;  %v63_v18 = vld [vmem:[#allocation5 + $0x28] sm:$0xff]  ;;  %v80_v19 = vld [vmem:[#allocation5 + $0xb0] sm:$0xff]  ;;  %v81_v20 = vld [vmem:[#allocation5 + $0xb8] sm:$0xff]  ;;  %p637_p10 = scmp.ne.s32.totalorder %s378_s21, %s636_s22  ;;  %p642_p12 = scmp.lt.s32.totalorder %s636_s22, %s636_s22 }
  0x3b   :  { %463 = vmatprep.subr.bf16.mxu1 %v462_v10  ;;  %v122_v21 = vld [vmem:[#allocation5 + $0x200] sm:$0xff]  ;;  %v123_v22 = vld [vmem:[#allocation5 + $0x208] sm:$0xff]  ;;  %v468_v23 = vpack.c.bf16 %v63_v18, %v62_v17  ;;  %v124_v25 = vld [vmem:[#allocation5 + $0x210] sm:$0xff]  ;;  %v470_v26 = vpack.c.bf16 %v81_v20, %v80_v19 }
  0x3c   :  { %v523_v24 = vpack.c.bf16 %v123_v22, %v122_v21  ;;  %v64_v27 = vld [vmem:[#allocation5 + $0x30] sm:$0xff]  ;;  %v65_v28 = vld [vmem:[#allocation5 + $0x38] sm:$0xff]  ;;  %v82_v30 = vld [vmem:[#allocation5 + $0xc0] sm:$0xff]  ;;  %p643_p13 = por %p642_p12, %p641_p11 }
  0x3d   :  { %v125_v29 = vld [vmem:[#allocation5 + $0x218] sm:$0xff]  ;;  %v83_v31 = vld [vmem:[#allocation5 + $0xc8] sm:$0xff]  ;;  %v126_v33 = vld [vmem:[#allocation5 + $0x220] sm:$0xff]  ;;  %v472_v35 = vpack.c.bf16 %v65_v28, %v64_v27 }
  0x3e   :  { %465 = vmatpush3.bf16.msra.mxu1 %v464_v15  ;;  %524 = vmatpush1.bf16.msra.mxu0 %v523_v24  ;;  %v526_v32 = vpack.c.bf16 %v125_v29, %v124_v25  ;;  %v127_v34 = vld [vmem:[#allocation5 + $0x228] sm:$0xff]  ;;  %v474_v36 = vpack.c.bf16 %v83_v31, %v82_v30  ;;  %v66_v37 = vld [vmem:[#allocation5 + $0x40] sm:$0xff]  ;;  %v53_v39 = vld [vmem:[#allocation2 + $0x8] sm:$0xff]  ;;  %p644_p0 = pnand %p643_p13, %p637_p10 }
  0x3f   :  { %467 = vmatprep.subr.bf16.mxu1 %v466_v16  ;;  %525 = vmatprep.subr.bf16.mxu0 %v669_v0  ;;  %v67_v38 = vld [vmem:[#allocation5 + $0x48] sm:$0xff]  ;;  %v84_v40 = vld [vmem:[#allocation5 + $0xd0] sm:$0xff]  ;;  %v85_v41 = vld [vmem:[#allocation5 + $0xd8] sm:$0xff]  ;;  %v529_v42 = vpack.c.bf16 %v127_v34, %v126_v33 }
  0x40   :  { %222 = vmatprep.mubr.f32.mxu1 %v53_v39  ;;  %v128_v43 = vld [vmem:[#allocation5 + $0x230] sm:$0xff]  ;;  %v129_v44 = vld [vmem:[#allocation5 + $0x238] sm:$0xff]  ;;  %v476_v45 = vpack.c.bf16 %v67_v38, %v66_v37  ;;  %v478_v46 = vpack.c.bf16 %v85_v41, %v84_v40  ;;  %v86_v49 = vld [vmem:[#allocation5 + $0xe0] sm:$0xff] }
  0x41   :  { %v68_v47 = vld [vmem:[#allocation5 + $0x50] sm:$0xff]  ;;  %v69_v48 = vld [vmem:[#allocation5 + $0x58] sm:$0xff]  ;;  %v87_v50 = vld [vmem:[#allocation5 + $0xe8] sm:$0xff]  ;;  %v532_v51 = vpack.c.bf16 %v129_v44, %v128_v43 }
  0x42   :  { %469 = vmatpush3.bf16.msra.mxu1 %v468_v23  ;;  %527 = vmatpush1.bf16.msra.mxu0 %v526_v32  ;;  %v130_v52 = vld [vmem:[#allocation5 + $0x240] sm:$0xff]  ;;  %v131_v53 = vld [vmem:[#allocation5 + $0x248] sm:$0xff]  ;;  %v480_v54 = vpack.c.bf16 %v69_v48, %v68_v47  ;;  %v482_v55 = vpack.c.bf16 %v87_v50, %v86_v49  ;;  %v88_v58 = vld [vmem:[#allocation5 + $0xf0] sm:$0xff] }
  0x43   :  { %471 = vmatprep.subr.bf16.mxu1 %v470_v26  ;;  %528 = vmatprep.subr.bf16.mxu0 %v669_v0  ;;  %v70_v56 = vld [vmem:[#allocation5 + $0x60] sm:$0xff]  ;;  %v71_v57 = vld [vmem:[#allocation5 + $0x68] sm:$0xff]  ;;  %v89_v59 = vld [vmem:[#allocation5 + $0xf8] sm:$0xff]  ;;  %v535_v60 = vpack.c.bf16 %v131_v53, %v130_v52 }
  0x44   :  { %v132_v61 = vld [vmem:[#allocation5 + $0x250] sm:$0xff]  ;;  %v133_v62 = vld [vmem:[#allocation5 + $0x258] sm:$0xff]  ;;  %v484_v63 = vpack.c.bf16 %v71_v57, %v70_v56  ;;  %v486_v1 = vpack.c.bf16 %v89_v59, %v88_v58  ;;  %v106_v4 = vld [vmem:[#allocation5 + $0x180] sm:$0xff] }
  0x45   :  { %v72_v2 = vld [vmem:[#allocation5 + $0x70] sm:$0xff]  ;;  %v73_v3 = vld [vmem:[#allocation5 + $0x78] sm:$0xff]  ;;  %v107_v5 = vld [vmem:[#allocation5 + $0x188] sm:$0xff]  ;;  %v538_v6 = vpack.c.bf16 %v133_v62, %v132_v61 }
  0x46   :  { %473 = vmatpush3.bf16.msra.mxu1 %v472_v35  ;;  %530 = vmatpush1.bf16.msra.mxu0 %v529_v42  ;;  %v134_v7 = vld [vmem:[#allocation5 + $0x260] sm:$0xff]  ;;  %v135_v8 = vld [vmem:[#allocation5 + $0x268] sm:$0xff]  ;;  %v488_v9 = vpack.c.bf16 %v73_v3, %v72_v2  ;;  %v490_v10 = vpack.c.bf16 %v107_v5, %v106_v4  ;;  %v108_v13 = vld [vmem:[#allocation5 + $0x190] sm:$0xff] }
  0x47   :  { %475 = vmatprep.subr.bf16.mxu1 %v474_v36  ;;  %531 = vmatprep.subr.bf16.mxu0 %v669_v0  ;;  %v90_v11 = vld [vmem:[#allocation5 + $0x100] sm:$0xff]  ;;  %v91_v12 = vld [vmem:[#allocation5 + $0x108] sm:$0xff]  ;;  %v109_v14 = vld [vmem:[#allocation5 + $0x198] sm:$0xff]  ;;  %v541_v15 = vpack.c.bf16 %v135_v8, %v134_v7 }
  0x48   :  { %v136_v16 = vld [vmem:[#allocation5 + $0x270] sm:$0xff]  ;;  %v137_v17 = vld [vmem:[#allocation5 + $0x278] sm:$0xff]  ;;  %v492_v20 = vpack.c.bf16 %v91_v12, %v90_v11  ;;  %v494_v22 = vpack.c.bf16 %v109_v14, %v108_v13  ;;  %v55_v25 = vld [vmem:[#allocation2 + $0x18] sm:$0xff] }
  0x49   :  { %v57_v18 = vld [vmem:[#allocation2 + $0x28] sm:$0xff]  ;;  %v52_v19 = vld [vmem:[#allocation2] sm:$0xff]  ;;  %v110_v26 = vld [vmem:[#allocation5 + $0x1a0] sm:$0xff]  ;;  %v544_v28 = vpack.c.bf16 %v137_v17, %v136_v16 }
  0x4a   :  { %477 = vmatpush3.bf16.msra.mxu1 %v476_v45  ;;  %533 = vmatpush1.bf16.msra.mxu0 %v532_v51  ;;  %v148_v21 = vld [vmem:[#allocation7] sm:$0xff]  ;;  %v93_v24 = vld [vmem:[#allocation5 + $0x118] sm:$0xff]  ;;  %v111_v27 = vld [vmem:[#allocation5 + $0x1a8] sm:$0xff] }
  0x4b   :  { %479 = vmatprep.subr.bf16.mxu1 %v478_v46  ;;  %534 = vmatprep.subr.bf16.mxu0 %v669_v0  ;;  %v92_v23 = vld [vmem:[#allocation5 + $0x110] sm:$0xff]  ;;  %v138_v29 = vld [vmem:[#allocation5 + $0x280] sm:$0xff]  ;;  %v139_v30 = vld [vmem:[#allocation5 + $0x288] sm:$0xff]  ;;  %v498_v32 = vpack.c.bf16 %v111_v27, %v110_v26 }
  0x4c   :  { %387 = vmatprep.mubr.msk.f32.mxu0 %vm154_vm0, %v57_v18  ;;  %151 = vperm.xlu0 %569, %v148_v21   ;;  %v496_v31 = vpack.c.bf16 %v93_v24, %v92_v23  ;;  %v94_v33 = vld [vmem:[#allocation5 + $0x120] sm:$0xff]  ;;  %v95_v34 = vld [vmem:[#allocation5 + $0x128] sm:$0xff]  ;;  %v112_v35 = vld [vmem:[#allocation5 + $0x1b0] sm:$0xff]  ;;  %v547_v37 = vpack.c.bf16 %v139_v30, %v138_v29 }
  0x4d   :  { %v113_v36 = vld [vmem:[#allocation5 + $0x1b8] sm:$0xff]  ;;  %v140_v38 = vld [vmem:[#allocation5 + $0x290] sm:$0xff]  ;;  %v500_v40 = vpack.c.bf16 %v95_v34, %v94_v33  ;;  %v114_v44 = vld [vmem:[#allocation5 + $0x1c0] sm:$0xff] }
  0x4e   :  { %481 = vmatpush3.bf16.msra.mxu1 %v480_v54  ;;  %536 = vmatpush1.bf16.msra.mxu0 %v535_v60  ;;  %v141_v39 = vld [vmem:[#allocation5 + $0x298] sm:$0xff]  ;;  %v502_v41 = vpack.c.bf16 %v113_v36, %v112_v35  ;;  %v96_v42 = vld [vmem:[#allocation5 + $0x130] sm:$0xff]  ;;  %v115_v45 = vld [vmem:[#allocation5 + $0x1c8] sm:$0xff] }
  0x4f   :  { %483 = vmatprep.subr.bf16.mxu1 %v482_v55  ;;  %537 = vmatprep.subr.bf16.mxu0 %v669_v0  ;;  %v97_v43 = vld [vmem:[#allocation5 + $0x138] sm:$0xff]  ;;  %v550_v46 = vpack.c.bf16 %v141_v39, %v140_v38  ;;  %v142_v47 = vld [vmem:[#allocation5 + $0x2a0] sm:$0xff]  ;;  %v143_v48 = vld [vmem:[#allocation5 + $0x2a8] sm:$0xff]  ;;  %v506_v50 = vpack.c.bf16 %v115_v45, %v114_v44 }
  0x50   :  { %v504_v49 = vpack.c.bf16 %v97_v43, %v96_v42  ;;  %v98_v51 = vld [vmem:[#allocation5 + $0x140] sm:$0xff]  ;;  %v99_v52 = vld [vmem:[#allocation5 + $0x148] sm:$0xff]  ;;  %v116_v53 = vld [vmem:[#allocation5 + $0x1d0] sm:$0xff]  ;;  %v553_v55 = vpack.c.bf16 %v143_v48, %v142_v47 }
  0x51   :  { %v117_v54 = vld [vmem:[#allocation5 + $0x1d8] sm:$0xff]  ;;  %v144_v56 = vld [vmem:[#allocation5 + $0x2b0] sm:$0xff]  ;;  %v508_v58 = vpack.c.bf16 %v99_v52, %v98_v51  ;;  %v118_v62 = vld [vmem:[#allocation5 + $0x1e0] sm:$0xff] }
  0x52   :  { %485 = vmatpush3.bf16.msra.mxu1 %v484_v63  ;;  %539 = vmatpush1.bf16.msra.mxu0 %v538_v6  ;;  %v145_v57 = vld [vmem:[#allocation5 + $0x2b8] sm:$0xff]  ;;  %v510_v59 = vpack.c.bf16 %v117_v54, %v116_v53  ;;  %v100_v60 = vld [vmem:[#allocation5 + $0x150] sm:$0xff]  ;;  %v119_v63 = vld [vmem:[#allocation5 + $0x1e8] sm:$0xff] }
  0x53   :  { %487 = vmatprep.subr.bf16.mxu1 %v486_v1  ;;  %540 = vmatprep.subr.bf16.mxu0 %v669_v0  ;;  %v101_v61 = vld [vmem:[#allocation5 + $0x158] sm:$0xff]  ;;  %v556_v1 = vpack.c.bf16 %v145_v57, %v144_v56  ;;  %v146_v2 = vld [vmem:[#allocation5 + $0x2c0] sm:$0xff]  ;;  %v147_v3 = vld [vmem:[#allocation5 + $0x2c8] sm:$0xff]  ;;  %v514_v5 = vpack.c.bf16 %v119_v63, %v118_v62 }
  0x54   :  { %v512_v4 = vpack.c.bf16 %v101_v61, %v100_v60  ;;  %v102_v6 = vld [vmem:[#allocation5 + $0x160] sm:$0xff]  ;;  %v103_v7 = vld [vmem:[#allocation5 + $0x168] sm:$0xff]  ;;  %v120_v8 = vld [vmem:[#allocation5 + $0x1f0] sm:$0xff] }
  0x55   :  { %v516_v11 = vpack.c.bf16 %v103_v7, %v102_v6  ;;  %v104_v13 = vld [vmem:[#allocation5 + $0x170] sm:$0xff]  ;;  %v105_v14 = vld [vmem:[#allocation5 + $0x178] sm:$0xff]  ;;  %v54_v17 = vld [vmem:[#allocation2 + $0x10] sm:$0xff] }
  0x56   :  { %489 = vmatpush3.bf16.msra.mxu1 %v488_v9  ;;  %542 = vmatpush1.bf16.msra.mxu0 %v541_v15  ;;  %v121_v9 = vld [vmem:[#allocation5 + $0x1f8] sm:$0xff]  ;;  %v56_v15 = vld [vmem:[#allocation2 + $0x20] sm:$0xff]  ;;  %v520_v16 = vpack.c.bf16 %v105_v14, %v104_v13 }
  0x57   :  { %491 = vmatprep.subr.bf16.mxu1 %v490_v10  ;;  %543 = vmatprep.subr.bf16.mxu0 %v669_v0  ;;  %v559_v10 = vpack.c.bf16 %v147_v3, %v146_v2  ;;  %v518_v12 = vpack.c.bf16 %v121_v9, %v120_v8 }
  0x59   :  { %223 = vmatmul.mubr.f32.vlgmr.msra.gmra.mrb[0].mxu1 %v52_v19 }
  0x5a   :  { %493 = vmatpush3.bf16.msra.mxu1 %v492_v20  ;;  %292 = vmatprep.mubr.f32.mxu1 %v55_v25 }
  0x5b   :  { %495 = vmatprep.subr.bf16.mxu1 %v494_v22  ;;  %545 = vmatpush1.bf16.msra.mxu0 %v544_v28 }
  0x5c   :  { %546 = vmatprep.subr.bf16.mxu0 %v669_v0 }
  0x5e   :  { %497 = vmatpush3.bf16.msra.mxu1 %v496_v31 }
  0x5f   :  { %499 = vmatprep.subr.bf16.mxu1 %v498_v32  ;;  %548 = vmatpush1.bf16.msra.mxu0 %v547_v37 }
  0x60   :  { %549 = vmatprep.subr.bf16.mxu0 %v669_v0 }
  0x62   :  { %501 = vmatpush3.bf16.msra.mxu1 %v500_v40 }
  0x63   :  { %503 = vmatprep.subr.bf16.mxu1 %v502_v41  ;;  %551 = vmatpush1.bf16.msra.mxu0 %v550_v46 }
  0x64   :  { %552 = vmatprep.subr.bf16.mxu0 %v669_v0 }
  0x66   :  { %505 = vmatpush3.bf16.msra.mxu1 %v504_v49 }
  0x67   :  { %507 = vmatprep.subr.bf16.mxu1 %v506_v50  ;;  %554 = vmatpush1.bf16.msra.mxu0 %v553_v55 }
  0x68   :  { %555 = vmatprep.subr.bf16.mxu0 %v669_v0 }
  0x6a   :  { %509 = vmatpush3.bf16.msra.mxu1 %v508_v58 }
  0x6b   :  { %511 = vmatprep.subr.bf16.mxu1 %v510_v59  ;;  %557 = vmatpush1.bf16.msra.mxu0 %v556_v1 }
  0x6c   :  { %558 = vmatprep.subr.bf16.mxu0 %v669_v0 }
  0x6e   :  { %513 = vmatpush3.bf16.msra.mxu1 %v512_v4 }
  0x6f   :  { %515 = vmatprep.subr.bf16.mxu1 %v514_v5  ;;  %560 = vmatpush1.bf16.msra.mxu0 %v559_v10 }
  0x72   :  { %517 = vmatpush3.bf16.msra.mxu1 %v516_v11  ;;  %363 = vmatmul.mubr.f32.vlgmr.msra.gmra.mrb[0].mxu0 %v56_v15 }
  0x73   :  { %519 = vmatprep.subr.bf16.mxu1 %v518_v12 }
  0x76   :  { %521 = vmatpush3.bf16.msra.mxu1 %v520_v16 }
  0x79   :  { %293 = vmatmul.mubr.f32.vlgmr.msra.gmra.mrb[2].mxu1 %v54_v17 }
  0xcb   :  { %v152_v22 = vpop.permute.xlu0 %151 }
 0x12c   :  { %v420_v18 = vpop.f32.mrb[0].mxu1 }
 0x12d   :  { %v421_v19 = vpop.f32.mrb[1].mxu1 }
 0x12e   :  { %v422_v20 = vadd.f32 %v421_v19, %v420_v18 }
 0x130   :  { %v225_v25 = vadd.f32 %v422_v20, %v152_v22 }
 0x145   :  { %v364_v21 = vpop.f32.mrb[0].mxu0 }
 0x146   :  { %v366_v0 = vpop.f32.mrb[1].mxu0 }
 0x14c   :  { %v455_v23 = vpop.f32.mrb[2].mxu1 }
 0x14d   :  { %v456_v24 = vpop.f32.mrb[3].mxu1 }
 0x14e   :  { %v457_v26 = vadd.f32 %v456_v24, %v455_v23 }
 0x150   :  { %v295_v27 = vadd.f32 %v457_v26, %v225_v25 }
 0x152   :  { %v365_v28 = vadd.f32 %v364_v21, %v295_v27 }
 0x154   :  { %v368_v29 = vmax.f32 %v365_v28, 0.0 }
 0x156   :  { %370 = vst.msk [vmem:[#allocation8] sm:$0xff] %vm369_vm1, %v368_v29 }
 0x157   :  { %647 = shalt.err (!%p644_p0)
}
 0x158   :  { %s648_s25 = scalar_lea.hbm %s756_s3, 128 }
 0x159   :  { %p649_p1 = scmp.ne.s32.totalorder %s756_s3, %s648_s25  ;;  %p652_p2 = scmp.lt.u32.totalorder %s648_s25, %s756_s3 }
 0x15b   :  { %p654_p3 = pnand %p652_p2, %p649_p1 }
 0x15d   :  { %657 = shalt.err (!%p654_p3)
}
 0x15e   :  { %380 = dma.vmem_to_hbm [thread:$0]  %s378_s21, 128, %s756_s3, [#allocation4]  }
 0x15f   :  { %662 = dma.done.wait [#allocation4], 128  }
 0x160   :  { %663 = vsyncadd [#allocation4], 4294967168 }
 0x161   :  { %384 = vsyncpa [#allocation3], 1 }
 0x162   :  { %385 = vsyncpa [#allocation6], 1 }
 0x163   :  { %386 = vsyncpa [#allocation4], 1 }

// kernel: _lambda_.41
= control target key start
LH: loop header
LB: loop body
LE: loop exit
PB: predicated region body
PF: predicated region fallthrough
CT: control target
= control target key end

     0   :  { %10 = vsyncpa [#allocation3], 0  ;;  %s533_s0 = inlined_call_operand.hbm [shape: f32[8,8], index: 0, kind: input, shape index: {}]   ;;  %s534_s1 = inlined_call_operand.hbm [shape: f32[8,128], index: 1, kind: input, shape index: {}]   ;;  %s535_s2 = inlined_call_operand.hbm [shape: f32[8,8], index: 2, kind: input, shape index: {}]   ;;  %s536_s3 = inlined_call_operand.hbm [shape: f32[8,128], index: 3, kind: input, shape index: {}]   ;;  %s537_s4 = inlined_call_operand.hbm [shape: f32[8,1], index: 4, kind: input, shape index: {}]   ;;  %s538_s5 = inlined_call_operand.hbm [shape: f32[8,128], index: 5, kind: output, shape index: {}]  }
   0x1   :  { %11 = vsyncpa [#allocation6], 0 }
   0x2   :  { %12 = vsyncpa [#allocation9], 0 }
   0x3   :  { %13 = vsyncpa [#allocation4], 0  ;;  %s422_s18 = smov [#allocation5]   ;;  %s423_s20 = smov [#allocation8]  }
   0x4   :  { %s30_s19 = sshll.u32 %s422_s18, 4  ;;  %s50_s21 = sshll.u32 %s423_s20, 4  ;;  %s31_s19 = int_to_ptr.vmem [resolvable:$true] %s30_s19  ;;  %s51_s21 = int_to_ptr.vmem [resolvable:$true] %s50_s21 }
   0x5   :  { %s282_s24 = scalar_lea.hbm %s534_s1, 128 }
   0x6   :  { %p283_p0 = scmp.ne.s32.totalorder %s534_s1, %s282_s24  ;;  %p286_p1 = scmp.lt.u32.totalorder %s282_s24, %s534_s1 }
   0x8   :  { %p288_p2 = pnand %p286_p1, %p283_p0 }
   0xa   :  { %291 = shalt.err (!%p288_p2)
}
   0xb   :  { %s292_s29 = scalar_lea.vmem %s31_s19, 128  ;;  %p297_p4 = scmp.lt.s32.totalorder %s31_s19, %s31_s19 }
   0xc   :  { %p293_p3 = scmp.ne.s32.totalorder %s31_s19, %s292_s29  ;;  %p298_p5 = scmp.lt.s32.totalorder %s292_s29, %s292_s29 }
   0xe   :  { %p299_p6 = por %p298_p5, %p297_p4 }
  0x10   :  { %p300_p7 = pnand %p299_p6, %p293_p3 }
  0x12   :  { %303 = shalt.err (!%p300_p7)
}
  0x13   :  { %33 = dma.hbm_to_vmem [thread:$0]  %s534_s1, 128, %s31_s19, [#allocation6]  }
  0x14   :  { %s304_s9 = scalar_lea.hbm %s536_s3, 128 }
  0x15   :  { %p305_p8 = scmp.ne.s32.totalorder %s536_s3, %s304_s9  ;;  %p308_p9 = scmp.lt.u32.totalorder %s304_s9, %s536_s3 }
  0x17   :  { %p310_p10 = pnand %p308_p9, %p305_p8 }
  0x19   :  { %313 = shalt.err (!%p310_p10)
}
  0x1a   :  { %s314_s14 = scalar_lea.vmem %s51_s21, 128  ;;  %p319_p12 = scmp.lt.s32.totalorder %s51_s21, %s51_s21 }
  0x1b   :  { %p315_p11 = scmp.ne.s32.totalorder %s51_s21, %s314_s14  ;;  %p320_p13 = scmp.lt.s32.totalorder %s314_s14, %s314_s14 }
  0x1d   :  { %p321_p0 = por %p320_p13, %p319_p12 }
  0x1f   :  { %p322_p1 = pnand %p321_p0, %p315_p11 }
  0x21   :  { %325 = shalt.err (!%p322_p1)
}
  0x22   :  { %53 = dma.hbm_to_vmem [thread:$0]  %s536_s3, 128, %s51_s21, [#allocation9]  }
  0x23   :  { %s424_s16 = smov [#allocation2]   ;;  %s425_s18 = smov [#allocation7]  }
  0x24   :  { %s20_s17 = sshll.u32 %s424_s16, 4  ;;  %s40_s19 = sshll.u32 %s425_s18, 4  ;;  %s21_s17 = int_to_ptr.vmem [resolvable:$true] %s20_s17  ;;  %s41_s19 = int_to_ptr.vmem [resolvable:$true] %s40_s19 }
  0x25   :  { %s326_s23 = scalar_lea.hbm %s533_s0, 128 }
  0x26   :  { %p327_p2 = scmp.ne.s32.totalorder %s533_s0, %s326_s23  ;;  %p330_p3 = scmp.lt.u32.totalorder %s326_s23, %s533_s0 }
  0x28   :  { %p332_p4 = pnand %p330_p3, %p327_p2 }
  0x2a   :  { %335 = shalt.err (!%p332_p4)
}
  0x2b   :  { %s336_s3 = scalar_lea.vmem %s21_s17, 128  ;;  %p341_p6 = scmp.lt.s32.totalorder %s21_s17, %s21_s17 }
  0x2c   :  { %p337_p5 = scmp.ne.s32.totalorder %s21_s17, %s336_s3  ;;  %p342_p7 = scmp.lt.s32.totalorder %s336_s3, %s336_s3 }
  0x2e   :  { %p343_p8 = por %p342_p7, %p341_p6 }
  0x30   :  { %p344_p9 = pnand %p343_p8, %p337_p5 }
  0x32   :  { %347 = shalt.err (!%p344_p9)
}
  0x33   :  { %23 = dma.hbm_to_vmem [thread:$0]  %s533_s0, 128, %s21_s17, [#allocation3]  }
  0x34   :  { %s348_s6 = scalar_lea.hbm %s535_s2, 128 }
  0x35   :  { %p349_p10 = scmp.ne.s32.totalorder %s535_s2, %s348_s6  ;;  %p352_p11 = scmp.lt.u32.totalorder %s348_s6, %s535_s2 }
  0x37   :  { %p354_p12 = pnand %p352_p11, %p349_p10 }
  0x39   :  { %357 = shalt.err (!%p354_p12)
}
  0x3a   :  { %s358_s11 = scalar_lea.vmem %s41_s19, 128  ;;  %p363_p0 = scmp.lt.s32.totalorder %s41_s19, %s41_s19 }
  0x3b   :  { %p359_p13 = scmp.ne.s32.totalorder %s41_s19, %s358_s11  ;;  %p364_p1 = scmp.lt.s32.totalorder %s358_s11, %s358_s11 }
  0x3d   :  { %p365_p2 = por %p364_p1, %p363_p0 }
  0x3f   :  { %p366_p3 = pnand %p365_p2, %p359_p13 }
  0x41   :  { %369 = shalt.err (!%p366_p3)
}
  0x42   :  { %43 = dma.hbm_to_vmem [thread:$0]  %s535_s2, 128, %s41_s19, [#allocation6]  }
  0x43   :  { %s426_s13 = smov [#allocation10]   ;;  %s370_s16 = scalar_lea.hbm %s537_s4, 128 }
  0x44   :  { %s60_s14 = sshll.u32 %s426_s13, 4  ;;  %p371_p4 = scmp.ne.s32.totalorder %s537_s4, %s370_s16  ;;  %s61_s14 = int_to_ptr.vmem [resolvable:$true] %s60_s14 }
  0x45   :  { %p374_p5 = scmp.lt.u32.totalorder %s370_s16, %s537_s4 }
  0x47   :  { %p376_p6 = pnand %p374_p5, %p371_p4 }
  0x49   :  { %379 = shalt.err (!%p376_p6)
}
  0x4a   :  { %s380_s23 = scalar_lea.vmem %s61_s14, 128  ;;  %p385_p8 = scmp.lt.s32.totalorder %s61_s14, %s61_s14 }
  0x4b   :  { %p381_p7 = scmp.ne.s32.totalorder %s61_s14, %s380_s23  ;;  %p386_p9 = scmp.lt.s32.totalorder %s380_s23, %s380_s23 }
  0x4d   :  { %p387_p10 = por %p386_p9, %p385_p8 }
  0x4f   :  { %p388_p11 = pnand %p387_p10, %p381_p7 }
  0x51   :  { %391 = shalt.err (!%p388_p11)
}
  0x52   :  { %63 = dma.hbm_to_vmem [thread:$0]  %s537_s4, 128, %s61_s14, [#allocation9]  }
  0x53   :  { %414 = dma.done.wait [#allocation3], 128  }
  0x54   :  { %415 = vsyncadd [#allocation3], 4294967168 }
  0x55   :  { %416 = dma.done.wait [#allocation6], 256  }
  0x56   :  { %417 = vsyncadd [#allocation6], 4294967040 }
  0x57   :  { %418 = dma.done.wait [#allocation9], 256  }
  0x58   :  { %419 = vsyncadd [#allocation9], 4294967040  ;;  %v427_v0 = vmov 0.0   ;;  %vm428_vm0 = vmmov 0   ;;  %v429_v1 = vmov 0   ;;  %vm83_vm1 = vcmask 64512  }
  0x59   :  { %262 = vmatprep.subr.mxu0 %v427_v0  ;;  %267 = vmatprep.subr.mxu1 %v427_v0  ;;  %v82_v2 = vld [vmem:[#allocation8] sm:$0xff]  ;;  %v80_v3 = vld [vmem:[#allocation5] sm:$0xff]  ;;  %v81_v4 = vld [vmem:[#allocation7] sm:$0xff]  ;;  %s430_s4 = smov [#allocation11]  }
  0x5a   :  { %264 = vmatprep.mubr.msk.f32.mxu0 %vm428_vm0, %v427_v0  ;;  %269 = vmatprep.mubr.msk.f32.mxu1 %vm428_vm0, %v427_v0  ;;  %v79_v5 = vld [vmem:[#allocation2] sm:$0xff]  ;;  %s245_s24 = sshll.u32 %s430_s4, 4  ;;  %s246_s24 = int_to_ptr.vmem [resolvable:$true] %s245_s24 }
  0x5b   :  { %281 = vset.pattern.permute.xlu0 %v429_v1  ;;  %263 = vmatpush3.msra.mxu0 %v82_v2  ;;  %v230_v6 = vld [vmem:[#allocation10] sm:$0xff]  ;;  %s392_s25 = scalar_lea.vmem %s246_s24, 128  ;;  %p397_p13 = scmp.lt.s32.totalorder %s246_s24, %s246_s24 }
  0x5c   :  { %268 = vmatpush3.msra.mxu1 %v80_v3  ;;  %265 = vmatmul.mubr.msk.f32.vlgmr.msra.gmra.mrb[0].mxu0 %vm83_vm1, %v81_v4  ;;  %p393_p12 = scmp.ne.s32.totalorder %s246_s24, %s392_s25  ;;  %p398_p0 = scmp.lt.s32.totalorder %s392_s25, %s392_s25 }
  0x5d   :  { %270 = vmatmul.mubr.msk.f32.vlgmr.msra.gmra.mrb[0].mxu1 %vm83_vm1, %v79_v5  ;;  %233 = vperm.xlu0 %281, %v230_v6  }
  0x5e   :  { %p399_p1 = por %p398_p0, %p397_p13 }
  0x60   :  { %p400_p2 = pnand %p399_p1, %p393_p12 }
  0xdc   :  { %v234_v7 = vpop.permute.xlu0 %233 }
 0x12f   :  { %v153_v8 = vpop.f32.mrb[0].mxu0 }
 0x130   :  { %v226_v9 = vpop.f32.mrb[0].mxu1  ;;  %v266_v11 = vpop.f32.mrb[1].mxu0 }
 0x131   :  { %v227_v10 = vadd.f32 %v226_v9, %v153_v8  ;;  %v271_v12 = vpop.f32.mrb[1].mxu1 }
 0x133   :  { %v236_v13 = vadd.f32 %v234_v7, %v227_v10 }
 0x135   :  { %v237_v14 = vmax.f32 %v236_v13, 0.0 }
 0x137   :  { %238 = vst [vmem:[#allocation11] sm:$0xff] %v237_v14 }
 0x138   :  { %403 = shalt.err (!%p400_p2)
}
 0x139   :  { %s404_s3 = scalar_lea.hbm %s538_s5, 128 }
 0x13a   :  { %p405_p3 = scmp.ne.s32.totalorder %s538_s5, %s404_s3  ;;  %p408_p4 = scmp.lt.u32.totalorder %s404_s3, %s538_s5 }
 0x13c   :  { %p410_p5 = pnand %p408_p4, %p405_p3 }
 0x13e   :  { %413 = shalt.err (!%p410_p5)
}
 0x13f   :  { %248 = dma.vmem_to_hbm [thread:$0]  %s246_s24, 128, %s538_s5, [#allocation4]  }
 0x140   :  { %420 = dma.done.wait [#allocation4], 128  }
 0x141   :  { %421 = vsyncadd [#allocation4], 4294967168 }
 0x142   :  { %252 = vsyncpa [#allocation3], 1 }
 0x143   :  { %253 = vsyncpa [#allocation6], 1 }
 0x144   :  { %254 = vsyncpa [#allocation9], 1 }
 0x145   :  { %255 = vsyncpa [#allocation4], 1 }

// kernel: _lambda_.48
= control target key start
LH: loop header
LB: loop body
LE: loop exit
PB: predicated region body
PF: predicated region fallthrough
CT: control target
= control target key end

     0   :  { %11 = vsyncpa [#allocation3], 0  ;;  %s594_s0 = inlined_call_operand.hbm [shape: f32[8,8], index: 0, kind: input, shape index: {}]   ;;  %s595_s1 = inlined_call_operand.hbm [shape: f32[8,128], index: 1, kind: input, shape index: {}]   ;;  %s596_s2 = inlined_call_operand.hbm [shape: f32[8,8], index: 2, kind: input, shape index: {}]   ;;  %s597_s3 = inlined_call_operand.hbm [shape: f32[8,128], index: 3, kind: input, shape index: {}]   ;;  %s598_s4 = inlined_call_operand.hbm [shape: f32[8,1], index: 4, kind: input, shape index: {}]   ;;  %s599_s5 = inlined_call_operand.hbm [shape: f32[8,128], index: 5, kind: input, shape index: {}]   ;;  %s600_s6 = inlined_call_operand.hbm [shape: f32[8,128], index: 6, kind: output, shape index: {}]  }
   0x1   :  { %12 = vsyncpa [#allocation6], 0 }
   0x2   :  { %13 = vsyncpa [#allocation9], 0 }
   0x3   :  { %14 = vsyncpa [#allocation12], 0 }
   0x4   :  { %15 = vsyncpa [#allocation4], 0  ;;  %s465_s21 = smov [#allocation5]   ;;  %s466_s23 = smov [#allocation8]  }
   0x5   :  { %s32_s22 = sshll.u32 %s465_s21, 4  ;;  %s52_s24 = sshll.u32 %s466_s23, 4  ;;  %s33_s22 = int_to_ptr.vmem [resolvable:$true] %s32_s22  ;;  %s53_s24 = int_to_ptr.vmem [resolvable:$true] %s52_s24 }
   0x6   :  { %s301_s27 = scalar_lea.hbm %s595_s1, 128 }
   0x7   :  { %p302_p0 = scmp.ne.s32.totalorder %s595_s1, %s301_s27  ;;  %p305_p1 = scmp.lt.u32.totalorder %s301_s27, %s595_s1 }
   0x9   :  { %p307_p2 = pnand %p305_p1, %p302_p0 }
   0xb   :  { %310 = shalt.err (!%p307_p2)
}
   0xc   :  { %s311_s8 = scalar_lea.vmem %s33_s22, 128  ;;  %p316_p4 = scmp.lt.s32.totalorder %s33_s22, %s33_s22 }
   0xd   :  { %p312_p3 = scmp.ne.s32.totalorder %s33_s22, %s311_s8  ;;  %p317_p5 = scmp.lt.s32.totalorder %s311_s8, %s311_s8 }
   0xf   :  { %p318_p6 = por %p317_p5, %p316_p4 }
  0x11   :  { %p319_p7 = pnand %p318_p6, %p312_p3 }
  0x13   :  { %322 = shalt.err (!%p319_p7)
}
  0x14   :  { %35 = dma.hbm_to_vmem [thread:$0]  %s595_s1, 128, %s33_s22, [#allocation6]  }
  0x15   :  { %s323_s13 = scalar_lea.hbm %s597_s3, 128 }
  0x16   :  { %p324_p8 = scmp.ne.s32.totalorder %s597_s3, %s323_s13  ;;  %p327_p9 = scmp.lt.u32.totalorder %s323_s13, %s597_s3 }
  0x18   :  { %p329_p10 = pnand %p327_p9, %p324_p8 }
  0x1a   :  { %332 = shalt.err (!%p329_p10)
}
  0x1b   :  { %s333_s18 = scalar_lea.vmem %s53_s24, 128  ;;  %p338_p12 = scmp.lt.s32.totalorder %s53_s24, %s53_s24 }
  0x1c   :  { %p334_p11 = scmp.ne.s32.totalorder %s53_s24, %s333_s18  ;;  %p339_p13 = scmp.lt.s32.totalorder %s333_s18, %s333_s18 }
  0x1e   :  { %p340_p0 = por %p339_p13, %p338_p12 }
  0x20   :  { %p341_p1 = pnand %p340_p0, %p334_p11 }
  0x22   :  { %344 = shalt.err (!%p341_p1)
}
  0x23   :  { %55 = dma.hbm_to_vmem [thread:$0]  %s597_s3, 128, %s53_s24, [#allocation9]  }
  0x24   :  { %s467_s20 = smov [#allocation2]   ;;  %s468_s22 = smov [#allocation7]  }
  0x25   :  { %s22_s21 = sshll.u32 %s467_s20, 4  ;;  %s42_s23 = sshll.u32 %s468_s22, 4  ;;  %s23_s21 = int_to_ptr.vmem [resolvable:$true] %s22_s21  ;;  %s43_s23 = int_to_ptr.vmem [resolvable:$true] %s42_s23 }
  0x26   :  { %s345_s27 = scalar_lea.hbm %s594_s0, 128 }
  0x27   :  { %p346_p2 = scmp.ne.s32.totalorder %s594_s0, %s345_s27  ;;  %p349_p3 = scmp.lt.u32.totalorder %s345_s27, %s594_s0 }
  0x29   :  { %p351_p4 = pnand %p349_p3, %p346_p2 }
  0x2b   :  { %354 = shalt.err (!%p351_p4)
}
  0x2c   :  { %s355_s3 = scalar_lea.vmem %s23_s21, 128  ;;  %p360_p6 = scmp.lt.s32.totalorder %s23_s21, %s23_s21 }
  0x2d   :  { %p356_p5 = scmp.ne.s32.totalorder %s23_s21, %s355_s3  ;;  %p361_p7 = scmp.lt.s32.totalorder %s355_s3, %s355_s3 }
  0x2f   :  { %p362_p8 = por %p361_p7, %p360_p6 }
  0x31   :  { %p363_p9 = pnand %p362_p8, %p356_p5 }
  0x33   :  { %366 = shalt.err (!%p363_p9)
}
  0x34   :  { %25 = dma.hbm_to_vmem [thread:$0]  %s594_s0, 128, %s23_s21, [#allocation3]  }
  0x35   :  { %s367_s11 = scalar_lea.hbm %s596_s2, 128 }
  0x36   :  { %p368_p10 = scmp.ne.s32.totalorder %s596_s2, %s367_s11  ;;  %p371_p11 = scmp.lt.u32.totalorder %s367_s11, %s596_s2 }
  0x38   :  { %p373_p12 = pnand %p371_p11, %p368_p10 }
  0x3a   :  { %376 = shalt.err (!%p373_p12)
}
  0x3b   :  { %s377_s16 = scalar_lea.vmem %s43_s23, 128  ;;  %p382_p0 = scmp.lt.s32.totalorder %s43_s23, %s43_s23 }
  0x3c   :  { %p378_p13 = scmp.ne.s32.totalorder %s43_s23, %s377_s16  ;;  %p383_p1 = scmp.lt.s32.totalorder %s377_s16, %s377_s16 }
  0x3e   :  { %p384_p2 = por %p383_p1, %p382_p0 }
  0x40   :  { %p385_p3 = pnand %p384_p2, %p378_p13 }
  0x42   :  { %388 = shalt.err (!%p385_p3)
}
  0x43   :  { %45 = dma.hbm_to_vmem [thread:$0]  %s596_s2, 128, %s43_s23, [#allocation6]  }
  0x44   :  { %s469_s18 = smov [#allocation10]   ;;  %s470_s19 = smov [#allocation11]  }
  0x45   :  { %s62_s1 = sshll.u32 %s469_s18, 4  ;;  %s72_s20 = sshll.u32 %s470_s19, 4  ;;  %s63_s1 = int_to_ptr.vmem [resolvable:$true] %s62_s1  ;;  %s73_s20 = int_to_ptr.vmem [resolvable:$true] %s72_s20 }
  0x46   :  { %s389_s25 = scalar_lea.hbm %s598_s4, 128 }
  0x47   :  { %p390_p4 = scmp.ne.s32.totalorder %s598_s4, %s389_s25  ;;  %p393_p5 = scmp.lt.u32.totalorder %s389_s25, %s598_s4 }
  0x49   :  { %p395_p6 = pnand %p393_p5, %p390_p4 }
  0x4b   :  { %398 = shalt.err (!%p395_p6)
}
  0x4c   :  { %s399_s2 = scalar_lea.vmem %s63_s1, 128  ;;  %p404_p8 = scmp.lt.s32.totalorder %s63_s1, %s63_s1 }
  0x4d   :  { %p400_p7 = scmp.ne.s32.totalorder %s63_s1, %s399_s2  ;;  %p405_p9 = scmp.lt.s32.totalorder %s399_s2, %s399_s2 }
  0x4f   :  { %p406_p10 = por %p405_p9, %p404_p8 }
  0x51   :  { %p407_p11 = pnand %p406_p10, %p400_p7 }
  0x53   :  { %410 = shalt.err (!%p407_p11)
}
  0x54   :  { %65 = dma.hbm_to_vmem [thread:$0]  %s598_s4, 128, %s63_s1, [#allocation9]  }
  0x55   :  { %s411_s24 = scalar_lea.hbm %s599_s5, 128 }
  0x56   :  { %p412_p12 = scmp.ne.s32.totalorder %s599_s5, %s411_s24  ;;  %p415_p13 = scmp.lt.u32.totalorder %s411_s24, %s599_s5 }
  0x58   :  { %p417_p0 = pnand %p415_p13, %p412_p12 }
  0x5a   :  { %420 = shalt.err (!%p417_p0)
}
  0x5b   :  { %s421_s12 = scalar_lea.vmem %s73_s20, 128  ;;  %p426_p2 = scmp.lt.s32.totalorder %s73_s20, %s73_s20 }
  0x5c   :  { %p422_p1 = scmp.ne.s32.totalorder %s73_s20, %s421_s12  ;;  %p427_p3 = scmp.lt.s32.totalorder %s421_s12, %s421_s12 }
  0x5e   :  { %p428_p4 = por %p427_p3, %p426_p2 }
  0x60   :  { %p429_p5 = pnand %p428_p4, %p422_p1 }
  0x62   :  { %432 = shalt.err (!%p429_p5)
}
  0x63   :  { %75 = dma.hbm_to_vmem [thread:$0]  %s599_s5, 128, %s73_s20, [#allocation12]  }
  0x64   :  { %455 = dma.done.wait [#allocation3], 128  }
  0x65   :  { %456 = vsyncadd [#allocation3], 4294967168 }
  0x66   :  { %457 = dma.done.wait [#allocation6], 256  }
  0x67   :  { %458 = vsyncadd [#allocation6], 4294967040 }
  0x68   :  { %459 = dma.done.wait [#allocation9], 256  }
  0x69   :  { %460 = vsyncadd [#allocation9], 4294967040 }
  0x6a   :  { %461 = dma.done.wait [#allocation12], 128  }
  0x6b   :  { %462 = vsyncadd [#allocation12], 4294967168  ;;  %v471_v0 = vmov 0.0   ;;  %vm472_vm0 = vmmov 0   ;;  %v473_v1 = vmov 0   ;;  %vm98_vm1 = vcmask 64512  }
  0x6c   :  { %280 = vmatprep.subr.mxu0 %v471_v0  ;;  %285 = vmatprep.subr.mxu1 %v471_v0  ;;  %v97_v2 = vld [vmem:[#allocation8] sm:$0xff]  ;;  %v95_v3 = vld [vmem:[#allocation5] sm:$0xff]  ;;  %v96_v4 = vld [vmem:[#allocation7] sm:$0xff]  ;;  %s474_s5 = smov [#allocation13]  }
  0x6d   :  { %282 = vmatprep.mubr.msk.f32.mxu0 %vm472_vm0, %v471_v0  ;;  %287 = vmatprep.mubr.msk.f32.mxu1 %vm472_vm0, %v471_v0  ;;  %v94_v5 = vld [vmem:[#allocation2] sm:$0xff]  ;;  %v253_v14 = vld [vmem:[#allocation11] sm:$0xff]  ;;  %s262_s14 = sshll.u32 %s474_s5, 4  ;;  %s263_s14 = int_to_ptr.vmem [resolvable:$true] %s262_s14 }
  0x6e   :  { %300 = vset.pattern.permute.xlu0 %v473_v1  ;;  %281 = vmatpush3.msra.mxu0 %v97_v2  ;;  %v245_v6 = vld [vmem:[#allocation10] sm:$0xff]  ;;  %s433_s15 = scalar_lea.vmem %s263_s14, 128  ;;  %p438_p7 = scmp.lt.s32.totalorder %s263_s14, %s263_s14 }
  0x6f   :  { %286 = vmatpush3.msra.mxu1 %v95_v3  ;;  %283 = vmatmul.mubr.msk.f32.vlgmr.msra.gmra.mrb[0].mxu0 %vm98_vm1, %v96_v4  ;;  %p434_p6 = scmp.ne.s32.totalorder %s263_s14, %s433_s15  ;;  %p439_p8 = scmp.lt.s32.totalorder %s433_s15, %s433_s15 }
  0x70   :  { %288 = vmatmul.mubr.msk.f32.vlgmr.msra.gmra.mrb[0].mxu1 %vm98_vm1, %v94_v5  ;;  %248 = vperm.xlu0 %300, %v245_v6  }
  0x71   :  { %p440_p9 = por %p439_p8, %p438_p7 }
  0x73   :  { %p441_p10 = pnand %p440_p9, %p434_p6 }
  0xef   :  { %v249_v7 = vpop.permute.xlu0 %248 }
 0x142   :  { %v168_v8 = vpop.f32.mrb[0].mxu0 }
 0x143   :  { %v241_v9 = vpop.f32.mrb[0].mxu1  ;;  %v284_v11 = vpop.f32.mrb[1].mxu0 }
 0x144   :  { %v242_v10 = vadd.f32 %v241_v9, %v168_v8  ;;  %v289_v12 = vpop.f32.mrb[1].mxu1 }
 0x146   :  { %v251_v13 = vadd.f32 %v249_v7, %v242_v10 }
 0x148   :  { %v252_v15 = vmax.f32 %v251_v13, 0.0 }
 0x14a   :  { %v254_v16 = vadd.f32 %v253_v14, %v252_v15 }
 0x14c   :  { %255 = vst [vmem:[#allocation13] sm:$0xff] %v254_v16 }
 0x14d   :  { %444 = shalt.err (!%p441_p10)
}
 0x14e   :  { %s445_s17 = scalar_lea.hbm %s600_s6, 128 }
 0x14f   :  { %p446_p11 = scmp.ne.s32.totalorder %s600_s6, %s445_s17  ;;  %p449_p12 = scmp.lt.u32.totalorder %s445_s17, %s600_s6 }
 0x151   :  { %p451_p13 = pnand %p449_p12, %p446_p11 }
 0x153   :  { %454 = shalt.err (!%p451_p13)
}
 0x154   :  { %265 = dma.vmem_to_hbm [thread:$0]  %s263_s14, 128, %s600_s6, [#allocation4]  }
 0x155   :  { %463 = dma.done.wait [#allocation4], 128  }
 0x156   :  { %464 = vsyncadd [#allocation4], 4294967168 }
 0x157   :  { %269 = vsyncpa [#allocation3], 1 }
 0x158   :  { %270 = vsyncpa [#allocation6], 1 }
 0x159   :  { %271 = vsyncpa [#allocation9], 1 }
 0x15a   :  { %272 = vsyncpa [#allocation12], 1 }
 0x15b   :  { %273 = vsyncpa [#allocation4], 1 }

// kernel: _lambda_.42
= control target key start
LH: loop header
LB: loop body
LE: loop exit
PB: predicated region body
PF: predicated region fallthrough
CT: control target
= control target key end

     0   :  { %s4350_s0 = inlined_call_operand.hbm [shape: f32[25,8,8], index: 0, kind: input, shape index: {}]   ;;  %s4351_s1 = inlined_call_operand.hbm [shape: f32[8,1], index: 1, kind: input, shape index: {}]   ;;  %s4352_s2 = inlined_call_operand.hbm [shape: f32[1,20,8,12], index: 2, kind: input, shape index: {}, may-alias: {2,3,4,5,6}]   ;;  %s4353_s3 = inlined_call_operand.hbm [shape: f32[1,20,8,12], index: 3, kind: input, shape index: {}, may-alias: {2,3,4,5,6}]   ;;  %s4354_s4 = inlined_call_operand.hbm [shape: f32[1,20,8,12], index: 4, kind: input, shape index: {}, may-alias: {2,3,4,5,6}]   ;;  %s4355_s5 = inlined_call_operand.hbm [shape: f32[1,20,8,12], index: 5, kind: input, shape index: {}, may-alias: {2,3,4,5,6}]   ;;  %s4356_s6 = inlined_call_operand.hbm [shape: f32[1,20,8,12], index: 6, kind: input, shape index: {}, may-alias: {2,3,4,5,6}]   ;;  %s4357_s7 = inlined_call_operand.hbm [shape: f32[1,16,8,8], index: 7, kind: output, shape index: {}]  }
   0x1   :  { %4386 = sst [smem:[#allocation36_spill]] %s4350_s0 }
   0x2   :  { %4387 = sst [smem:[#allocation37_spill]] %s4351_s1 }
   0x3   :  { %4388 = sst [smem:[#allocation38_spill]] %s4352_s2 }
   0x4   :  { %4389 = sst [smem:[#allocation39_spill]] %s4353_s3 }
   0x5   :  { %4390 = sst [smem:[#allocation40_spill]] %s4354_s4 }
   0x6   :  { %4391 = sst [smem:[#allocation41_spill]] %s4355_s5 }
   0x7   :  { %4392 = sst [smem:[#allocation42_spill]] %s4356_s6 }
   0x8   :  { %4393 = sst [smem:[#allocation43_spill]] %s4357_s7 }
   0x9   :  { %12 = vsyncpa [#allocation3], 0 }
   0xa   :  { %13 = vsyncpa [#allocation6], 0 }
   0xb   :  { %14 = vsyncpa [#allocation4], 0 }
   0xc   :  { %16 = vsyncpa [#allocation4 + $0x1], 0  ;;  %s3602_s24 = smov 0   ;;  %s3604_s25 = smov 0  }
   0xd   :  { %s3606_s26 = smov 0   ;;  %s3608_s27 = smov 0  }
   0xe   :  { %s3610_s28 = smov 0   ;;  %s3612_s29 = smov 0  }
   0xf   :  { %s3614_s30 = smov 0   ;;  %s3616_s8 = smov 0  }
  0x10   :  { %s3618_s9 = smov 0   ;;  %s3620_s10 = smov 0  }
  0x11   :  { %s3622_s11 = smov 0   ;;  %s3624_s12 = smov 0  }
  0x12   :  { %s3626_s13 = smov 0   ;;  %s3628_s14 = smov 0  }
  0x13   :  { %s3630_s15 = smov 0   ;;  %s3632_s16 = smov 0  }
  0x14   :  { %s3634_s17 = smov 0   ;;  %s3636_s18 = smov 0  }
  0x15 LB: > { %4394 = sst [smem:[#allocation21_spill]] %s3475_s24  ;;  %s3693_s19 = sadd.s32 4294967295, %s3543_s18   ;;  %s3543_s18 = sphi %s3636_s18, %s22_s18   ;;  %s3539_s17 = sphi %s3634_s17, %s4494_s17   ;;  %s3535_s16 = sphi %s3632_s16, %s4493_s16   ;;  %s3531_s15 = sphi %s3630_s15, %s4492_s15   ;;  %s3527_s14 = sphi %s3628_s14, %s4479_s14   ;;  %s3523_s13 = sphi %s3626_s13, %s4478_s13   ;;  %s3519_s12 = sphi %s3624_s12, %s4477_s12   ;;  %s3515_s11 = sphi %s3622_s11, %s4491_s11   ;;  %s3511_s10 = sphi %s3620_s10, %s4490_s10   ;;  %s3507_s9 = sphi %s3618_s9, %s4489_s9   ;;  %s3503_s8 = sphi %s3616_s8, %s4488_s8   ;;  %s3499_s30 = sphi %s3614_s30, %s4487_s30   ;;  %s3495_s29 = sphi %s3612_s29, %s4486_s29   ;;  %s3491_s28 = sphi %s3610_s28, %s4485_s28   ;;  %s3487_s27 = sphi %s3608_s27, %s4484_s27   ;;  %s3483_s26 = sphi %s3606_s26, %s4482_s26   ;;  %s3479_s25 = sphi %s3604_s25, %s4474_s25   ;;  %s3475_s24 = sphi %s3602_s24, %s4473_s24  }
  0x16   : > { %4395 = sst [smem:[#allocation22_spill]] %s3479_s25  ;;  %p2695_p0 = scmp.ge.s32.totalorder %s3543_s18, 1 }
  0x17   : > { %4396 = sst [smem:[#allocation23_spill]] %s3483_s26  ;;  %p4362_p1 = scmp.eq.s32.totalorder %s3693_s19, 0 }
  0x18   : > { %4397 = sst [smem:[#allocation24_spill]] %s3519_s12  ;;  %p257_p2 = scmp.lt.s32.totalorder %s3543_s18, 17 }
  0x19   : > { %4398 = sst [smem:[#allocation25_spill]] %s3523_s13  ;;  %s3545_s21 = smov [#allocation2]  }
  0x1a   : > { %4399 = sst [smem:[#allocation26_spill]] %s3527_s14  ;;  %p3698_p3 = pnand %p2695_p0, %p257_p2 }
  0x1b   : > { %4400 = sst [smem:[#allocation27_spill]] %s3531_s15  ;;  %s269_s22 = sshll.u32 %s3545_s21, 4  ;;  %s270_s22 = int_to_ptr.vmem [resolvable:$true] %s269_s22 }
  0x1c   : > { %4401 = sst [smem:[#allocation28_spill]] %s3535_s16  ;;  %p2942_p4 = pneg %p3698_p3 }
  0x1d   : > { %s4402_s20 = scalar_select %p3698_p3, 1, 0 }
  0x1e   : > { %p3706_p5 = pnand %p2942_p4, %p4362_p1  ;;  %s4406_s0 = sld [smem:[#allocation36_spill]] }
  0x1f   : > { %4403 = sst [smem:[#allocation29_spill]] %s4402_s20 }
  0x20   : > { %s4404_s23 = scalar_select %p3706_p5, 1, 0 }
  0x21   : > { %p4375_p7 = pneg %p3706_p5 }
  0x22   : > { %4405 = sst [smem:[#allocation30_spill]] %s4404_s23 }
  0x24   : > { %s3131_s6 = scalar_lea.hbm %s4406_s0, 3200 }
  0x25   : > { %p3132_p6 = scmp.ne.s32.totalorder %s4406_s0, %s3131_s6  ;;  %p3138_p10 = scmp.lt.u32.totalorder %s3131_s6, %s4406_s0 }
  0x27   : > { %p3134_p8 = pnand %p4375_p7, %p3132_p6 }
  0x29   : > { %p3135_p9 = pneg %p3134_p8 }
  0x2b   : > { %p3140_p11 = pnand %p3138_p10, %p3135_p9 }
  0x2d   : > { %3143 = shalt.err (!%p3140_p11)
}
  0x2e   : > { %s3144_s7 = scalar_lea.vmem %s270_s22, 3200  ;;  %p3152_p2 = scmp.lt.s32.totalorder %s270_s22, %s270_s22 }
  0x2f   : > { %p3145_p12 = scmp.ne.s32.totalorder %s270_s22, %s3144_s7  ;;  %p3153_p4 = scmp.lt.s32.totalorder %s3144_s7, %s3144_s7 }
  0x31   : > { %p3147_p13 = pnand %p3145_p12, %p4375_p7  ;;  %p3154_p1 = por %p3153_p4, %p3152_p2 }
  0x33   : > { %p3148_p0 = pneg %p3147_p13 }
  0x35   : > { %p3155_p3 = pnand %p3154_p1, %p3148_p0 }
  0x37   : > { %3158 = shalt.err (!%p3155_p3)
}
  0x38   : > { %s3546_s24 = smov 128   ;;  %s3547_s6 = smov 8  }
  0x39   : > { %2945 = dma.hbm_to_vmem [thread:$0]  (!%p3706_p5), %s4406_s0, 3200, %s270_s22, [#allocation3], %s3546_s24, %s3546_s24, %s3547_s6  }
  0x3a   : > { %s2694_s20 = sadd.s32 4294967294, %s3543_s18   ;;  %s3734_s21 = sadd.s32 1, %s3539_s17 }
  0x3b   : > { %s85_s7 = sadd.s32 1, %s3531_s15  ;;  %p32_p1 = scmp.ge.s32.totalorder %s3734_s21, 16 }
  0x3c   : > { %p92_p3 = scmp.ne.s32.totalorder %s3531_s15, %s3527_s14  ;;  %p4377_p6 = scmp.eq.s32.totalorder %s3543_s18, 0 }
  0x3d   : > { %p98_p8 = scmp.ne.s32.totalorder %s3527_s14, %s3523_s13  ;;  %p4408_p10 = scmp.eq.s32.totalorder %s3693_s19, 0 }
  0x3e   : > { %s3744_s26 = scalar_select %p32_p1, 0, %s3734_s21  }
  0x3f   : > { %p3748_p9 = por %p4377_p6, %p92_p3  ;;  %p3754_p11 = por %p4408_p10, %p98_p8 }
  0x40   : > { %s81_s6 = ssub.s32 %s3539_s17, %s3744_s26  ;;  %p244_p12 = scmp.eq.s32.totalorder %s3693_s19, 15 }
  0x41   : > { %s4409_s24 = scalar_select %p3754_p11, 1, 0 }
  0x42   : > { %p83_p13 = scmp.eq.s32.totalorder %s81_s6, 0  ;;  %p250_p0 = scmp.eq.s32.totalorder %s2694_s20, 15 }
  0x43   : > { %4410 = sst [smem:[#allocation31_spill]] %s4409_s24  ;;  %p3761_p2 = por %p244_p12, %p92_p3 }
  0x44   : > { %p4376_p4 = scmp.lt.s32.totalorder %s3543_s18, 16  ;;  %p3769_p1 = por %p250_p0, %p98_p8 }
  0x45   : > { %s4411_s25 = scalar_select %p3761_p2, 1, 0 }
  0x46   : > { %s3767_s16 = scalar_select %p83_p13, %s3531_s15, %s85_s7  }
  0x47   : > { %s4413_s0 = scalar_select %p3769_p1, 1, 0 }
  0x48   : > { %4412 = sst [smem:[#allocation32_spill]] %s3767_s16  ;;  %s294_s13 = sand.u32 1, %s3543_s18  }
  0x49   : > { %4414 = sst [smem:[#allocation33_spill]] %s4413_s0  ;;  %s296_s14 = sand.u32 1, %s3531_s15  }
  0x4a   : > { %s2699_s24 = sshll.u32 %s296_s14, 3  ;;  %s3776_s1 = sshll.u32 %s3539_s17, 7 }
  0x4b   : > { %s4415_s2 = sld [smem:[#allocation38_spill]]  ;;  %s298_s7 = scalar_lea.vmem [#allocation7], %s2699_s24 }
  0x4c   : > { %s307_s16 = sshll.u32 %s298_s7, 4  ;;  %p3788_p3 = pnand %p4376_p4, %p3748_p9  ;;  %s3792_s16 = int_to_ptr.vmem [resolvable:$true] %s307_s16 }
  0x4d   : > { %s3794_s14 = scalar_lea.sflag [#allocation3], %s294_s13 }
  0x4e   : > { %p3161_p10 = pneg %p3788_p3 }
  0x51   : > { %s3782_s20 = scalar_lea.hbm %s4415_s2, %s3776_s1  ;;  %s3164_s6 = scalar_lea.hbm %s4415_s2, 2560 }
  0x52   : > { %s3159_s23 = scalar_lea.hbm %s3782_s20, 128  ;;  %p3165_p9 = scmp.lt.u32.totalorder %s3782_s20, %s4415_s2 }
  0x53   : > { %p3160_p8 = scmp.ne.s32.totalorder %s3782_s20, %s3159_s23  ;;  %p3166_p0 = scmp.lt.u32.totalorder %s3164_s6, %s3159_s23 }
  0x54   : > { %p3168_p4 = scmp.lt.u32.totalorder %s3159_s23, %s3782_s20 }
  0x55   : > { %p3162_p12 = pnand %p3161_p10, %p3160_p8  ;;  %p3167_p7 = por %p3166_p0, %p3165_p9 }
  0x57   : > { %p3163_p13 = pneg %p3162_p12  ;;  %p3169_p6 = por %p3168_p4, %p3167_p7 }
  0x59   : > { %p3170_p1 = pnand %p3169_p6, %p3163_p13 }
  0x5b   : > { %3173 = shalt.err (!%p3170_p1)
}
  0x5c   : > { %s3174_s13 = scalar_lea.vmem %s3792_s16, 128  ;;  %s3548_s22 = smov [#allocation7]  }
  0x5d   : > { %p3175_p8 = scmp.ne.s32.totalorder %s3792_s16, %s3174_s13  ;;  %s3179_s24 = sshll.u32 %s3548_s22, 4  ;;  %s3180_s24 = int_to_ptr.vmem [resolvable:$false] %s3179_s24 }
  0x5e   : > { %s3181_s15 = scalar_lea.vmem %s3180_s24, 256  ;;  %p3182_p11 = scmp.lt.s32.totalorder %s3792_s16, %s3180_s24 }
  0x5f   : > { %p3177_p12 = pnand %p3175_p8, %p3161_p10  ;;  %p3183_p9 = scmp.lt.s32.totalorder %s3181_s15, %s3174_s13 }
  0x61   : > { %p3178_p2 = pneg %p3177_p12  ;;  %p3184_p0 = por %p3183_p9, %p3182_p11 }
  0x63   : > { %p3185_p7 = pnand %p3184_p0, %p3178_p2 }
  0x65   : > { %3188 = shalt.err (!%p3185_p7)
}
  0x66   : > { %2952 = dma.hbm_to_vmem [thread:$0]  (!%p3788_p3), %s3782_s20, 128, %s3792_s16, %s3794_s14  }
  0x67   : > { %s109_s23 = sadd.s32 1, %s3744_s26  ;;  %s115_s6 = sadd.s32 1, %s3519_s12 }
  0x68   : > { %s111_s0 = ssub.s32 %s3734_s21, %s109_s23  ;;  %p122_p6 = scmp.ne.s32.totalorder %s3519_s12, %s3515_s11 }
  0x69   : > { %p113_p11 = scmp.eq.s32.totalorder %s111_s0, 0  ;;  %p128_p2 = scmp.ne.s32.totalorder %s3515_s11, %s3511_s10 }
  0x6a   : > { %p4417_p4 = scmp.eq.s32.totalorder %s3543_s18, 0  ;;  %s316_s7 = sand.u32 1, %s3519_s12  }
  0x6b   : > { %s3833_s13 = scalar_select %p113_p11, %s3519_s12, %s115_s6  }
  0x6c   : > { %p124_p1 = por %p122_p6, %p4417_p4  ;;  %p4419_p10 = scmp.eq.s32.totalorder %s3693_s19, 0 }
  0x6d   : > { %4418 = sst [smem:[#allocation34_spill]] %s3833_s13  ;;  %s2701_s24 = sshll.u32 %s316_s7, 3 }
  0x6e   : > { %p3837_p13 = por %p128_p2, %p4419_p10  ;;  %s4421_s3 = sld [smem:[#allocation39_spill]] }
  0x6f   : > { %s318_s10 = scalar_lea.vmem [#allocation8], %s2701_s24  ;;  %p4422_p3 = scmp.lt.s32.totalorder %s3543_s18, 16 }
  0x70   : > { %s4420_s22 = scalar_select %p3837_p13, 1, 0 }
  0x71   : > { %s328_s21 = sshll.u32 %s318_s10, 4  ;;  %p3851_p8 = pnand %p4422_p3, %p124_p1  ;;  %s3847_s21 = int_to_ptr.vmem [resolvable:$true] %s328_s21 }
  0x73   : > { %p3191_p9 = pneg %p3851_p8 }
  0x74   : > { %s2538_s20 = scalar_lea.hbm %s4421_s3, %s3776_s1  ;;  %s3194_s24 = scalar_lea.hbm %s4421_s3, 2560 }
  0x75   : > { %s3845_s2 = scalar_lea.hbm %s2538_s20, 128  ;;  %s3219_s6 = scalar_lea.hbm %s2538_s20, 256 }
  0x76   : > { %p3190_p12 = scmp.ne.s32.totalorder %s3845_s2, %s3219_s6  ;;  %p3195_p6 = scmp.lt.u32.totalorder %s3845_s2, %s4421_s3 }
  0x77   : > { %p3196_p11 = scmp.lt.u32.totalorder %s3194_s24, %s3219_s6  ;;  %p3198_p4 = scmp.lt.u32.totalorder %s3219_s6, %s3845_s2 }
  0x78   : > { %p3192_p0 = pnand %p3191_p9, %p3190_p12 }
  0x79   : > { %p3197_p2 = por %p3196_p11, %p3195_p6 }
  0x7a   : > { %p3193_p7 = pneg %p3192_p0 }
  0x7b   : > { %p3199_p1 = por %p3198_p4, %p3197_p2 }
  0x7d   : > { %p3200_p10 = pnand %p3199_p1, %p3193_p7 }
  0x7f   : > { %3203 = shalt.err (!%p3200_p10)
}
  0x80   : > { %s3204_s20 = scalar_lea.vmem %s3847_s21, 128  ;;  %s3549_s10 = smov [#allocation8]  }
  0x81   : > { %p3205_p3 = scmp.ne.s32.totalorder %s3847_s21, %s3204_s20  ;;  %s3209_s0 = sshll.u32 %s3549_s10, 4  ;;  %s3210_s0 = int_to_ptr.vmem [resolvable:$false] %s3209_s0 }
  0x82   : > { %s3211_s7 = scalar_lea.vmem %s3210_s0, 256  ;;  %p3212_p13 = scmp.lt.s32.totalorder %s3847_s21, %s3210_s0 }
  0x83   : > { %p3207_p12 = pnand %p3205_p3, %p3191_p9  ;;  %p3213_p6 = scmp.lt.s32.totalorder %s3211_s7, %s3204_s20 }
  0x85   : > { %p3208_p0 = pneg %p3207_p12  ;;  %p3214_p11 = por %p3213_p6, %p3212_p13 }
  0x87   : > { %p3215_p2 = pnand %p3214_p11, %p3208_p0 }
  0x89   : > { %3218 = shalt.err (!%p3215_p2)
}
  0x8a   : > { %2955 = dma.hbm_to_vmem [thread:$0]  (!%p3851_p8), %s3845_s2, 128, %s3847_s21, %s3794_s14  }
  0x8b   : > { %s138_s6 = sadd.s32 2, %s3539_s17  ;;  %s139_s24 = sadd.s32 2, %s3744_s26 }
  0x8c   : > { %s145_s23 = sadd.s32 1, %s3507_s9  ;;  %s141_s15 = ssub.s32 %s138_s6, %s139_s24 }
  0x8d   : > { %p152_p13 = scmp.ne.s32.totalorder %s3507_s9, %s3503_s8  ;;  %p143_p9 = scmp.eq.s32.totalorder %s141_s15, 0 }
  0x8e   : > { %p158_p7 = scmp.ne.s32.totalorder %s3503_s8, %s3499_s30  ;;  %p4424_p4 = scmp.eq.s32.totalorder %s3543_s18, 0 }
  0x8f   : > { %s337_s16 = sand.u32 1, %s3507_s9   ;;  %p4426_p10 = scmp.eq.s32.totalorder %s3693_s19, 0 }
  0x90   : > { %p154_p1 = por %p152_p13, %p4424_p4  ;;  %s2703_s0 = sshll.u32 %s337_s16, 3 }
  0x91   : > { %s3891_s20 = scalar_select %p143_p9, %s3507_s9, %s145_s23  }
  0x92   : > { %p3895_p3 = por %p158_p7, %p4426_p10  ;;  %s4428_s4 = sld [smem:[#allocation40_spill]] }
  0x93   : > { %4425 = sst [smem:[#allocation35_spill]] %s3891_s20  ;;  %s339_s30 = scalar_lea.vmem [#allocation9], %s2703_s0 }
  0x94   : > { %s4427_s10 = scalar_select %p3895_p3, 1, 0 }
  0x95   : > { %s349_s6 = sshll.u32 %s339_s30, 4  ;;  %p4429_p8 = scmp.lt.s32.totalorder %s3543_s18, 16  ;;  %s3905_s6 = int_to_ptr.vmem [resolvable:$true] %s349_s6 }
  0x97   : > { %p3909_p12 = pnand %p4429_p8, %p154_p1 }
  0x98   : > { %s2546_s7 = scalar_lea.hbm %s4428_s4, %s3776_s1  ;;  %s3225_s0 = scalar_lea.hbm %s4428_s4, 2560 }
  0x99   : > { %s3903_s3 = scalar_lea.hbm %s2546_s7, 256  ;;  %s3250_s23 = scalar_lea.hbm %s2546_s7, 384 }
  0x9a   : > { %p3221_p0 = scmp.ne.s32.totalorder %s3903_s3, %s3250_s23  ;;  %p3222_p6 = pneg %p3909_p12 }
  0x9b   : > { %p3226_p13 = scmp.lt.u32.totalorder %s3903_s3, %s4428_s4  ;;  %p3227_p9 = scmp.lt.u32.totalorder %s3225_s0, %s3250_s23 }
  0x9c   : > { %p3223_p11 = pnand %p3222_p6, %p3221_p0  ;;  %p3229_p4 = scmp.lt.u32.totalorder %s3250_s23, %s3903_s3 }
  0x9d   : > { %p3228_p7 = por %p3227_p9, %p3226_p13 }
  0x9e   : > { %p3224_p2 = pneg %p3223_p11 }
  0x9f   : > { %p3230_p1 = por %p3229_p4, %p3228_p7 }
  0xa1   : > { %p3231_p10 = pnand %p3230_p1, %p3224_p2 }
  0xa3   : > { %3234 = shalt.err (!%p3231_p10)
}
  0xa4   : > { %s3235_s7 = scalar_lea.vmem %s3905_s6, 128  ;;  %s3550_s30 = smov [#allocation9]  }
  0xa5   : > { %p3236_p8 = scmp.ne.s32.totalorder %s3905_s6, %s3235_s7  ;;  %s3240_s15 = sshll.u32 %s3550_s30, 4  ;;  %s3241_s15 = int_to_ptr.vmem [resolvable:$false] %s3240_s15 }
  0xa6   : > { %s3242_s16 = scalar_lea.vmem %s3241_s15, 256  ;;  %p3243_p3 = scmp.lt.s32.totalorder %s3905_s6, %s3241_s15 }
  0xa7   : > { %p3238_p0 = pnand %p3236_p8, %p3222_p6  ;;  %p3244_p13 = scmp.lt.s32.totalorder %s3242_s16, %s3235_s7 }
  0xa9   : > { %p3239_p11 = pneg %p3238_p0  ;;  %p3245_p9 = por %p3244_p13, %p3243_p3 }
  0xab   : > { %p3246_p7 = pnand %p3245_p9, %p3239_p11 }
  0xad   : > { %3249 = shalt.err (!%p3246_p7)
}
  0xae   : > { %2958 = dma.hbm_to_vmem [thread:$0]  (!%p3909_p12), %s3903_s3, 128, %s3905_s6, %s3794_s14  }
  0xaf   : > { %s168_s23 = sadd.s32 3, %s3539_s17  ;;  %s169_s0 = sadd.s32 3, %s3744_s26 }
  0xb0   : > { %s175_s24 = sadd.s32 1, %s3495_s29  ;;  %s171_s2 = ssub.s32 %s168_s23, %s169_s0 }
  0xb1   : > { %p182_p3 = scmp.ne.s32.totalorder %s3495_s29, %s3491_s28  ;;  %p173_p6 = scmp.eq.s32.totalorder %s171_s2, 0 }
  0xb2   : > { %p188_p2 = scmp.ne.s32.totalorder %s3491_s28, %s3487_s27  ;;  %p4431_p4 = scmp.eq.s32.totalorder %s3543_s18, 0 }
  0xb3   : > { %s358_s21 = sand.u32 1, %s3495_s29   ;;  %p4432_p10 = scmp.eq.s32.totalorder %s3693_s19, 0 }
  0xb4   : > { %p184_p1 = por %p182_p3, %p4431_p4  ;;  %s2705_s15 = sshll.u32 %s358_s21, 3 }
  0xb5   : > { %s3949_s7 = scalar_select %p173_p6, %s3495_s29, %s175_s24  }
  0xb6   : > { %p3953_p8 = por %p188_p2, %p4432_p10  ;;  %s4434_s5 = sld [smem:[#allocation41_spill]] }
  0xb7   : > { %s360_s27 = scalar_lea.vmem [#allocation10], %s2705_s15  ;;  %p4435_p12 = scmp.lt.s32.totalorder %s3543_s18, 16 }
  0xb8   : > { %s4433_s30 = scalar_select %p3953_p8, 1, 0 }
  0xb9   : > { %s370_s23 = sshll.u32 %s360_s27, 4  ;;  %p3967_p0 = pnand %p4435_p12, %p184_p1  ;;  %s3963_s23 = int_to_ptr.vmem [resolvable:$true] %s370_s23 }
  0xba   : > { %s3551_s24 = smov [#allocation5]  }
  0xbb   : > { %s3971_s2 = sshll.u32 %s3551_s24, 4  ;;  %p3253_p13 = pneg %p3967_p0  ;;  %s284_s2 = int_to_ptr.vmem [resolvable:$true] %s3971_s2 }
  0xbc   : > { %s2554_s16 = scalar_lea.hbm %s4434_s5, %s3776_s1  ;;  %s3256_s6 = scalar_lea.hbm %s4434_s5, 2560 }
  0xbd   : > { %s3961_s4 = scalar_lea.hbm %s2554_s16, 384  ;;  %s3281_s21 = scalar_lea.hbm %s2554_s16, 512 }
  0xbe   : > { %p3252_p11 = scmp.ne.s32.totalorder %s3961_s4, %s3281_s21  ;;  %p3257_p3 = scmp.lt.u32.totalorder %s3961_s4, %s4434_s5 }
  0xbf   : > { %p3258_p6 = scmp.lt.u32.totalorder %s3256_s6, %s3281_s21  ;;  %p3260_p4 = scmp.lt.u32.totalorder %s3281_s21, %s3961_s4 }
  0xc0   : > { %p3254_p9 = pnand %p3253_p13, %p3252_p11 }
  0xc1   : > { %p3259_p2 = por %p3258_p6, %p3257_p3 }
  0xc2   : > { %p3255_p7 = pneg %p3254_p9 }
  0xc3   : > { %p3261_p1 = por %p3260_p4, %p3259_p2 }
  0xc5   : > { %p3262_p10 = pnand %p3261_p1, %p3255_p7 }
  0xc7   : > { %3265 = shalt.err (!%p3262_p10)
}
  0xc8   : > { %s3266_s16 = scalar_lea.vmem %s3963_s23, 128  ;;  %s3552_s24 = smov [#allocation10]  }
  0xc9   : > { %p3267_p12 = scmp.ne.s32.totalorder %s3963_s23, %s3266_s16  ;;  %s3271_s15 = sshll.u32 %s3552_s24, 4  ;;  %s3272_s15 = int_to_ptr.vmem [resolvable:$false] %s3271_s15 }
  0xca   : > { %s3273_s13 = scalar_lea.vmem %s3272_s15, 256  ;;  %p3274_p8 = scmp.lt.s32.totalorder %s3963_s23, %s3272_s15 }
  0xcb   : > { %p3269_p11 = pnand %p3267_p12, %p3253_p13  ;;  %p3275_p3 = scmp.lt.s32.totalorder %s3273_s13, %s3266_s16 }
  0xcd   : > { %p3270_p9 = pneg %p3269_p11  ;;  %p3276_p6 = por %p3275_p3, %p3274_p8 }
  0xcf   : > { %p3277_p2 = pnand %p3276_p6, %p3270_p9 }
  0xd1   : > { %3280 = shalt.err (!%p3277_p2)
}
  0xd2   : > { %2961 = dma.hbm_to_vmem [thread:$0]  (!%p3967_p0), %s3961_s4, 128, %s3963_s23, %s3794_s14  }
  0xd3   : > { %s4438_s27 = sld [smem:[#allocation37_spill]]  ;;  %p4440_p8 = pneg %p3706_p5 }
  0xd9   : > { %s4439_s5 = smov %s4438_s27  ;;  %s3282_s24 = scalar_lea.hbm %s4438_s27, 128 }
  0xda   : > { %p3283_p13 = scmp.ne.s32.totalorder %s4439_s5, %s3282_s24  ;;  %p3289_p1 = scmp.lt.u32.totalorder %s3282_s24, %s4439_s5 }
  0xdc   : > { %p3285_p7 = pnand %p3283_p13, %p4440_p8 }
  0xde   : > { %p3286_p4 = pneg %p3285_p7 }
  0xe0   : > { %p3291_p10 = pnand %p3289_p1, %p3286_p4 }
  0xe2   : > { %3294 = shalt.err (!%p3291_p10)
}
  0xe3   : > { %s3295_s4 = scalar_lea.vmem %s284_s2, 128  ;;  %p4441_p12 = pmov %p4440_p8 }
  0xe4   : > { %p3296_p0 = scmp.ne.s32.totalorder %s284_s2, %s3295_s4  ;;  %p3303_p3 = scmp.lt.s32.totalorder %s284_s2, %s284_s2 }
  0xe5   : > { %p3304_p6 = scmp.lt.s32.totalorder %s3295_s4, %s3295_s4 }
  0xe6   : > { %p3298_p11 = pnand %p3296_p0, %p4441_p12 }
  0xe7   : > { %p3305_p2 = por %p3304_p6, %p3303_p3 }
  0xe8   : > { %p3299_p9 = pneg %p3298_p11 }
  0xea   : > { %p3306_p8 = pnand %p3305_p2, %p3299_p9 }
  0xec   : > { %3309 = shalt.err (!%p3306_p8)
}
  0xed   : > { %s4442_s23 = sld [smem:[#allocation23_spill]]  ;;  %s4443_s15 = sld [smem:[#allocation22_spill]] }
  0xee   : > { %s4444_s13 = sld [smem:[#allocation21_spill]]  ;;  %s198_s3 = sadd.s32 4, %s3539_s17 }
  0xef   : > { %2948 = dma.hbm_to_vmem [thread:$0]  (!%p3706_p5), %s4439_s5, 128, %s284_s2, [#allocation6]  }
  0xf0   : > { %s199_s6 = sadd.s32 4, %s3744_s26  ;;  %p4445_p1 = scmp.eq.s32.totalorder %s3543_s18, 0 }
  0xf1   : > { %s201_s21 = ssub.s32 %s198_s3, %s199_s6  ;;  %p4446_p0 = scmp.eq.s32.totalorder %s3693_s19, 0 }
  0xf2   : > { %p203_p13 = scmp.eq.s32.totalorder %s201_s21, 0  ;;  %s4448_s12 = sld [smem:[#allocation42_spill]] }
  0xf3   : > { %s205_s27 = sadd.s32 1, %s4442_s23  ;;  %p212_p7 = scmp.ne.s32.totalorder %s4442_s23, %s4443_s15 }
  0xf4   : > { %p218_p4 = scmp.ne.s32.totalorder %s4443_s15, %s4444_s13  ;;  %s379_s24 = sand.u32 1, %s4442_s23  }
  0xf5   : > { %s4496_s23 = smov (!%p203_p13, %s4442_s23), %s205_s27  ;;  %p214_p10 = por %p212_p7, %p4445_p1 }
  0xf6   : > { %p4034_p12 = por %p218_p4, %p4446_p0  ;;  %s2707_s16 = sshll.u32 %s379_s24, 3 }
  0xf7   : > { %s381_s15 = scalar_lea.vmem [#allocation11], %s2707_s16  ;;  %p4450_p5 = scmp.lt.s32.totalorder %s3543_s18, 16 }
  0xf8   : > { %s4447_s0 = scalar_select %p4034_p12, 1, 0 }
  0xf9   : > { %s4449_s20 = smov %s4448_s12  ;;  %s2562_s5 = scalar_lea.hbm %s4448_s12, %s3776_s1 }
  0xfa   : > { %s4042_s3 = scalar_lea.hbm %s2562_s5, 512  ;;  %s391_s13 = sshll.u32 %s381_s15, 4  ;;  %s392_s13 = int_to_ptr.vmem [resolvable:$true] %s391_s13 }
  0xfb   : > { %p4046_p11 = pnand %p4450_p5, %p214_p10  ;;  %s3340_s21 = scalar_lea.hbm %s2562_s5, 640 }
  0xfc   : > { %p3311_p9 = scmp.ne.s32.totalorder %s4042_s3, %s3340_s21  ;;  %s3315_s24 = scalar_lea.hbm %s4449_s20, 2560 }
  0xfd   : > { %p3312_p3 = pneg %p4046_p11  ;;  %p3316_p8 = scmp.lt.u32.totalorder %s4042_s3, %s4449_s20 }
  0xfe   : > { %p3317_p13 = scmp.lt.u32.totalorder %s3315_s24, %s3340_s21  ;;  %p3319_p4 = scmp.lt.u32.totalorder %s3340_s21, %s4042_s3 }
  0xff   : > { %p3313_p6 = pnand %p3312_p3, %p3311_p9 }
 0x100   : > { %p3318_p7 = por %p3317_p13, %p3316_p8 }
 0x101   : > { %p3314_p2 = pneg %p3313_p6 }
 0x102   : > { %p3320_p1 = por %p3319_p4, %p3318_p7 }
 0x104   : > { %p3321_p10 = pnand %p3320_p1, %p3314_p2 }
 0x106   : > { %3324 = shalt.err (!%p3321_p10)
}
 0x107   : > { %s3325_s5 = scalar_lea.vmem %s392_s13, 128  ;;  %s3553_s4 = smov [#allocation11]  }
 0x108   : > { %p3326_p0 = scmp.ne.s32.totalorder %s392_s13, %s3325_s5  ;;  %s3330_s12 = sshll.u32 %s3553_s4, 4  ;;  %s3331_s12 = int_to_ptr.vmem [resolvable:$false] %s3330_s12 }
 0x109   : > { %s3332_s15 = scalar_lea.vmem %s3331_s12, 256  ;;  %p3333_p6 = scmp.lt.s32.totalorder %s392_s13, %s3331_s12 }
 0x10a   : > { %p3328_p5 = pnand %p3326_p0, %p3312_p3  ;;  %p3334_p12 = scmp.lt.s32.totalorder %s3332_s15, %s3325_s5 }
 0x10c   : > { %p3329_p9 = pneg %p3328_p5  ;;  %p3335_p8 = por %p3334_p12, %p3333_p6 }
 0x10e   : > { %p3336_p13 = pnand %p3335_p8, %p3329_p9 }
 0x110   : > { %3339 = shalt.err (!%p3336_p13)
}
 0x111   : > { %2964 = dma.hbm_to_vmem [thread:$0]  (!%p4046_p11), %s4042_s3, 128, %s392_s13, %s3794_s14  }
 0x112   : > { %s4452_s21 = sld [smem:[#allocation29_spill]] }
 0x118   : > { %p4453_p2 = scmp.ne.s32.totalorder %s4452_s21, 0 }
 0x119   : > { %p4454_p3 = scmp.eq.s32.totalorder (!%p4453_p2), %s3693_s19, 0 }
 0x11a   : > { %400 = sbr.rel (%p4453_p2) target bundleno = 725 (0x2d5), region = 48 }
 0x121   : > { %3442 = dma.done.wait (%p4454_p3), [#allocation3], 3200   ;;  %p4455_p7 = pmov %p4454_p3 }
 0x122   : > { %p4456_p4 = pmov %p4454_p3 }
 0x123   : > { %3444 = vsyncadd (%p4455_p7), [#allocation3], 4294964096 }
 0x124   : > { %3446 = dma.done.wait (%p4456_p4), [#allocation6], 128   ;;  %p4457_p12 = pmov %p4454_p3 }
 0x125   : > { %s4458_s6 = sld [smem:[#allocation26_spill]]  ;;  %s4459_s1 = sld [smem:[#allocation31_spill]] }
 0x126   : > { %3448 = vsyncadd (%p4457_p12), [#allocation6], 4294967168  ;;  %s410_s14 = sand.u32 1, %s3693_s19  }
 0x127   : > { %s411_s27 = scalar_lea.sflag [#allocation3], %s410_s14 }
 0x12b   : > { %s412_s3 = sand.u32 1, %s4458_s6   ;;  %p4460_p11 = scmp.ne.s32.totalorder %s4459_s1, 0 }
 0x12c   : > { %s4085_s13 = sshll.u32 %s412_s3, 3 }
 0x12d   : > { %s414_s24 = scalar_lea.vmem [#allocation7], %s4085_s13 }
 0x12e   : > { %3450 = dma.done.wait (%p4460_p11), %s411_s27, 128  }
 0x12f   : > { %3452 = vsyncadd (%p4460_p11), %s411_s27, 4294967168  ;;  %s421_s16 = sand.u32 1, %s3515_s11   ;;  %p4461_p1 = scmp.ne.s32.totalorder %s4420_s22, 0 }
 0x130   : > { %s4093_s2 = sshll.u32 %s421_s16, 3 }
 0x131   : > { %s423_s5 = scalar_lea.vmem [#allocation8], %s4093_s2 }
 0x132   : > { %3454 = dma.done.wait (%p4461_p1), %s411_s27, 128  }
 0x133   : > { %3456 = vsyncadd (%p4461_p1), %s411_s27, 4294967168  ;;  %s430_s19 = sand.u32 1, %s3503_s8   ;;  %p4462_p10 = scmp.ne.s32.totalorder %s4427_s10, 0 }
 0x134   : > { %s4101_s4 = sshll.u32 %s430_s19, 3 }
 0x135   : > { %s432_s12 = scalar_lea.vmem [#allocation9], %s4101_s4 }
 0x136   : > { %3458 = dma.done.wait (%p4462_p10), %s411_s27, 128  }
 0x137   : > { %3460 = vsyncadd (%p4462_p10), %s411_s27, 4294967168  ;;  %s439_s15 = sand.u32 1, %s3491_s28   ;;  %p4463_p0 = scmp.ne.s32.totalorder %s4433_s30, 0 }
 0x138   : > { %s4109_s21 = sshll.u32 %s439_s15, 3 }
 0x139   : > { %s441_s22 = scalar_lea.vmem [#allocation10], %s4109_s21 }
 0x13a   : > { %3462 = dma.done.wait (%p4463_p0), %s411_s27, 128  }
 0x13b   : > { %3464 = vsyncadd (%p4463_p0), %s411_s27, 4294967168  ;;  %s4464_s1 = sld [smem:[#allocation22_spill]]  ;;  %p4465_p5 = scmp.ne.s32.totalorder %s4447_s0, 0 }
 0x141   : > { %s448_s14 = sand.u32 1, %s4464_s1  }
 0x142   : > { %s4117_s16 = sshll.u32 %s448_s14, 3 }
 0x143   : > { %s450_s10 = scalar_lea.vmem [#allocation11], %s4117_s16 }
 0x144   : > { %3466 = dma.done.wait (%p4465_p5), %s411_s27, 128  }
 0x145   : > { %3468 = vsyncadd (%p4465_p5), %s411_s27, 4294967168  ;;  %v3554_v0 = vmov 0.0   ;;  %vm3555_vm0 = vmmov 0   ;;  %v505_v1 = vld [vmem:[%s414_s24] sm:$0xff]  ;;  %vm513_vm1 = vcmask 64512   ;;  %s3556_s30 = smov 127  }
 0x146   : > { %2797 = vmatprep.subr.mxu0 %v3554_v0  ;;  %2799 = vmatprep.mubr.msk.f32.mxu0 %vm3555_vm0, %v3554_v0  ;;  %s3557_s19 = smov 125   ;;  %v506_v2 = vld [vmem:[#allocation2] sm:$0xff]  ;;  %s3558_s0 = smov 126   ;;  %v4138_v4 = vld [vmem:[%s432_s12] sm:$0xff]  ;;  %v3560_v7 = vmov 0   ;;  %v2473_v8 = vld [vmem:[#allocation5] sm:$0xff] }
 0x147   : > { %2802 = vmatprep.subr.mxu1 %v3554_v0  ;;  %2804 = vmatprep.mubr.msk.f32.mxu1 %vm3555_vm0, %v3554_v0  ;;  %s3559_s27 = smov 124   ;;  %v897_v3 = vld [vmem:[%s423_s5] sm:$0xff]  ;;  %v4154_v6 = vld [vmem:[%s450_s10] sm:$0xff]  ;;  %s4466_s24 = sld [smem:[#allocation28_spill]] }
 0x148   : > { %510 = vrot.lane.b32.xlu0 %v505_v1, %s3556_s30  ;;  %741 = vrot.lane.b32.xlu1 %v505_v1, %s3557_s19  ;;  %v4146_v5 = vld [vmem:[%s441_s22] sm:$0xff]  ;;  %v740_v12 = vld [vmem:[#allocation2 + $0x18] sm:$0xff]  ;;  %v661_v13 = vld [vmem:[#allocation2 + $0x10] sm:$0xff]  ;;  %s500_s5 = scalar_lea.vmem [#allocation12], %s4085_s13  ;;  %s4467_s21 = sld [smem:[#allocation43_spill]] }
 0x149   : > { %2803 = vmatpush3.msra.mxu1 %v505_v1  ;;  %3130 = vset.pattern.permute.xlu0 %v3560_v7  ;;  %v508_v9 = vld [vmem:[#allocation2 + $0x8] sm:$0xff]  ;;  %v819_v17 = vld [vmem:[#allocation2 + $0x20] sm:$0xff]  ;;  %v1055_v20 = vld [vmem:[#allocation2 + $0x38] sm:$0xff]  ;;  %s2500_s4 = sshll.u32 %s500_s5, 4  ;;  %s2485_s1 = scalar_lea.sflag [#allocation4], %s412_s3  ;;  %s4260_s4 = int_to_ptr.vmem [resolvable:$true] %s2500_s4 }
 0x14a   : > { %2805 = vmatmul.mubr.msk.f32.vlgmr.msra.gmra.mrb[0].mxu1 %vm513_vm1, %v506_v2  ;;  %2812 = vmatprep.subr.mxu1 %v3554_v0  ;;  %v899_v16 = vld [vmem:[#allocation2 + $0x28] sm:$0xff]  ;;  %v975_v21 = vld [vmem:[#allocation2 + $0x30] sm:$0xff]  ;;  %v1134_v25 = vld [vmem:[#allocation2 + $0x40] sm:$0xff]  ;;  %s3341_s14 = scalar_lea.vmem %s4260_s4, 128  ;;  %p4468_p6 = scmp.ne.s32.totalorder %s4411_s25, 0 }
 0x14b   : > { %2814 = vmatprep.mubr.msk.f32.mxu1 %vm3555_vm0, %v3554_v0  ;;  %v1213_v24 = vld [vmem:[#allocation2 + $0x48] sm:$0xff]  ;;  %v1369_v28 = vld [vmem:[#allocation2 + $0x58] sm:$0xff]  ;;  %v1293_v29 = vld [vmem:[#allocation2 + $0x50] sm:$0xff]  ;;  %p3342_p9 = scmp.ne.s32.totalorder %s4260_s4, %s3341_s14  ;;  %s3561_s13 = smov [#allocation12]  }
 0x14c   : > { %662 = vrot.lane.b32.xlu0 %v505_v1, %s3558_s0  ;;  %820 = vrot.lane.b32.xlu1 %v505_v1, %s3559_s27  ;;  %v1528_v32 = vld [vmem:[#allocation2 + $0x68] sm:$0xff]  ;;  %v1449_v33 = vld [vmem:[#allocation2 + $0x60] sm:$0xff]  ;;  %v1687_v35 = vld [vmem:[#allocation2 + $0x78] sm:$0xff]  ;;  %s3345_s16 = sshll.u32 %s3561_s13, 4  ;;  %s3346_s16 = int_to_ptr.vmem [resolvable:$false] %s3345_s16 }
 0x14d   : > { %v1607_v37 = vld [vmem:[#allocation2 + $0x70] sm:$0xff]  ;;  %v1843_v39 = vld [vmem:[#allocation2 + $0x88] sm:$0xff]  ;;  %v1763_v40 = vld [vmem:[#allocation2 + $0x80] sm:$0xff]  ;;  %s2744_s2 = sshll.u32 %s4466_s24, 7  ;;  %p3343_p8 = pnand %p3342_p9, %p4468_p6 }
 0x14e   : > { %v2001_v42 = vld [vmem:[#allocation2 + $0x98] sm:$0xff]  ;;  %v1922_v44 = vld [vmem:[#allocation2 + $0x90] sm:$0xff]  ;;  %v2157_v45 = vld [vmem:[#allocation2 + $0xa8] sm:$0xff]  ;;  %s4258_s22 = scalar_lea.hbm %s4467_s21, %s2744_s2  ;;  %s3347_s10 = scalar_lea.vmem %s3346_s16, 256 }
 0x14f   : > { %v2081_v47 = vld [vmem:[#allocation2 + $0xa0] sm:$0xff]  ;;  %v2316_v49 = vld [vmem:[#allocation2 + $0xb8] sm:$0xff]  ;;  %v2237_v50 = vld [vmem:[#allocation2 + $0xb0] sm:$0xff]  ;;  %p3344_p13 = pneg %p3343_p8  ;;  %p3348_p2 = scmp.lt.s32.totalorder %s4260_s4, %s3346_s16 }
 0x150   : > { %977 = vrot.lane.b32.xlu0 %v897_v3, %s3556_s30  ;;  %1056 = vrot.lane.b32.xlu1 %v897_v3, %s3558_s0  ;;  %v2395_v52 = vld [vmem:[#allocation2 + $0xc0] sm:$0xff]  ;;  %p3349_p3 = scmp.lt.s32.totalorder %s3347_s10, %s3341_s14 }
 0x152   : > { %p3350_p7 = por %p3349_p3, %p3348_p2 }
 0x154   : > { %1135 = vrot.lane.b32.xlu0 %v897_v3, %s3557_s19  ;;  %1214 = vrot.lane.b32.xlu1 %v897_v3, %s3559_s27  ;;  %p3351_p4 = pnand %p3350_p7, %p3344_p13 }
 0x158   : > { %1371 = vrot.lane.b32.xlu0 %v4138_v4, %s3556_s30  ;;  %1450 = vrot.lane.b32.xlu1 %v4138_v4, %s3558_s0 }
 0x15c   : > { %1529 = vrot.lane.b32.xlu0 %v4138_v4, %s3557_s19  ;;  %1608 = vrot.lane.b32.xlu1 %v4138_v4, %s3559_s27 }
 0x160   : > { %1765 = vrot.lane.b32.xlu0 %v4146_v5, %s3556_s30  ;;  %1844 = vrot.lane.b32.xlu1 %v4146_v5, %s3558_s0 }
 0x164   : > { %1923 = vrot.lane.b32.xlu0 %v4146_v5, %s3557_s19  ;;  %2002 = vrot.lane.b32.xlu1 %v4146_v5, %s3559_s27 }
 0x168   : > { %2159 = vrot.lane.b32.xlu0 %v4154_v6, %s3556_s30  ;;  %2238 = vrot.lane.b32.xlu1 %v4154_v6, %s3558_s0 }
 0x16c   : > { %2317 = vrot.lane.b32.xlu0 %v4154_v6, %s3557_s19  ;;  %2396 = vrot.lane.b32.xlu1 %v4154_v6, %s3559_s27 }
 0x170   : > { %2476 = vperm.xlu0 %3130, %v2473_v8  }
 0x1ba   : > { %v511_v10 = vpop.permute.xlu0 %510  ;;  %v742_v11 = vpop.permute.xlu1 %741 }
 0x1bb   : > { %2798 = vmatpush3.msra.mxu0 %v511_v10  ;;  %2813 = vmatpush3.msra.mxu1 %v742_v11 }
 0x1bc   : > { %2800 = vmatmul.mubr.msk.f32.vlgmr.msra.gmra.mrb[0].mxu0 %vm513_vm1, %v508_v9  ;;  %2807 = vmatprep.subr.mxu0 %v3554_v0 }
 0x1bd   : > { %2809 = vmatprep.mubr.msk.f32.mxu0 %vm3555_vm0, %v3554_v0  ;;  %2815 = vmatmul.mubr.msk.f32.vlgmr.msra.gmra.mrb[2].mxu1 %vm513_vm1, %v740_v12 }
 0x1be   : > { %v663_v14 = vpop.permute.xlu0 %662  ;;  %v821_v15 = vpop.permute.xlu1 %820  ;;  %2822 = vmatprep.subr.mxu1 %v3554_v0  ;;  %2824 = vmatprep.mubr.msk.f32.mxu1 %vm3555_vm0, %v3554_v0 }
 0x1bf   : > { %2808 = vmatpush3.msra.mxu0 %v663_v14  ;;  %2823 = vmatpush3.msra.mxu1 %v897_v3 }
 0x1c0   : > { %2810 = vmatmul.mubr.msk.f32.vlgmr.msra.gmra.mrb[2].mxu0 %vm513_vm1, %v661_v13  ;;  %2817 = vmatprep.subr.mxu0 %v3554_v0 }
 0x1c1   : > { %2818 = vmatpush3.msra.mxu0 %v821_v15  ;;  %2819 = vmatprep.mubr.msk.f32.mxu0 %vm3555_vm0, %v3554_v0 }
 0x1c2   : > { %2827 = vmatprep.subr.mxu0 %v3554_v0  ;;  %v978_v18 = vpop.permute.xlu0 %977  ;;  %2825 = vmatmul.mubr.msk.f32.vlgmr.msra.gmra.mrb[4].mxu1 %vm513_vm1, %v899_v16  ;;  %v1057_v19 = vpop.permute.xlu1 %1056 }
 0x1c3   : > { %2832 = vmatprep.subr.mxu1 %v3554_v0  ;;  %2834 = vmatprep.mubr.msk.f32.mxu1 %vm3555_vm0, %v3554_v0 }
 0x1c4   : > { %2820 = vmatmul.mubr.msk.f32.vlgmr.msra.gmra.mrb[4].mxu0 %vm513_vm1, %v819_v17  ;;  %2833 = vmatpush3.msra.mxu1 %v1057_v19 }
 0x1c5   : > { %2828 = vmatpush3.msra.mxu0 %v978_v18  ;;  %2829 = vmatprep.mubr.msk.f32.mxu0 %vm3555_vm0, %v3554_v0 }
 0x1c6   : > { %2837 = vmatprep.subr.mxu0 %v3554_v0  ;;  %v1136_v22 = vpop.permute.xlu0 %1135  ;;  %2835 = vmatmul.mubr.msk.f32.vlgmr.msra.gmra.mrb[6].mxu1 %vm513_vm1, %v1055_v20  ;;  %v1215_v23 = vpop.permute.xlu1 %1214 }
 0x1c7   : > { %2842 = vmatprep.subr.mxu1 %v3554_v0  ;;  %2844 = vmatprep.mubr.msk.f32.mxu1 %vm3555_vm0, %v3554_v0 }
 0x1c8   : > { %2830 = vmatmul.mubr.msk.f32.vlgmr.msra.gmra.mrb[6].mxu0 %vm513_vm1, %v975_v21  ;;  %2843 = vmatpush3.msra.mxu1 %v1215_v23 }
 0x1c9   : > { %2838 = vmatpush3.msra.mxu0 %v1136_v22  ;;  %2839 = vmatprep.mubr.msk.f32.mxu0 %vm3555_vm0, %v3554_v0 }
 0x1ca   : > { %2845 = vmatmul.mubr.msk.f32.vlgmr.msra.gmra.mrb[8].mxu1 %vm513_vm1, %v1213_v24  ;;  %2847 = vmatprep.subr.mxu0 %v3554_v0  ;;  %v1372_v26 = vpop.permute.xlu0 %1371  ;;  %v1451_v27 = vpop.permute.xlu1 %1450 }
 0x1cb   : > { %2852 = vmatprep.subr.mxu1 %v3554_v0  ;;  %2854 = vmatprep.mubr.msk.f32.mxu1 %vm3555_vm0, %v3554_v0 }
 0x1cc   : > { %2840 = vmatmul.mubr.msk.f32.vlgmr.msra.gmra.mrb[8].mxu0 %vm513_vm1, %v1134_v25  ;;  %2853 = vmatpush3.msra.mxu1 %v1372_v26 }
 0x1cd   : > { %2848 = vmatpush3.msra.mxu0 %v4138_v4  ;;  %2849 = vmatprep.mubr.msk.f32.mxu0 %vm3555_vm0, %v3554_v0 }
 0x1ce   : > { %2855 = vmatmul.mubr.msk.f32.vlgmr.msra.gmra.mrb[10].mxu1 %vm513_vm1, %v1369_v28  ;;  %2857 = vmatprep.subr.mxu0 %v3554_v0  ;;  %v1530_v30 = vpop.permute.xlu0 %1529  ;;  %v1609_v31 = vpop.permute.xlu1 %1608 }
 0x1cf   : > { %2862 = vmatprep.subr.mxu1 %v3554_v0  ;;  %2864 = vmatprep.mubr.msk.f32.mxu1 %vm3555_vm0, %v3554_v0 }
 0x1d0   : > { %2850 = vmatmul.mubr.msk.f32.vlgmr.msra.gmra.mrb[10].mxu0 %vm513_vm1, %v1293_v29  ;;  %2863 = vmatpush3.msra.mxu1 %v1530_v30 }
 0x1d1   : > { %2858 = vmatpush3.msra.mxu0 %v1451_v27  ;;  %2859 = vmatprep.mubr.msk.f32.mxu0 %vm3555_vm0, %v3554_v0 }
 0x1d2   : > { %2865 = vmatmul.mubr.msk.f32.vlgmr.msra.gmra.mrb[12].mxu1 %vm513_vm1, %v1528_v32  ;;  %2867 = vmatprep.subr.mxu0 %v3554_v0  ;;  %v1766_v34 = vpop.permute.xlu0 %1765  ;;  %v1845_v36 = vpop.permute.xlu1 %1844 }
 0x1d3   : > { %2872 = vmatprep.subr.mxu1 %v3554_v0  ;;  %2874 = vmatprep.mubr.msk.f32.mxu1 %vm3555_vm0, %v3554_v0 }
 0x1d4   : > { %2860 = vmatmul.mubr.msk.f32.vlgmr.msra.gmra.mrb[12].mxu0 %vm513_vm1, %v1449_v33  ;;  %2873 = vmatpush3.msra.mxu1 %v4146_v5 }
 0x1d5   : > { %2868 = vmatpush3.msra.mxu0 %v1609_v31  ;;  %2869 = vmatprep.mubr.msk.f32.mxu0 %vm3555_vm0, %v3554_v0 }
 0x1d6   : > { %2877 = vmatprep.subr.mxu0 %v3554_v0  ;;  %2875 = vmatmul.mubr.msk.f32.vlgmr.msra.gmra.mrb[14].mxu1 %vm513_vm1, %v1687_v35  ;;  %v1924_v38 = vpop.permute.xlu0 %1923  ;;  %v2003_v41 = vpop.permute.xlu1 %2002 }
 0x1d7   : > { %2882 = vmatprep.subr.mxu1 %v3554_v0  ;;  %2884 = vmatprep.mubr.msk.f32.mxu1 %vm3555_vm0, %v3554_v0 }
 0x1d8   : > { %2870 = vmatmul.mubr.msk.f32.vlgmr.msra.gmra.mrb[14].mxu0 %vm513_vm1, %v1607_v37  ;;  %2883 = vmatpush3.msra.mxu1 %v1845_v36 }
 0x1d9   : > { %2878 = vmatpush3.msra.mxu0 %v1766_v34  ;;  %2879 = vmatprep.mubr.msk.f32.mxu0 %vm3555_vm0, %v3554_v0 }
 0x1da   : > { %2887 = vmatprep.subr.mxu0 %v3554_v0  ;;  %2885 = vmatmul.mubr.msk.f32.vlgmr.msra.gmra.mrb[16].mxu1 %vm513_vm1, %v1843_v39  ;;  %v2160_v43 = vpop.permute.xlu0 %2159  ;;  %v2239_v46 = vpop.permute.xlu1 %2238 }
 0x1db   : > { %2892 = vmatprep.subr.mxu1 %v3554_v0  ;;  %2894 = vmatprep.mubr.msk.f32.mxu1 %vm3555_vm0, %v3554_v0 }
 0x1dc   : > { %2880 = vmatmul.mubr.msk.f32.vlgmr.msra.gmra.mrb[16].mxu0 %vm513_vm1, %v1763_v40  ;;  %2893 = vmatpush3.msra.mxu1 %v2003_v41 }
 0x1dd   : > { %2888 = vmatpush3.msra.mxu0 %v1924_v38  ;;  %2889 = vmatprep.mubr.msk.f32.mxu0 %vm3555_vm0, %v3554_v0 }
 0x1de   : > { %2895 = vmatmul.mubr.msk.f32.vlgmr.msra.gmra.mrb[18].mxu1 %vm513_vm1, %v2001_v42  ;;  %2897 = vmatprep.subr.mxu0 %v3554_v0  ;;  %v2318_v48 = vpop.permute.xlu0 %2317  ;;  %v2397_v51 = vpop.permute.xlu1 %2396 }
 0x1df   : > { %2902 = vmatprep.subr.mxu1 %v3554_v0  ;;  %2904 = vmatprep.mubr.msk.f32.mxu1 %vm3555_vm0, %v3554_v0 }
 0x1e0   : > { %2890 = vmatmul.mubr.msk.f32.vlgmr.msra.gmra.mrb[18].mxu0 %vm513_vm1, %v1922_v44  ;;  %2903 = vmatpush3.msra.mxu1 %v2160_v43 }
 0x1e1   : > { %2898 = vmatpush3.msra.mxu0 %v4154_v6  ;;  %2899 = vmatprep.mubr.msk.f32.mxu0 %vm3555_vm0, %v3554_v0 }
 0x1e2   : > { %2905 = vmatmul.mubr.msk.f32.vlgmr.msra.gmra.mrb[20].mxu1 %vm513_vm1, %v2157_v45  ;;  %2907 = vmatprep.subr.mxu0 %v3554_v0 }
 0x1e3   : > { %2912 = vmatprep.subr.mxu1 %v3554_v0  ;;  %2914 = vmatprep.mubr.msk.f32.mxu1 %vm3555_vm0, %v3554_v0 }
 0x1e4   : > { %2900 = vmatmul.mubr.msk.f32.vlgmr.msra.gmra.mrb[20].mxu0 %vm513_vm1, %v2081_v47  ;;  %2913 = vmatpush3.msra.mxu1 %v2318_v48 }
 0x1e5   : > { %2908 = vmatpush3.msra.mxu0 %v2239_v46  ;;  %2909 = vmatprep.mubr.msk.f32.mxu0 %vm3555_vm0, %v3554_v0 }
 0x1e6   : > { %2915 = vmatmul.mubr.msk.f32.vlgmr.msra.gmra.mrb[22].mxu1 %vm513_vm1, %v2316_v49  ;;  %2917 = vmatprep.subr.mxu0 %v3554_v0 }
 0x1e8   : > { %2910 = vmatmul.mubr.msk.f32.vlgmr.msra.gmra.mrb[22].mxu0 %vm513_vm1, %v2237_v50 }
 0x1e9   : > { %2918 = vmatpush3.msra.mxu0 %v2397_v51  ;;  %2919 = vmatprep.mubr.msk.f32.mxu0 %vm3555_vm0, %v3554_v0 }
 0x1ec   : > { %2920 = vmatmul.mubr.msk.f32.vlgmr.msra.gmra.mrb[24].mxu0 %vm513_vm1, %v2395_v52 }
 0x21d   : > { %v656_v53 = vpop.f32.mrb[0].mxu1 }
 0x21e   : > { %v2806_v54 = vpop.f32.mrb[1].mxu1 }
 0x28f   : > { %v583_v55 = vpop.f32.mrb[0].mxu0 }
 0x290   : > { %v657_v56 = vadd.f32 %v656_v53, %v583_v55  ;;  %v2801_v57 = vpop.f32.mrb[1].mxu0  ;;  %v813_v58 = vpop.f32.mrb[2].mxu1 }
 0x291   : > { %v2816_v59 = vpop.f32.mrb[3].mxu1 }
 0x293   : > { %v734_v60 = vpop.f32.mrb[2].mxu0 }
 0x294   : > { %v738_v61 = vadd.f32 %v734_v60, %v657_v56  ;;  %v2811_v62 = vpop.f32.mrb[3].mxu0 }
 0x295   : > { %v969_v63 = vpop.f32.mrb[4].mxu1 }
 0x296   : > { %v817_v1 = vadd.f32 %v813_v58, %v738_v61  ;;  %v2826_v2 = vpop.f32.mrb[5].mxu1  ;;  %v2477_v61 = vpop.permute.xlu0 %2476 }
 0x297   : > { %v892_v3 = vpop.f32.mrb[4].mxu0 }
 0x298   : > { %v896_v4 = vadd.f32 %v892_v3, %v817_v1  ;;  %v2821_v5 = vpop.f32.mrb[5].mxu0 }
 0x299   : > { %v1128_v0 = vpop.f32.mrb[6].mxu1 }
 0x29a   : > { %v973_v6 = vadd.f32 %v969_v63, %v896_v4  ;;  %v2836_v7 = vpop.f32.mrb[7].mxu1 }
 0x29b   : > { %v1049_v8 = vpop.f32.mrb[6].mxu0 }
 0x29c   : > { %v1053_v9 = vadd.f32 %v1049_v8, %v973_v6  ;;  %v2831_v10 = vpop.f32.mrb[7].mxu0 }
 0x29d   : > { %v1286_v11 = vpop.f32.mrb[8].mxu1 }
 0x29e   : > { %v1132_v12 = vadd.f32 %v1128_v0, %v1053_v9  ;;  %v2846_v13 = vpop.f32.mrb[9].mxu1 }
 0x29f   : > { %v1207_v14 = vpop.f32.mrb[8].mxu0 }
 0x2a0   : > { %v1211_v15 = vadd.f32 %v1207_v14, %v1132_v12  ;;  %v2841_v16 = vpop.f32.mrb[9].mxu0 }
 0x2a1   : > { %v1443_v17 = vpop.f32.mrb[10].mxu1 }
 0x2a2   : > { %v1290_v18 = vadd.f32 %v1286_v11, %v1211_v15  ;;  %v2856_v19 = vpop.f32.mrb[11].mxu1 }
 0x2a3   : > { %v1363_v20 = vpop.f32.mrb[10].mxu0 }
 0x2a4   : > { %v1367_v21 = vadd.f32 %v1363_v20, %v1290_v18  ;;  %v2851_v22 = vpop.f32.mrb[11].mxu0 }
 0x2a5   : > { %v1601_v23 = vpop.f32.mrb[12].mxu1 }
 0x2a6   : > { %v1447_v24 = vadd.f32 %v1443_v17, %v1367_v21  ;;  %v2866_v25 = vpop.f32.mrb[13].mxu1 }
 0x2a7   : > { %v1522_v26 = vpop.f32.mrb[12].mxu0 }
 0x2a8   : > { %v1526_v27 = vadd.f32 %v1522_v26, %v1447_v24  ;;  %v2861_v28 = vpop.f32.mrb[13].mxu0 }
 0x2a9   : > { %v1757_v29 = vpop.f32.mrb[14].mxu1 }
 0x2aa   : > { %v1605_v30 = vadd.f32 %v1601_v23, %v1526_v27  ;;  %v2876_v31 = vpop.f32.mrb[15].mxu1 }
 0x2ab   : > { %v1680_v32 = vpop.f32.mrb[14].mxu0 }
 0x2ac   : > { %v1684_v33 = vadd.f32 %v1680_v32, %v1605_v30  ;;  %v2871_v34 = vpop.f32.mrb[15].mxu0 }
 0x2ad   : > { %v1916_v35 = vpop.f32.mrb[16].mxu1 }
 0x2ae   : > { %v1761_v36 = vadd.f32 %v1757_v29, %v1684_v33  ;;  %v2886_v37 = vpop.f32.mrb[17].mxu1 }
 0x2af   : > { %v1837_v38 = vpop.f32.mrb[16].mxu0 }
 0x2b0   : > { %v1841_v39 = vadd.f32 %v1837_v38, %v1761_v36  ;;  %v2881_v40 = vpop.f32.mrb[17].mxu0 }
 0x2b1   : > { %v2074_v41 = vpop.f32.mrb[18].mxu1 }
 0x2b2   : > { %v1920_v42 = vadd.f32 %v1916_v35, %v1841_v39  ;;  %v2896_v43 = vpop.f32.mrb[19].mxu1 }
 0x2b3   : > { %v1995_v44 = vpop.f32.mrb[18].mxu0 }
 0x2b4   : > { %v1999_v45 = vadd.f32 %v1995_v44, %v1920_v42  ;;  %v2891_v46 = vpop.f32.mrb[19].mxu0 }
 0x2b5   : > { %v2231_v47 = vpop.f32.mrb[20].mxu1 }
 0x2b6   : > { %v2078_v48 = vadd.f32 %v2074_v41, %v1999_v45  ;;  %v2906_v49 = vpop.f32.mrb[21].mxu1 }
 0x2b7   : > { %v2151_v50 = vpop.f32.mrb[20].mxu0 }
 0x2b8   : > { %v2155_v51 = vadd.f32 %v2151_v50, %v2078_v48  ;;  %v2901_v52 = vpop.f32.mrb[21].mxu0 }
 0x2b9   : > { %v2389_v53 = vpop.f32.mrb[22].mxu1 }
 0x2ba   : > { %v2235_v54 = vadd.f32 %v2231_v47, %v2155_v51  ;;  %v2916_v55 = vpop.f32.mrb[23].mxu1 }
 0x2bb   : > { %v2310_v56 = vpop.f32.mrb[22].mxu0 }
 0x2bc   : > { %v2314_v57 = vadd.f32 %v2310_v56, %v2235_v54  ;;  %v2911_v58 = vpop.f32.mrb[23].mxu0 }
 0x2be   : > { %v2393_v59 = vadd.f32 %v2389_v53, %v2314_v57 }
 0x2bf   : > { %v2468_v60 = vpop.f32.mrb[24].mxu0 }
 0x2c0   : > { %v2472_v62 = vadd.f32 %v2468_v60, %v2393_v59  ;;  %v2921_v63 = vpop.f32.mrb[25].mxu0 }
 0x2c2   : > { %v2479_v1 = vadd.f32 %v2477_v61, %v2472_v62 }
 0x2c4   : > { %vm2480_vm2 = vcmp.ge.f32.partialorder %v2479_v1, 0.0  ;;  %v2481_v2 = vmul.f32 0.01, %v2479_v1 }
 0x2c6   : > { %v2482_v3 = vsel %vm2480_vm2, %v2479_v1, %v2481_v2 }
 0x2c7   : > { %2483 = vst.msk [vmem:[%s500_s5] sm:$0xff] %vm513_vm1, %v2482_v3 }
 0x2c8   : > { %3354 = shalt.err (!%p3351_p4)
}
 0x2c9   : > { %s3355_s6 = scalar_lea.hbm %s4258_s22, 128  ;;  %s3359_s19 = scalar_lea.hbm %s4467_s21, 2048 }
 0x2ca   : > { %p3356_p12 = scmp.ne.s32.totalorder %s4258_s22, %s3355_s6  ;;  %p3360_p10 = scmp.lt.u32.totalorder %s4258_s22, %s4467_s21 }
 0x2cb   : > { %p3361_p0 = scmp.lt.u32.totalorder %s3359_s19, %s3355_s6  ;;  %p3363_p9 = scmp.lt.u32.totalorder %s3355_s6, %s4258_s22 }
 0x2cc   : > { %p3357_p11 = pnand %p3356_p12, %p4468_p6 }
 0x2cd   : > { %p3362_p5 = por %p3361_p0, %p3360_p10 }
 0x2ce   : > { %p3358_p1 = pneg %p3357_p11 }
 0x2cf   : > { %p3364_p8 = por %p3363_p9, %p3362_p5 }
 0x2d1   : > { %p3365_p13 = pnand %p3364_p8, %p3358_p1 }
 0x2d3   : > { %3368 = shalt.err (!%p3365_p13)
}
 0x2d4   : > { %2940 = dma.vmem_to_hbm [thread:$0]  (%p4468_p6), %s4260_s4, 128, %s4258_s22, %s2485_s1  }
 0x2d5 PF: > { %s4469_s24 = sld [smem:[#allocation25_spill]]  ;;  %s4470_s2 = sld [smem:[#allocation33_spill]] }
 0x2d6   : > { %p2974_p2 = scmp.ge.s32.totalorder %s3543_s18, 2 }
 0x2db   : > { %s2512_s5 = sand.u32 1, %s4469_s24   ;;  %p4471_p3 = scmp.ne.s32.totalorder %s4470_s2, 0 }
 0x2dc   : > { %s2513_s12 = scalar_lea.sflag [#allocation4], %s2512_s5 }
 0x2dd   : > { %p2966_p7 = pnand %p2974_p2, %p4471_p3 }
 0x2df   : > { %3470 = dma.done.wait (!%p2966_p7), %s2513_s12, 128  }
 0x2e0   : > { %3472 = vsyncadd (!%p2966_p7), %s2513_s12, 4294967168  ;;  %s22_s18 = sadd.s32 1, %s3543_s18   ;;  %s4473_s24 = sld [smem:[#allocation22_spill]] }
 0x2e1   : > { %p4291_p4 = scmp.ge.s32.totalorder %s22_s18, 18   ;;  %s4474_s25 = sld [smem:[#allocation23_spill]] }
 0x2e2   : > { %s4475_s4 = sld [smem:[#allocation35_spill]]  ;;  %s4476_s22 = sld [smem:[#allocation24_spill]] }
 0x2e3   : > { %s4477_s12 = sld [smem:[#allocation34_spill]]  ;;  %s4478_s13 = sld [smem:[#allocation26_spill]] }
 0x2e4   : > { %s4479_s14 = sld [smem:[#allocation27_spill]]  ;;  %s4480_s1 = sld [smem:[#allocation32_spill]] }
 0x2e5   : > { %s4481_s6 = smov %s3744_s26  ;;  %s4482_s26 = smov %s4496_s23 }
 0x2e6   : > { %s4484_s27 = smov %s3491_s28  ;;  %s4485_s28 = smov %s3495_s29 }
 0x2e7   : > { %s4486_s29 = smov %s3949_s7  ;;  %s4487_s30 = smov %s3503_s8 }
 0x2e8   : > { %s4488_s8 = smov %s3507_s9  ;;  %s4489_s9 = smov %s4475_s4 }
 0x2e9   : > { %s4490_s10 = smov %s3515_s11  ;;  %s4491_s11 = smov %s4476_s22 }
 0x2ea   : > { %s4492_s15 = smov %s4480_s1  ;;  %s4493_s16 = smov %s3539_s17 }
 0x2eb   : > { %s4494_s17 = smov %s4481_s6  ;;  %21 = sbr.rel (!%p4291_p4) target bundleno = 21 (0x15), region = 168 }
 0x2f2   :  { %2518 = vsyncpa [#allocation3], 1 }
 0x2f3   :  { %2520 = vsyncpa [#allocation3 + $0x1], 1 }
 0x2f4   :  { %2521 = vsyncpa [#allocation6], 1 }
 0x2f5   :  { %2522 = vsyncpa [#allocation4], 1 }
 0x2f6   :  { %2524 = vsyncpa [#allocation4 + $0x1], 1 }

// kernel: _lambda_.71
= control target key start
LH: loop header
LB: loop body
LE: loop exit
PB: predicated region body
PF: predicated region fallthrough
CT: control target
= control target key end

     0   :  { %s299_s0 = inlined_call_operand.hbm [shape: f32[1,8], index: 0, kind: input, shape index: {}]   ;;  %s300_s1 = inlined_call_operand.hbm [shape: f32[8,128], index: 1, kind: input, shape index: {}]   ;;  %s301_s2 = inlined_call_operand.<no memory space> [shape: f32[1,1], index: 2, kind: input, shape index: {}]   ;;  %s302_s3 = inlined_call_operand.hbm [shape: f32[1,128], index: 3, kind: output, shape index: {}]  }
   0x1   :  { %v8_v0 = vstv %s301_s2 }
   0x2   :  { %9 = vst [vmem:[#allocation2] sm:$0x1] %v8_v0 }
   0x3   :  { %10 = vsyncpa [#allocation4], 0 }
   0x4   :  { %11 = vsyncpa [#allocation7], 0 }
   0x5   :  { %12 = vsyncpa [#allocation5], 0  ;;  %s234_s14 = smov [#allocation3]   ;;  %s235_s16 = smov [#allocation6]  }
   0x6   :  { %s19_s15 = sshll.u32 %s234_s14, 4  ;;  %s29_s17 = sshll.u32 %s235_s16, 4  ;;  %s20_s15 = int_to_ptr.vmem [resolvable:$true] %s19_s15  ;;  %s30_s17 = int_to_ptr.vmem [resolvable:$true] %s29_s17 }
   0x7   :  { %s162_s20 = scalar_lea.hbm %s299_s0, 16 }
   0x8   :  { %p163_p0 = scmp.ne.s32.totalorder %s299_s0, %s162_s20  ;;  %p166_p1 = scmp.lt.u32.totalorder %s162_s20, %s299_s0 }
   0xa   :  { %p168_p2 = pnand %p166_p1, %p163_p0 }
   0xc   :  { %171 = shalt.err (!%p168_p2)
}
   0xd   :  { %s172_s24 = scalar_lea.vmem %s20_s15, 16  ;;  %s176_s25 = scalar_lea.vmem %s20_s15, 32 }
   0xe   :  { %p173_p3 = scmp.ne.s32.totalorder %s20_s15, %s172_s24  ;;  %p177_p4 = scmp.lt.s32.totalorder %s20_s15, %s20_s15 }
   0xf   :  { %p178_p5 = scmp.lt.s32.totalorder %s176_s25, %s172_s24 }
  0x11   :  { %p179_p6 = por %p178_p5, %p177_p4 }
  0x13   :  { %p180_p7 = pnand %p179_p6, %p173_p3 }
  0x15   :  { %183 = shalt.err (!%p180_p7)
}
  0x16   :  { %22 = dma.hbm_to_vmem [thread:$0]  %s299_s0, 16, %s20_s15, [#allocation4]  }
  0x17   :  { %s184_s30 = scalar_lea.hbm %s300_s1, 128 }
  0x18   :  { %p185_p8 = scmp.ne.s32.totalorder %s300_s1, %s184_s30  ;;  %p188_p9 = scmp.lt.u32.totalorder %s184_s30, %s300_s1 }
  0x1a   :  { %p190_p10 = pnand %p188_p9, %p185_p8 }
  0x1c   :  { %193 = shalt.err (!%p190_p10)
}
  0x1d   :  { %s194_s8 = scalar_lea.vmem %s30_s17, 128  ;;  %p199_p12 = scmp.lt.s32.totalorder %s30_s17, %s30_s17 }
  0x1e   :  { %p195_p11 = scmp.ne.s32.totalorder %s30_s17, %s194_s8  ;;  %p200_p13 = scmp.lt.s32.totalorder %s194_s8, %s194_s8 }
  0x20   :  { %p201_p0 = por %p200_p13, %p199_p12 }
  0x22   :  { %p202_p1 = pnand %p201_p0, %p195_p11 }
  0x24   :  { %205 = shalt.err (!%p202_p1)
}
  0x25   :  { %32 = dma.hbm_to_vmem [thread:$0]  %s300_s1, 128, %s30_s17, [#allocation7]  }
  0x26   :  { %228 = dma.done.wait [#allocation4], 16  }
  0x27   :  { %229 = vsyncadd [#allocation4], 4294967280 }
  0x28   :  { %230 = dma.done.wait [#allocation7], 128  }
  0x29   :  { %231 = vsyncadd [#allocation7], 4294967168  ;;  %v236_v1 = vmov 0.0   ;;  %vm237_vm0 = vmmov 0   ;;  %v238_v2 = vmov 0   ;;  %vm53_vm1 = vcmask 64512  }
  0x2a   :  { %150 = vmatprep.subr.mxu0 %v236_v1  ;;  %152 = vmatprep.mubr.msk.f32.mxu0 %vm237_vm0, %v236_v1  ;;  %v42_v3 = vld [vmem:[#allocation6] sm:$0xff]  ;;  %v41_v4 = vld [vmem:[#allocation3] sm:$0x1]  ;;  %v43_v5 = vld [vmem:[#allocation2] sm:$0x1]  ;;  %v49_v6 = vlaneseq  ;;  %s239_s1 = smov [#allocation8]  }
  0x2b   :  { %161 = vset.pattern.permute.xlu0 %v238_v2  ;;  %151 = vmatpush3.msra.mxu0 %v42_v3  ;;  %s137_s10 = sshll.u32 %s239_s1, 4  ;;  %s138_s10 = int_to_ptr.vmem [resolvable:$true] %s137_s10 }
  0x2c   :  { %46 = vperm.xlu0 %161, %v43_v5   ;;  %153 = vmatmul.mubr.msk.f32.vlgmr.msra.gmra.mrb[0].mxu0 %vm53_vm1, %v41_v4  ;;  %v50_v7 = vshrl.u32 %v49_v6, 7  ;;  %s206_s11 = scalar_lea.vmem %s138_s10, 16  ;;  %s210_s12 = scalar_lea.vmem %s138_s10, 32 }
  0x2d   :  { %p207_p2 = scmp.ne.s32.totalorder %s138_s10, %s206_s11  ;;  %p211_p3 = scmp.lt.s32.totalorder %s138_s10, %s138_s10 }
  0x2e   :  { %v51_v8 = vsub.s32 0, %v50_v7  ;;  %p212_p4 = scmp.lt.s32.totalorder %s210_s12, %s206_s11 }
  0x30   :  { %p213_p5 = por %p212_p4, %p211_p3 }
  0x32   :  { %p214_p6 = pnand %p213_p5, %p207_p2 }
  0xab   :  { %v47_v9 = vpop.permute.xlu0 %46 }
  0xac   :  { %v52_v10 = vrot.slane %v47_v9, %v51_v8 }
  0xff   :  { %v123_v11 = vpop.f32.mrb[0].mxu0 }
 0x100   :  { %v124_v12 = vadd.f32 %v123_v11, %v52_v10  ;;  %v154_v13 = vpop.f32.mrb[1].mxu0 }
 0x102   :  { %v128_v14 = vmul.f32 0.01, %v124_v12  ;;  %vm127_vm2 = vcmp.ge.f32.partialorder %v124_v12, 0.0 }
 0x104   :  { %v129_v15 = vsel %vm127_vm2, %v124_v12, %v128_v14 }
 0x105   :  { %130 = vst [vmem:[#allocation8] sm:$0x1] %v129_v15 }
 0x106   :  { %217 = shalt.err (!%p214_p6)
}
 0x107   :  { %s218_s15 = scalar_lea.hbm %s302_s3, 16 }
 0x108   :  { %p219_p7 = scmp.ne.s32.totalorder %s302_s3, %s218_s15  ;;  %p222_p8 = scmp.lt.u32.totalorder %s218_s15, %s302_s3 }
 0x10a   :  { %p224_p9 = pnand %p222_p8, %p219_p7 }
 0x10c   :  { %227 = shalt.err (!%p224_p9)
}
 0x10d   :  { %140 = dma.vmem_to_hbm [thread:$0]  %s138_s10, 16, %s302_s3, [#allocation5]  }
 0x10e   :  { %232 = dma.done.wait [#allocation5], 16  }
 0x10f   :  { %233 = vsyncadd [#allocation5], 4294967280 }
 0x110   :  { %144 = vsyncpa [#allocation4], 1 }
 0x111   :  { %145 = vsyncpa [#allocation7], 1 }
 0x112   :  { %146 = vsyncpa [#allocation5], 1 }

// kernel: _lambda_.43
= control target key start
LH: loop header
LB: loop body
LE: loop exit
PB: predicated region body
PF: predicated region fallthrough
CT: control target
= control target key end

     0   :  { %8 = vsyncpa [#allocation3], 0  ;;  %s3235_s0 = inlined_call_operand.hbm [shape: f32[25,8,8], index: 0, kind: input, shape index: {}]   ;;  %s3236_s1 = inlined_call_operand.hbm [shape: f32[8,1], index: 1, kind: input, shape index: {}]   ;;  %s3237_s2 = inlined_call_operand.hbm [shape: f32[1,16,8,32], index: 2, kind: input, shape index: {}]   ;;  %s3238_s3 = inlined_call_operand.hbm [shape: f32[1,16,8,8], index: 3, kind: output, shape index: {}]  }
   0x1   :  { %9 = vsyncpa [#allocation6], 0 }
   0x2   :  { %10 = vsyncpa [#allocation4], 0 }
   0x3   :  { %12 = vsyncpa [#allocation4 + $0x1], 0  ;;  %s2890_s12 = smov 0   ;;  %s2892_s13 = smov 0  }
   0x4   :  { %s2894_s14 = smov 0   ;;  %s2896_s15 = smov 0  }
   0x5   :  { %s2898_s16 = smov 0   ;;  %s2900_s17 = smov 0  }
   0x6 LB: > { %s2921_s18 = sadd.s32 4294967295, %s2835_s17   ;;  %s2330_s19 = sadd.s32 4294967294, %s2835_s17   ;;  %s2835_s17 = sphi %s2900_s17, %s18_s17   ;;  %s2831_s16 = sphi %s2898_s16, %s3260_s16   ;;  %s2827_s15 = sphi %s2896_s15, %s3259_s15   ;;  %s2823_s14 = sphi %s2894_s14, %s3258_s14   ;;  %s2819_s13 = sphi %s2892_s13, %s3257_s13   ;;  %s2815_s12 = sphi %s2890_s12, %s3256_s12  }
   0x7   : > { %p94_p0 = scmp.ne.s32.totalorder %s2819_s13, %s2815_s12  ;;  %p3239_p1 = scmp.eq.s32.totalorder %s2921_s18, 0 }
   0x8   : > { %p126_p3 = scmp.eq.s32.totalorder %s2330_s19, 15  ;;  %p2331_p5 = scmp.ge.s32.totalorder %s2835_s17, 1 }
   0x9   : > { %p2930_p4 = por %p3239_p1, %p94_p0  ;;  %p133_p7 = scmp.lt.s32.totalorder %s2835_s17, 17 }
   0xa   : > { %p2935_p6 = por %p126_p3, %p94_p0  ;;  %s2837_s23 = smov [#allocation2]  }
   0xb   : > { %s3242_s20 = scalar_select %p2930_p4, 1, 0 }
   0xc   : > { %s3243_s21 = scalar_select %p2935_p6, 1, 0 }
   0xd   : > { %p2940_p8 = pnand %p2331_p5, %p133_p7  ;;  %s145_s24 = sshll.u32 %s2837_s23, 4  ;;  %s146_s24 = int_to_ptr.vmem [resolvable:$true] %s145_s24 }
   0xe   : > { %s2838_s26 = smov [#allocation5]   ;;  %s2659_s30 = scalar_lea.hbm %s3235_s0, 3200 }
   0xf   : > { %s3244_s22 = scalar_select %p2940_p8, 1, 0 }
  0x10   : > { %p2558_p9 = pneg %p2940_p8  ;;  %s159_s27 = sshll.u32 %s2838_s26, 4  ;;  %s2952_s27 = int_to_ptr.vmem [resolvable:$true] %s159_s27 }
  0x11   : > { %p2660_p11 = scmp.ne.s32.totalorder %s3235_s0, %s2659_s30  ;;  %p2666_p3 = scmp.lt.u32.totalorder %s2659_s30, %s3235_s0 }
  0x12   : > { %p2948_p10 = pnand %p2558_p9, %p3239_p1 }
  0x14   : > { %p2661_p12 = pneg %p2948_p10 }
  0x16   : > { %p2662_p13 = pnand %p2661_p12, %p2660_p11 }
  0x18   : > { %p2663_p0 = pneg %p2662_p13 }
  0x1a   : > { %p2668_p5 = pnand %p2666_p3, %p2663_p0 }
  0x1c   : > { %2671 = shalt.err (!%p2668_p5)
}
  0x1d   : > { %s2672_s8 = scalar_lea.vmem %s146_s24, 3200  ;;  %p2680_p2 = scmp.lt.s32.totalorder %s146_s24, %s146_s24 }
  0x1e   : > { %p2673_p7 = scmp.ne.s32.totalorder %s146_s24, %s2672_s8  ;;  %p2681_p6 = scmp.lt.s32.totalorder %s2672_s8, %s2672_s8 }
  0x20   : > { %p2675_p9 = pnand %p2673_p7, %p2661_p12  ;;  %p2682_p4 = por %p2681_p6, %p2680_p2 }
  0x22   : > { %p2676_p1 = pneg %p2675_p9 }
  0x24   : > { %p2683_p8 = pnand %p2682_p4, %p2676_p1 }
  0x26   : > { %2686 = shalt.err (!%p2683_p8)
}
  0x27   : > { %s2839_s9 = smov 128   ;;  %s2840_s10 = smov 8  }
  0x28   : > { %2561 = dma.hbm_to_vmem [thread:$0]  (!%p2948_p10), %s3235_s0, 3200, %s146_s24, [#allocation3], %s2839_s9, %s2839_s9, %s2840_s10  }
  0x29   : > { %s2687_s28 = scalar_lea.hbm %s3236_s1, 128 }
  0x2a   : > { %p2688_p11 = scmp.ne.s32.totalorder %s3236_s1, %s2687_s28  ;;  %p2694_p4 = scmp.lt.u32.totalorder %s2687_s28, %s3236_s1 }
  0x2c   : > { %p2690_p1 = pnand %p2688_p11, %p2661_p12 }
  0x2e   : > { %p2691_p2 = pneg %p2690_p1 }
  0x30   : > { %p2696_p6 = pnand %p2694_p4, %p2691_p2 }
  0x32   : > { %2699 = shalt.err (!%p2696_p6)
}
  0x33   : > { %s2700_s24 = scalar_lea.vmem %s2952_s27, 128  ;;  %p2708_p3 = scmp.lt.s32.totalorder %s2952_s27, %s2952_s27 }
  0x34   : > { %p2701_p8 = scmp.ne.s32.totalorder %s2952_s27, %s2700_s24  ;;  %p2709_p5 = scmp.lt.s32.totalorder %s2700_s24, %s2700_s24 }
  0x36   : > { %p2703_p13 = pnand %p2701_p8, %p2661_p12  ;;  %p2710_p7 = por %p2709_p5, %p2708_p3 }
  0x38   : > { %p2704_p0 = pneg %p2703_p13 }
  0x3a   : > { %p2711_p9 = pnand %p2710_p7, %p2704_p0 }
  0x3c   : > { %2714 = shalt.err (!%p2711_p9)
}
  0x3d   : > { %2564 = dma.hbm_to_vmem [thread:$0]  (!%p2948_p10), %s3236_s1, 128, %s2952_s27, [#allocation6]  }
  0x3e   : > { %s27_s8 = sadd.s32 1, %s2831_s16  ;;  %s81_s9 = sadd.s32 1, %s2823_s14 }
  0x3f   : > { %p28_p12 = scmp.ge.s32.totalorder %s27_s8, 16  ;;  %p88_p11 = scmp.ne.s32.totalorder %s2823_s14, %s2819_s13 }
  0x40   : > { %p89_p1 = scmp.eq.s32.totalorder %s2835_s17, 0  ;;  %p2575_p2 = scmp.lt.s32.totalorder %s2835_s17, 16 }
  0x41   : > { %s3262_s8 = smov (%p28_p12, %s27_s8), 0  ;;  %p3246_p6 = scmp.eq.s32.totalorder %s2921_s18, 15 }
  0x42   : > { %p90_p4 = por %p89_p1, %p88_p11  ;;  %s77_s10 = ssub.s32 %s2831_s16, %s3262_s8 }
  0x43   : > { %p3011_p8 = por %p3246_p6, %p88_p11  ;;  %s170_s11 = sand.u32 1, %s2835_s17  }
  0x44   : > { %p79_p13 = scmp.eq.s32.totalorder %s77_s10, 0  ;;  %s172_s19 = sand.u32 1, %s2823_s14  }
  0x45   : > { %s2336_s27 = sshll.u32 %s2831_s16, 7  ;;  %s2335_s26 = sshll.u32 %s172_s19, 3 }
  0x46   : > { %s3021_s23 = scalar_select %p79_p13, %s2823_s14, %s81_s9  }
  0x47   : > { %s3026_s30 = scalar_lea.hbm %s3237_s2, %s2336_s27  ;;  %p3028_p10 = pnand %p2575_p2, %p90_p4 }
  0x48   : > { %s174_s5 = scalar_lea.vmem [#allocation7], %s2335_s26  ;;  %s171_s6 = scalar_lea.sflag [#allocation3], %s170_s11 }
  0x49   : > { %s183_s24 = sshll.u32 %s174_s5, 4  ;;  %s2715_s7 = scalar_lea.hbm %s3026_s30, 128  ;;  %s3032_s24 = int_to_ptr.vmem [resolvable:$true] %s183_s24 }
  0x4a   : > { %p2716_p0 = scmp.ne.s32.totalorder %s3026_s30, %s2715_s7  ;;  %p2717_p3 = pneg %p3028_p10 }
  0x4b   : > { %s2720_s19 = scalar_lea.hbm %s3237_s2, 2048  ;;  %p2721_p9 = scmp.lt.u32.totalorder %s3026_s30, %s3237_s2 }
  0x4c   : > { %p2718_p5 = pnand %p2717_p3, %p2716_p0  ;;  %p2722_p12 = scmp.lt.u32.totalorder %s2720_s19, %s2715_s7 }
  0x4d   : > { %p2724_p1 = scmp.lt.u32.totalorder %s2715_s7, %s3026_s30 }
  0x4e   : > { %p2719_p7 = pneg %p2718_p5  ;;  %p2723_p11 = por %p2722_p12, %p2721_p9 }
  0x50   : > { %p2725_p2 = por %p2724_p1, %p2723_p11 }
  0x52   : > { %p2726_p4 = pnand %p2725_p2, %p2719_p7 }
  0x54   : > { %2729 = shalt.err (!%p2726_p4)
}
  0x55   : > { %s2730_s11 = scalar_lea.vmem %s3032_s24, 128  ;;  %s2841_s26 = smov [#allocation7]  }
  0x56   : > { %p2731_p6 = scmp.ne.s32.totalorder %s3032_s24, %s2730_s11  ;;  %s2735_s29 = sshll.u32 %s2841_s26, 4  ;;  %s2736_s29 = int_to_ptr.vmem [resolvable:$false] %s2735_s29 }
  0x57   : > { %s2737_s5 = scalar_lea.vmem %s2736_s29, 256  ;;  %p2738_p5 = scmp.lt.s32.totalorder %s3032_s24, %s2736_s29 }
  0x58   : > { %p2733_p13 = pnand %p2731_p6, %p2717_p3  ;;  %p2739_p9 = scmp.lt.s32.totalorder %s2737_s5, %s2730_s11 }
  0x5a   : > { %p2734_p0 = pneg %p2733_p13  ;;  %p2740_p12 = por %p2739_p9, %p2738_p5 }
  0x5c   : > { %p2741_p11 = pnand %p2740_p12, %p2734_p0 }
  0x5e   : > { %2744 = shalt.err (!%p2741_p11)
}
  0x5f   : > { %2568 = dma.hbm_to_vmem [thread:$0]  (!%p3028_p10), %s3026_s30, 128, %s3032_s24, %s171_s6  }
  0x60   : > { %p3249_p7 = scmp.ne.s32.totalorder %s3244_s22, 0 }
  0x61   : > { %p3250_p3 = scmp.eq.s32.totalorder (!%p3249_p7), %s2921_s18, 0 }
  0x62   : > { %192 = sbr.rel (%p3249_p7) target bundleno = 515 (0x203), region = 32 }
  0x69   : > { %2798 = dma.done.wait (%p3250_p3), [#allocation3], 3200   ;;  %p3251_p1 = pmov %p3250_p3 }
  0x6b   : > { %2800 = vsyncadd (%p3251_p1), [#allocation3], 4294964096  ;;  %p3252_p2 = pmov %p3251_p1 }
  0x6c   : > { %p3253_p4 = pmov %p3251_p1 }
  0x6d   : > { %2802 = dma.done.wait (%p3252_p2), [#allocation6], 128  }
  0x6e   : > { %2804 = vsyncadd (%p3253_p4), [#allocation6], 4294967168  ;;  %s202_s30 = sand.u32 1, %s2921_s18   ;;  %s204_s4 = sand.u32 1, %s2819_s13  }
  0x6f   : > { %s3073_s22 = sshll.u32 %s204_s4, 3  ;;  %s203_s24 = scalar_lea.sflag [#allocation3], %s202_s30 }
  0x70   : > { %s206_s6 = scalar_lea.vmem [#allocation7], %s3073_s22  ;;  %p3254_p10 = scmp.ne.s32.totalorder %s3242_s20, 0 }
  0x72   : > { %2806 = dma.done.wait (%p3254_p10), %s203_s24, 128  }
  0x73   : > { %2808 = vsyncadd (%p3254_p10), %s203_s24, 4294967168  ;;  %v2842_v0 = vmov 0.0   ;;  %vm2843_vm0 = vmmov 0   ;;  %v229_v1 = vld [vmem:[%s206_s6] sm:$0xff]  ;;  %vm237_vm1 = vcmask 64512   ;;  %v230_v2 = vld [vmem:[#allocation2] sm:$0xff] }
  0x74   : > { %2421 = vmatprep.subr.mxu0 %v2842_v0  ;;  %2423 = vmatprep.mubr.msk.f32.mxu0 %vm2843_vm0, %v2842_v0  ;;  %s2844_s18 = smov 127   ;;  %s2845_s7 = smov 125   ;;  %v2864_v3 = vmov 0   ;;  %v2201_v4 = vld [vmem:[#allocation5] sm:$0xff]  ;;  %v464_v8 = vld [vmem:[#allocation2 + $0x18] sm:$0xff]  ;;  %v385_v9 = vld [vmem:[#allocation2 + $0x10] sm:$0xff] }
  0x75   : > { %2426 = vmatprep.subr.mxu1 %v2842_v0  ;;  %2428 = vmatprep.mubr.msk.f32.mxu1 %vm2843_vm0, %v2842_v0  ;;  %s2846_s20 = smov 126   ;;  %s2847_s9 = smov 124   ;;  %v232_v5 = vld [vmem:[#allocation2 + $0x8] sm:$0xff]  ;;  %v543_v12 = vld [vmem:[#allocation2 + $0x20] sm:$0xff]  ;;  %v701_v16 = vld [vmem:[#allocation2 + $0x30] sm:$0xff] }
  0x76   : > { %234 = vrot.lane.b32.xlu0 %v229_v1, %s2844_s18  ;;  %465 = vrot.lane.b32.xlu1 %v229_v1, %s2845_s7  ;;  %s2848_s10 = smov 123   ;;  %s2849_s19 = smov 122   ;;  %v622_v13 = vld [vmem:[#allocation2 + $0x28] sm:$0xff]  ;;  %v780_v17 = vld [vmem:[#allocation2 + $0x38] sm:$0xff]  ;;  %v859_v20 = vld [vmem:[#allocation2 + $0x40] sm:$0xff] }
  0x77   : > { %2427 = vmatpush3.msra.mxu1 %v229_v1  ;;  %s2850_s27 = smov 121   ;;  %s2851_s28 = smov 120   ;;  %2658 = vset.pattern.permute.xlu0 %v2864_v3  ;;  %v938_v21 = vld [vmem:[#allocation2 + $0x48] sm:$0xff]  ;;  %v1017_v24 = vld [vmem:[#allocation2 + $0x50] sm:$0xff]  ;;  %v1096_v25 = vld [vmem:[#allocation2 + $0x58] sm:$0xff] }
  0x78   : > { %2429 = vmatmul.mubr.msk.f32.vlgmr.msra.gmra.mrb[0].mxu1 %vm237_vm1, %v230_v2  ;;  %2436 = vmatprep.subr.mxu1 %v2842_v0  ;;  %s2852_s11 = smov 119   ;;  %s2853_s26 = smov 118   ;;  %v1175_v28 = vld [vmem:[#allocation2 + $0x60] sm:$0xff]  ;;  %v1254_v29 = vld [vmem:[#allocation2 + $0x68] sm:$0xff]  ;;  %v1333_v32 = vld [vmem:[#allocation2 + $0x70] sm:$0xff] }
  0x79   : > { %2438 = vmatprep.mubr.msk.f32.mxu1 %vm2843_vm0, %v2842_v0  ;;  %s2854_s29 = smov 117   ;;  %s2855_s5 = smov 116   ;;  %v1412_v33 = vld [vmem:[#allocation2 + $0x78] sm:$0xff]  ;;  %v1491_v36 = vld [vmem:[#allocation2 + $0x80] sm:$0xff]  ;;  %v1570_v37 = vld [vmem:[#allocation2 + $0x88] sm:$0xff] }
  0x7a   : > { %386 = vrot.lane.b32.xlu0 %v229_v1, %s2846_s20  ;;  %544 = vrot.lane.b32.xlu1 %v229_v1, %s2847_s9  ;;  %s2856_s30 = smov 115   ;;  %s2857_s24 = smov 114   ;;  %v1649_v40 = vld [vmem:[#allocation2 + $0x90] sm:$0xff]  ;;  %v1728_v41 = vld [vmem:[#allocation2 + $0x98] sm:$0xff]  ;;  %v1807_v44 = vld [vmem:[#allocation2 + $0xa0] sm:$0xff] }
  0x7b   : > { %s2858_s6 = smov 113   ;;  %s2859_s18 = smov 112   ;;  %v1886_v45 = vld [vmem:[#allocation2 + $0xa8] sm:$0xff]  ;;  %v1965_v48 = vld [vmem:[#allocation2 + $0xb0] sm:$0xff]  ;;  %v2044_v49 = vld [vmem:[#allocation2 + $0xb8] sm:$0xff] }
  0x7c   : > { %s2860_s7 = smov 111   ;;  %s2861_s20 = smov 110   ;;  %v2123_v52 = vld [vmem:[#allocation2 + $0xc0] sm:$0xff] }
  0x7d   : > { %s2862_s9 = smov 109  }
  0x7e   : > { %623 = vrot.lane.b32.xlu0 %v229_v1, %s2848_s10  ;;  %702 = vrot.lane.b32.xlu1 %v229_v1, %s2849_s19  ;;  %s2863_s10 = smov 108   ;;  %s2865_s19 = smov 107  }
  0x82   : > { %781 = vrot.lane.b32.xlu0 %v229_v1, %s2850_s27  ;;  %860 = vrot.lane.b32.xlu1 %v229_v1, %s2851_s28  ;;  %s2866_s27 = smov 106   ;;  %s2867_s28 = smov 105  }
  0x86   : > { %939 = vrot.lane.b32.xlu0 %v229_v1, %s2852_s11  ;;  %1018 = vrot.lane.b32.xlu1 %v229_v1, %s2853_s26  ;;  %s2868_s11 = smov 104   ;;  %s2368_s26 = sshll.u32 %s2827_s15, 7 }
  0x8a   : > { %1097 = vrot.lane.b32.xlu0 %v229_v1, %s2854_s29  ;;  %1176 = vrot.lane.b32.xlu1 %v229_v1, %s2855_s5  ;;  %s228_s29 = scalar_lea.vmem [#allocation8], %s3073_s22  ;;  %s2869_s22 = smov [#allocation8]  }
  0x8b   : > { %s2228_s5 = sshll.u32 %s228_s29, 4  ;;  %s3187_s5 = int_to_ptr.vmem [resolvable:$true] %s2228_s5 }
  0x8c   : > { %s2745_s15 = scalar_lea.vmem %s3187_s5, 128 }
  0x8d   : > { %p2746_p6 = scmp.ne.s32.totalorder %s3187_s5, %s2745_s15 }
  0x8e   : > { %1255 = vrot.lane.b32.xlu0 %v229_v1, %s2856_s30  ;;  %1334 = vrot.lane.b32.xlu1 %v229_v1, %s2857_s24 }
  0x8f   : > { %p2747_p13 = pnand %p2746_p6, %p3011_p8 }
  0x91   : > { %p2748_p0 = pneg %p2747_p13 }
  0x92   : > { %1413 = vrot.lane.b32.xlu0 %v229_v1, %s2858_s6  ;;  %1492 = vrot.lane.b32.xlu1 %v229_v1, %s2859_s18  ;;  %s3185_s6 = scalar_lea.hbm %s3238_s3, %s2368_s26  ;;  %s2213_s18 = scalar_lea.sflag [#allocation4], %s204_s4 }
  0x96   : > { %1571 = vrot.lane.b32.xlu0 %v229_v1, %s2860_s7  ;;  %1650 = vrot.lane.b32.xlu1 %v229_v1, %s2861_s20  ;;  %s2749_s7 = sshll.u32 %s2869_s22, 4  ;;  %s2750_s7 = int_to_ptr.vmem [resolvable:$false] %s2749_s7 }
  0x97   : > { %s2751_s20 = scalar_lea.vmem %s2750_s7, 256  ;;  %p2752_p5 = scmp.lt.s32.totalorder %s3187_s5, %s2750_s7 }
  0x98   : > { %p2753_p9 = scmp.lt.s32.totalorder %s2751_s20, %s2745_s15 }
  0x9a   : > { %1729 = vrot.lane.b32.xlu0 %v229_v1, %s2862_s9  ;;  %1808 = vrot.lane.b32.xlu1 %v229_v1, %s2863_s10  ;;  %p2754_p12 = por %p2753_p9, %p2752_p5 }
  0x9c   : > { %p2755_p11 = pnand %p2754_p12, %p2748_p0 }
  0x9e   : > { %1887 = vrot.lane.b32.xlu0 %v229_v1, %s2865_s19  ;;  %1966 = vrot.lane.b32.xlu1 %v229_v1, %s2866_s27 }
  0xa2   : > { %2045 = vrot.lane.b32.xlu0 %v229_v1, %s2867_s28  ;;  %2124 = vrot.lane.b32.xlu1 %v229_v1, %s2868_s11 }
  0xa6   : > { %2204 = vperm.xlu0 %2658, %v2201_v4  }
  0xe8   : > { %v235_v6 = vpop.permute.xlu0 %234  ;;  %v466_v7 = vpop.permute.xlu1 %465 }
  0xe9   : > { %2422 = vmatpush3.msra.mxu0 %v235_v6  ;;  %2437 = vmatpush3.msra.mxu1 %v466_v7 }
  0xea   : > { %2424 = vmatmul.mubr.msk.f32.vlgmr.msra.gmra.mrb[0].mxu0 %vm237_vm1, %v232_v5  ;;  %2431 = vmatprep.subr.mxu0 %v2842_v0 }
  0xeb   : > { %2433 = vmatprep.mubr.msk.f32.mxu0 %vm2843_vm0, %v2842_v0  ;;  %2439 = vmatmul.mubr.msk.f32.vlgmr.msra.gmra.mrb[2].mxu1 %vm237_vm1, %v464_v8 }
  0xec   : > { %v387_v10 = vpop.permute.xlu0 %386  ;;  %v545_v11 = vpop.permute.xlu1 %544  ;;  %2446 = vmatprep.subr.mxu1 %v2842_v0  ;;  %2448 = vmatprep.mubr.msk.f32.mxu1 %vm2843_vm0, %v2842_v0 }
  0xed   : > { %2432 = vmatpush3.msra.mxu0 %v387_v10 }
  0xee   : > { %2434 = vmatmul.mubr.msk.f32.vlgmr.msra.gmra.mrb[2].mxu0 %vm237_vm1, %v385_v9  ;;  %2441 = vmatprep.subr.mxu0 %v2842_v0 }
  0xef   : > { %2442 = vmatpush3.msra.mxu0 %v545_v11  ;;  %2443 = vmatprep.mubr.msk.f32.mxu0 %vm2843_vm0, %v2842_v0 }
  0xf0   : > { %v624_v14 = vpop.permute.xlu0 %623  ;;  %v703_v15 = vpop.permute.xlu1 %702  ;;  %2451 = vmatprep.subr.mxu0 %v2842_v0 }
  0xf1   : > { %2447 = vmatpush3.msra.mxu1 %v624_v14 }
  0xf2   : > { %2444 = vmatmul.mubr.msk.f32.vlgmr.msra.gmra.mrb[4].mxu0 %vm237_vm1, %v543_v12  ;;  %2449 = vmatmul.mubr.msk.f32.vlgmr.msra.gmra.mrb[4].mxu1 %vm237_vm1, %v622_v13 }
  0xf3   : > { %2452 = vmatpush3.msra.mxu0 %v703_v15  ;;  %2453 = vmatprep.mubr.msk.f32.mxu0 %vm2843_vm0, %v2842_v0 }
  0xf4   : > { %v782_v18 = vpop.permute.xlu0 %781  ;;  %2456 = vmatprep.subr.mxu1 %v2842_v0  ;;  %2458 = vmatprep.mubr.msk.f32.mxu1 %vm2843_vm0, %v2842_v0  ;;  %v861_v19 = vpop.permute.xlu1 %860 }
  0xf5   : > { %2457 = vmatpush3.msra.mxu1 %v782_v18  ;;  %2461 = vmatprep.subr.mxu0 %v2842_v0 }
  0xf6   : > { %2454 = vmatmul.mubr.msk.f32.vlgmr.msra.gmra.mrb[6].mxu0 %vm237_vm1, %v701_v16  ;;  %2459 = vmatmul.mubr.msk.f32.vlgmr.msra.gmra.mrb[6].mxu1 %vm237_vm1, %v780_v17 }
  0xf7   : > { %2462 = vmatpush3.msra.mxu0 %v861_v19  ;;  %2463 = vmatprep.mubr.msk.f32.mxu0 %vm2843_vm0, %v2842_v0 }
  0xf8   : > { %v940_v22 = vpop.permute.xlu0 %939  ;;  %2466 = vmatprep.subr.mxu1 %v2842_v0  ;;  %2468 = vmatprep.mubr.msk.f32.mxu1 %vm2843_vm0, %v2842_v0  ;;  %v1019_v23 = vpop.permute.xlu1 %1018 }
  0xf9   : > { %2467 = vmatpush3.msra.mxu1 %v940_v22  ;;  %2471 = vmatprep.subr.mxu0 %v2842_v0 }
  0xfa   : > { %2464 = vmatmul.mubr.msk.f32.vlgmr.msra.gmra.mrb[8].mxu0 %vm237_vm1, %v859_v20  ;;  %2469 = vmatmul.mubr.msk.f32.vlgmr.msra.gmra.mrb[8].mxu1 %vm237_vm1, %v938_v21 }
  0xfb   : > { %2472 = vmatpush3.msra.mxu0 %v1019_v23  ;;  %2473 = vmatprep.mubr.msk.f32.mxu0 %vm2843_vm0, %v2842_v0 }
  0xfc   : > { %v1098_v26 = vpop.permute.xlu0 %1097  ;;  %2476 = vmatprep.subr.mxu1 %v2842_v0  ;;  %2478 = vmatprep.mubr.msk.f32.mxu1 %vm2843_vm0, %v2842_v0  ;;  %v1177_v27 = vpop.permute.xlu1 %1176 }
  0xfd   : > { %2477 = vmatpush3.msra.mxu1 %v1098_v26  ;;  %2481 = vmatprep.subr.mxu0 %v2842_v0 }
  0xfe   : > { %2474 = vmatmul.mubr.msk.f32.vlgmr.msra.gmra.mrb[10].mxu0 %vm237_vm1, %v1017_v24  ;;  %2479 = vmatmul.mubr.msk.f32.vlgmr.msra.gmra.mrb[10].mxu1 %vm237_vm1, %v1096_v25 }
  0xff   : > { %2482 = vmatpush3.msra.mxu0 %v1177_v27  ;;  %2483 = vmatprep.mubr.msk.f32.mxu0 %vm2843_vm0, %v2842_v0 }
 0x100   : > { %v1256_v30 = vpop.permute.xlu0 %1255  ;;  %2486 = vmatprep.subr.mxu1 %v2842_v0  ;;  %2488 = vmatprep.mubr.msk.f32.mxu1 %vm2843_vm0, %v2842_v0  ;;  %v1335_v31 = vpop.permute.xlu1 %1334 }
 0x101   : > { %2487 = vmatpush3.msra.mxu1 %v1256_v30  ;;  %2491 = vmatprep.subr.mxu0 %v2842_v0 }
 0x102   : > { %2484 = vmatmul.mubr.msk.f32.vlgmr.msra.gmra.mrb[12].mxu0 %vm237_vm1, %v1175_v28  ;;  %2489 = vmatmul.mubr.msk.f32.vlgmr.msra.gmra.mrb[12].mxu1 %vm237_vm1, %v1254_v29 }
 0x103   : > { %2492 = vmatpush3.msra.mxu0 %v1335_v31  ;;  %2493 = vmatprep.mubr.msk.f32.mxu0 %vm2843_vm0, %v2842_v0 }
 0x104   : > { %v1414_v34 = vpop.permute.xlu0 %1413  ;;  %2496 = vmatprep.subr.mxu1 %v2842_v0  ;;  %2498 = vmatprep.mubr.msk.f32.mxu1 %vm2843_vm0, %v2842_v0  ;;  %v1493_v35 = vpop.permute.xlu1 %1492 }
 0x105   : > { %2497 = vmatpush3.msra.mxu1 %v1414_v34  ;;  %2501 = vmatprep.subr.mxu0 %v2842_v0 }
 0x106   : > { %2494 = vmatmul.mubr.msk.f32.vlgmr.msra.gmra.mrb[14].mxu0 %vm237_vm1, %v1333_v32  ;;  %2499 = vmatmul.mubr.msk.f32.vlgmr.msra.gmra.mrb[14].mxu1 %vm237_vm1, %v1412_v33 }
 0x107   : > { %2502 = vmatpush3.msra.mxu0 %v1493_v35  ;;  %2503 = vmatprep.mubr.msk.f32.mxu0 %vm2843_vm0, %v2842_v0 }
 0x108   : > { %v1572_v38 = vpop.permute.xlu0 %1571  ;;  %2506 = vmatprep.subr.mxu1 %v2842_v0  ;;  %2508 = vmatprep.mubr.msk.f32.mxu1 %vm2843_vm0, %v2842_v0  ;;  %v1651_v39 = vpop.permute.xlu1 %1650 }
 0x109   : > { %2507 = vmatpush3.msra.mxu1 %v1572_v38  ;;  %2511 = vmatprep.subr.mxu0 %v2842_v0 }
 0x10a   : > { %2504 = vmatmul.mubr.msk.f32.vlgmr.msra.gmra.mrb[16].mxu0 %vm237_vm1, %v1491_v36  ;;  %2509 = vmatmul.mubr.msk.f32.vlgmr.msra.gmra.mrb[16].mxu1 %vm237_vm1, %v1570_v37 }
 0x10b   : > { %2512 = vmatpush3.msra.mxu0 %v1651_v39  ;;  %2513 = vmatprep.mubr.msk.f32.mxu0 %vm2843_vm0, %v2842_v0 }
 0x10c   : > { %v1730_v42 = vpop.permute.xlu0 %1729  ;;  %2516 = vmatprep.subr.mxu1 %v2842_v0  ;;  %2518 = vmatprep.mubr.msk.f32.mxu1 %vm2843_vm0, %v2842_v0  ;;  %v1809_v43 = vpop.permute.xlu1 %1808 }
 0x10d   : > { %2517 = vmatpush3.msra.mxu1 %v1730_v42  ;;  %2521 = vmatprep.subr.mxu0 %v2842_v0 }
 0x10e   : > { %2514 = vmatmul.mubr.msk.f32.vlgmr.msra.gmra.mrb[18].mxu0 %vm237_vm1, %v1649_v40  ;;  %2519 = vmatmul.mubr.msk.f32.vlgmr.msra.gmra.mrb[18].mxu1 %vm237_vm1, %v1728_v41 }
 0x10f   : > { %2522 = vmatpush3.msra.mxu0 %v1809_v43  ;;  %2523 = vmatprep.mubr.msk.f32.mxu0 %vm2843_vm0, %v2842_v0 }
 0x110   : > { %v1888_v46 = vpop.permute.xlu0 %1887  ;;  %2526 = vmatprep.subr.mxu1 %v2842_v0  ;;  %2528 = vmatprep.mubr.msk.f32.mxu1 %vm2843_vm0, %v2842_v0  ;;  %v1967_v47 = vpop.permute.xlu1 %1966 }
 0x111   : > { %2527 = vmatpush3.msra.mxu1 %v1888_v46  ;;  %2531 = vmatprep.subr.mxu0 %v2842_v0 }
 0x112   : > { %2524 = vmatmul.mubr.msk.f32.vlgmr.msra.gmra.mrb[20].mxu0 %vm237_vm1, %v1807_v44  ;;  %2529 = vmatmul.mubr.msk.f32.vlgmr.msra.gmra.mrb[20].mxu1 %vm237_vm1, %v1886_v45 }
 0x113   : > { %2532 = vmatpush3.msra.mxu0 %v1967_v47  ;;  %2533 = vmatprep.mubr.msk.f32.mxu0 %vm2843_vm0, %v2842_v0 }
 0x114   : > { %v2046_v50 = vpop.permute.xlu0 %2045  ;;  %2536 = vmatprep.subr.mxu1 %v2842_v0  ;;  %2538 = vmatprep.mubr.msk.f32.mxu1 %vm2843_vm0, %v2842_v0  ;;  %v2125_v51 = vpop.permute.xlu1 %2124 }
 0x115   : > { %2537 = vmatpush3.msra.mxu1 %v2046_v50  ;;  %2541 = vmatprep.subr.mxu0 %v2842_v0 }
 0x116   : > { %2534 = vmatmul.mubr.msk.f32.vlgmr.msra.gmra.mrb[22].mxu0 %vm237_vm1, %v1965_v48  ;;  %2539 = vmatmul.mubr.msk.f32.vlgmr.msra.gmra.mrb[22].mxu1 %vm237_vm1, %v2044_v49 }
 0x117   : > { %2542 = vmatpush3.msra.mxu0 %v2125_v51  ;;  %2543 = vmatprep.mubr.msk.f32.mxu0 %vm2843_vm0, %v2842_v0 }
 0x11a   : > { %2544 = vmatmul.mubr.msk.f32.vlgmr.msra.gmra.mrb[24].mxu0 %vm237_vm1, %v2123_v52 }
 0x14b   : > { %v380_v53 = vpop.f32.mrb[0].mxu1 }
 0x14c   : > { %v2430_v54 = vpop.f32.mrb[1].mxu1 }
 0x1bd   : > { %v307_v55 = vpop.f32.mrb[0].mxu0 }
 0x1be   : > { %v381_v56 = vadd.f32 %v380_v53, %v307_v55  ;;  %v2425_v57 = vpop.f32.mrb[1].mxu0  ;;  %v537_v58 = vpop.f32.mrb[2].mxu1 }
 0x1bf   : > { %v2440_v59 = vpop.f32.mrb[3].mxu1 }
 0x1c1   : > { %v458_v60 = vpop.f32.mrb[2].mxu0 }
 0x1c2   : > { %v462_v61 = vadd.f32 %v458_v60, %v381_v56  ;;  %v2435_v62 = vpop.f32.mrb[3].mxu0 }
 0x1c4   : > { %v541_v63 = vadd.f32 %v537_v58, %v462_v61  ;;  %v2205_v61 = vpop.permute.xlu0 %2204 }
 0x1c5   : > { %v616_v1 = vpop.f32.mrb[4].mxu0  ;;  %v695_v2 = vpop.f32.mrb[4].mxu1 }
 0x1c6   : > { %v620_v3 = vadd.f32 %v616_v1, %v541_v63  ;;  %v2445_v4 = vpop.f32.mrb[5].mxu0  ;;  %v2450_v5 = vpop.f32.mrb[5].mxu1 }
 0x1c8   : > { %v699_v0 = vadd.f32 %v695_v2, %v620_v3 }
 0x1c9   : > { %v774_v6 = vpop.f32.mrb[6].mxu0  ;;  %v853_v7 = vpop.f32.mrb[6].mxu1 }
 0x1ca   : > { %v778_v8 = vadd.f32 %v774_v6, %v699_v0  ;;  %v2455_v9 = vpop.f32.mrb[7].mxu0  ;;  %v2460_v10 = vpop.f32.mrb[7].mxu1 }
 0x1cc   : > { %v857_v11 = vadd.f32 %v853_v7, %v778_v8 }
 0x1cd   : > { %v932_v12 = vpop.f32.mrb[8].mxu0  ;;  %v1011_v13 = vpop.f32.mrb[8].mxu1 }
 0x1ce   : > { %v936_v14 = vadd.f32 %v932_v12, %v857_v11  ;;  %v2465_v15 = vpop.f32.mrb[9].mxu0  ;;  %v2470_v16 = vpop.f32.mrb[9].mxu1 }
 0x1d0   : > { %v1015_v17 = vadd.f32 %v1011_v13, %v936_v14 }
 0x1d1   : > { %v1090_v18 = vpop.f32.mrb[10].mxu0  ;;  %v1169_v19 = vpop.f32.mrb[10].mxu1 }
 0x1d2   : > { %v1094_v20 = vadd.f32 %v1090_v18, %v1015_v17  ;;  %v2475_v21 = vpop.f32.mrb[11].mxu0  ;;  %v2480_v22 = vpop.f32.mrb[11].mxu1 }
 0x1d4   : > { %v1173_v23 = vadd.f32 %v1169_v19, %v1094_v20 }
 0x1d5   : > { %v1248_v24 = vpop.f32.mrb[12].mxu0  ;;  %v1327_v25 = vpop.f32.mrb[12].mxu1 }
 0x1d6   : > { %v1252_v26 = vadd.f32 %v1248_v24, %v1173_v23  ;;  %v2485_v27 = vpop.f32.mrb[13].mxu0  ;;  %v2490_v28 = vpop.f32.mrb[13].mxu1 }
 0x1d8   : > { %v1331_v29 = vadd.f32 %v1327_v25, %v1252_v26 }
 0x1d9   : > { %v1406_v30 = vpop.f32.mrb[14].mxu0  ;;  %v1485_v31 = vpop.f32.mrb[14].mxu1 }
 0x1da   : > { %v1410_v32 = vadd.f32 %v1406_v30, %v1331_v29  ;;  %v2495_v33 = vpop.f32.mrb[15].mxu0  ;;  %v2500_v34 = vpop.f32.mrb[15].mxu1 }
 0x1dc   : > { %v1489_v35 = vadd.f32 %v1485_v31, %v1410_v32 }
 0x1dd   : > { %v1564_v36 = vpop.f32.mrb[16].mxu0  ;;  %v1643_v37 = vpop.f32.mrb[16].mxu1 }
 0x1de   : > { %v1568_v38 = vadd.f32 %v1564_v36, %v1489_v35  ;;  %v2505_v39 = vpop.f32.mrb[17].mxu0  ;;  %v2510_v40 = vpop.f32.mrb[17].mxu1 }
 0x1e0   : > { %v1647_v41 = vadd.f32 %v1643_v37, %v1568_v38 }
 0x1e1   : > { %v1722_v42 = vpop.f32.mrb[18].mxu0  ;;  %v1801_v43 = vpop.f32.mrb[18].mxu1 }
 0x1e2   : > { %v1726_v44 = vadd.f32 %v1722_v42, %v1647_v41  ;;  %v2515_v45 = vpop.f32.mrb[19].mxu0  ;;  %v2520_v46 = vpop.f32.mrb[19].mxu1 }
 0x1e4   : > { %v1805_v47 = vadd.f32 %v1801_v43, %v1726_v44 }
 0x1e5   : > { %v1880_v48 = vpop.f32.mrb[20].mxu0  ;;  %v1959_v49 = vpop.f32.mrb[20].mxu1 }
 0x1e6   : > { %v1884_v50 = vadd.f32 %v1880_v48, %v1805_v47  ;;  %v2525_v51 = vpop.f32.mrb[21].mxu0  ;;  %v2530_v52 = vpop.f32.mrb[21].mxu1 }
 0x1e8   : > { %v1963_v53 = vadd.f32 %v1959_v49, %v1884_v50 }
 0x1e9   : > { %v2038_v54 = vpop.f32.mrb[22].mxu0  ;;  %v2117_v55 = vpop.f32.mrb[22].mxu1 }
 0x1ea   : > { %v2042_v56 = vadd.f32 %v2038_v54, %v1963_v53  ;;  %v2535_v57 = vpop.f32.mrb[23].mxu0  ;;  %v2540_v58 = vpop.f32.mrb[23].mxu1 }
 0x1ec   : > { %v2121_v59 = vadd.f32 %v2117_v55, %v2042_v56 }
 0x1ed   : > { %v2196_v60 = vpop.f32.mrb[24].mxu0 }
 0x1ee   : > { %v2200_v62 = vadd.f32 %v2196_v60, %v2121_v59  ;;  %v2545_v63 = vpop.f32.mrb[25].mxu0 }
 0x1f0   : > { %v2207_v1 = vadd.f32 %v2205_v61, %v2200_v62 }
 0x1f2   : > { %vm2208_vm2 = vcmp.ge.f32.partialorder %v2207_v1, 0.0  ;;  %v2209_v2 = vmul.f32 0.01, %v2207_v1 }
 0x1f4   : > { %v2210_v3 = vsel %vm2208_vm2, %v2207_v1, %v2209_v2 }
 0x1f5   : > { %2211 = vst.msk [vmem:[%s228_s29] sm:$0xff] %vm237_vm1, %v2210_v3 }
 0x1f6   : > { %2758 = shalt.err (!%p2755_p11)
}
 0x1f7   : > { %s2759_s4 = scalar_lea.hbm %s3185_s6, 128  ;;  %s2763_s19 = scalar_lea.hbm %s3238_s3, 2048 }
 0x1f8   : > { %p2760_p7 = scmp.ne.s32.totalorder %s3185_s6, %s2759_s4  ;;  %p2764_p2 = scmp.lt.u32.totalorder %s3185_s6, %s3238_s3 }
 0x1f9   : > { %p2765_p4 = scmp.lt.u32.totalorder %s2763_s19, %s2759_s4  ;;  %p2767_p6 = scmp.lt.u32.totalorder %s2759_s4, %s3185_s6 }
 0x1fa   : > { %p2761_p3 = pnand %p2760_p7, %p3011_p8 }
 0x1fb   : > { %p2766_p10 = por %p2765_p4, %p2764_p2 }
 0x1fc   : > { %p2762_p1 = pneg %p2761_p3 }
 0x1fd   : > { %p2768_p13 = por %p2767_p6, %p2766_p10 }
 0x1ff   : > { %p2769_p0 = pnand %p2768_p13, %p2762_p1 }
 0x201   : > { %2772 = shalt.err (!%p2769_p0)
}
 0x202   : > { %2556 = dma.vmem_to_hbm [thread:$0]  (%p3011_p8), %s3187_s5, 128, %s3185_s6, %s2213_s18  }
 0x203 PF: > { %p2578_p5 = scmp.ge.s32.totalorder %s2835_s17, 2  ;;  %s2240_s11 = sand.u32 1, %s2815_s12  }
 0x204   : > { %p3255_p9 = scmp.ne.s32.totalorder %s3243_s21, 0  ;;  %s2241_s26 = scalar_lea.sflag [#allocation4], %s2240_s11 }
 0x206   : > { %p2570_p12 = pnand %p2578_p5, %p3255_p9 }
 0x208   : > { %2810 = dma.done.wait (!%p2570_p12), %s2241_s26, 128  }
 0x209   : > { %2812 = vsyncadd (!%p2570_p12), %s2241_s26, 4294967168  ;;  %s18_s17 = sadd.s32 1, %s2835_s17   ;;  %s3256_s12 = smov %s2819_s13 }
 0x20a   : > { %p15_p11 = scmp.ge.s32.totalorder %s18_s17, 18   ;;  %s3257_s13 = smov %s2823_s14 }
 0x20b   : > { %s3258_s14 = smov %s3021_s23  ;;  %s3259_s15 = smov %s2831_s16 }
 0x20c   : > { %s3260_s16 = smov %s3262_s8  ;;  %17 = sbr.rel (!%p15_p11) target bundleno = 6 (0x6), region = 108 }
 0x213   :  { %2246 = vsyncpa [#allocation3], 1 }
 0x214   :  { %2248 = vsyncpa [#allocation3 + $0x1], 1 }
 0x215   :  { %2249 = vsyncpa [#allocation6], 1 }
 0x216   :  { %2250 = vsyncpa [#allocation4], 1 }
 0x217   :  { %2252 = vsyncpa [#allocation4 + $0x1], 1 }

</bundles_post_ra>
